<compile_context>
chip_gen: v7x
topology: tpu7x:2x2x1
jax: 0.10.0
libtpu: 0.0.40
codegen_flags: <defaults>
</compile_context>

<pallas_src>
import functools

import jax
import jax.numpy as jnp
from jax.experimental import pallas as pl
from jax.experimental.pallas import tpu as pltpu

LRELU_SLOPE = 0.2
BN_EPS = 1e-5
LANE = 128
TK_MAX = 2048                      # max K slab streamed per grid step


def _round_up(x, m):
    return (x + m - 1) // m * m


def _vmem_config():
    """Generation-aware VMEM budgeting (v7x: 64 MiB, v5e/v6e: 128 MiB)."""
    cap = 64 * 1024 * 1024
    try:
        cap = int(getattr(pltpu.get_tpu_info(), "vmem_capacity_bytes", cap))
    except Exception:
        pass
    if cap >= 96 * 1024 * 1024:                       # v5e / v6e (128 MiB VMEM)
        return 72 * 1024 * 1024, 96 * 1024 * 1024, 2048
    return 36 * 1024 * 1024, 48 * 1024 * 1024, 1024    # v7x (64 MiB VMEM)


VMEM_BUDGET, VMEM_LIMIT, MAX_TM = _vmem_config()


# --------------------------------------------------------------------------
# Pallas kernels.  All matmul kernels: grid = (M tiles, K slabs), f32 VMEM
# accumulator, bf16 lane-dense stores.
# --------------------------------------------------------------------------
def _conv_lrelu_kernel(p_ref, w_ref, o_ref, acc_ref):
    kk = pl.program_id(1)

    @pl.when(kk == 0)
    def _():
        acc_ref[...] = jnp.zeros_like(acc_ref)

    acc_ref[...] += jnp.dot(p_ref[...], w_ref[...],
                            preferred_element_type=jnp.float32)

    @pl.when(kk == pl.num_programs(1) - 1)
    def _():
        y = acc_ref[...]                                  # f32 math (v5e-safe)
        o_ref[...] = jnp.where(y > 0, y, LRELU_SLOPE * y).astype(o_ref.dtype)


def _conv_stats_kernel(p_ref, w_ref, y_ref, s1_ref, s2_ref, acc_ref):
    # Phase 1 of the BN layers: matmul + per-tile per-channel sum / sum-sq.
    kk = pl.program_id(1)

    @pl.when(kk == 0)
    def _():
        acc_ref[...] = jnp.zeros_like(acc_ref)

    acc_ref[...] += jnp.dot(p_ref[...], w_ref[...],
                            preferred_element_type=jnp.float32)

    @pl.when(kk == pl.num_programs(1) - 1)
    def _():
        y = acc_ref[...]                                  # f32 stats
        y_ref[...] = y.astype(y_ref.dtype)                # bf16 intermediate
        s1_ref[...] = jnp.sum(y, axis=0, keepdims=True)[None]        # (1,1,C)
        s2_ref[...] = jnp.sum(y * y, axis=0, keepdims=True)[None]    # (1,1,C)


def _bn_lrelu_kernel(y_ref, sc_ref, sh_ref, o_ref):
    # Phase 2: y * scale + shift (BN folded), then LeakyReLU.  f32 math.
    y = y_ref[...].astype(jnp.float32) * sc_ref[...] + sh_ref[...]
    o_ref[...] = jnp.where(y > 0, y, LRELU_SLOPE * y).astype(o_ref.dtype)


# --------------------------------------------------------------------------
# Plain-JAX glue: im2col layout, tiling choice, padding.
# --------------------------------------------------------------------------
def _extract_patches(x_nhwc, c_true, kh, kw, stride, pad):
    """im2col: (N,H,W,C) -> (N*OH*OW, KH*KW*c_true); column order (kh, kw, c).
    Channels are sliced to c_true BEFORE the slab stack and the input is bf16,
    so the materialized temporary is as small as possible."""
    x = x_nhwc[..., :c_true]
    if pad:
        x = jnp.pad(x, ((0, 0), (pad, pad), (pad, pad), (0, 0)))
    n, hp, wp, c = x.shape
    oh = (hp - kh) // stride + 1
    ow = (wp - kw) // stride + 1
    slabs = []
    for i in range(kh):
        for j in range(kw):
            slabs.append(x[:, i:i + stride * oh:stride, j:j + stride * ow:stride, :])
    p = jnp.stack(slabs, axis=3)                       # (N, OH, OW, KH*KW, C)
    return p.reshape(n * oh * ow, kh * kw * c), (n, oh, ow)


def _choose_tiles(m, k, cpad):
    """Pick (tm, tk, kp): biggest tiles whose pipelined working set fits VMEM."""
    def working_set(tm, tk):
        return (2 * tm * tk * 2          # bf16 patch tile   (double-buffered)
                + 2 * tk * cpad * 2      # bf16 weight slab  (double-buffered)
                + 2 * tm * cpad * 2      # bf16 output tile  (double-buffered)
                + tm * cpad * 4          # f32 accumulator scratch
                + 8 * cpad * 4)          # per-tile channel sums (stats kernel)

    tm_cands = ([m] if m <= MAX_TM else []) + \
        [t for t in (2048, 1024, 512, 256, 128) if t <= MAX_TM and t < m]
    tk_cands = [k] if k <= TK_MAX else [TK_MAX, 1024, 512, 256]
    for tk in tk_cands:
        for tm in tm_cands:
            if working_set(tm, tk) <= VMEM_BUDGET:
                return tm, tk, _round_up(k, tk)
    tk = tk_cands[-1]
    return 128, tk, _round_up(k, tk)


def _prep_matmul(x, w_mat, cin, kh, kw, stride, pad):
    k, cpad = w_mat.shape
    patches, (n, oh, ow) = _extract_patches(x, cin, kh, kw, stride, pad)
    patches = patches.astype(jnp.bfloat16)             # bf16 MXU operand
    m = patches.shape[0]
    tm, tk, kp = _choose_tiles(m, k, cpad)
    mpad = _round_up(m, tm)
    if mpad > m or kp > k:
        patches = jnp.pad(patches, ((0, mpad - m), (0, kp - k)))
    w = jnp.pad(w_mat, ((0, kp - k), (0, 0))) if kp > k else w_mat
    return patches, w, m, mpad, kp, cpad, tm, tk, (n, oh, ow)


def _cparams(sem):
    return pltpu.CompilerParams(dimension_semantics=sem,
                                vmem_limit_bytes=VMEM_LIMIT)


def _matmul_cost(mpad, kp, cpad):
    return pl.CostEstimate(
        flops=2 * mpad * kp * cpad,
        transcendentals=0,
        bytes_accessed=mpad * kp * 2 + kp * cpad * 2 + mpad * cpad * 2)


# --------------------------------------------------------------------------
# Conv layers (Pallas).
# --------------------------------------------------------------------------
def _conv_lrelu_layer(x, w_mat, cin, kh, kw, stride, pad):
    patches, w, m, mpad, kp, cpad, tm, tk, (n, oh, ow) = _prep_matmul(
        x, w_mat, cin, kh, kw, stride, pad)
    nt, nk = mpad // tm, kp // tk

    act = pl.pallas_call(
        _conv_lrelu_kernel,
        out_shape=jax.ShapeDtypeStruct((mpad, cpad), jnp.bfloat16),
        grid=(nt, nk),
        in_specs=[pl.BlockSpec((tm, tk), lambda i, kk: (i, kk)),
                  pl.BlockSpec((tk, cpad), lambda i, kk: (kk, 0))],
        out_specs=pl.BlockSpec((tm, cpad), lambda i, kk: (i, 0)),
        scratch_shapes=[pltpu.VMEM((tm, cpad), jnp.float32)],
        compiler_params=_cparams(("parallel", "arbitrary")),
        cost_estimate=_matmul_cost(mpad, kp, cpad),
    )(patches, w)
    return act[:m].reshape(n, oh, ow, cpad)


def _conv_bn_lrelu_layer(x, w_mat, gamma_p, beta_p, cin, kh, kw, stride, pad):
    patches, w, m, mpad, kp, cpad, tm, tk, (n, oh, ow) = _prep_matmul(
        x, w_mat, cin, kh, kw, stride, pad)
    nt, nk = mpad // tm, kp // tk

    # Phase 1: tiled matmul + per-tile channel sums (zero-padded rows contribute
    # exactly zero, so dividing by the true M gives PyTorch's biased batch stats).
    y, s1, s2 = pl.pallas_call(
        _conv_stats_kernel,
        out_shape=(jax.ShapeDtypeStruct((mpad, cpad), jnp.bfloat16),
                   jax.ShapeDtypeStruct((nt, 1, cpad), jnp.float32),
                   jax.ShapeDtypeStruct((nt, 1, cpad), jnp.float32)),
        grid=(nt, nk),
        in_specs=[pl.BlockSpec((tm, tk), lambda i, kk: (i, kk)),
                  pl.BlockSpec((tk, cpad), lambda i, kk: (kk, 0))],
        out_specs=(pl.BlockSpec((tm, cpad), lambda i, kk: (i, 0)),
                   pl.BlockSpec((1, 1, cpad), lambda i, kk: (i, 0, 0)),
                   pl.BlockSpec((1, 1, cpad), lambda i, kk: (i, 0, 0))),
        scratch_shapes=[pltpu.VMEM((tm, cpad), jnp.float32)],
        compiler_params=_cparams(("parallel", "arbitrary")),
        cost_estimate=_matmul_cost(mpad, kp, cpad),
    )(patches, w)

    # Tiny cross-tile reduction + fold BN into per-channel scale/shift (glue).
    mean = jnp.sum(s1, axis=0) / m                                   # (1, Cpad)
    var = jnp.maximum(jnp.sum(s2, axis=0) / m - mean * mean, 0.0)    # biased var
    scale = gamma_p * jax.lax.rsqrt(var + BN_EPS)
    shift = beta_p - mean * scale

    # Phase 2: tiled affine + LeakyReLU; output aliases the bf16 y buffer.
    act = pl.pallas_call(
        _bn_lrelu_kernel,
        out_shape=jax.ShapeDtypeStruct((mpad, cpad), jnp.bfloat16),
        grid=(nt,),
        in_specs=[pl.BlockSpec((tm, cpad), lambda i: (i, 0)),
                  pl.BlockSpec((1, cpad), lambda i: (0, 0)),
                  pl.BlockSpec((1, cpad), lambda i: (0, 0))],
        out_specs=pl.BlockSpec((tm, cpad), lambda i: (i, 0)),
        input_output_aliases={0: 0},
        compiler_params=_cparams(("parallel",)),
    )(y, scale, shift)
    return act[:m].reshape(n, oh, ow, cpad)


# --------------------------------------------------------------------------
# Parameters.
# --------------------------------------------------------------------------
def init_params(key, ndf, nc):
    chans = [nc, ndf, ndf * 2, ndf * 4, ndf * 8, ndf * 16, 1]
    params = []
    for li in range(6):
        key, sub = jax.random.split(key)
        w = 0.02 * jax.random.normal(
            sub, (chans[li + 1], chans[li], 4, 4), dtype=jnp.float32)
        layer = {"w": w}
        if 1 <= li <= 4:      # layers with BatchNorm2d
            layer["gamma"] = jnp.ones((chans[li + 1],), jnp.float32)
            layer["beta"] = jnp.zeros((chans[li + 1],), jnp.float32)
        params.append(layer)
    return params


def prepare_params(params):
    """One-time weight re-layout, hoisted out of the forward pass.
    K (= kh*kw*cin) is kept unpadded; Cout is lane-padded to 128."""
    prepped = []
    n_layers = len(params)
    for li, layer in enumerate(params):
        cout, cin, kh, kw = layer["w"].shape
        w_cols = jnp.transpose(layer["w"], (2, 3, 1, 0)).reshape(kh * kw * cin, cout)
        if li == n_layers - 1:
            prepped.append({"w_vec": w_cols})          # final conv: plain-JAX matvec
            continue
        cpad = _round_up(cout, LANE)
        w_mat = jnp.pad(w_cols, ((0, 0), (0, cpad - cout)))
        entry = {"w_mat": w_mat.astype(jnp.bfloat16)}
        if "gamma" in layer:
            entry["gamma"] = jnp.pad(layer["gamma"], (0, cpad - cout)).reshape(1, cpad)
            entry["beta"] = jnp.pad(layer["beta"], (0, cpad - cout)).reshape(1, cpad)
        prepped.append(entry)
    return prepped


def make_static_cfg(params):
    cfg = []
    n_layers = len(params)
    for li, layer in enumerate(params):
        cout, cin, kh, kw = layer["w"].shape
        stride, pad = ((1, 0) if li == n_layers - 1 else (2, 1))
        cfg.append((int(cin), int(cout), int(kh), int(kw), stride, pad,
                    "gamma" in layer))
    return tuple(cfg)


# --------------------------------------------------------------------------
# Discriminator forward.  Input: NCHW float32, spatial 128x128.
# --------------------------------------------------------------------------
@functools.partial(jax.jit, static_argnums=(2,))
def discriminator_forward(x_nchw, prepped, cfg):
    # NCHW -> NHWC once, and straight to bf16 (all HBM activations are bf16).
    x = jnp.transpose(x_nchw, (0, 2, 3, 1)).astype(jnp.bfloat16)
    for li in range(len(cfg) - 1):
        cin, cout, kh, kw, stride, pad, has_bn = cfg[li]
        if has_bn:
            x = _conv_bn_lrelu_layer(x, prepped[li]["w_mat"], prepped[li]["gamma"],
                                     prepped[li]["beta"], cin, kh, kw, stride, pad)
        else:
            x = _conv_lrelu_layer(x, prepped[li]["w_mat"], cin, kh, kw, stride, pad)
    # Final 4x4 conv (Cout=1) + Flatten + Sigmoid: a tiny matrix-vector product,
    # evaluated in plain JAX (avoids an MXU launch + a 1-lane masked store).
    cin, cout, kh, kw, stride, pad, _ = cfg[-1]
    patches, (n, oh, ow) = _extract_patches(x, cin, kh, kw, stride, pad)
    logits = jnp.dot(patches.astype(jnp.float32), prepped[-1]["w_vec"],
                     preferred_element_type=jnp.float32)
    return jax.nn.sigmoid(logits).reshape(n, oh * ow * cout)


# --------------------------------------------------------------------------
# Pure-JAX reference (sanity check only).
# --------------------------------------------------------------------------
def _ref_forward(x_nchw, params):
    def conv(x, w, stride, pad):
        return jax.lax.conv_general_dilated(
            x, w, (stride, stride), [(pad, pad), (pad, pad)],
            dimension_numbers=("NCHW", "OIHW", "NCHW"),
            precision=jax.lax.Precision.HIGHEST)

    def lrelu(x):
        return jnp.where(x > 0, x, LRELU_SLOPE * x)

    def bn(x, g, b):
        m = jnp.mean(x, axis=(0, 2, 3), keepdims=True)
        v = jnp.mean(jnp.square(x - m), axis=(0, 2, 3), keepdims=True)
        xh = (x - m) * jax.lax.rsqrt(v + BN_EPS)
        return xh * g.reshape(1, -1, 1, 1) + b.reshape(1, -1, 1, 1)

    x = lrelu(conv(x_nchw, params[0]["w"], 2, 1))
    for li in range(1, 5):
        x = lrelu(bn(conv(x, params[li]["w"], 2, 1),
                     params[li]["gamma"], params[li]["beta"]))
    x = jax.nn.sigmoid(conv(x, params[5]["w"], 1, 0))
    return x.reshape(x.shape[0], -1)


if __name__ == "__main__":
    key = jax.random.PRNGKey(0)
    k_x, k_p = jax.random.split(key)

    batch, nc, ndf, spatial = 2, 3, 4, 128   # 128x128 -> 1x1 through the conv stack
    x = jax.random.normal(k_x, (batch, nc, spatial, spatial), dtype=jnp.float32)
    params = init_params(k_p, ndf, nc)
    prepped = prepare_params(params)         # one-time weight re-layout (hoisted)
    cfg = make_static_cfg(params)

    out = discriminator_forward(x, prepped, cfg)
    out = jax.block_until_ready(out)
    assert out.shape == (batch, 1), out.shape

    ref = jax.block_until_ready(_ref_forward(x, params))
    # bf16 MXU operands + bf16 HBM activations with f32 accumulation/statistics:
    # BN renormalizes per layer, so a slightly looser tolerance vs. the f32
    # reference is expected and sufficient.
    assert jnp.allclose(out, ref, rtol=3e-2, atol=3e-2), (out, ref)

    print("KERNEL_OK")
</pallas_src>

<mosaic_0001>
module attributes {stable_mosaic.version = 11 : i64} {
  func.func @_conv_lrelu_kernel(%arg0: i32, %arg1: i32, %arg2: memref<1024x48xbf16, #tpu.memory_space<vmem>>, %arg3: memref<48x128xbf16, #tpu.memory_space<vmem>>, %arg4: memref<1024x128xbf16, #tpu.memory_space<vmem>>, %arg5: memref<1024x128xf32, #tpu.memory_space<vmem>>) attributes {dimension_semantics = [#tpu.dimension_semantics<parallel>, #tpu.dimension_semantics<arbitrary>], iteration_bounds = array<i64: 8, 1>, scalar_prefetch = 0 : i64, scratch_operands = 1 : i64, tpu.core_type = #tpu.core_type<tc>, window_params = [{transform_indices = @transform_0, window_bounds = array<i64: 1024, 48>}, {transform_indices = @transform_1, window_bounds = array<i64: 48, 128>}, {transform_indices = @transform_2, window_bounds = array<i64: 1024, 128>}]} {
    %c0_i32 = arith.constant 0 : i32
    %0 = arith.cmpi eq, %arg1, %c0_i32 : i32
    %1 = arith.extui %0 : i1 to i32
    %c0_i32_0 = arith.constant 0 : i32
    %2 = arith.cmpi ne, %1, %c0_i32_0 : i32
    scf.if %2 {
      %cst_10 = arith.constant 0.000000e+00 : f32
      %12 = vector.broadcast %cst_10 : f32 to vector<1024x128xf32>
      %c0_11 = arith.constant 0 : index
      %c0_12 = arith.constant 0 : index
      %13 = vector.load %arg5[%c0_11, %c0_12] : memref<1024x128xf32, #tpu.memory_space<vmem>>, vector<1024x128xf32>
      tpu.vector_store %arg5[%c0_11, %c0_12], %12 {strides = array<i32>} : memref<1024x128xf32, #tpu.memory_space<vmem>>, vector<1024x128xf32>,
    } else {
    }
    %c0 = arith.constant 0 : index
    %c0_1 = arith.constant 0 : index
    %3 = vector.load %arg5[%c0, %c0_1] : memref<1024x128xf32, #tpu.memory_space<vmem>>, vector<1024x128xf32>
    %c0_2 = arith.constant 0 : index
    %c0_3 = arith.constant 0 : index
    %4 = vector.load %arg2[%c0_2, %c0_3] : memref<1024x48xbf16, #tpu.memory_space<vmem>>, vector<1024x48xbf16>
    %c0_4 = arith.constant 0 : index
    %c0_5 = arith.constant 0 : index
    %5 = vector.load %arg3[%c0_4, %c0_5] : memref<48x128xbf16, #tpu.memory_space<vmem>>, vector<48x128xbf16>
    %cst = arith.constant dense<0.000000e+00> : vector<1024x128xf32>
    %6 = tpu.matmul %4, %5, %cst {dimension_numbers = #tpu.dot_dimension_numbers<[1], [0], [0], [1], [0, 0, 1, 1], [], []>} : vector<1024x48xbf16>, vector<48x128xbf16>, vector<1024x128xf32> -> vector<1024x128xf32>
    %7 = arith.addf %3, %6 : vector<1024x128xf32>
    %c0_6 = arith.constant 0 : index
    %c0_7 = arith.constant 0 : index
    %8 = vector.load %arg5[%c0_6, %c0_7] : memref<1024x128xf32, #tpu.memory_space<vmem>>, vector<1024x128xf32>
    tpu.vector_store %arg5[%c0_6, %c0_7], %7 {strides = array<i32>} : memref<1024x128xf32, #tpu.memory_space<vmem>>, vector<1024x128xf32>,
    %c0_i32_8 = arith.constant 0 : i32
    %9 = arith.cmpi eq, %arg1, %c0_i32_8 : i32
    %10 = arith.extui %9 : i1 to i32
    %c0_i32_9 = arith.constant 0 : i32
    %11 = arith.cmpi ne, %10, %c0_i32_9 : i32
    scf.if %11 {
      %c0_10 = arith.constant 0 : index
      %c0_11 = arith.constant 0 : index
      %12 = vector.load %arg5[%c0_10, %c0_11] : memref<1024x128xf32, #tpu.memory_space<vmem>>, vector<1024x128xf32>
      %cst_12 = arith.constant 0.000000e+00 : f32
      %13 = vector.broadcast %cst_12 : f32 to vector<1024x128xf32>
      %14 = arith.cmpf ogt, %12, %13 : vector<1024x128xf32>
      %cst_13 = arith.constant 2.000000e-01 : f32
      %15 = vector.broadcast %cst_13 : f32 to vector<1024x128xf32>
      %16 = arith.mulf %15, %12 : vector<1024x128xf32>
      %17 = arith.select %14, %12, %16 : vector<1024x128xi1>, vector<1024x128xf32>
      %18 = arith.truncf %17 : vector<1024x128xf32> to vector<1024x128xbf16>
      %c0_14 = arith.constant 0 : index
      %c0_15 = arith.constant 0 : index
      %19 = vector.load %arg4[%c0_14, %c0_15] : memref<1024x128xbf16, #tpu.memory_space<vmem>>, vector<1024x128xbf16>
      tpu.vector_store %arg4[%c0_14, %c0_15], %18 {strides = array<i32>} : memref<1024x128xbf16, #tpu.memory_space<vmem>>, vector<1024x128xbf16>,
    } else {
    }
    return
  }
  func.func @transform_0(%arg0: i32, %arg1: i32) -> (i32, i32) {
    %c0_i32 = arith.constant 0 : i32
    return %arg0, %arg1 : i32, i32
  }
  func.func @transform_1(%arg0: i32, %arg1: i32) -> (i32, i32) {
    %c0_i32 = arith.constant 0 : i32
    %c0_i32_0 = arith.constant 0 : i32
    return %arg1, %c0_i32 : i32, i32
  }
  func.func @transform_2(%arg0: i32, %arg1: i32) -> (i32, i32) {
    %c0_i32 = arith.constant 0 : i32
    %c0_i32_0 = arith.constant 0 : i32
    return %arg0, %c0_i32 : i32, i32
  }
}

module attributes {stable_mosaic.version = 11 : i64} {
  func.func @_conv_stats_kernel(%arg0: i32, %arg1: i32, %arg2: memref<1024x64xbf16, #tpu.memory_space<vmem>>, %arg3: memref<64x128xbf16, #tpu.memory_space<vmem>>, %arg4: memref<1024x128xbf16, #tpu.memory_space<vmem>>, %arg5: memref<1x1x128xf32, #tpu.memory_space<vmem>>, %arg6: memref<1x1x128xf32, #tpu.memory_space<vmem>>, %arg7: memref<1024x128xf32, #tpu.memory_space<vmem>>) attributes {dimension_semantics = [#tpu.dimension_semantics<parallel>, #tpu.dimension_semantics<arbitrary>], iteration_bounds = array<i64: 2, 1>, scalar_prefetch = 0 : i64, scratch_operands = 1 : i64, tpu.core_type = #tpu.core_type<tc>, window_params = [{transform_indices = @transform_0, window_bounds = array<i64: 1024, 64>}, {transform_indices = @transform_1, window_bounds = array<i64: 64, 128>}, {transform_indices = @transform_2, window_bounds = array<i64: 1024, 128>}, {transform_indices = @transform_3, window_bounds = array<i64: 1, 1, 128>}, {transform_indices = @transform_4, window_bounds = array<i64: 1, 1, 128>}]} {
    %c0_i32 = arith.constant 0 : i32
    %0 = arith.cmpi eq, %arg1, %c0_i32 : i32
    %1 = arith.extui %0 : i1 to i32
    %c0_i32_0 = arith.constant 0 : i32
    %2 = arith.cmpi ne, %1, %c0_i32_0 : i32
    scf.if %2 {
      %cst_10 = arith.constant 0.000000e+00 : f32
      %12 = vector.broadcast %cst_10 : f32 to vector<1024x128xf32>
      %c0_11 = arith.constant 0 : index
      %c0_12 = arith.constant 0 : index
      %13 = vector.load %arg7[%c0_11, %c0_12] : memref<1024x128xf32, #tpu.memory_space<vmem>>, vector<1024x128xf32>
      tpu.vector_store %arg7[%c0_11, %c0_12], %12 {strides = array<i32>} : memref<1024x128xf32, #tpu.memory_space<vmem>>, vector<1024x128xf32>,
    } else {
    }
    %c0 = arith.constant 0 : index
    %c0_1 = arith.constant 0 : index
    %3 = vector.load %arg7[%c0, %c0_1] : memref<1024x128xf32, #tpu.memory_space<vmem>>, vector<1024x128xf32>
    %c0_2 = arith.constant 0 : index
    %c0_3 = arith.constant 0 : index
    %4 = vector.load %arg2[%c0_2, %c0_3] : memref<1024x64xbf16, #tpu.memory_space<vmem>>, vector<1024x64xbf16>
    %c0_4 = arith.constant 0 : index
    %c0_5 = arith.constant 0 : index
    %5 = vector.load %arg3[%c0_4, %c0_5] : memref<64x128xbf16, #tpu.memory_space<vmem>>, vector<64x128xbf16>
    %cst = arith.constant dense<0.000000e+00> : vector<1024x128xf32>
    %6 = tpu.matmul %4, %5, %cst {dimension_numbers = #tpu.dot_dimension_numbers<[1], [0], [0], [1], [0, 0, 1, 1], [], []>} : vector<1024x64xbf16>, vector<64x128xbf16>, vector<1024x128xf32> -> vector<1024x128xf32>
    %7 = arith.addf %3, %6 : vector<1024x128xf32>
    %c0_6 = arith.constant 0 : index
    %c0_7 = arith.constant 0 : index
    %8 = vector.load %arg7[%c0_6, %c0_7] : memref<1024x128xf32, #tpu.memory_space<vmem>>, vector<1024x128xf32>
    tpu.vector_store %arg7[%c0_6, %c0_7], %7 {strides = array<i32>} : memref<1024x128xf32, #tpu.memory_space<vmem>>, vector<1024x128xf32>,
    %c0_i32_8 = arith.constant 0 : i32
    %9 = arith.cmpi eq, %arg1, %c0_i32_8 : i32
    %10 = arith.extui %9 : i1 to i32
    %c0_i32_9 = arith.constant 0 : i32
    %11 = arith.cmpi ne, %10, %c0_i32_9 : i32
    scf.if %11 {
      %c0_10 = arith.constant 0 : index
      %c0_11 = arith.constant 0 : index
      %12 = vector.load %arg7[%c0_10, %c0_11] : memref<1024x128xf32, #tpu.memory_space<vmem>>, vector<1024x128xf32>
      %13 = arith.truncf %12 : vector<1024x128xf32> to vector<1024x128xbf16>
      %c0_12 = arith.constant 0 : index
      %c0_13 = arith.constant 0 : index
      %14 = vector.load %arg4[%c0_12, %c0_13] : memref<1024x128xbf16, #tpu.memory_space<vmem>>, vector<1024x128xbf16>
      tpu.vector_store %arg4[%c0_12, %c0_13], %13 {strides = array<i32>} : memref<1024x128xbf16, #tpu.memory_space<vmem>>, vector<1024x128xbf16>,
      %cst_14 = arith.constant dense<0.000000e+00> : vector<128xf32>
      %15 = vector.multi_reduction <add>, %12, %cst_14 [0] : vector<1024x128xf32> to vector<128xf32>
      %16 = vector.shape_cast %15 : vector<128xf32> to vector<1x128xf32>
      %17 = vector.shape_cast %16 : vector<1x128xf32> to vector<1x1x128xf32>
      %c0_15 = arith.constant 0 : index
      %c0_16 = arith.constant 0 : index
      %c0_17 = arith.constant 0 : index
      %18 = vector.load %arg5[%c0_15, %c0_16, %c0_17] : memref<1x1x128xf32, #tpu.memory_space<vmem>>, vector<1x1x128xf32>
      tpu.vector_store %arg5[%c0_15, %c0_16, %c0_17], %17 {strides = array<i32>} : memref<1x1x128xf32, #tpu.memory_space<vmem>>, vector<1x1x128xf32>,
      %19 = arith.mulf %12, %12 : vector<1024x128xf32>
      %cst_18 = arith.constant dense<0.000000e+00> : vector<128xf32>
      %20 = vector.multi_reduction <add>, %19, %cst_18 [0] : vector<1024x128xf32> to vector<128xf32>
      %21 = vector.shape_cast %20 : vector<128xf32> to vector<1x128xf32>
      %22 = vector.shape_cast %21 : vector<1x128xf32> to vector<1x1x128xf32>
      %c0_19 = arith.constant 0 : index
      %c0_20 = arith.constant 0 : index
      %c0_21 = arith.constant 0 : index
      %23 = vector.load %arg6[%c0_19, %c0_20, %c0_21] : memref<1x1x128xf32, #tpu.memory_space<vmem>>, vector<1x1x128xf32>
      tpu.vector_store %arg6[%c0_19, %c0_20, %c0_21], %22 {strides = array<i32>} : memref<1x1x128xf32, #tpu.memory_space<vmem>>, vector<1x1x128xf32>,
    } else {
    }
    return
  }
  func.func @transform_0(%arg0: i32, %arg1: i32) -> (i32, i32) {
    %c0_i32 = arith.constant 0 : i32
    return %arg0, %arg1 : i32, i32
  }
  func.func @transform_1(%arg0: i32, %arg1: i32) -> (i32, i32) {
    %c0_i32 = arith.constant 0 : i32
    %c0_i32_0 = arith.constant 0 : i32
    return %arg1, %c0_i32 : i32, i32
  }
  func.func @transform_2(%arg0: i32, %arg1: i32) -> (i32, i32) {
    %c0_i32 = arith.constant 0 : i32
    %c0_i32_0 = arith.constant 0 : i32
    return %arg0, %c0_i32 : i32, i32
  }
  func.func @transform_3(%arg0: i32, %arg1: i32) -> (i32, i32, i32) {
    %c0_i32 = arith.constant 0 : i32
    %c0_i32_0 = arith.constant 0 : i32
    %c0_i32_1 = arith.constant 0 : i32
    return %arg0, %c0_i32, %c0_i32_0 : i32, i32, i32
  }
  func.func @transform_4(%arg0: i32, %arg1: i32) -> (i32, i32, i32) {
    %c0_i32 = arith.constant 0 : i32
    %c0_i32_0 = arith.constant 0 : i32
    %c0_i32_1 = arith.constant 0 : i32
    return %arg0, %c0_i32, %c0_i32_0 : i32, i32, i32
  }
}

module attributes {stable_mosaic.version = 11 : i64} {
  func.func @_bn_lrelu_kernel(%arg0: i32, %arg1: memref<1024x128xbf16, #tpu.memory_space<vmem>>, %arg2: memref<1x128xf32, #tpu.memory_space<vmem>>, %arg3: memref<1x128xf32, #tpu.memory_space<vmem>>, %arg4: memref<1024x128xbf16, #tpu.memory_space<vmem>>) attributes {dimension_semantics = [#tpu.dimension_semantics<parallel>], iteration_bounds = array<i64: 2>, scalar_prefetch = 0 : i64, scratch_operands = 0 : i64, tpu.core_type = #tpu.core_type<tc>, window_params = [{transform_indices = @transform_0, window_bounds = array<i64: 1024, 128>}, {pipeline_mode = #tpu.pipeline_mode<synchronous>, transform_indices = @transform_1, window_bounds = array<i64: 1, 128>}, {pipeline_mode = #tpu.pipeline_mode<synchronous>, transform_indices = @transform_2, window_bounds = array<i64: 1, 128>}, {transform_indices = @transform_3, window_bounds = array<i64: 1024, 128>}]} {
    %c0 = arith.constant 0 : index
    %c0_0 = arith.constant 0 : index
    %0 = vector.load %arg1[%c0, %c0_0] : memref<1024x128xbf16, #tpu.memory_space<vmem>>, vector<1024x128xbf16>
    %1 = arith.extf %0 : vector<1024x128xbf16> to vector<1024x128xf32>
    %c0_1 = arith.constant 0 : index
    %c0_2 = arith.constant 0 : index
    %2 = vector.load %arg2[%c0_1, %c0_2] : memref<1x128xf32, #tpu.memory_space<vmem>>, vector<1x128xf32>
    %3 = vector.broadcast %2 : vector<1x128xf32> to vector<1024x128xf32>
    %4 = arith.mulf %1, %3 : vector<1024x128xf32>
    %c0_3 = arith.constant 0 : index
    %c0_4 = arith.constant 0 : index
    %5 = vector.load %arg3[%c0_3, %c0_4] : memref<1x128xf32, #tpu.memory_space<vmem>>, vector<1x128xf32>
    %6 = vector.broadcast %5 : vector<1x128xf32> to vector<1024x128xf32>
    %7 = arith.addf %4, %6 : vector<1024x128xf32>
    %cst = arith.constant 0.000000e+00 : f32
    %8 = vector.broadcast %cst : f32 to vector<1024x128xf32>
    %9 = arith.cmpf ogt, %7, %8 : vector<1024x128xf32>
    %cst_5 = arith.constant 2.000000e-01 : f32
    %10 = vector.broadcast %cst_5 : f32 to vector<1024x128xf32>
    %11 = arith.mulf %10, %7 : vector<1024x128xf32>
    %12 = arith.select %9, %7, %11 : vector<1024x128xi1>, vector<1024x128xf32>
    %13 = arith.truncf %12 : vector<1024x128xf32> to vector<1024x128xbf16>
    %c0_6 = arith.constant 0 : index
    %c0_7 = arith.constant 0 : index
    %14 = vector.load %arg4[%c0_6, %c0_7] : memref<1024x128xbf16, #tpu.memory_space<vmem>>, vector<1024x128xbf16>
    tpu.vector_store %arg4[%c0_6, %c0_7], %13 {strides = array<i32>} : memref<1024x128xbf16, #tpu.memory_space<vmem>>, vector<1024x128xbf16>,
    return
  }
  func.func @transform_0(%arg0: i32) -> (i32, i32) {
    %c0_i32 = arith.constant 0 : i32
    %c0_i32_0 = arith.constant 0 : i32
    return %arg0, %c0_i32 : i32, i32
  }
  func.func @transform_1(%arg0: i32) -> (i32, i32) {
    %c0_i32 = arith.constant 0 : i32
    %c0_i32_0 = arith.constant 0 : i32
    %c0_i32_1 = arith.constant 0 : i32
    return %c0_i32, %c0_i32_0 : i32, i32
  }
  func.func @transform_2(%arg0: i32) -> (i32, i32) {
    %c0_i32 = arith.constant 0 : i32
    %c0_i32_0 = arith.constant 0 : i32
    %c0_i32_1 = arith.constant 0 : i32
    return %c0_i32, %c0_i32_0 : i32, i32
  }
  func.func @transform_3(%arg0: i32) -> (i32, i32) {
    %c0_i32 = arith.constant 0 : i32
    %c0_i32_0 = arith.constant 0 : i32
    return %arg0, %c0_i32 : i32, i32
  }
}

module attributes {stable_mosaic.version = 11 : i64} {
  func.func @_conv_stats_kernel(%arg0: i32, %arg1: i32, %arg2: memref<512x128xbf16, #tpu.memory_space<vmem>>, %arg3: memref<128x128xbf16, #tpu.memory_space<vmem>>, %arg4: memref<512x128xbf16, #tpu.memory_space<vmem>>, %arg5: memref<1x1x128xf32, #tpu.memory_space<vmem>>, %arg6: memref<1x1x128xf32, #tpu.memory_space<vmem>>, %arg7: memref<512x128xf32, #tpu.memory_space<vmem>>) attributes {dimension_semantics = [#tpu.dimension_semantics<parallel>, #tpu.dimension_semantics<arbitrary>], iteration_bounds = array<i64: 1, 1>, scalar_prefetch = 0 : i64, scratch_operands = 1 : i64, tpu.core_type = #tpu.core_type<tc>, window_params = [{transform_indices = @transform_0, window_bounds = array<i64: 512, 128>}, {transform_indices = @transform_1, window_bounds = array<i64: 128, 128>}, {transform_indices = @transform_2, window_bounds = array<i64: 512, 128>}, {transform_indices = @transform_3, window_bounds = array<i64: 1, 1, 128>}, {transform_indices = @transform_4, window_bounds = array<i64: 1, 1, 128>}]} {
    %c0_i32 = arith.constant 0 : i32
    %0 = arith.cmpi eq, %arg1, %c0_i32 : i32
    %1 = arith.extui %0 : i1 to i32
    %c0_i32_0 = arith.constant 0 : i32
    %2 = arith.cmpi ne, %1, %c0_i32_0 : i32
    scf.if %2 {
      %cst_10 = arith.constant 0.000000e+00 : f32
      %12 = vector.broadcast %cst_10 : f32 to vector<512x128xf32>
      %c0_11 = arith.constant 0 : index
      %c0_12 = arith.constant 0 : index
      %13 = vector.load %arg7[%c0_11, %c0_12] : memref<512x128xf32, #tpu.memory_space<vmem>>, vector<512x128xf32>
      tpu.vector_store %arg7[%c0_11, %c0_12], %12 {strides = array<i32>} : memref<512x128xf32, #tpu.memory_space<vmem>>, vector<512x128xf32>,
    } else {
    }
    %c0 = arith.constant 0 : index
    %c0_1 = arith.constant 0 : index
    %3 = vector.load %arg7[%c0, %c0_1] : memref<512x128xf32, #tpu.memory_space<vmem>>, vector<512x128xf32>
    %c0_2 = arith.constant 0 : index
    %c0_3 = arith.constant 0 : index
    %4 = vector.load %arg2[%c0_2, %c0_3] : memref<512x128xbf16, #tpu.memory_space<vmem>>, vector<512x128xbf16>
    %c0_4 = arith.constant 0 : index
    %c0_5 = arith.constant 0 : index
    %5 = vector.load %arg3[%c0_4, %c0_5] : memref<128x128xbf16, #tpu.memory_space<vmem>>, vector<128x128xbf16>
    %cst = arith.constant dense<0.000000e+00> : vector<512x128xf32>
    %6 = tpu.matmul %4, %5, %cst {dimension_numbers = #tpu.dot_dimension_numbers<[1], [0], [0], [1], [0, 0, 1, 1], [], []>} : vector<512x128xbf16>, vector<128x128xbf16>, vector<512x128xf32> -> vector<512x128xf32>
    %7 = arith.addf %3, %6 : vector<512x128xf32>
    %c0_6 = arith.constant 0 : index
    %c0_7 = arith.constant 0 : index
    %8 = vector.load %arg7[%c0_6, %c0_7] : memref<512x128xf32, #tpu.memory_space<vmem>>, vector<512x128xf32>
    tpu.vector_store %arg7[%c0_6, %c0_7], %7 {strides = array<i32>} : memref<512x128xf32, #tpu.memory_space<vmem>>, vector<512x128xf32>,
    %c0_i32_8 = arith.constant 0 : i32
    %9 = arith.cmpi eq, %arg1, %c0_i32_8 : i32
    %10 = arith.extui %9 : i1 to i32
    %c0_i32_9 = arith.constant 0 : i32
    %11 = arith.cmpi ne, %10, %c0_i32_9 : i32
    scf.if %11 {
      %c0_10 = arith.constant 0 : index
      %c0_11 = arith.constant 0 : index
      %12 = vector.load %arg7[%c0_10, %c0_11] : memref<512x128xf32, #tpu.memory_space<vmem>>, vector<512x128xf32>
      %13 = arith.truncf %12 : vector<512x128xf32> to vector<512x128xbf16>
      %c0_12 = arith.constant 0 : index
      %c0_13 = arith.constant 0 : index
      %14 = vector.load %arg4[%c0_12, %c0_13] : memref<512x128xbf16, #tpu.memory_space<vmem>>, vector<512x128xbf16>
      tpu.vector_store %arg4[%c0_12, %c0_13], %13 {strides = array<i32>} : memref<512x128xbf16, #tpu.memory_space<vmem>>, vector<512x128xbf16>,
      %cst_14 = arith.constant dense<0.000000e+00> : vector<128xf32>
      %15 = vector.multi_reduction <add>, %12, %cst_14 [0] : vector<512x128xf32> to vector<128xf32>
      %16 = vector.shape_cast %15 : vector<128xf32> to vector<1x128xf32>
      %17 = vector.shape_cast %16 : vector<1x128xf32> to vector<1x1x128xf32>
      %c0_15 = arith.constant 0 : index
      %c0_16 = arith.constant 0 : index
      %c0_17 = arith.constant 0 : index
      %18 = vector.load %arg5[%c0_15, %c0_16, %c0_17] : memref<1x1x128xf32, #tpu.memory_space<vmem>>, vector<1x1x128xf32>
      tpu.vector_store %arg5[%c0_15, %c0_16, %c0_17], %17 {strides = array<i32>} : memref<1x1x128xf32, #tpu.memory_space<vmem>>, vector<1x1x128xf32>,
      %19 = arith.mulf %12, %12 : vector<512x128xf32>
      %cst_18 = arith.constant dense<0.000000e+00> : vector<128xf32>
      %20 = vector.multi_reduction <add>, %19, %cst_18 [0] : vector<512x128xf32> to vector<128xf32>
      %21 = vector.shape_cast %20 : vector<128xf32> to vector<1x128xf32>
      %22 = vector.shape_cast %21 : vector<1x128xf32> to vector<1x1x128xf32>
      %c0_19 = arith.constant 0 : index
      %c0_20 = arith.constant 0 : index
      %c0_21 = arith.constant 0 : index
      %23 = vector.load %arg6[%c0_19, %c0_20, %c0_21] : memref<1x1x128xf32, #tpu.memory_space<vmem>>, vector<1x1x128xf32>
      tpu.vector_store %arg6[%c0_19, %c0_20, %c0_21], %22 {strides = array<i32>} : memref<1x1x128xf32, #tpu.memory_space<vmem>>, vector<1x1x128xf32>,
    } else {
    }
    return
  }
  func.func @transform_0(%arg0: i32, %arg1: i32) -> (i32, i32) {
    %c0_i32 = arith.constant 0 : i32
    return %arg0, %arg1 : i32, i32
  }
  func.func @transform_1(%arg0: i32, %arg1: i32) -> (i32, i32) {
    %c0_i32 = arith.constant 0 : i32
    %c0_i32_0 = arith.constant 0 : i32
    return %arg1, %c0_i32 : i32, i32
  }
  func.func @transform_2(%arg0: i32, %arg1: i32) -> (i32, i32) {
    %c0_i32 = arith.constant 0 : i32
    %c0_i32_0 = arith.constant 0 : i32
    return %arg0, %c0_i32 : i32, i32
  }
  func.func @transform_3(%arg0: i32, %arg1: i32) -> (i32, i32, i32) {
    %c0_i32 = arith.constant 0 : i32
    %c0_i32_0 = arith.constant 0 : i32
    %c0_i32_1 = arith.constant 0 : i32
    return %arg0, %c0_i32, %c0_i32_0 : i32, i32, i32
  }
  func.func @transform_4(%arg0: i32, %arg1: i32) -> (i32, i32, i32) {
    %c0_i32 = arith.constant 0 : i32
    %c0_i32_0 = arith.constant 0 : i32
    %c0_i32_1 = arith.constant 0 : i32
    return %arg0, %c0_i32, %c0_i32_0 : i32, i32, i32
  }
}

module attributes {stable_mosaic.version = 11 : i64} {
  func.func @_bn_lrelu_kernel(%arg0: i32, %arg1: memref<512x128xbf16, #tpu.memory_space<vmem>>, %arg2: memref<1x128xf32, #tpu.memory_space<vmem>>, %arg3: memref<1x128xf32, #tpu.memory_space<vmem>>, %arg4: memref<512x128xbf16, #tpu.memory_space<vmem>>) attributes {dimension_semantics = [#tpu.dimension_semantics<parallel>], iteration_bounds = array<i64: 1>, scalar_prefetch = 0 : i64, scratch_operands = 0 : i64, tpu.core_type = #tpu.core_type<tc>, window_params = [{transform_indices = @transform_0, window_bounds = array<i64: 512, 128>}, {pipeline_mode = #tpu.pipeline_mode<synchronous>, transform_indices = @transform_1, window_bounds = array<i64: 1, 128>}, {pipeline_mode = #tpu.pipeline_mode<synchronous>, transform_indices = @transform_2, window_bounds = array<i64: 1, 128>}, {transform_indices = @transform_3, window_bounds = array<i64: 512, 128>}]} {
    %c0 = arith.constant 0 : index
    %c0_0 = arith.constant 0 : index
    %0 = vector.load %arg1[%c0, %c0_0] : memref<512x128xbf16, #tpu.memory_space<vmem>>, vector<512x128xbf16>
    %1 = arith.extf %0 : vector<512x128xbf16> to vector<512x128xf32>
    %c0_1 = arith.constant 0 : index
    %c0_2 = arith.constant 0 : index
    %2 = vector.load %arg2[%c0_1, %c0_2] : memref<1x128xf32, #tpu.memory_space<vmem>>, vector<1x128xf32>
    %3 = vector.broadcast %2 : vector<1x128xf32> to vector<512x128xf32>
    %4 = arith.mulf %1, %3 : vector<512x128xf32>
    %c0_3 = arith.constant 0 : index
    %c0_4 = arith.constant 0 : index
    %5 = vector.load %arg3[%c0_3, %c0_4] : memref<1x128xf32, #tpu.memory_space<vmem>>, vector<1x128xf32>
    %6 = vector.broadcast %5 : vector<1x128xf32> to vector<512x128xf32>
    %7 = arith.addf %4, %6 : vector<512x128xf32>
    %cst = arith.constant 0.000000e+00 : f32
    %8 = vector.broadcast %cst : f32 to vector<512x128xf32>
    %9 = arith.cmpf ogt, %7, %8 : vector<512x128xf32>
    %cst_5 = arith.constant 2.000000e-01 : f32
    %10 = vector.broadcast %cst_5 : f32 to vector<512x128xf32>
    %11 = arith.mulf %10, %7 : vector<512x128xf32>
    %12 = arith.select %9, %7, %11 : vector<512x128xi1>, vector<512x128xf32>
    %13 = arith.truncf %12 : vector<512x128xf32> to vector<512x128xbf16>
    %c0_6 = arith.constant 0 : index
    %c0_7 = arith.constant 0 : index
    %14 = vector.load %arg4[%c0_6, %c0_7] : memref<512x128xbf16, #tpu.memory_space<vmem>>, vector<512x128xbf16>
    tpu.vector_store %arg4[%c0_6, %c0_7], %13 {strides = array<i32>} : memref<512x128xbf16, #tpu.memory_space<vmem>>, vector<512x128xbf16>,
    return
  }
  func.func @transform_0(%arg0: i32) -> (i32, i32) {
    %c0_i32 = arith.constant 0 : i32
    %c0_i32_0 = arith.constant 0 : i32
    return %arg0, %c0_i32 : i32, i32
  }
  func.func @transform_1(%arg0: i32) -> (i32, i32) {
    %c0_i32 = arith.constant 0 : i32
    %c0_i32_0 = arith.constant 0 : i32
    %c0_i32_1 = arith.constant 0 : i32
    return %c0_i32, %c0_i32_0 : i32, i32
  }
  func.func @transform_2(%arg0: i32) -> (i32, i32) {
    %c0_i32 = arith.constant 0 : i32
    %c0_i32_0 = arith.constant 0 : i32
    %c0_i32_1 = arith.constant 0 : i32
    return %c0_i32, %c0_i32_0 : i32, i32
  }
  func.func @transform_3(%arg0: i32) -> (i32, i32) {
    %c0_i32 = arith.constant 0 : i32
    %c0_i32_0 = arith.constant 0 : i32
    return %arg0, %c0_i32 : i32, i32
  }
}

module attributes {stable_mosaic.version = 11 : i64} {
  func.func @_conv_stats_kernel(%arg0: i32, %arg1: i32, %arg2: memref<128x256xbf16, #tpu.memory_space<vmem>>, %arg3: memref<256x128xbf16, #tpu.memory_space<vmem>>, %arg4: memref<128x128xbf16, #tpu.memory_space<vmem>>, %arg5: memref<1x1x128xf32, #tpu.memory_space<vmem>>, %arg6: memref<1x1x128xf32, #tpu.memory_space<vmem>>, %arg7: memref<128x128xf32, #tpu.memory_space<vmem>>) attributes {dimension_semantics = [#tpu.dimension_semantics<parallel>, #tpu.dimension_semantics<arbitrary>], iteration_bounds = array<i64: 1, 1>, scalar_prefetch = 0 : i64, scratch_operands = 1 : i64, tpu.core_type = #tpu.core_type<tc>, window_params = [{transform_indices = @transform_0, window_bounds = array<i64: 128, 256>}, {transform_indices = @transform_1, window_bounds = array<i64: 256, 128>}, {transform_indices = @transform_2, window_bounds = array<i64: 128, 128>}, {transform_indices = @transform_3, window_bounds = array<i64: 1, 1, 128>}, {transform_indices = @transform_4, window_bounds = array<i64: 1, 1, 128>}]} {
    %c0_i32 = arith.constant 0 : i32
    %0 = arith.cmpi eq, %arg1, %c0_i32 : i32
    %1 = arith.extui %0 : i1 to i32
    %c0_i32_0 = arith.constant 0 : i32
    %2 = arith.cmpi ne, %1, %c0_i32_0 : i32
    scf.if %2 {
      %cst_10 = arith.constant 0.000000e+00 : f32
      %12 = vector.broadcast %cst_10 : f32 to vector<128x128xf32>
      %c0_11 = arith.constant 0 : index
      %c0_12 = arith.constant 0 : index
      %13 = vector.load %arg7[%c0_11, %c0_12] : memref<128x128xf32, #tpu.memory_space<vmem>>, vector<128x128xf32>
      tpu.vector_store %arg7[%c0_11, %c0_12], %12 {strides = array<i32>} : memref<128x128xf32, #tpu.memory_space<vmem>>, vector<128x128xf32>,
    } else {
    }
    %c0 = arith.constant 0 : index
    %c0_1 = arith.constant 0 : index
    %3 = vector.load %arg7[%c0, %c0_1] : memref<128x128xf32, #tpu.memory_space<vmem>>, vector<128x128xf32>
    %c0_2 = arith.constant 0 : index
    %c0_3 = arith.constant 0 : index
    %4 = vector.load %arg2[%c0_2, %c0_3] : memref<128x256xbf16, #tpu.memory_space<vmem>>, vector<128x256xbf16>
    %c0_4 = arith.constant 0 : index
    %c0_5 = arith.constant 0 : index
    %5 = vector.load %arg3[%c0_4, %c0_5] : memref<256x128xbf16, #tpu.memory_space<vmem>>, vector<256x128xbf16>
    %cst = arith.constant dense<0.000000e+00> : vector<128x128xf32>
    %6 = tpu.matmul %4, %5, %cst {dimension_numbers = #tpu.dot_dimension_numbers<[1], [0], [0], [1], [0, 0, 1, 1], [], []>} : vector<128x256xbf16>, vector<256x128xbf16>, vector<128x128xf32> -> vector<128x128xf32>
    %7 = arith.addf %3, %6 : vector<128x128xf32>
    %c0_6 = arith.constant 0 : index
    %c0_7 = arith.constant 0 : index
    %8 = vector.load %arg7[%c0_6, %c0_7] : memref<128x128xf32, #tpu.memory_space<vmem>>, vector<128x128xf32>
    tpu.vector_store %arg7[%c0_6, %c0_7], %7 {strides = array<i32>} : memref<128x128xf32, #tpu.memory_space<vmem>>, vector<128x128xf32>,
    %c0_i32_8 = arith.constant 0 : i32
    %9 = arith.cmpi eq, %arg1, %c0_i32_8 : i32
    %10 = arith.extui %9 : i1 to i32
    %c0_i32_9 = arith.constant 0 : i32
    %11 = arith.cmpi ne, %10, %c0_i32_9 : i32
    scf.if %11 {
      %c0_10 = arith.constant 0 : index
      %c0_11 = arith.constant 0 : index
      %12 = vector.load %arg7[%c0_10, %c0_11] : memref<128x128xf32, #tpu.memory_space<vmem>>, vector<128x128xf32>
      %13 = arith.truncf %12 : vector<128x128xf32> to vector<128x128xbf16>
      %c0_12 = arith.constant 0 : index
      %c0_13 = arith.constant 0 : index
      %14 = vector.load %arg4[%c0_12, %c0_13] : memref<128x128xbf16, #tpu.memory_space<vmem>>, vector<128x128xbf16>
      tpu.vector_store %arg4[%c0_12, %c0_13], %13 {strides = array<i32>} : memref<128x128xbf16, #tpu.memory_space<vmem>>, vector<128x128xbf16>,
      %cst_14 = arith.constant dense<0.000000e+00> : vector<128xf32>
      %15 = vector.multi_reduction <add>, %12, %cst_14 [0] : vector<128x128xf32> to vector<128xf32>
      %16 = vector.shape_cast %15 : vector<128xf32> to vector<1x128xf32>
      %17 = vector.shape_cast %16 : vector<1x128xf32> to vector<1x1x128xf32>
      %c0_15 = arith.constant 0 : index
      %c0_16 = arith.constant 0 : index
      %c0_17 = arith.constant 0 : index
      %18 = vector.load %arg5[%c0_15, %c0_16, %c0_17] : memref<1x1x128xf32, #tpu.memory_space<vmem>>, vector<1x1x128xf32>
      tpu.vector_store %arg5[%c0_15, %c0_16, %c0_17], %17 {strides = array<i32>} : memref<1x1x128xf32, #tpu.memory_space<vmem>>, vector<1x1x128xf32>,
      %19 = arith.mulf %12, %12 : vector<128x128xf32>
      %cst_18 = arith.constant dense<0.000000e+00> : vector<128xf32>
      %20 = vector.multi_reduction <add>, %19, %cst_18 [0] : vector<128x128xf32> to vector<128xf32>
      %21 = vector.shape_cast %20 : vector<128xf32> to vector<1x128xf32>
      %22 = vector.shape_cast %21 : vector<1x128xf32> to vector<1x1x128xf32>
      %c0_19 = arith.constant 0 : index
      %c0_20 = arith.constant 0 : index
      %c0_21 = arith.constant 0 : index
      %23 = vector.load %arg6[%c0_19, %c0_20, %c0_21] : memref<1x1x128xf32, #tpu.memory_space<vmem>>, vector<1x1x128xf32>
      tpu.vector_store %arg6[%c0_19, %c0_20, %c0_21], %22 {strides = array<i32>} : memref<1x1x128xf32, #tpu.memory_space<vmem>>, vector<1x1x128xf32>,
    } else {
    }
    return
  }
  func.func @transform_0(%arg0: i32, %arg1: i32) -> (i32, i32) {
    %c0_i32 = arith.constant 0 : i32
    return %arg0, %arg1 : i32, i32
  }
  func.func @transform_1(%arg0: i32, %arg1: i32) -> (i32, i32) {
    %c0_i32 = arith.constant 0 : i32
    %c0_i32_0 = arith.constant 0 : i32
    return %arg1, %c0_i32 : i32, i32
  }
  func.func @transform_2(%arg0: i32, %arg1: i32) -> (i32, i32) {
    %c0_i32 = arith.constant 0 : i32
    %c0_i32_0 = arith.constant 0 : i32
    return %arg0, %c0_i32 : i32, i32
  }
  func.func @transform_3(%arg0: i32, %arg1: i32) -> (i32, i32, i32) {
    %c0_i32 = arith.constant 0 : i32
    %c0_i32_0 = arith.constant 0 : i32
    %c0_i32_1 = arith.constant 0 : i32
    return %arg0, %c0_i32, %c0_i32_0 : i32, i32, i32
  }
  func.func @transform_4(%arg0: i32, %arg1: i32) -> (i32, i32, i32) {
    %c0_i32 = arith.constant 0 : i32
    %c0_i32_0 = arith.constant 0 : i32
    %c0_i32_1 = arith.constant 0 : i32
    return %arg0, %c0_i32, %c0_i32_0 : i32, i32, i32
  }
}

module attributes {stable_mosaic.version = 11 : i64} {
  func.func @_bn_lrelu_kernel(%arg0: i32, %arg1: memref<128x128xbf16, #tpu.memory_space<vmem>>, %arg2: memref<1x128xf32, #tpu.memory_space<vmem>>, %arg3: memref<1x128xf32, #tpu.memory_space<vmem>>, %arg4: memref<128x128xbf16, #tpu.memory_space<vmem>>) attributes {dimension_semantics = [#tpu.dimension_semantics<parallel>], iteration_bounds = array<i64: 1>, scalar_prefetch = 0 : i64, scratch_operands = 0 : i64, tpu.core_type = #tpu.core_type<tc>, window_params = [{transform_indices = @transform_0, window_bounds = array<i64: 128, 128>}, {pipeline_mode = #tpu.pipeline_mode<synchronous>, transform_indices = @transform_1, window_bounds = array<i64: 1, 128>}, {pipeline_mode = #tpu.pipeline_mode<synchronous>, transform_indices = @transform_2, window_bounds = array<i64: 1, 128>}, {transform_indices = @transform_3, window_bounds = array<i64: 128, 128>}]} {
    %c0 = arith.constant 0 : index
    %c0_0 = arith.constant 0 : index
    %0 = vector.load %arg1[%c0, %c0_0] : memref<128x128xbf16, #tpu.memory_space<vmem>>, vector<128x128xbf16>
    %1 = arith.extf %0 : vector<128x128xbf16> to vector<128x128xf32>
    %c0_1 = arith.constant 0 : index
    %c0_2 = arith.constant 0 : index
    %2 = vector.load %arg2[%c0_1, %c0_2] : memref<1x128xf32, #tpu.memory_space<vmem>>, vector<1x128xf32>
    %3 = vector.broadcast %2 : vector<1x128xf32> to vector<128x128xf32>
    %4 = arith.mulf %1, %3 : vector<128x128xf32>
    %c0_3 = arith.constant 0 : index
    %c0_4 = arith.constant 0 : index
    %5 = vector.load %arg3[%c0_3, %c0_4] : memref<1x128xf32, #tpu.memory_space<vmem>>, vector<1x128xf32>
    %6 = vector.broadcast %5 : vector<1x128xf32> to vector<128x128xf32>
    %7 = arith.addf %4, %6 : vector<128x128xf32>
    %cst = arith.constant 0.000000e+00 : f32
    %8 = vector.broadcast %cst : f32 to vector<128x128xf32>
    %9 = arith.cmpf ogt, %7, %8 : vector<128x128xf32>
    %cst_5 = arith.constant 2.000000e-01 : f32
    %10 = vector.broadcast %cst_5 : f32 to vector<128x128xf32>
    %11 = arith.mulf %10, %7 : vector<128x128xf32>
    %12 = arith.select %9, %7, %11 : vector<128x128xi1>, vector<128x128xf32>
    %13 = arith.truncf %12 : vector<128x128xf32> to vector<128x128xbf16>
    %c0_6 = arith.constant 0 : index
    %c0_7 = arith.constant 0 : index
    %14 = vector.load %arg4[%c0_6, %c0_7] : memref<128x128xbf16, #tpu.memory_space<vmem>>, vector<128x128xbf16>
    tpu.vector_store %arg4[%c0_6, %c0_7], %13 {strides = array<i32>} : memref<128x128xbf16, #tpu.memory_space<vmem>>, vector<128x128xbf16>,
    return
  }
  func.func @transform_0(%arg0: i32) -> (i32, i32) {
    %c0_i32 = arith.constant 0 : i32
    %c0_i32_0 = arith.constant 0 : i32
    return %arg0, %c0_i32 : i32, i32
  }
  func.func @transform_1(%arg0: i32) -> (i32, i32) {
    %c0_i32 = arith.constant 0 : i32
    %c0_i32_0 = arith.constant 0 : i32
    %c0_i32_1 = arith.constant 0 : i32
    return %c0_i32, %c0_i32_0 : i32, i32
  }
  func.func @transform_2(%arg0: i32) -> (i32, i32) {
    %c0_i32 = arith.constant 0 : i32
    %c0_i32_0 = arith.constant 0 : i32
    %c0_i32_1 = arith.constant 0 : i32
    return %c0_i32, %c0_i32_0 : i32, i32
  }
  func.func @transform_3(%arg0: i32) -> (i32, i32) {
    %c0_i32 = arith.constant 0 : i32
    %c0_i32_0 = arith.constant 0 : i32
    return %arg0, %c0_i32 : i32, i32
  }
}

module attributes {stable_mosaic.version = 11 : i64} {
  func.func @_conv_stats_kernel(%arg0: i32, %arg1: i32, %arg2: memref<32x512xbf16, #tpu.memory_space<vmem>>, %arg3: memref<512x128xbf16, #tpu.memory_space<vmem>>, %arg4: memref<32x128xbf16, #tpu.memory_space<vmem>>, %arg5: memref<1x1x128xf32, #tpu.memory_space<vmem>>, %arg6: memref<1x1x128xf32, #tpu.memory_space<vmem>>, %arg7: memref<32x128xf32, #tpu.memory_space<vmem>>) attributes {dimension_semantics = [#tpu.dimension_semantics<parallel>, #tpu.dimension_semantics<arbitrary>], iteration_bounds = array<i64: 1, 1>, scalar_prefetch = 0 : i64, scratch_operands = 1 : i64, tpu.core_type = #tpu.core_type<tc>, window_params = [{transform_indices = @transform_0, window_bounds = array<i64: 32, 512>}, {transform_indices = @transform_1, window_bounds = array<i64: 512, 128>}, {transform_indices = @transform_2, window_bounds = array<i64: 32, 128>}, {transform_indices = @transform_3, window_bounds = array<i64: 1, 1, 128>}, {transform_indices = @transform_4, window_bounds = array<i64: 1, 1, 128>}]} {
    %c0_i32 = arith.constant 0 : i32
    %0 = arith.cmpi eq, %arg1, %c0_i32 : i32
    %1 = arith.extui %0 : i1 to i32
    %c0_i32_0 = arith.constant 0 : i32
    %2 = arith.cmpi ne, %1, %c0_i32_0 : i32
    scf.if %2 {
      %cst_10 = arith.constant 0.000000e+00 : f32
      %12 = vector.broadcast %cst_10 : f32 to vector<32x128xf32>
      %c0_11 = arith.constant 0 : index
      %c0_12 = arith.constant 0 : index
      %13 = vector.load %arg7[%c0_11, %c0_12] : memref<32x128xf32, #tpu.memory_space<vmem>>, vector<32x128xf32>
      tpu.vector_store %arg7[%c0_11, %c0_12], %12 {strides = array<i32>} : memref<32x128xf32, #tpu.memory_space<vmem>>, vector<32x128xf32>,
    } else {
    }
    %c0 = arith.constant 0 : index
    %c0_1 = arith.constant 0 : index
    %3 = vector.load %arg7[%c0, %c0_1] : memref<32x128xf32, #tpu.memory_space<vmem>>, vector<32x128xf32>
    %c0_2 = arith.constant 0 : index
    %c0_3 = arith.constant 0 : index
    %4 = vector.load %arg2[%c0_2, %c0_3] : memref<32x512xbf16, #tpu.memory_space<vmem>>, vector<32x512xbf16>
    %c0_4 = arith.constant 0 : index
    %c0_5 = arith.constant 0 : index
    %5 = vector.load %arg3[%c0_4, %c0_5] : memref<512x128xbf16, #tpu.memory_space<vmem>>, vector<512x128xbf16>
    %cst = arith.constant dense<0.000000e+00> : vector<32x128xf32>
    %6 = tpu.matmul %4, %5, %cst {dimension_numbers = #tpu.dot_dimension_numbers<[1], [0], [0], [1], [0, 0, 1, 1], [], []>} : vector<32x512xbf16>, vector<512x128xbf16>, vector<32x128xf32> -> vector<32x128xf32>
    %7 = arith.addf %3, %6 : vector<32x128xf32>
    %c0_6 = arith.constant 0 : index
    %c0_7 = arith.constant 0 : index
    %8 = vector.load %arg7[%c0_6, %c0_7] : memref<32x128xf32, #tpu.memory_space<vmem>>, vector<32x128xf32>
    tpu.vector_store %arg7[%c0_6, %c0_7], %7 {strides = array<i32>} : memref<32x128xf32, #tpu.memory_space<vmem>>, vector<32x128xf32>,
    %c0_i32_8 = arith.constant 0 : i32
    %9 = arith.cmpi eq, %arg1, %c0_i32_8 : i32
    %10 = arith.extui %9 : i1 to i32
    %c0_i32_9 = arith.constant 0 : i32
    %11 = arith.cmpi ne, %10, %c0_i32_9 : i32
    scf.if %11 {
      %c0_10 = arith.constant 0 : index
      %c0_11 = arith.constant 0 : index
      %12 = vector.load %arg7[%c0_10, %c0_11] : memref<32x128xf32, #tpu.memory_space<vmem>>, vector<32x128xf32>
      %13 = arith.truncf %12 : vector<32x128xf32> to vector<32x128xbf16>
      %c0_12 = arith.constant 0 : index
      %c0_13 = arith.constant 0 : index
      %14 = vector.load %arg4[%c0_12, %c0_13] : memref<32x128xbf16, #tpu.memory_space<vmem>>, vector<32x128xbf16>
      tpu.vector_store %arg4[%c0_12, %c0_13], %13 {strides = array<i32>} : memref<32x128xbf16, #tpu.memory_space<vmem>>, vector<32x128xbf16>,
      %cst_14 = arith.constant dense<0.000000e+00> : vector<128xf32>
      %15 = vector.multi_reduction <add>, %12, %cst_14 [0] : vector<32x128xf32> to vector<128xf32>
      %16 = vector.shape_cast %15 : vector<128xf32> to vector<1x128xf32>
      %17 = vector.shape_cast %16 : vector<1x128xf32> to vector<1x1x128xf32>
      %c0_15 = arith.constant 0 : index
      %c0_16 = arith.constant 0 : index
      %c0_17 = arith.constant 0 : index
      %18 = vector.load %arg5[%c0_15, %c0_16, %c0_17] : memref<1x1x128xf32, #tpu.memory_space<vmem>>, vector<1x1x128xf32>
      tpu.vector_store %arg5[%c0_15, %c0_16, %c0_17], %17 {strides = array<i32>} : memref<1x1x128xf32, #tpu.memory_space<vmem>>, vector<1x1x128xf32>,
      %19 = arith.mulf %12, %12 : vector<32x128xf32>
      %cst_18 = arith.constant dense<0.000000e+00> : vector<128xf32>
      %20 = vector.multi_reduction <add>, %19, %cst_18 [0] : vector<32x128xf32> to vector<128xf32>
      %21 = vector.shape_cast %20 : vector<128xf32> to vector<1x128xf32>
      %22 = vector.shape_cast %21 : vector<1x128xf32> to vector<1x1x128xf32>
      %c0_19 = arith.constant 0 : index
      %c0_20 = arith.constant 0 : index
      %c0_21 = arith.constant 0 : index
      %23 = vector.load %arg6[%c0_19, %c0_20, %c0_21] : memref<1x1x128xf32, #tpu.memory_space<vmem>>, vector<1x1x128xf32>
      tpu.vector_store %arg6[%c0_19, %c0_20, %c0_21], %22 {strides = array<i32>} : memref<1x1x128xf32, #tpu.memory_space<vmem>>, vector<1x1x128xf32>,
    } else {
    }
    return
  }
  func.func @transform_0(%arg0: i32, %arg1: i32) -> (i32, i32) {
    %c0_i32 = arith.constant 0 : i32
    return %arg0, %arg1 : i32, i32
  }
  func.func @transform_1(%arg0: i32, %arg1: i32) -> (i32, i32) {
    %c0_i32 = arith.constant 0 : i32
    %c0_i32_0 = arith.constant 0 : i32
    return %arg1, %c0_i32 : i32, i32
  }
  func.func @transform_2(%arg0: i32, %arg1: i32) -> (i32, i32) {
    %c0_i32 = arith.constant 0 : i32
    %c0_i32_0 = arith.constant 0 : i32
    return %arg0, %c0_i32 : i32, i32
  }
  func.func @transform_3(%arg0: i32, %arg1: i32) -> (i32, i32, i32) {
    %c0_i32 = arith.constant 0 : i32
    %c0_i32_0 = arith.constant 0 : i32
    %c0_i32_1 = arith.constant 0 : i32
    return %arg0, %c0_i32, %c0_i32_0 : i32, i32, i32
  }
  func.func @transform_4(%arg0: i32, %arg1: i32) -> (i32, i32, i32) {
    %c0_i32 = arith.constant 0 : i32
    %c0_i32_0 = arith.constant 0 : i32
    %c0_i32_1 = arith.constant 0 : i32
    return %arg0, %c0_i32, %c0_i32_0 : i32, i32, i32
  }
}

module attributes {stable_mosaic.version = 11 : i64} {
  func.func @_bn_lrelu_kernel(%arg0: i32, %arg1: memref<32x128xbf16, #tpu.memory_space<vmem>>, %arg2: memref<1x128xf32, #tpu.memory_space<vmem>>, %arg3: memref<1x128xf32, #tpu.memory_space<vmem>>, %arg4: memref<32x128xbf16, #tpu.memory_space<vmem>>) attributes {dimension_semantics = [#tpu.dimension_semantics<parallel>], iteration_bounds = array<i64: 1>, scalar_prefetch = 0 : i64, scratch_operands = 0 : i64, tpu.core_type = #tpu.core_type<tc>, window_params = [{transform_indices = @transform_0, window_bounds = array<i64: 32, 128>}, {pipeline_mode = #tpu.pipeline_mode<synchronous>, transform_indices = @transform_1, window_bounds = array<i64: 1, 128>}, {pipeline_mode = #tpu.pipeline_mode<synchronous>, transform_indices = @transform_2, window_bounds = array<i64: 1, 128>}, {transform_indices = @transform_3, window_bounds = array<i64: 32, 128>}]} {
    %c0 = arith.constant 0 : index
    %c0_0 = arith.constant 0 : index
    %0 = vector.load %arg1[%c0, %c0_0] : memref<32x128xbf16, #tpu.memory_space<vmem>>, vector<32x128xbf16>
    %1 = arith.extf %0 : vector<32x128xbf16> to vector<32x128xf32>
    %c0_1 = arith.constant 0 : index
    %c0_2 = arith.constant 0 : index
    %2 = vector.load %arg2[%c0_1, %c0_2] : memref<1x128xf32, #tpu.memory_space<vmem>>, vector<1x128xf32>
    %3 = vector.broadcast %2 : vector<1x128xf32> to vector<32x128xf32>
    %4 = arith.mulf %1, %3 : vector<32x128xf32>
    %c0_3 = arith.constant 0 : index
    %c0_4 = arith.constant 0 : index
    %5 = vector.load %arg3[%c0_3, %c0_4] : memref<1x128xf32, #tpu.memory_space<vmem>>, vector<1x128xf32>
    %6 = vector.broadcast %5 : vector<1x128xf32> to vector<32x128xf32>
    %7 = arith.addf %4, %6 : vector<32x128xf32>
    %cst = arith.constant 0.000000e+00 : f32
    %8 = vector.broadcast %cst : f32 to vector<32x128xf32>
    %9 = arith.cmpf ogt, %7, %8 : vector<32x128xf32>
    %cst_5 = arith.constant 2.000000e-01 : f32
    %10 = vector.broadcast %cst_5 : f32 to vector<32x128xf32>
    %11 = arith.mulf %10, %7 : vector<32x128xf32>
    %12 = arith.select %9, %7, %11 : vector<32x128xi1>, vector<32x128xf32>
    %13 = arith.truncf %12 : vector<32x128xf32> to vector<32x128xbf16>
    %c0_6 = arith.constant 0 : index
    %c0_7 = arith.constant 0 : index
    %14 = vector.load %arg4[%c0_6, %c0_7] : memref<32x128xbf16, #tpu.memory_space<vmem>>, vector<32x128xbf16>
    tpu.vector_store %arg4[%c0_6, %c0_7], %13 {strides = array<i32>} : memref<32x128xbf16, #tpu.memory_space<vmem>>, vector<32x128xbf16>,
    return
  }
  func.func @transform_0(%arg0: i32) -> (i32, i32) {
    %c0_i32 = arith.constant 0 : i32
    %c0_i32_0 = arith.constant 0 : i32
    return %arg0, %c0_i32 : i32, i32
  }
  func.func @transform_1(%arg0: i32) -> (i32, i32) {
    %c0_i32 = arith.constant 0 : i32
    %c0_i32_0 = arith.constant 0 : i32
    %c0_i32_1 = arith.constant 0 : i32
    return %c0_i32, %c0_i32_0 : i32, i32
  }
  func.func @transform_2(%arg0: i32) -> (i32, i32) {
    %c0_i32 = arith.constant 0 : i32
    %c0_i32_0 = arith.constant 0 : i32
    %c0_i32_1 = arith.constant 0 : i32
    return %c0_i32, %c0_i32_0 : i32, i32
  }
  func.func @transform_3(%arg0: i32) -> (i32, i32) {
    %c0_i32 = arith.constant 0 : i32
    %c0_i32_0 = arith.constant 0 : i32
    return %arg0, %c0_i32 : i32, i32
  }
}

</mosaic_0001>

<bundles_post_ra>
// kernel: discriminator_forward.9
= control target key start
LH: loop header
LB: loop body
LE: loop exit
PB: predicated region body
PF: predicated region fallthrough
CT: control target
= control target key end

     0   :  { %s4276_s9 = smov 0   ;;  %s4278_s10 = smov 0   ;;  %s4536_s0 = inlined_call_operand.vmem [shape: bf16[8192,48], index: 0, kind: input, shape index: {}]   ;;  %s4537_s1 = inlined_call_operand.vmem [shape: bf16[48,128], index: 1, kind: input, shape index: {}]   ;;  %s4538_s2 = inlined_call_operand.vmem [shape: bf16[8192,128], index: 2, kind: output, shape index: {}]  }
   0x1   :  { %s4280_s11 = smov 0  }
   0x2 LB: > { %s24_s12 = sadd.s32 1, %s4255_s10  ;;  %p3162_p0 = scmp.ge.s32.totalorder %s4259_s11, 1  ;;  %s4259_s11 = sphi %s4280_s11, %s12_s11   ;;  %s4255_s10 = sphi %s4278_s10, %s4540_s10   ;;  %s4251_s9 = sphi %s4276_s9, %s4539_s9  }
   0x3   : > { %p26_p1 = scmp.ge.s32.totalorder %s24_s12, 8  ;;  %p141_p2 = scmp.lt.s32.totalorder %s4259_s11, 9 }
   0x5   : > { %s4542_s12 = smov (%p26_p1, %s24_s12), 0  ;;  %p142_p3 = pnand %p3162_p0, %p141_p2 }
   0x6   : > { %v4170_v0 = vld [vmem:[%s4537_s1] sm:$0xff] (!%p142_p3)   ;;  %s3163_s15 = sshll.u32 (!%p142_p3), %s4251_s9, 7  ;;  %v4171_v1 = vld [vmem:[%s4537_s1 + $0x8] sm:$0xff] (!%p142_p3)   ;;  %v4172_v2 = vld [vmem:[%s4537_s1 + $0x10] sm:$0xff] (!%p142_p3)   ;;  %vm925_vm0 = vcmask (!%p142_p3), 392192  }
   0x7   : > { %145 = sbr.rel (%p142_p3) target bundleno = 362 (0x16a), region = 28  ;;  %p172_p4 = scmp.lt.s32.totalorder (!%p142_p3), %s3163_s15, 1023  ;;  %4006 = vmatprep.subr.bf16.mxu0 (!%p142_p3), %v4170_v0  ;;  %4140 = vmatprep.subr.bf16.mxu1 (!%p142_p3), %v4170_v0 }
   0x8   : > { %4007 = vmatpush3.bf16.msra.mxu0 (!%p142_p3), %v4170_v0  ;;  %4143 = vmatpush3.bf16.msra.mxu1 (!%p142_p3), %v4170_v0 }
   0x9   : > { %4008 = vmatprep.subr.bf16.mxu0 (!%p142_p3), %v4171_v1  ;;  %4141 = vmatprep.subr.bf16.mxu1 (!%p142_p3), %v4171_v1 }
   0xc   : > { %4009 = vmatpush3.bf16.msra.mxu0 (!%p142_p3), %v4171_v1  ;;  %4144 = vmatpush3.bf16.msra.mxu1 (!%p142_p3), %v4171_v1 }
   0xd   : > { %4010 = vmatprep.subr.bf16.mxu0 (!%p142_p3), %v4172_v2  ;;  %4142 = vmatprep.subr.bf16.mxu1 (!%p142_p3), %v4172_v2 }
   0xe   : > { %s4544_s15 = smov (!%p172_p4, %s3163_s15), 1023 }
   0xf   : > { %s3164_s20 = sshll.u32 %s4544_s15, 2 }
  0x10   : > { %s4311_s23 = scalar_lea.vmem %s4536_s0, %s3164_s20  ;;  %4011 = vmatpush3.bf16.msra.mxu0 %v4172_v2  ;;  %4145 = vmatpush3.bf16.msra.mxu1 %v4172_v2  ;;  %s4446_s26 = scalar_lea.vmem %s4538_s2, %s3164_s20 }
  0x11   : > { %v4173_v3 = vld [vmem:[%s4311_s23] sm:$0xff]   ;;  %v4175_v5 = vld [vmem:[%s4311_s23 + $0x8] sm:$0xff]   ;;  %v4177_v7 = vld [vmem:[%s4311_s23 + $0x10] sm:$0xff]  }
  0x12   : > { %v4174_v4 = vld [vmem:[%s4311_s23 + $0x100] sm:$0xff]   ;;  %4012 = vmatprep.mubr.msk.bf16.mxu0 %vm925_vm0, %v4173_v3  ;;  %v4176_v6 = vld [vmem:[%s4311_s23 + $0x108] sm:$0xff]   ;;  %v4178_v8 = vld [vmem:[%s4311_s23 + $0x110] sm:$0xff]  }
  0x13   : > { %4076 = vmatprep.mubr.msk.bf16.mxu1 %vm925_vm0, %v4174_v4  ;;  %4013 = vmatmul.mubr.msk.bf16.vlgmr.msra.gmra.mrb[0].mxu0 %vm925_vm0, %v4175_v5  ;;  %v4179_v9 = vld [vmem:[%s4311_s23 + $0x18] sm:$0xff]   ;;  %v4181_v11 = vld [vmem:[%s4311_s23 + $0x20] sm:$0xff]   ;;  %v4183_v13 = vld [vmem:[%s4311_s23 + $0x28] sm:$0xff]  }
  0x14   : > { %4077 = vmatmul.mubr.msk.bf16.vlgmr.msra.gmra.mrb[0].mxu1 %vm925_vm0, %v4176_v6  ;;  %4016 = vmatprep.mubr.msk.bf16.mxu0 %vm925_vm0, %v4177_v7  ;;  %v4180_v10 = vld [vmem:[%s4311_s23 + $0x118] sm:$0xff]   ;;  %v4182_v12 = vld [vmem:[%s4311_s23 + $0x120] sm:$0xff]   ;;  %v4184_v14 = vld [vmem:[%s4311_s23 + $0x128] sm:$0xff]  }
  0x15   : > { %4080 = vmatprep.mubr.msk.bf16.mxu1 %vm925_vm0, %v4178_v8  ;;  %v4185_v15 = vld [vmem:[%s4311_s23 + $0x30] sm:$0xff]   ;;  %v4187_v17 = vld [vmem:[%s4311_s23 + $0x38] sm:$0xff]   ;;  %v4189_v19 = vld [vmem:[%s4311_s23 + $0x40] sm:$0xff]  }
  0x16   : > { %v4186_v16 = vld [vmem:[%s4311_s23 + $0x130] sm:$0xff]   ;;  %v4188_v18 = vld [vmem:[%s4311_s23 + $0x138] sm:$0xff]   ;;  %v4190_v20 = vld [vmem:[%s4311_s23 + $0x140] sm:$0xff]  }
  0x17   : > { %v4191_v21 = vld [vmem:[%s4311_s23 + $0x48] sm:$0xff]   ;;  %v4193_v23 = vld [vmem:[%s4311_s23 + $0x50] sm:$0xff]   ;;  %v4195_v25 = vld [vmem:[%s4311_s23 + $0x58] sm:$0xff]  }
  0x18   : > { %v4192_v22 = vld [vmem:[%s4311_s23 + $0x148] sm:$0xff]   ;;  %v4194_v24 = vld [vmem:[%s4311_s23 + $0x150] sm:$0xff]   ;;  %v4196_v26 = vld [vmem:[%s4311_s23 + $0x158] sm:$0xff]  }
  0x19   : > { %v4197_v27 = vld [vmem:[%s4311_s23 + $0x60] sm:$0xff]   ;;  %v4199_v29 = vld [vmem:[%s4311_s23 + $0x68] sm:$0xff]   ;;  %v4201_v31 = vld [vmem:[%s4311_s23 + $0x70] sm:$0xff]  }
  0x1a   : > { %v4198_v28 = vld [vmem:[%s4311_s23 + $0x160] sm:$0xff]   ;;  %v4200_v30 = vld [vmem:[%s4311_s23 + $0x168] sm:$0xff]   ;;  %v4202_v32 = vld [vmem:[%s4311_s23 + $0x170] sm:$0xff]  }
  0x1b   : > { %4017 = vmatmul.mubr.msk.bf16.gmra.mrb[4].mxu0 %vm925_vm0, %v4179_v9  ;;  %v4203_v33 = vld [vmem:[%s4311_s23 + $0x78] sm:$0xff]   ;;  %v4205_v35 = vld [vmem:[%s4311_s23 + $0x80] sm:$0xff]   ;;  %v4207_v37 = vld [vmem:[%s4311_s23 + $0x88] sm:$0xff]  }
  0x1c   : > { %4081 = vmatmul.mubr.msk.bf16.gmra.mrb[4].mxu1 %vm925_vm0, %v4180_v10  ;;  %4020 = vmatprep.mubr.msk.bf16.mxu0 %vm925_vm0, %v4181_v11  ;;  %v4204_v34 = vld [vmem:[%s4311_s23 + $0x178] sm:$0xff]   ;;  %v4206_v36 = vld [vmem:[%s4311_s23 + $0x180] sm:$0xff]   ;;  %v4208_v38 = vld [vmem:[%s4311_s23 + $0x188] sm:$0xff]  }
  0x1d   : > { %4084 = vmatprep.mubr.msk.bf16.mxu1 %vm925_vm0, %v4182_v12  ;;  %v4209_v39 = vld [vmem:[%s4311_s23 + $0x90] sm:$0xff]   ;;  %v4211_v41 = vld [vmem:[%s4311_s23 + $0x98] sm:$0xff]   ;;  %v4213_v43 = vld [vmem:[%s4311_s23 + $0xa0] sm:$0xff]  }
  0x1e   : > { %v4210_v40 = vld [vmem:[%s4311_s23 + $0x190] sm:$0xff]   ;;  %v4212_v42 = vld [vmem:[%s4311_s23 + $0x198] sm:$0xff]   ;;  %v4214_v44 = vld [vmem:[%s4311_s23 + $0x1a0] sm:$0xff]  }
  0x1f   : > { %v4215_v45 = vld [vmem:[%s4311_s23 + $0xa8] sm:$0xff]   ;;  %v4217_v47 = vld [vmem:[%s4311_s23 + $0xb0] sm:$0xff]   ;;  %v4219_v49 = vld [vmem:[%s4311_s23 + $0xb8] sm:$0xff]  }
  0x20   : > { %v4216_v46 = vld [vmem:[%s4311_s23 + $0x1a8] sm:$0xff]   ;;  %v4218_v48 = vld [vmem:[%s4311_s23 + $0x1b0] sm:$0xff]   ;;  %v4220_v50 = vld [vmem:[%s4311_s23 + $0x1b8] sm:$0xff]  }
  0x21   : > { %v4221_v51 = vld [vmem:[%s4311_s23 + $0xc0] sm:$0xff]   ;;  %v4223_v53 = vld [vmem:[%s4311_s23 + $0xc8] sm:$0xff]   ;;  %v4225_v55 = vld [vmem:[%s4311_s23 + $0xd0] sm:$0xff]  }
  0x22   : > { %v4222_v52 = vld [vmem:[%s4311_s23 + $0x1c0] sm:$0xff]   ;;  %v4224_v54 = vld [vmem:[%s4311_s23 + $0x1c8] sm:$0xff]   ;;  %v4226_v56 = vld [vmem:[%s4311_s23 + $0x1d0] sm:$0xff]  }
  0x23   : > { %4021 = vmatmul.mubr.msk.bf16.gmra.mrb[8].mxu0 %vm925_vm0, %v4183_v13  ;;  %v4227_v57 = vld [vmem:[%s4311_s23 + $0xd8] sm:$0xff]   ;;  %v4229_v59 = vld [vmem:[%s4311_s23 + $0xe0] sm:$0xff]   ;;  %v4231_v61 = vld [vmem:[%s4311_s23 + $0xe8] sm:$0xff]  }
  0x24   : > { %4085 = vmatmul.mubr.msk.bf16.gmra.mrb[8].mxu1 %vm925_vm0, %v4184_v14  ;;  %4024 = vmatprep.mubr.msk.bf16.mxu0 %vm925_vm0, %v4185_v15  ;;  %v4228_v58 = vld [vmem:[%s4311_s23 + $0x1d8] sm:$0xff]   ;;  %v4230_v60 = vld [vmem:[%s4311_s23 + $0x1e0] sm:$0xff]   ;;  %v4232_v62 = vld [vmem:[%s4311_s23 + $0x1e8] sm:$0xff]  }
  0x25   : > { %4088 = vmatprep.mubr.msk.bf16.mxu1 %vm925_vm0, %v4186_v16  ;;  %v4233_v63 = vld [vmem:[%s4311_s23 + $0xf0] sm:$0xff]   ;;  %v4235_v1 = vld [vmem:[%s4311_s23 + $0xf8] sm:$0xff]  }
  0x26   : > { %v4234_v0 = vld [vmem:[%s4311_s23 + $0x1f0] sm:$0xff]   ;;  %v4236_v2 = vld [vmem:[%s4311_s23 + $0x1f8] sm:$0xff]  }
  0x2b   : > { %4025 = vmatmul.mubr.msk.bf16.gmra.mrb[12].mxu0 %vm925_vm0, %v4187_v17 }
  0x2c   : > { %4089 = vmatmul.mubr.msk.bf16.gmra.mrb[12].mxu1 %vm925_vm0, %v4188_v18  ;;  %4028 = vmatprep.mubr.msk.bf16.mxu0 %vm925_vm0, %v4189_v19 }
  0x2d   : > { %4092 = vmatprep.mubr.msk.bf16.mxu1 %vm925_vm0, %v4190_v20 }
  0x33   : > { %4029 = vmatmul.mubr.msk.bf16.gmra.mrb[16].mxu0 %vm925_vm0, %v4191_v21 }
  0x34   : > { %4093 = vmatmul.mubr.msk.bf16.gmra.mrb[16].mxu1 %vm925_vm0, %v4192_v22  ;;  %4032 = vmatprep.mubr.msk.bf16.mxu0 %vm925_vm0, %v4193_v23 }
  0x35   : > { %4096 = vmatprep.mubr.msk.bf16.mxu1 %vm925_vm0, %v4194_v24 }
  0x3b   : > { %4033 = vmatmul.mubr.msk.bf16.gmra.mrb[20].mxu0 %vm925_vm0, %v4195_v25 }
  0x3c   : > { %4097 = vmatmul.mubr.msk.bf16.gmra.mrb[20].mxu1 %vm925_vm0, %v4196_v26  ;;  %4036 = vmatprep.mubr.msk.bf16.mxu0 %vm925_vm0, %v4197_v27 }
  0x3d   : > { %4100 = vmatprep.mubr.msk.bf16.mxu1 %vm925_vm0, %v4198_v28 }
  0x43   : > { %4037 = vmatmul.mubr.msk.bf16.gmra.mrb[24].mxu0 %vm925_vm0, %v4199_v29 }
  0x44   : > { %4101 = vmatmul.mubr.msk.bf16.gmra.mrb[24].mxu1 %vm925_vm0, %v4200_v30  ;;  %4040 = vmatprep.mubr.msk.bf16.mxu0 %vm925_vm0, %v4201_v31 }
  0x45   : > { %4104 = vmatprep.mubr.msk.bf16.mxu1 %vm925_vm0, %v4202_v32 }
  0x4b   : > { %4041 = vmatmul.mubr.msk.bf16.gmra.mrb[28].mxu0 %vm925_vm0, %v4203_v33 }
  0x4c   : > { %4105 = vmatmul.mubr.msk.bf16.gmra.mrb[28].mxu1 %vm925_vm0, %v4204_v34  ;;  %4044 = vmatprep.mubr.msk.bf16.mxu0 %vm925_vm0, %v4205_v35 }
  0x4d   : > { %4108 = vmatprep.mubr.msk.bf16.mxu1 %vm925_vm0, %v4206_v36 }
  0x53   : > { %4045 = vmatmul.mubr.msk.bf16.gmra.mrb[32].mxu0 %vm925_vm0, %v4207_v37 }
  0x54   : > { %4109 = vmatmul.mubr.msk.bf16.gmra.mrb[32].mxu1 %vm925_vm0, %v4208_v38  ;;  %4048 = vmatprep.mubr.msk.bf16.mxu0 %vm925_vm0, %v4209_v39 }
  0x55   : > { %4112 = vmatprep.mubr.msk.bf16.mxu1 %vm925_vm0, %v4210_v40 }
  0x5b   : > { %4049 = vmatmul.mubr.msk.bf16.gmra.mrb[36].mxu0 %vm925_vm0, %v4211_v41 }
  0x5c   : > { %4113 = vmatmul.mubr.msk.bf16.gmra.mrb[36].mxu1 %vm925_vm0, %v4212_v42  ;;  %4052 = vmatprep.mubr.msk.bf16.mxu0 %vm925_vm0, %v4213_v43 }
  0x5d   : > { %4116 = vmatprep.mubr.msk.bf16.mxu1 %vm925_vm0, %v4214_v44 }
  0x63   : > { %4053 = vmatmul.mubr.msk.bf16.gmra.mrb[40].mxu0 %vm925_vm0, %v4215_v45 }
  0x64   : > { %4117 = vmatmul.mubr.msk.bf16.gmra.mrb[40].mxu1 %vm925_vm0, %v4216_v46  ;;  %4056 = vmatprep.mubr.msk.bf16.mxu0 %vm925_vm0, %v4217_v47 }
  0x65   : > { %4120 = vmatprep.mubr.msk.bf16.mxu1 %vm925_vm0, %v4218_v48 }
  0x6b   : > { %4057 = vmatmul.mubr.msk.bf16.gmra.mrb[44].mxu0 %vm925_vm0, %v4219_v49 }
  0x6c   : > { %4121 = vmatmul.mubr.msk.bf16.gmra.mrb[44].mxu1 %vm925_vm0, %v4220_v50  ;;  %4060 = vmatprep.mubr.msk.bf16.mxu0 %vm925_vm0, %v4221_v51 }
  0x6d   : > { %4124 = vmatprep.mubr.msk.bf16.mxu1 %vm925_vm0, %v4222_v52 }
  0x73   : > { %4061 = vmatmul.mubr.msk.bf16.gmra.mrb[48].mxu0 %vm925_vm0, %v4223_v53 }
  0x74   : > { %4125 = vmatmul.mubr.msk.bf16.gmra.mrb[48].mxu1 %vm925_vm0, %v4224_v54  ;;  %4064 = vmatprep.mubr.msk.bf16.mxu0 %vm925_vm0, %v4225_v55 }
  0x75   : > { %4128 = vmatprep.mubr.msk.bf16.mxu1 %vm925_vm0, %v4226_v56 }
  0x7b   : > { %4065 = vmatmul.mubr.msk.bf16.gmra.mrb[52].mxu0 %vm925_vm0, %v4227_v57 }
  0x7c   : > { %4129 = vmatmul.mubr.msk.bf16.gmra.mrb[52].mxu1 %vm925_vm0, %v4228_v58  ;;  %4068 = vmatprep.mubr.msk.bf16.mxu0 %vm925_vm0, %v4229_v59 }
  0x7d   : > { %4132 = vmatprep.mubr.msk.bf16.mxu1 %vm925_vm0, %v4230_v60 }
  0x83   : > { %4069 = vmatmul.mubr.msk.bf16.gmra.mrb[56].mxu0 %vm925_vm0, %v4231_v61 }
  0x84   : > { %4133 = vmatmul.mubr.msk.bf16.gmra.mrb[56].mxu1 %vm925_vm0, %v4232_v62  ;;  %4072 = vmatprep.mubr.msk.bf16.mxu0 %vm925_vm0, %v4233_v63 }
  0x85   : > { %4136 = vmatprep.mubr.msk.bf16.mxu1 %vm925_vm0, %v4234_v0 }
  0x8b   : > { %4073 = vmatmul.mubr.msk.bf16.gmra.mrb[60].mxu0 %vm925_vm0, %v4235_v1 }
  0x8c   : > { %4137 = vmatmul.mubr.msk.bf16.gmra.mrb[60].mxu1 %vm925_vm0, %v4236_v2 }
  0xe6   : > { %v4014_v3 = vpop.f32.mrb[0].mxu0 }
  0xe7   : > { %v4078_v4 = vpop.f32.mrb[0].mxu1  ;;  %vm2052_vm1 = vcmp.gt.f32.partialorder %v4014_v3, 0.0  ;;  %v2180_v5 = vmul.f32 0.2, %v4014_v3  ;;  %v1152_v7 = vpop.f32.mrb[1].mxu0 }
  0xe8   : > { %v2244_v6 = vmul.f32 0.2, %v4078_v4  ;;  %vm2116_vm2 = vcmp.gt.f32.partialorder %v4078_v4, 0.0  ;;  %v1408_v8 = vpop.f32.mrb[1].mxu1  ;;  %v2178_v9 = vmul.f32 0.2, %v1152_v7 }
  0xe9   : > { %v4015_v10 = vpop.f32.mrb[2].mxu0  ;;  %v4079_v11 = vpop.f32.mrb[2].mxu1  ;;  %v2308_v12 = vsel %vm2052_vm1, %v4014_v3, %v2180_v5  ;;  %v2242_v13 = vmul.f32 0.2, %v1408_v8  ;;  %vm2050_vm4 = vcmp.gt.f32.partialorder %v1152_v7, 0.0  ;;  %vm2114_vm6 = vcmp.gt.f32.partialorder %v1408_v8, 0.0 }
  0xea   : > { %vm2053_vm3 = vcmp.gt.f32.partialorder %v4015_v10, 0.0  ;;  %v2181_v14 = vmul.f32 0.2, %v4015_v10  ;;  %v2372_v15 = vsel %vm2116_vm2, %v4078_v4, %v2244_v6  ;;  %vm2117_vm5 = vcmp.gt.f32.partialorder %v4079_v11, 0.0  ;;  %v1155_v17 = vpop.f32.mrb[3].mxu0  ;;  %v1411_v18 = vpop.f32.mrb[3].mxu1 }
  0xeb   : > { %v2245_v16 = vmul.f32 0.2, %v4079_v11  ;;  %vm2051_vm7 = vcmp.gt.f32.partialorder %v1155_v17, 0.0  ;;  %v2179_v20 = vmul.f32 0.2, %v1155_v17  ;;  %vm2115_vm8 = vcmp.gt.f32.partialorder %v1411_v18, 0.0 }
  0xec   : > { %v2309_v19 = vsel %vm2053_vm3, %v4015_v10, %v2181_v14  ;;  %v2243_v23 = vmul.f32 0.2, %v1411_v18  ;;  %v2306_v24 = vsel %vm2050_vm4, %v1152_v7, %v2178_v9  ;;  %v2370_v29 = vsel %vm2114_vm6, %v1408_v8, %v2242_v13 }
  0xed   : > { %v3564_v21 = vpack.c.bf16 %v2309_v19, %v2308_v12  ;;  %v2373_v22 = vsel %vm2117_vm5, %v4079_v11, %v2245_v16  ;;  %v2307_v26 = vsel %vm2051_vm7, %v1155_v17, %v2179_v20 }
  0xee   : > { %v3724_v25 = vpack.c.bf16 %v2373_v22, %v2372_v15  ;;  %v4018_v27 = vpop.f32.mrb[4].mxu0  ;;  %v3559_v30 = vpack.c.bf16 %v2307_v26, %v2306_v24  ;;  %v2371_v31 = vsel %vm2115_vm8, %v1411_v18, %v2243_v23 }
  0xef   : > { %v4082_v28 = vpop.f32.mrb[4].mxu1  ;;  %3876 = vst [vmem:[%s4446_s26 + $0x8] sm:$0xff] %v3564_v21   ;;  %v2184_v32 = vmul.f32 0.2, %v4018_v27  ;;  %v1168_v33 = vpop.f32.mrb[5].mxu0  ;;  %v3719_v35 = vpack.c.bf16 %v2371_v31, %v2370_v29  ;;  %vm2056_vm9 = vcmp.gt.f32.partialorder %v4018_v27, 0.0 }
  0xf0   : > { %v1424_v34 = vpop.f32.mrb[5].mxu1  ;;  %3908 = vst [vmem:[%s4446_s26 + $0x108] sm:$0xff] %v3724_v25   ;;  %v2248_v36 = vmul.f32 0.2, %v4082_v28  ;;  %v4019_v37 = vpop.f32.mrb[6].mxu0  ;;  %3560 = vst [vmem:[%s4446_s26] sm:$0xff] %v3559_v30   ;;  %vm2120_vm10 = vcmp.gt.f32.partialorder %v4082_v28, 0.0 }
  0xf1   : > { %v4083_v38 = vpop.f32.mrb[6].mxu1  ;;  %v2182_v39 = vmul.f32 0.2, %v1168_v33  ;;  %v2246_v40 = vmul.f32 0.2, %v1424_v34  ;;  %v1171_v41 = vpop.f32.mrb[7].mxu0  ;;  %v2312_v44 = vsel %vm2056_vm9, %v4018_v27, %v2184_v32 }
  0xf2   : > { %3907 = vst [vmem:[%s4446_s26 + $0x100] sm:$0xff] %v3719_v35   ;;  %vm2054_vm11 = vcmp.gt.f32.partialorder %v1168_v33, 0.0  ;;  %vm2057_vm12 = vcmp.gt.f32.partialorder %v4019_v37, 0.0  ;;  %v2185_v42 = vmul.f32 0.2, %v4019_v37  ;;  %vm2121_vm13 = vcmp.gt.f32.partialorder %v4083_v38, 0.0 }
  0xf3   : > { %v1427_v43 = vpop.f32.mrb[7].mxu1  ;;  %vm2118_vm14 = vcmp.gt.f32.partialorder %v1424_v34, 0.0  ;;  %v2249_v45 = vmul.f32 0.2, %v4083_v38  ;;  %vm2055_vm15 = vcmp.gt.f32.partialorder %v1171_v41, 0.0  ;;  %v2376_v49 = vsel %vm2120_vm10, %v4082_v28, %v2248_v36 }
  0xf4   : > { %v2313_v46 = vsel %vm2057_vm12, %v4019_v37, %v2185_v42  ;;  %v2183_v47 = vmul.f32 0.2, %v1171_v41  ;;  %vm2119_vm0 = vcmp.gt.f32.partialorder %v1427_v43, 0.0  ;;  %v2247_v48 = vmul.f32 0.2, %v1427_v43 }
  0xf5   : > { %v2310_v50 = vsel %vm2054_vm11, %v1168_v33, %v2182_v39  ;;  %v3574_v51 = vpack.c.bf16 %v2313_v46, %v2312_v44  ;;  %v2377_v52 = vsel %vm2121_vm13, %v4083_v38, %v2249_v45  ;;  %v2374_v53 = vsel %vm2118_vm14, %v1424_v34, %v2246_v40 }
  0xf6   : > { %v3734_v54 = vpack.c.bf16 %v2377_v52, %v2376_v49  ;;  %v2311_v55 = vsel %vm2055_vm15, %v1171_v41, %v2183_v47  ;;  %v2375_v56 = vsel %vm2119_vm0, %v1427_v43, %v2247_v48  ;;  %v4022_v57 = vpop.f32.mrb[8].mxu0 }
  0xf7   : > { %v4086_v58 = vpop.f32.mrb[8].mxu1  ;;  %3878 = vst [vmem:[%s4446_s26 + $0x18] sm:$0xff] %v3574_v51   ;;  %v3569_v59 = vpack.c.bf16 %v2311_v55, %v2310_v50  ;;  %v3729_v60 = vpack.c.bf16 %v2375_v56, %v2374_v53  ;;  %vm2060_vm1 = vcmp.gt.f32.partialorder %v4022_v57, 0.0  ;;  %v2188_v61 = vmul.f32 0.2, %v4022_v57  ;;  %v1184_v62 = vpop.f32.mrb[9].mxu0 }
  0xf8   : > { %v1440_v63 = vpop.f32.mrb[9].mxu1  ;;  %3910 = vst [vmem:[%s4446_s26 + $0x118] sm:$0xff] %v3734_v54   ;;  %vm2124_vm2 = vcmp.gt.f32.partialorder %v4086_v58, 0.0  ;;  %v2252_v0 = vmul.f32 0.2, %v4086_v58  ;;  %v4023_v3 = vpop.f32.mrb[10].mxu0 }
  0xf9   : > { %3877 = vst [vmem:[%s4446_s26 + $0x10] sm:$0xff] %v3569_v59   ;;  %3909 = vst [vmem:[%s4446_s26 + $0x110] sm:$0xff] %v3729_v60   ;;  %v2186_v1 = vmul.f32 0.2, %v1184_v62  ;;  %v2250_v2 = vmul.f32 0.2, %v1440_v63  ;;  %v2316_v5 = vsel %vm2060_vm1, %v4022_v57, %v2188_v61 }
  0xfa   : > { %v4087_v4 = vpop.f32.mrb[10].mxu1  ;;  %vm2058_vm3 = vcmp.gt.f32.partialorder %v1184_v62, 0.0  ;;  %vm2061_vm4 = vcmp.gt.f32.partialorder %v4023_v3, 0.0  ;;  %v2189_v6 = vmul.f32 0.2, %v4023_v3  ;;  %v1187_v7 = vpop.f32.mrb[11].mxu0  ;;  %v2380_v13 = vsel %vm2124_vm2, %v4086_v58, %v2252_v0 }
  0xfb   : > { %v1443_v8 = vpop.f32.mrb[11].mxu1  ;;  %vm2122_vm5 = vcmp.gt.f32.partialorder %v1440_v63, 0.0  ;;  %vm2125_vm6 = vcmp.gt.f32.partialorder %v4087_v4, 0.0  ;;  %v2253_v9 = vmul.f32 0.2, %v4087_v4  ;;  %vm2059_vm7 = vcmp.gt.f32.partialorder %v1187_v7, 0.0 }
  0xfc   : > { %v2317_v10 = vsel %vm2061_vm4, %v4023_v3, %v2189_v6  ;;  %v2187_v11 = vmul.f32 0.2, %v1187_v7  ;;  %vm2123_vm8 = vcmp.gt.f32.partialorder %v1443_v8, 0.0  ;;  %v2251_v12 = vmul.f32 0.2, %v1443_v8 }
  0xfd   : > { %v2314_v14 = vsel %vm2058_vm3, %v1184_v62, %v2186_v1  ;;  %v3584_v15 = vpack.c.bf16 %v2317_v10, %v2316_v5  ;;  %v2381_v16 = vsel %vm2125_vm6, %v4087_v4, %v2253_v9  ;;  %v2378_v17 = vsel %vm2122_vm5, %v1440_v63, %v2250_v2 }
  0xfe   : > { %v3744_v18 = vpack.c.bf16 %v2381_v16, %v2380_v13  ;;  %v2315_v19 = vsel %vm2059_vm7, %v1187_v7, %v2187_v11  ;;  %v2379_v20 = vsel %vm2123_vm8, %v1443_v8, %v2251_v12  ;;  %v4026_v21 = vpop.f32.mrb[12].mxu0 }
  0xff   : > { %v4090_v22 = vpop.f32.mrb[12].mxu1  ;;  %3880 = vst [vmem:[%s4446_s26 + $0x28] sm:$0xff] %v3584_v15   ;;  %v3579_v23 = vpack.c.bf16 %v2315_v19, %v2314_v14  ;;  %v3739_v24 = vpack.c.bf16 %v2379_v20, %v2378_v17  ;;  %vm2064_vm9 = vcmp.gt.f32.partialorder %v4026_v21, 0.0  ;;  %v2192_v25 = vmul.f32 0.2, %v4026_v21  ;;  %v1200_v26 = vpop.f32.mrb[13].mxu0 }
 0x100   : > { %v1456_v27 = vpop.f32.mrb[13].mxu1  ;;  %3912 = vst [vmem:[%s4446_s26 + $0x128] sm:$0xff] %v3744_v18   ;;  %vm2128_vm10 = vcmp.gt.f32.partialorder %v4090_v22, 0.0  ;;  %v2256_v28 = vmul.f32 0.2, %v4090_v22  ;;  %v4027_v31 = vpop.f32.mrb[14].mxu0 }
 0x101   : > { %3879 = vst [vmem:[%s4446_s26 + $0x20] sm:$0xff] %v3579_v23   ;;  %3911 = vst [vmem:[%s4446_s26 + $0x120] sm:$0xff] %v3739_v24   ;;  %v2190_v29 = vmul.f32 0.2, %v1200_v26  ;;  %v2254_v30 = vmul.f32 0.2, %v1456_v27  ;;  %v2320_v33 = vsel %vm2064_vm9, %v4026_v21, %v2192_v25 }
 0x102   : > { %v4091_v32 = vpop.f32.mrb[14].mxu1  ;;  %vm2062_vm11 = vcmp.gt.f32.partialorder %v1200_v26, 0.0  ;;  %vm2065_vm12 = vcmp.gt.f32.partialorder %v4027_v31, 0.0  ;;  %v2193_v34 = vmul.f32 0.2, %v4027_v31  ;;  %v1203_v35 = vpop.f32.mrb[15].mxu0  ;;  %v2384_v41 = vsel %vm2128_vm10, %v4090_v22, %v2256_v28 }
 0x103   : > { %v1459_v36 = vpop.f32.mrb[15].mxu1  ;;  %vm2126_vm13 = vcmp.gt.f32.partialorder %v1456_v27, 0.0  ;;  %vm2129_vm14 = vcmp.gt.f32.partialorder %v4091_v32, 0.0  ;;  %v2257_v37 = vmul.f32 0.2, %v4091_v32  ;;  %vm2063_vm15 = vcmp.gt.f32.partialorder %v1203_v35, 0.0 }
 0x104   : > { %v2321_v38 = vsel %vm2065_vm12, %v4027_v31, %v2193_v34  ;;  %v2191_v39 = vmul.f32 0.2, %v1203_v35  ;;  %vm2127_vm0 = vcmp.gt.f32.partialorder %v1459_v36, 0.0  ;;  %v2255_v40 = vmul.f32 0.2, %v1459_v36 }
 0x105   : > { %v2318_v42 = vsel %vm2062_vm11, %v1200_v26, %v2190_v29  ;;  %v3594_v43 = vpack.c.bf16 %v2321_v38, %v2320_v33  ;;  %v2385_v44 = vsel %vm2129_vm14, %v4091_v32, %v2257_v37  ;;  %v2382_v45 = vsel %vm2126_vm13, %v1456_v27, %v2254_v30 }
 0x106   : > { %v3754_v46 = vpack.c.bf16 %v2385_v44, %v2384_v41  ;;  %v2319_v47 = vsel %vm2063_vm15, %v1203_v35, %v2191_v39  ;;  %v2383_v48 = vsel %vm2127_vm0, %v1459_v36, %v2255_v40  ;;  %v4030_v49 = vpop.f32.mrb[16].mxu0 }
 0x107   : > { %v4094_v50 = vpop.f32.mrb[16].mxu1  ;;  %3882 = vst [vmem:[%s4446_s26 + $0x38] sm:$0xff] %v3594_v43   ;;  %v3589_v51 = vpack.c.bf16 %v2319_v47, %v2318_v42  ;;  %v3749_v52 = vpack.c.bf16 %v2383_v48, %v2382_v45  ;;  %vm2068_vm1 = vcmp.gt.f32.partialorder %v4030_v49, 0.0  ;;  %v2196_v53 = vmul.f32 0.2, %v4030_v49  ;;  %v1216_v54 = vpop.f32.mrb[17].mxu0 }
 0x108   : > { %v1472_v55 = vpop.f32.mrb[17].mxu1  ;;  %3914 = vst [vmem:[%s4446_s26 + $0x138] sm:$0xff] %v3754_v46   ;;  %vm2132_vm2 = vcmp.gt.f32.partialorder %v4094_v50, 0.0  ;;  %v2260_v56 = vmul.f32 0.2, %v4094_v50  ;;  %v4031_v59 = vpop.f32.mrb[18].mxu0 }
 0x109   : > { %3881 = vst [vmem:[%s4446_s26 + $0x30] sm:$0xff] %v3589_v51   ;;  %3913 = vst [vmem:[%s4446_s26 + $0x130] sm:$0xff] %v3749_v52   ;;  %v2194_v57 = vmul.f32 0.2, %v1216_v54  ;;  %v2258_v58 = vmul.f32 0.2, %v1472_v55  ;;  %v2324_v61 = vsel %vm2068_vm1, %v4030_v49, %v2196_v53 }
 0x10a   : > { %v4095_v60 = vpop.f32.mrb[18].mxu1  ;;  %vm2066_vm3 = vcmp.gt.f32.partialorder %v1216_v54, 0.0  ;;  %vm2069_vm4 = vcmp.gt.f32.partialorder %v4031_v59, 0.0  ;;  %v2197_v62 = vmul.f32 0.2, %v4031_v59  ;;  %v1219_v63 = vpop.f32.mrb[19].mxu0  ;;  %v2388_v5 = vsel %vm2132_vm2, %v4094_v50, %v2260_v56 }
 0x10b   : > { %v1475_v0 = vpop.f32.mrb[19].mxu1  ;;  %vm2130_vm5 = vcmp.gt.f32.partialorder %v1472_v55, 0.0  ;;  %vm2133_vm6 = vcmp.gt.f32.partialorder %v4095_v60, 0.0  ;;  %v2261_v1 = vmul.f32 0.2, %v4095_v60  ;;  %vm2067_vm7 = vcmp.gt.f32.partialorder %v1219_v63, 0.0 }
 0x10c   : > { %v2325_v2 = vsel %vm2069_vm4, %v4031_v59, %v2197_v62  ;;  %v2195_v3 = vmul.f32 0.2, %v1219_v63  ;;  %vm2131_vm8 = vcmp.gt.f32.partialorder %v1475_v0, 0.0  ;;  %v2259_v4 = vmul.f32 0.2, %v1475_v0 }
 0x10d   : > { %v2322_v6 = vsel %vm2066_vm3, %v1216_v54, %v2194_v57  ;;  %v3604_v7 = vpack.c.bf16 %v2325_v2, %v2324_v61  ;;  %v2389_v8 = vsel %vm2133_vm6, %v4095_v60, %v2261_v1  ;;  %v2386_v9 = vsel %vm2130_vm5, %v1472_v55, %v2258_v58 }
 0x10e   : > { %v3764_v10 = vpack.c.bf16 %v2389_v8, %v2388_v5  ;;  %v2323_v11 = vsel %vm2067_vm7, %v1219_v63, %v2195_v3  ;;  %v2387_v12 = vsel %vm2131_vm8, %v1475_v0, %v2259_v4  ;;  %v4034_v13 = vpop.f32.mrb[20].mxu0 }
 0x10f   : > { %v4098_v14 = vpop.f32.mrb[20].mxu1  ;;  %3884 = vst [vmem:[%s4446_s26 + $0x48] sm:$0xff] %v3604_v7   ;;  %v3599_v15 = vpack.c.bf16 %v2323_v11, %v2322_v6  ;;  %v3759_v16 = vpack.c.bf16 %v2387_v12, %v2386_v9  ;;  %vm2072_vm9 = vcmp.gt.f32.partialorder %v4034_v13, 0.0  ;;  %v2200_v17 = vmul.f32 0.2, %v4034_v13  ;;  %v1232_v18 = vpop.f32.mrb[21].mxu0 }
 0x110   : > { %v1488_v19 = vpop.f32.mrb[21].mxu1  ;;  %3916 = vst [vmem:[%s4446_s26 + $0x148] sm:$0xff] %v3764_v10   ;;  %vm2136_vm10 = vcmp.gt.f32.partialorder %v4098_v14, 0.0  ;;  %v2264_v20 = vmul.f32 0.2, %v4098_v14  ;;  %v4035_v23 = vpop.f32.mrb[22].mxu0 }
 0x111   : > { %3883 = vst [vmem:[%s4446_s26 + $0x40] sm:$0xff] %v3599_v15   ;;  %3915 = vst [vmem:[%s4446_s26 + $0x140] sm:$0xff] %v3759_v16   ;;  %v2198_v21 = vmul.f32 0.2, %v1232_v18  ;;  %v2262_v22 = vmul.f32 0.2, %v1488_v19  ;;  %v2328_v25 = vsel %vm2072_vm9, %v4034_v13, %v2200_v17 }
 0x112   : > { %v4099_v24 = vpop.f32.mrb[22].mxu1  ;;  %vm2070_vm11 = vcmp.gt.f32.partialorder %v1232_v18, 0.0  ;;  %vm2073_vm12 = vcmp.gt.f32.partialorder %v4035_v23, 0.0  ;;  %v2201_v26 = vmul.f32 0.2, %v4035_v23  ;;  %v1235_v27 = vpop.f32.mrb[23].mxu0  ;;  %v2392_v33 = vsel %vm2136_vm10, %v4098_v14, %v2264_v20 }
 0x113   : > { %v1491_v28 = vpop.f32.mrb[23].mxu1  ;;  %vm2134_vm13 = vcmp.gt.f32.partialorder %v1488_v19, 0.0  ;;  %vm2137_vm14 = vcmp.gt.f32.partialorder %v4099_v24, 0.0  ;;  %v2265_v29 = vmul.f32 0.2, %v4099_v24  ;;  %vm2071_vm15 = vcmp.gt.f32.partialorder %v1235_v27, 0.0 }
 0x114   : > { %v2329_v30 = vsel %vm2073_vm12, %v4035_v23, %v2201_v26  ;;  %v2199_v31 = vmul.f32 0.2, %v1235_v27  ;;  %vm2135_vm0 = vcmp.gt.f32.partialorder %v1491_v28, 0.0  ;;  %v2263_v32 = vmul.f32 0.2, %v1491_v28 }
 0x115   : > { %v2326_v34 = vsel %vm2070_vm11, %v1232_v18, %v2198_v21  ;;  %v3614_v35 = vpack.c.bf16 %v2329_v30, %v2328_v25  ;;  %v2393_v36 = vsel %vm2137_vm14, %v4099_v24, %v2265_v29  ;;  %v2390_v37 = vsel %vm2134_vm13, %v1488_v19, %v2262_v22 }
 0x116   : > { %v3774_v38 = vpack.c.bf16 %v2393_v36, %v2392_v33  ;;  %v2327_v39 = vsel %vm2071_vm15, %v1235_v27, %v2199_v31  ;;  %v2391_v40 = vsel %vm2135_vm0, %v1491_v28, %v2263_v32  ;;  %v4038_v41 = vpop.f32.mrb[24].mxu0 }
 0x117   : > { %v4102_v42 = vpop.f32.mrb[24].mxu1  ;;  %3886 = vst [vmem:[%s4446_s26 + $0x58] sm:$0xff] %v3614_v35   ;;  %v3609_v43 = vpack.c.bf16 %v2327_v39, %v2326_v34  ;;  %v3769_v44 = vpack.c.bf16 %v2391_v40, %v2390_v37  ;;  %vm2076_vm1 = vcmp.gt.f32.partialorder %v4038_v41, 0.0  ;;  %v2204_v45 = vmul.f32 0.2, %v4038_v41  ;;  %v1248_v46 = vpop.f32.mrb[25].mxu0 }
 0x118   : > { %v1504_v47 = vpop.f32.mrb[25].mxu1  ;;  %3918 = vst [vmem:[%s4446_s26 + $0x158] sm:$0xff] %v3774_v38   ;;  %vm2140_vm2 = vcmp.gt.f32.partialorder %v4102_v42, 0.0  ;;  %v2268_v48 = vmul.f32 0.2, %v4102_v42  ;;  %v4039_v51 = vpop.f32.mrb[26].mxu0 }
 0x119   : > { %3885 = vst [vmem:[%s4446_s26 + $0x50] sm:$0xff] %v3609_v43   ;;  %3917 = vst [vmem:[%s4446_s26 + $0x150] sm:$0xff] %v3769_v44   ;;  %v2202_v49 = vmul.f32 0.2, %v1248_v46  ;;  %v2266_v50 = vmul.f32 0.2, %v1504_v47  ;;  %v2332_v53 = vsel %vm2076_vm1, %v4038_v41, %v2204_v45 }
 0x11a   : > { %v4103_v52 = vpop.f32.mrb[26].mxu1  ;;  %vm2074_vm3 = vcmp.gt.f32.partialorder %v1248_v46, 0.0  ;;  %vm2077_vm4 = vcmp.gt.f32.partialorder %v4039_v51, 0.0  ;;  %v2205_v54 = vmul.f32 0.2, %v4039_v51  ;;  %v1251_v55 = vpop.f32.mrb[27].mxu0  ;;  %v2396_v61 = vsel %vm2140_vm2, %v4102_v42, %v2268_v48 }
 0x11b   : > { %v1507_v56 = vpop.f32.mrb[27].mxu1  ;;  %vm2138_vm5 = vcmp.gt.f32.partialorder %v1504_v47, 0.0  ;;  %vm2141_vm6 = vcmp.gt.f32.partialorder %v4103_v52, 0.0  ;;  %v2269_v57 = vmul.f32 0.2, %v4103_v52  ;;  %vm2075_vm7 = vcmp.gt.f32.partialorder %v1251_v55, 0.0 }
 0x11c   : > { %v2333_v58 = vsel %vm2077_vm4, %v4039_v51, %v2205_v54  ;;  %v2203_v59 = vmul.f32 0.2, %v1251_v55  ;;  %vm2139_vm8 = vcmp.gt.f32.partialorder %v1507_v56, 0.0  ;;  %v2267_v60 = vmul.f32 0.2, %v1507_v56 }
 0x11d   : > { %v2330_v62 = vsel %vm2074_vm3, %v1248_v46, %v2202_v49  ;;  %v3624_v63 = vpack.c.bf16 %v2333_v58, %v2332_v53  ;;  %v2397_v0 = vsel %vm2141_vm6, %v4103_v52, %v2269_v57  ;;  %v2394_v1 = vsel %vm2138_vm5, %v1504_v47, %v2266_v50 }
 0x11e   : > { %v3784_v2 = vpack.c.bf16 %v2397_v0, %v2396_v61  ;;  %v2331_v3 = vsel %vm2075_vm7, %v1251_v55, %v2203_v59  ;;  %v2395_v4 = vsel %vm2139_vm8, %v1507_v56, %v2267_v60  ;;  %v4042_v5 = vpop.f32.mrb[28].mxu0 }
 0x11f   : > { %v4106_v6 = vpop.f32.mrb[28].mxu1  ;;  %3888 = vst [vmem:[%s4446_s26 + $0x68] sm:$0xff] %v3624_v63   ;;  %v3619_v7 = vpack.c.bf16 %v2331_v3, %v2330_v62  ;;  %v3779_v8 = vpack.c.bf16 %v2395_v4, %v2394_v1  ;;  %vm2080_vm9 = vcmp.gt.f32.partialorder %v4042_v5, 0.0  ;;  %v2208_v9 = vmul.f32 0.2, %v4042_v5  ;;  %v1264_v10 = vpop.f32.mrb[29].mxu0 }
 0x120   : > { %v1520_v11 = vpop.f32.mrb[29].mxu1  ;;  %3920 = vst [vmem:[%s4446_s26 + $0x168] sm:$0xff] %v3784_v2   ;;  %vm2144_vm10 = vcmp.gt.f32.partialorder %v4106_v6, 0.0  ;;  %v2272_v12 = vmul.f32 0.2, %v4106_v6  ;;  %v4043_v15 = vpop.f32.mrb[30].mxu0 }
 0x121   : > { %3887 = vst [vmem:[%s4446_s26 + $0x60] sm:$0xff] %v3619_v7   ;;  %3919 = vst [vmem:[%s4446_s26 + $0x160] sm:$0xff] %v3779_v8   ;;  %v2206_v13 = vmul.f32 0.2, %v1264_v10  ;;  %v2270_v14 = vmul.f32 0.2, %v1520_v11  ;;  %v2336_v17 = vsel %vm2080_vm9, %v4042_v5, %v2208_v9 }
 0x122   : > { %v4107_v16 = vpop.f32.mrb[30].mxu1  ;;  %vm2078_vm11 = vcmp.gt.f32.partialorder %v1264_v10, 0.0  ;;  %vm2081_vm12 = vcmp.gt.f32.partialorder %v4043_v15, 0.0  ;;  %v2209_v18 = vmul.f32 0.2, %v4043_v15  ;;  %v1267_v19 = vpop.f32.mrb[31].mxu0  ;;  %v2400_v25 = vsel %vm2144_vm10, %v4106_v6, %v2272_v12 }
 0x123   : > { %v1523_v20 = vpop.f32.mrb[31].mxu1  ;;  %vm2142_vm13 = vcmp.gt.f32.partialorder %v1520_v11, 0.0  ;;  %vm2145_vm14 = vcmp.gt.f32.partialorder %v4107_v16, 0.0  ;;  %v2273_v21 = vmul.f32 0.2, %v4107_v16  ;;  %vm2079_vm15 = vcmp.gt.f32.partialorder %v1267_v19, 0.0 }
 0x124   : > { %v2337_v22 = vsel %vm2081_vm12, %v4043_v15, %v2209_v18  ;;  %v2207_v23 = vmul.f32 0.2, %v1267_v19  ;;  %vm2143_vm0 = vcmp.gt.f32.partialorder %v1523_v20, 0.0  ;;  %v2271_v24 = vmul.f32 0.2, %v1523_v20 }
 0x125   : > { %v2334_v26 = vsel %vm2078_vm11, %v1264_v10, %v2206_v13  ;;  %v3634_v27 = vpack.c.bf16 %v2337_v22, %v2336_v17  ;;  %v2401_v28 = vsel %vm2145_vm14, %v4107_v16, %v2273_v21  ;;  %v2398_v29 = vsel %vm2142_vm13, %v1520_v11, %v2270_v14 }
 0x126   : > { %v3794_v30 = vpack.c.bf16 %v2401_v28, %v2400_v25  ;;  %v2335_v31 = vsel %vm2079_vm15, %v1267_v19, %v2207_v23  ;;  %v2399_v32 = vsel %vm2143_vm0, %v1523_v20, %v2271_v24  ;;  %v4046_v33 = vpop.f32.mrb[32].mxu0 }
 0x127   : > { %v4110_v34 = vpop.f32.mrb[32].mxu1  ;;  %3890 = vst [vmem:[%s4446_s26 + $0x78] sm:$0xff] %v3634_v27   ;;  %v3629_v35 = vpack.c.bf16 %v2335_v31, %v2334_v26  ;;  %v3789_v36 = vpack.c.bf16 %v2399_v32, %v2398_v29  ;;  %vm2084_vm1 = vcmp.gt.f32.partialorder %v4046_v33, 0.0  ;;  %v2212_v37 = vmul.f32 0.2, %v4046_v33  ;;  %v1280_v38 = vpop.f32.mrb[33].mxu0 }
 0x128   : > { %v1536_v39 = vpop.f32.mrb[33].mxu1  ;;  %3922 = vst [vmem:[%s4446_s26 + $0x178] sm:$0xff] %v3794_v30   ;;  %vm2148_vm2 = vcmp.gt.f32.partialorder %v4110_v34, 0.0  ;;  %v2276_v40 = vmul.f32 0.2, %v4110_v34  ;;  %v4047_v43 = vpop.f32.mrb[34].mxu0 }
 0x129   : > { %3889 = vst [vmem:[%s4446_s26 + $0x70] sm:$0xff] %v3629_v35   ;;  %3921 = vst [vmem:[%s4446_s26 + $0x170] sm:$0xff] %v3789_v36   ;;  %v2210_v41 = vmul.f32 0.2, %v1280_v38  ;;  %v2274_v42 = vmul.f32 0.2, %v1536_v39  ;;  %v2340_v45 = vsel %vm2084_vm1, %v4046_v33, %v2212_v37 }
 0x12a   : > { %v4111_v44 = vpop.f32.mrb[34].mxu1  ;;  %vm2082_vm3 = vcmp.gt.f32.partialorder %v1280_v38, 0.0  ;;  %vm2085_vm4 = vcmp.gt.f32.partialorder %v4047_v43, 0.0  ;;  %v2213_v46 = vmul.f32 0.2, %v4047_v43  ;;  %v1283_v47 = vpop.f32.mrb[35].mxu0  ;;  %v2404_v53 = vsel %vm2148_vm2, %v4110_v34, %v2276_v40 }
 0x12b   : > { %v1539_v48 = vpop.f32.mrb[35].mxu1  ;;  %vm2146_vm5 = vcmp.gt.f32.partialorder %v1536_v39, 0.0  ;;  %vm2149_vm6 = vcmp.gt.f32.partialorder %v4111_v44, 0.0  ;;  %v2277_v49 = vmul.f32 0.2, %v4111_v44  ;;  %vm2083_vm7 = vcmp.gt.f32.partialorder %v1283_v47, 0.0 }
 0x12c   : > { %v2341_v50 = vsel %vm2085_vm4, %v4047_v43, %v2213_v46  ;;  %v2211_v51 = vmul.f32 0.2, %v1283_v47  ;;  %vm2147_vm8 = vcmp.gt.f32.partialorder %v1539_v48, 0.0  ;;  %v2275_v52 = vmul.f32 0.2, %v1539_v48 }
 0x12d   : > { %v2338_v54 = vsel %vm2082_vm3, %v1280_v38, %v2210_v41  ;;  %v3644_v55 = vpack.c.bf16 %v2341_v50, %v2340_v45  ;;  %v2405_v56 = vsel %vm2149_vm6, %v4111_v44, %v2277_v49  ;;  %v2402_v57 = vsel %vm2146_vm5, %v1536_v39, %v2274_v42 }
 0x12e   : > { %v3804_v58 = vpack.c.bf16 %v2405_v56, %v2404_v53  ;;  %v2339_v59 = vsel %vm2083_vm7, %v1283_v47, %v2211_v51  ;;  %v2403_v60 = vsel %vm2147_vm8, %v1539_v48, %v2275_v52  ;;  %v4050_v61 = vpop.f32.mrb[36].mxu0 }
 0x12f   : > { %v4114_v62 = vpop.f32.mrb[36].mxu1  ;;  %3892 = vst [vmem:[%s4446_s26 + $0x88] sm:$0xff] %v3644_v55   ;;  %v3639_v63 = vpack.c.bf16 %v2339_v59, %v2338_v54  ;;  %v3799_v0 = vpack.c.bf16 %v2403_v60, %v2402_v57  ;;  %vm2088_vm9 = vcmp.gt.f32.partialorder %v4050_v61, 0.0  ;;  %v2216_v1 = vmul.f32 0.2, %v4050_v61  ;;  %v1296_v2 = vpop.f32.mrb[37].mxu0 }
 0x130   : > { %v1552_v3 = vpop.f32.mrb[37].mxu1  ;;  %3924 = vst [vmem:[%s4446_s26 + $0x188] sm:$0xff] %v3804_v58   ;;  %vm2152_vm10 = vcmp.gt.f32.partialorder %v4114_v62, 0.0  ;;  %v2280_v4 = vmul.f32 0.2, %v4114_v62  ;;  %v4051_v7 = vpop.f32.mrb[38].mxu0 }
 0x131   : > { %3891 = vst [vmem:[%s4446_s26 + $0x80] sm:$0xff] %v3639_v63   ;;  %3923 = vst [vmem:[%s4446_s26 + $0x180] sm:$0xff] %v3799_v0   ;;  %v2214_v5 = vmul.f32 0.2, %v1296_v2  ;;  %v2278_v6 = vmul.f32 0.2, %v1552_v3  ;;  %v2344_v9 = vsel %vm2088_vm9, %v4050_v61, %v2216_v1 }
 0x132   : > { %v4115_v8 = vpop.f32.mrb[38].mxu1  ;;  %vm2086_vm11 = vcmp.gt.f32.partialorder %v1296_v2, 0.0  ;;  %vm2089_vm12 = vcmp.gt.f32.partialorder %v4051_v7, 0.0  ;;  %v2217_v10 = vmul.f32 0.2, %v4051_v7  ;;  %v1299_v11 = vpop.f32.mrb[39].mxu0  ;;  %v2408_v17 = vsel %vm2152_vm10, %v4114_v62, %v2280_v4 }
 0x133   : > { %v1555_v12 = vpop.f32.mrb[39].mxu1  ;;  %vm2150_vm13 = vcmp.gt.f32.partialorder %v1552_v3, 0.0  ;;  %vm2153_vm14 = vcmp.gt.f32.partialorder %v4115_v8, 0.0  ;;  %v2281_v13 = vmul.f32 0.2, %v4115_v8  ;;  %vm2087_vm15 = vcmp.gt.f32.partialorder %v1299_v11, 0.0 }
 0x134   : > { %v2345_v14 = vsel %vm2089_vm12, %v4051_v7, %v2217_v10  ;;  %v2215_v15 = vmul.f32 0.2, %v1299_v11  ;;  %vm2151_vm0 = vcmp.gt.f32.partialorder %v1555_v12, 0.0  ;;  %v2279_v16 = vmul.f32 0.2, %v1555_v12 }
 0x135   : > { %v2342_v18 = vsel %vm2086_vm11, %v1296_v2, %v2214_v5  ;;  %v3654_v19 = vpack.c.bf16 %v2345_v14, %v2344_v9  ;;  %v2409_v20 = vsel %vm2153_vm14, %v4115_v8, %v2281_v13  ;;  %v2406_v21 = vsel %vm2150_vm13, %v1552_v3, %v2278_v6 }
 0x136   : > { %v3814_v22 = vpack.c.bf16 %v2409_v20, %v2408_v17  ;;  %v2343_v23 = vsel %vm2087_vm15, %v1299_v11, %v2215_v15  ;;  %v2407_v24 = vsel %vm2151_vm0, %v1555_v12, %v2279_v16  ;;  %v4054_v25 = vpop.f32.mrb[40].mxu0 }
 0x137   : > { %v4118_v26 = vpop.f32.mrb[40].mxu1  ;;  %3894 = vst [vmem:[%s4446_s26 + $0x98] sm:$0xff] %v3654_v19   ;;  %v3649_v27 = vpack.c.bf16 %v2343_v23, %v2342_v18  ;;  %v3809_v28 = vpack.c.bf16 %v2407_v24, %v2406_v21  ;;  %vm2092_vm1 = vcmp.gt.f32.partialorder %v4054_v25, 0.0  ;;  %v2220_v29 = vmul.f32 0.2, %v4054_v25  ;;  %v1312_v30 = vpop.f32.mrb[41].mxu0 }
 0x138   : > { %v1568_v31 = vpop.f32.mrb[41].mxu1  ;;  %3926 = vst [vmem:[%s4446_s26 + $0x198] sm:$0xff] %v3814_v22   ;;  %vm2156_vm2 = vcmp.gt.f32.partialorder %v4118_v26, 0.0  ;;  %v2284_v32 = vmul.f32 0.2, %v4118_v26  ;;  %v4055_v35 = vpop.f32.mrb[42].mxu0 }
 0x139   : > { %3893 = vst [vmem:[%s4446_s26 + $0x90] sm:$0xff] %v3649_v27   ;;  %3925 = vst [vmem:[%s4446_s26 + $0x190] sm:$0xff] %v3809_v28   ;;  %v2218_v33 = vmul.f32 0.2, %v1312_v30  ;;  %v2282_v34 = vmul.f32 0.2, %v1568_v31  ;;  %v2348_v37 = vsel %vm2092_vm1, %v4054_v25, %v2220_v29 }
 0x13a   : > { %v4119_v36 = vpop.f32.mrb[42].mxu1  ;;  %vm2090_vm3 = vcmp.gt.f32.partialorder %v1312_v30, 0.0  ;;  %vm2093_vm4 = vcmp.gt.f32.partialorder %v4055_v35, 0.0  ;;  %v2221_v38 = vmul.f32 0.2, %v4055_v35  ;;  %v1315_v39 = vpop.f32.mrb[43].mxu0  ;;  %v2412_v45 = vsel %vm2156_vm2, %v4118_v26, %v2284_v32 }
 0x13b   : > { %v1571_v40 = vpop.f32.mrb[43].mxu1  ;;  %vm2154_vm5 = vcmp.gt.f32.partialorder %v1568_v31, 0.0  ;;  %vm2157_vm6 = vcmp.gt.f32.partialorder %v4119_v36, 0.0  ;;  %v2285_v41 = vmul.f32 0.2, %v4119_v36  ;;  %vm2091_vm7 = vcmp.gt.f32.partialorder %v1315_v39, 0.0 }
 0x13c   : > { %v2349_v42 = vsel %vm2093_vm4, %v4055_v35, %v2221_v38  ;;  %v2219_v43 = vmul.f32 0.2, %v1315_v39  ;;  %vm2155_vm8 = vcmp.gt.f32.partialorder %v1571_v40, 0.0  ;;  %v2283_v44 = vmul.f32 0.2, %v1571_v40 }
 0x13d   : > { %v2346_v46 = vsel %vm2090_vm3, %v1312_v30, %v2218_v33  ;;  %v3664_v47 = vpack.c.bf16 %v2349_v42, %v2348_v37  ;;  %v2413_v48 = vsel %vm2157_vm6, %v4119_v36, %v2285_v41  ;;  %v2410_v49 = vsel %vm2154_vm5, %v1568_v31, %v2282_v34 }
 0x13e   : > { %v3824_v50 = vpack.c.bf16 %v2413_v48, %v2412_v45  ;;  %v2347_v51 = vsel %vm2091_vm7, %v1315_v39, %v2219_v43  ;;  %v2411_v52 = vsel %vm2155_vm8, %v1571_v40, %v2283_v44  ;;  %v4058_v53 = vpop.f32.mrb[44].mxu0 }
 0x13f   : > { %v4122_v54 = vpop.f32.mrb[44].mxu1  ;;  %3896 = vst [vmem:[%s4446_s26 + $0xa8] sm:$0xff] %v3664_v47   ;;  %v3659_v55 = vpack.c.bf16 %v2347_v51, %v2346_v46  ;;  %v3819_v56 = vpack.c.bf16 %v2411_v52, %v2410_v49  ;;  %vm2096_vm9 = vcmp.gt.f32.partialorder %v4058_v53, 0.0  ;;  %v2224_v57 = vmul.f32 0.2, %v4058_v53  ;;  %v1328_v58 = vpop.f32.mrb[45].mxu0 }
 0x140   : > { %v1584_v59 = vpop.f32.mrb[45].mxu1  ;;  %3928 = vst [vmem:[%s4446_s26 + $0x1a8] sm:$0xff] %v3824_v50   ;;  %vm2160_vm10 = vcmp.gt.f32.partialorder %v4122_v54, 0.0  ;;  %v2288_v60 = vmul.f32 0.2, %v4122_v54  ;;  %v4059_v63 = vpop.f32.mrb[46].mxu0 }
 0x141   : > { %3895 = vst [vmem:[%s4446_s26 + $0xa0] sm:$0xff] %v3659_v55   ;;  %3927 = vst [vmem:[%s4446_s26 + $0x1a0] sm:$0xff] %v3819_v56   ;;  %v2222_v61 = vmul.f32 0.2, %v1328_v58  ;;  %v2286_v62 = vmul.f32 0.2, %v1584_v59  ;;  %v2352_v1 = vsel %vm2096_vm9, %v4058_v53, %v2224_v57 }
 0x142   : > { %v4123_v0 = vpop.f32.mrb[46].mxu1  ;;  %vm2094_vm11 = vcmp.gt.f32.partialorder %v1328_v58, 0.0  ;;  %vm2097_vm12 = vcmp.gt.f32.partialorder %v4059_v63, 0.0  ;;  %v2225_v2 = vmul.f32 0.2, %v4059_v63  ;;  %v1331_v3 = vpop.f32.mrb[47].mxu0  ;;  %v2416_v9 = vsel %vm2160_vm10, %v4122_v54, %v2288_v60 }
 0x143   : > { %v1587_v4 = vpop.f32.mrb[47].mxu1  ;;  %vm2158_vm13 = vcmp.gt.f32.partialorder %v1584_v59, 0.0  ;;  %vm2161_vm14 = vcmp.gt.f32.partialorder %v4123_v0, 0.0  ;;  %v2289_v5 = vmul.f32 0.2, %v4123_v0  ;;  %vm2095_vm15 = vcmp.gt.f32.partialorder %v1331_v3, 0.0 }
 0x144   : > { %v2353_v6 = vsel %vm2097_vm12, %v4059_v63, %v2225_v2  ;;  %v2223_v7 = vmul.f32 0.2, %v1331_v3  ;;  %vm2159_vm0 = vcmp.gt.f32.partialorder %v1587_v4, 0.0  ;;  %v2287_v8 = vmul.f32 0.2, %v1587_v4 }
 0x145   : > { %v2350_v10 = vsel %vm2094_vm11, %v1328_v58, %v2222_v61  ;;  %v3674_v11 = vpack.c.bf16 %v2353_v6, %v2352_v1  ;;  %v2417_v12 = vsel %vm2161_vm14, %v4123_v0, %v2289_v5  ;;  %v2414_v13 = vsel %vm2158_vm13, %v1584_v59, %v2286_v62 }
 0x146   : > { %v3834_v14 = vpack.c.bf16 %v2417_v12, %v2416_v9  ;;  %v2351_v15 = vsel %vm2095_vm15, %v1331_v3, %v2223_v7  ;;  %v2415_v16 = vsel %vm2159_vm0, %v1587_v4, %v2287_v8  ;;  %v4062_v17 = vpop.f32.mrb[48].mxu0 }
 0x147   : > { %v4126_v18 = vpop.f32.mrb[48].mxu1  ;;  %3898 = vst [vmem:[%s4446_s26 + $0xb8] sm:$0xff] %v3674_v11   ;;  %v3669_v19 = vpack.c.bf16 %v2351_v15, %v2350_v10  ;;  %v3829_v20 = vpack.c.bf16 %v2415_v16, %v2414_v13  ;;  %vm2100_vm1 = vcmp.gt.f32.partialorder %v4062_v17, 0.0  ;;  %v2228_v21 = vmul.f32 0.2, %v4062_v17  ;;  %v1344_v22 = vpop.f32.mrb[49].mxu0 }
 0x148   : > { %v1600_v23 = vpop.f32.mrb[49].mxu1  ;;  %3930 = vst [vmem:[%s4446_s26 + $0x1b8] sm:$0xff] %v3834_v14   ;;  %vm2164_vm2 = vcmp.gt.f32.partialorder %v4126_v18, 0.0  ;;  %v2292_v24 = vmul.f32 0.2, %v4126_v18  ;;  %v4063_v27 = vpop.f32.mrb[50].mxu0 }
 0x149   : > { %3897 = vst [vmem:[%s4446_s26 + $0xb0] sm:$0xff] %v3669_v19   ;;  %3929 = vst [vmem:[%s4446_s26 + $0x1b0] sm:$0xff] %v3829_v20   ;;  %v2226_v25 = vmul.f32 0.2, %v1344_v22  ;;  %v2290_v26 = vmul.f32 0.2, %v1600_v23  ;;  %v2356_v29 = vsel %vm2100_vm1, %v4062_v17, %v2228_v21 }
 0x14a   : > { %v4127_v28 = vpop.f32.mrb[50].mxu1  ;;  %vm2098_vm3 = vcmp.gt.f32.partialorder %v1344_v22, 0.0  ;;  %vm2101_vm4 = vcmp.gt.f32.partialorder %v4063_v27, 0.0  ;;  %v2229_v30 = vmul.f32 0.2, %v4063_v27  ;;  %v1347_v31 = vpop.f32.mrb[51].mxu0  ;;  %v2420_v37 = vsel %vm2164_vm2, %v4126_v18, %v2292_v24 }
 0x14b   : > { %v1603_v32 = vpop.f32.mrb[51].mxu1  ;;  %vm2162_vm5 = vcmp.gt.f32.partialorder %v1600_v23, 0.0  ;;  %vm2165_vm6 = vcmp.gt.f32.partialorder %v4127_v28, 0.0  ;;  %v2293_v33 = vmul.f32 0.2, %v4127_v28  ;;  %vm2099_vm7 = vcmp.gt.f32.partialorder %v1347_v31, 0.0 }
 0x14c   : > { %v2357_v34 = vsel %vm2101_vm4, %v4063_v27, %v2229_v30  ;;  %v2227_v35 = vmul.f32 0.2, %v1347_v31  ;;  %vm2163_vm8 = vcmp.gt.f32.partialorder %v1603_v32, 0.0  ;;  %v2291_v36 = vmul.f32 0.2, %v1603_v32 }
 0x14d   : > { %v2354_v38 = vsel %vm2098_vm3, %v1344_v22, %v2226_v25  ;;  %v3684_v39 = vpack.c.bf16 %v2357_v34, %v2356_v29  ;;  %v2421_v40 = vsel %vm2165_vm6, %v4127_v28, %v2293_v33  ;;  %v2418_v41 = vsel %vm2162_vm5, %v1600_v23, %v2290_v26 }
 0x14e   : > { %v3844_v42 = vpack.c.bf16 %v2421_v40, %v2420_v37  ;;  %v2355_v43 = vsel %vm2099_vm7, %v1347_v31, %v2227_v35  ;;  %v2419_v44 = vsel %vm2163_vm8, %v1603_v32, %v2291_v36  ;;  %v4066_v45 = vpop.f32.mrb[52].mxu0 }
 0x14f   : > { %v4130_v46 = vpop.f32.mrb[52].mxu1  ;;  %3900 = vst [vmem:[%s4446_s26 + $0xc8] sm:$0xff] %v3684_v39   ;;  %v3679_v47 = vpack.c.bf16 %v2355_v43, %v2354_v38  ;;  %v3839_v48 = vpack.c.bf16 %v2419_v44, %v2418_v41  ;;  %vm2104_vm9 = vcmp.gt.f32.partialorder %v4066_v45, 0.0  ;;  %v2232_v49 = vmul.f32 0.2, %v4066_v45  ;;  %v1360_v50 = vpop.f32.mrb[53].mxu0 }
 0x150   : > { %v1616_v51 = vpop.f32.mrb[53].mxu1  ;;  %3932 = vst [vmem:[%s4446_s26 + $0x1c8] sm:$0xff] %v3844_v42   ;;  %vm2168_vm10 = vcmp.gt.f32.partialorder %v4130_v46, 0.0  ;;  %v2296_v52 = vmul.f32 0.2, %v4130_v46  ;;  %v4067_v55 = vpop.f32.mrb[54].mxu0 }
 0x151   : > { %3899 = vst [vmem:[%s4446_s26 + $0xc0] sm:$0xff] %v3679_v47   ;;  %3931 = vst [vmem:[%s4446_s26 + $0x1c0] sm:$0xff] %v3839_v48   ;;  %v2230_v53 = vmul.f32 0.2, %v1360_v50  ;;  %v2294_v54 = vmul.f32 0.2, %v1616_v51  ;;  %v2360_v57 = vsel %vm2104_vm9, %v4066_v45, %v2232_v49 }
 0x152   : > { %v4131_v56 = vpop.f32.mrb[54].mxu1  ;;  %vm2102_vm11 = vcmp.gt.f32.partialorder %v1360_v50, 0.0  ;;  %vm2105_vm12 = vcmp.gt.f32.partialorder %v4067_v55, 0.0  ;;  %v2233_v58 = vmul.f32 0.2, %v4067_v55  ;;  %v1363_v59 = vpop.f32.mrb[55].mxu0  ;;  %v2424_v1 = vsel %vm2168_vm10, %v4130_v46, %v2296_v52 }
 0x153   : > { %v1619_v60 = vpop.f32.mrb[55].mxu1  ;;  %vm2166_vm13 = vcmp.gt.f32.partialorder %v1616_v51, 0.0  ;;  %vm2169_vm14 = vcmp.gt.f32.partialorder %v4131_v56, 0.0  ;;  %v2297_v61 = vmul.f32 0.2, %v4131_v56  ;;  %vm2103_vm15 = vcmp.gt.f32.partialorder %v1363_v59, 0.0 }
 0x154   : > { %v2361_v62 = vsel %vm2105_vm12, %v4067_v55, %v2233_v58  ;;  %v2231_v63 = vmul.f32 0.2, %v1363_v59  ;;  %vm2167_vm0 = vcmp.gt.f32.partialorder %v1619_v60, 0.0  ;;  %v2295_v0 = vmul.f32 0.2, %v1619_v60 }
 0x155   : > { %v2358_v2 = vsel %vm2102_vm11, %v1360_v50, %v2230_v53  ;;  %v3694_v3 = vpack.c.bf16 %v2361_v62, %v2360_v57  ;;  %v2425_v4 = vsel %vm2169_vm14, %v4131_v56, %v2297_v61  ;;  %v2422_v5 = vsel %vm2166_vm13, %v1616_v51, %v2294_v54 }
 0x156   : > { %v3854_v6 = vpack.c.bf16 %v2425_v4, %v2424_v1  ;;  %v2359_v7 = vsel %vm2103_vm15, %v1363_v59, %v2231_v63  ;;  %v2423_v8 = vsel %vm2167_vm0, %v1619_v60, %v2295_v0  ;;  %v4070_v9 = vpop.f32.mrb[56].mxu0 }
 0x157   : > { %v4134_v10 = vpop.f32.mrb[56].mxu1  ;;  %3902 = vst [vmem:[%s4446_s26 + $0xd8] sm:$0xff] %v3694_v3   ;;  %v3689_v11 = vpack.c.bf16 %v2359_v7, %v2358_v2  ;;  %v3849_v12 = vpack.c.bf16 %v2423_v8, %v2422_v5  ;;  %vm2108_vm1 = vcmp.gt.f32.partialorder %v4070_v9, 0.0  ;;  %v2236_v13 = vmul.f32 0.2, %v4070_v9  ;;  %v1376_v14 = vpop.f32.mrb[57].mxu0 }
 0x158   : > { %v1632_v15 = vpop.f32.mrb[57].mxu1  ;;  %3934 = vst [vmem:[%s4446_s26 + $0x1d8] sm:$0xff] %v3854_v6   ;;  %vm2172_vm2 = vcmp.gt.f32.partialorder %v4134_v10, 0.0  ;;  %v2300_v16 = vmul.f32 0.2, %v4134_v10  ;;  %v4071_v19 = vpop.f32.mrb[58].mxu0 }
 0x159   : > { %3901 = vst [vmem:[%s4446_s26 + $0xd0] sm:$0xff] %v3689_v11   ;;  %3933 = vst [vmem:[%s4446_s26 + $0x1d0] sm:$0xff] %v3849_v12   ;;  %v2234_v17 = vmul.f32 0.2, %v1376_v14  ;;  %v2298_v18 = vmul.f32 0.2, %v1632_v15  ;;  %v2364_v21 = vsel %vm2108_vm1, %v4070_v9, %v2236_v13 }
 0x15a   : > { %v4135_v20 = vpop.f32.mrb[58].mxu1  ;;  %vm2106_vm3 = vcmp.gt.f32.partialorder %v1376_v14, 0.0  ;;  %vm2109_vm4 = vcmp.gt.f32.partialorder %v4071_v19, 0.0  ;;  %v2237_v22 = vmul.f32 0.2, %v4071_v19  ;;  %v1379_v23 = vpop.f32.mrb[59].mxu0  ;;  %v2428_v29 = vsel %vm2172_vm2, %v4134_v10, %v2300_v16 }
 0x15b   : > { %v1635_v24 = vpop.f32.mrb[59].mxu1  ;;  %vm2170_vm5 = vcmp.gt.f32.partialorder %v1632_v15, 0.0  ;;  %vm2173_vm6 = vcmp.gt.f32.partialorder %v4135_v20, 0.0  ;;  %v2301_v25 = vmul.f32 0.2, %v4135_v20  ;;  %vm2107_vm7 = vcmp.gt.f32.partialorder %v1379_v23, 0.0 }
 0x15c   : > { %v2365_v26 = vsel %vm2109_vm4, %v4071_v19, %v2237_v22  ;;  %v2235_v27 = vmul.f32 0.2, %v1379_v23  ;;  %vm2171_vm8 = vcmp.gt.f32.partialorder %v1635_v24, 0.0  ;;  %v2299_v28 = vmul.f32 0.2, %v1635_v24 }
 0x15d   : > { %v2362_v30 = vsel %vm2106_vm3, %v1376_v14, %v2234_v17  ;;  %v3704_v31 = vpack.c.bf16 %v2365_v26, %v2364_v21  ;;  %v2429_v32 = vsel %vm2173_vm6, %v4135_v20, %v2301_v25  ;;  %v2426_v33 = vsel %vm2170_vm5, %v1632_v15, %v2298_v18 }
 0x15e   : > { %v3864_v34 = vpack.c.bf16 %v2429_v32, %v2428_v29  ;;  %v2363_v35 = vsel %vm2107_vm7, %v1379_v23, %v2235_v27  ;;  %v2427_v36 = vsel %vm2171_vm8, %v1635_v24, %v2299_v28  ;;  %v4074_v37 = vpop.f32.mrb[60].mxu0 }
 0x15f   : > { %v4138_v38 = vpop.f32.mrb[60].mxu1  ;;  %3904 = vst [vmem:[%s4446_s26 + $0xe8] sm:$0xff] %v3704_v31   ;;  %v3699_v39 = vpack.c.bf16 %v2363_v35, %v2362_v30  ;;  %v3859_v40 = vpack.c.bf16 %v2427_v36, %v2426_v33  ;;  %vm2112_vm9 = vcmp.gt.f32.partialorder %v4074_v37, 0.0  ;;  %v2240_v41 = vmul.f32 0.2, %v4074_v37  ;;  %v1392_v42 = vpop.f32.mrb[61].mxu0 }
 0x160   : > { %v1648_v43 = vpop.f32.mrb[61].mxu1  ;;  %3936 = vst [vmem:[%s4446_s26 + $0x1e8] sm:$0xff] %v3864_v34   ;;  %vm2176_vm10 = vcmp.gt.f32.partialorder %v4138_v38, 0.0  ;;  %v2304_v44 = vmul.f32 0.2, %v4138_v38  ;;  %v4075_v47 = vpop.f32.mrb[62].mxu0 }
 0x161   : > { %3903 = vst [vmem:[%s4446_s26 + $0xe0] sm:$0xff] %v3699_v39   ;;  %3935 = vst [vmem:[%s4446_s26 + $0x1e0] sm:$0xff] %v3859_v40   ;;  %v2238_v45 = vmul.f32 0.2, %v1392_v42  ;;  %v2302_v46 = vmul.f32 0.2, %v1648_v43  ;;  %v2368_v49 = vsel %vm2112_vm9, %v4074_v37, %v2240_v41 }
 0x162   : > { %v4139_v48 = vpop.f32.mrb[62].mxu1  ;;  %vm2110_vm11 = vcmp.gt.f32.partialorder %v1392_v42, 0.0  ;;  %vm2113_vm12 = vcmp.gt.f32.partialorder %v4075_v47, 0.0  ;;  %v2241_v50 = vmul.f32 0.2, %v4075_v47  ;;  %v1395_v51 = vpop.f32.mrb[63].mxu0  ;;  %v2432_v57 = vsel %vm2176_vm10, %v4138_v38, %v2304_v44 }
 0x163   : > { %v1651_v52 = vpop.f32.mrb[63].mxu1  ;;  %vm2174_vm13 = vcmp.gt.f32.partialorder %v1648_v43, 0.0  ;;  %vm2177_vm14 = vcmp.gt.f32.partialorder %v4139_v48, 0.0  ;;  %v2305_v53 = vmul.f32 0.2, %v4139_v48  ;;  %vm2111_vm15 = vcmp.gt.f32.partialorder %v1395_v51, 0.0 }
 0x164   : > { %v2369_v54 = vsel %vm2113_vm12, %v4075_v47, %v2241_v50  ;;  %v2239_v55 = vmul.f32 0.2, %v1395_v51  ;;  %vm2175_vm0 = vcmp.gt.f32.partialorder %v1651_v52, 0.0  ;;  %v2303_v56 = vmul.f32 0.2, %v1651_v52 }
 0x165   : > { %v2366_v58 = vsel %vm2110_vm11, %v1392_v42, %v2238_v45  ;;  %v3714_v59 = vpack.c.bf16 %v2369_v54, %v2368_v49  ;;  %v2433_v60 = vsel %vm2177_vm14, %v4139_v48, %v2305_v53  ;;  %v2430_v61 = vsel %vm2174_vm13, %v1648_v43, %v2302_v46 }
 0x166   : > { %v3874_v62 = vpack.c.bf16 %v2433_v60, %v2432_v57  ;;  %v2367_v63 = vsel %vm2111_vm15, %v1395_v51, %v2239_v55  ;;  %v2431_v0 = vsel %vm2175_vm0, %v1651_v52, %v2303_v56 }
 0x167   : > { %3906 = vst [vmem:[%s4446_s26 + $0xf8] sm:$0xff] %v3714_v59   ;;  %v3709_v1 = vpack.c.bf16 %v2367_v63, %v2366_v58  ;;  %v3869_v2 = vpack.c.bf16 %v2431_v0, %v2430_v61 }
 0x168   : > { %3938 = vst [vmem:[%s4446_s26 + $0x1f8] sm:$0xff] %v3874_v62  }
 0x169   : > { %3905 = vst [vmem:[%s4446_s26 + $0xf0] sm:$0xff] %v3709_v1   ;;  %3937 = vst [vmem:[%s4446_s26 + $0x1f0] sm:$0xff] %v3869_v2  }
 0x16a PF: > { %s12_s11 = sadd.s32 1, %s4259_s11   ;;  %s4539_s9 = smov %s4255_s10 }
 0x16b   : > { %p9_p5 = scmp.ge.s32.totalorder %s12_s11, 10   ;;  %s4540_s10 = smov %s4542_s12 }
 0x16d   :  { %11 = sbr.rel (!%p9_p5) target bundleno = 2 (0x2), region = 69 }

// kernel: discriminator_forward.11
= control target key start
LH: loop header
LB: loop body
LE: loop exit
PB: predicated region body
PF: predicated region fallthrough
CT: control target
= control target key end

     0   :  { %s2789_s12 = smov 0   ;;  %s3520_s0 = inlined_call_operand.vmem [shape: bf16[2048,128], index: 0, kind: input, shape index: {}, may-alias: {0,3}]   ;;  %s3521_s1 = inlined_call_operand.vmem [shape: f32[1,128], index: 1, kind: input, shape index: {}]   ;;  %s3522_s2 = inlined_call_operand.vmem [shape: f32[1,128], index: 2, kind: input, shape index: {}]   ;;  %s3523_s3 = inlined_call_operand.vmem [shape: bf16[2048,128], index: 3, kind: output, shape index: {}, may-alias: {0,3}]  }
   0x1 LB: > { %s1780_s13 = sadd.s32 4294967295, %s2767_s12   ;;  %p1784_p0 = scmp.ge.s32.totalorder %s2767_s12, 1  ;;  %s2767_s12 = sphi %s2789_s12, %s13_s12  }
   0x2   : > { %p138_p1 = scmp.lt.s32.totalorder %s2767_s12, 3 }
   0x4   : > { %p139_p2 = pnand %p1784_p0, %p138_p1 }
   0x6   : > { %142 = sbr.rel (%p139_p2) target bundleno = 235 (0xeb), region = 32 }
   0xd   : > { %s1785_s14 = sshll.u32 %s1780_s13, 7  ;;  %v2810_v0 = vld [vmem:[%s3521_s1] ss:$0 sm:$0xff] }
   0xe   : > { %p163_p3 = scmp.lt.s32.totalorder %s1785_s14, 255  ;;  %v2819_v9 = vld [vmem:[%s3522_s2] ss:$0 sm:$0xff] }
  0x10   : > { %s3581_s14 = smov (!%p163_p3, %s1785_s14), 255 }
  0x11   : > { %s1786_s15 = sshll.u32 %s3581_s14, 2 }
  0x12   : > { %s2805_s18 = scalar_lea.vmem %s3520_s0, %s1786_s15  ;;  %s2908_s25 = scalar_lea.vmem %s3523_s3, %s1786_s15 }
  0x13   : > { %v2050_v1 = vld [vmem:[%s2805_s18] sm:$0xff]   ;;  %v2625_v2 = vld [vmem:[%s2805_s18 + $0x8] sm:$0xff]   ;;  %v2626_v3 = vld [vmem:[%s2805_s18 + $0x10] sm:$0xff]  }
  0x14   : > { %v2051_v4 = vunpack.c.l.bf16 %v2050_v1  ;;  %v2052_v5 = vunpack.c.h.bf16 %v2050_v1  ;;  %v2627_v6 = vld [vmem:[%s2805_s18 + $0x18] sm:$0xff]   ;;  %v2055_v7 = vunpack.c.l.bf16 %v2625_v2  ;;  %v2056_v8 = vunpack.c.h.bf16 %v2625_v2  ;;  %v2628_v18 = vld [vmem:[%s2805_s18 + $0x20] sm:$0xff]   ;;  %v2629_v23 = vld [vmem:[%s2805_s18 + $0x28] sm:$0xff]  }
  0x15   : > { %v2059_v10 = vunpack.c.l.bf16 %v2626_v3  ;;  %v2060_v11 = vunpack.c.h.bf16 %v2626_v3  ;;  %v2063_v12 = vunpack.c.l.bf16 %v2627_v6  ;;  %v2064_v13 = vunpack.c.h.bf16 %v2627_v6  ;;  %v2858_v51 = vld [vmem:[%s2805_s18 + $0x30] sm:$0xff]   ;;  %v2880_v63 = vld [vmem:[%s2805_s18 + $0x38] sm:$0xff]   ;;  %v2894_v6 = vld [vmem:[%s2805_s18 + $0x48] sm:$0xff]  }
  0x16   : > { %v437_v14 = vmul.f32 %v2051_v4, %v2810_v0  ;;  %v438_v15 = vmul.f32 %v2052_v5, %v2810_v0  ;;  %v439_v16 = vmul.f32 %v2055_v7, %v2810_v0  ;;  %v440_v17 = vmul.f32 %v2056_v8, %v2810_v0  ;;  %v2891_v5 = vld [vmem:[%s2805_s18 + $0x40] sm:$0xff]   ;;  %v3028_v7 = vld [vmem:[%s2805_s18 + $0x188] sm:$0xff]   ;;  %v3031_v59 = vld [vmem:[%s2805_s18 + $0x190] sm:$0xff]  }
  0x17   : > { %v441_v19 = vmul.f32 %v2059_v10, %v2810_v0  ;;  %v442_v20 = vmul.f32 %v2060_v11, %v2810_v0  ;;  %v443_v21 = vmul.f32 %v2063_v12, %v2810_v0  ;;  %v444_v22 = vmul.f32 %v2064_v13, %v2810_v0  ;;  %v2911_v11 = vld [vmem:[%s2805_s18 + $0x50] sm:$0xff]   ;;  %v2914_v12 = vld [vmem:[%s2805_s18 + $0x58] sm:$0xff]   ;;  %v2917_v13 = vld [vmem:[%s2805_s18 + $0x60] sm:$0xff]   ;;  %3546 = vst [vmem:[#allocation7_spill] sm:$0xff] %v3028_v7 }
  0x18   : > { %v572_v24 = vadd.f32 %v2819_v9, %v437_v14  ;;  %v573_v25 = vadd.f32 %v2819_v9, %v438_v15  ;;  %v574_v26 = vadd.f32 %v2819_v9, %v439_v16  ;;  %v575_v27 = vadd.f32 %v2819_v9, %v440_v17  ;;  %v2920_v14 = vld [vmem:[%s2805_s18 + $0x68] sm:$0xff]   ;;  %v2923_v15 = vld [vmem:[%s2805_s18 + $0x70] sm:$0xff]   ;;  %v2926_v16 = vld [vmem:[%s2805_s18 + $0x78] sm:$0xff]   ;;  %3547 = vst [vmem:[#allocation8_spill] sm:$0xff] %v3031_v59 }
  0x19   : > { %v576_v28 = vadd.f32 %v2819_v9, %v441_v19  ;;  %v577_v29 = vadd.f32 %v2819_v9, %v442_v20  ;;  %v578_v30 = vadd.f32 %v2819_v9, %v443_v21  ;;  %v579_v31 = vadd.f32 %v2819_v9, %v444_v22  ;;  %v2929_v17 = vld [vmem:[%s2805_s18 + $0x80] sm:$0xff]   ;;  %v2935_v19 = vld [vmem:[%s2805_s18 + $0x90] sm:$0xff]   ;;  %v2938_v20 = vld [vmem:[%s2805_s18 + $0x98] sm:$0xff]  }
  0x1a   : > { %vm700_vm0 = vcmp.gt.f32.partialorder %v572_v24, 0.0  ;;  %vm701_vm1 = vcmp.gt.f32.partialorder %v573_v25, 0.0  ;;  %vm702_vm2 = vcmp.gt.f32.partialorder %v574_v26, 0.0  ;;  %v2067_v32 = vunpack.c.l.bf16 %v2628_v18  ;;  %v2941_v21 = vld [vmem:[%s2805_s18 + $0xa0] sm:$0xff]   ;;  %v2944_v22 = vld [vmem:[%s2805_s18 + $0xa8] sm:$0xff]   ;;  %v3034_v52 = vld [vmem:[%s2805_s18 + $0x198] sm:$0xff]  }
  0x1b   : > { %v828_v33 = vmul.f32 0.2, %v572_v24  ;;  %vm703_vm3 = vcmp.gt.f32.partialorder %v575_v27, 0.0  ;;  %v2068_v34 = vunpack.c.h.bf16 %v2628_v18  ;;  %v2071_v35 = vunpack.c.l.bf16 %v2629_v23  ;;  %v2932_v18 = vld [vmem:[%s2805_s18 + $0x88] sm:$0xff]   ;;  %3548 = vst [vmem:[#allocation9_spill] sm:$0xff] %v3034_v52  ;;  %v3037_v45 = vld [vmem:[%s2805_s18 + $0x1a0] sm:$0xff]  }
  0x1c   : > { %v829_v36 = vmul.f32 0.2, %v573_v25  ;;  %vm704_vm4 = vcmp.gt.f32.partialorder %v576_v28, 0.0  ;;  %v445_v37 = vmul.f32 %v2067_v32, %v2810_v0  ;;  %v2072_v38 = vunpack.c.h.bf16 %v2629_v23  ;;  %v2947_v23 = vld [vmem:[%s2805_s18 + $0xb0] sm:$0xff]   ;;  %v2974_v32 = vld [vmem:[%s2805_s18 + $0xf8] sm:$0xff]   ;;  %3549 = vst [vmem:[#allocation10_spill] sm:$0xff] %v3037_v45 }
  0x1d   : > { %v2840_v39 = vsel %vm700_vm0, %v572_v24, %v828_v33  ;;  %v830_v40 = vmul.f32 0.2, %v574_v26  ;;  %vm705_vm5 = vcmp.gt.f32.partialorder %v577_v29, 0.0  ;;  %v446_v41 = vmul.f32 %v2068_v34, %v2810_v0  ;;  %v2950_v24 = vld [vmem:[%s2805_s18 + $0xb8] sm:$0xff]   ;;  %v2977_v33 = vld [vmem:[%s2805_s18 + $0x100] sm:$0xff]   ;;  %v2980_v34 = vld [vmem:[%s2805_s18 + $0x108] sm:$0xff]  }
  0x1e   : > { %v2843_v42 = vsel %vm701_vm1, %v573_v25, %v829_v36  ;;  %v831_v43 = vmul.f32 0.2, %v575_v27  ;;  %vm706_vm6 = vcmp.gt.f32.partialorder %v578_v30, 0.0  ;;  %v580_v44 = vadd.f32 %v2819_v9, %v445_v37  ;;  %v2953_v25 = vld [vmem:[%s2805_s18 + $0xc0] sm:$0xff]   ;;  %v2986_v36 = vld [vmem:[%s2805_s18 + $0x118] sm:$0xff]   ;;  %v3040_v4 = vld [vmem:[%s2805_s18 + $0x1a8] sm:$0xff]  }
  0x1f   : > { %v2849_v46 = vsel %vm702_vm2, %v574_v26, %v830_v40  ;;  %v832_v47 = vmul.f32 0.2, %v576_v28  ;;  %vm707_vm7 = vcmp.gt.f32.partialorder %v579_v31, 0.0  ;;  %v833_v49 = vmul.f32 0.2, %v577_v29  ;;  %v2956_v26 = vld [vmem:[%s2805_s18 + $0xc8] sm:$0xff]  }
  0x20   : > { %v2852_v48 = vsel %vm703_vm3, %v575_v27, %v831_v43  ;;  %v2855_v50 = vadd.f32 %v2819_v9, %v446_v41  ;;  %vm708_vm8 = vcmp.gt.f32.partialorder %v580_v44, 0.0  ;;  %v834_v54 = vmul.f32 0.2, %v578_v30  ;;  %v2959_v27 = vld [vmem:[%s2805_s18 + $0xd0] sm:$0xff]   ;;  %v2989_v37 = vld [vmem:[%s2805_s18 + $0x120] sm:$0xff]   ;;  %v2998_v41 = vld [vmem:[%s2805_s18 + $0x138] sm:$0xff]  }
  0x21   : > { %v2863_v53 = vsel %vm704_vm4, %v576_v28, %v832_v47  ;;  %v447_v55 = vmul.f32 %v2071_v35, %v2810_v0  ;;  %v2867_v56 = vsel %vm705_vm5, %v577_v29, %v833_v49  ;;  %v835_v57 = vmul.f32 0.2, %v579_v31  ;;  %v2962_v28 = vld [vmem:[%s2805_s18 + $0xd8] sm:$0xff]   ;;  %v2965_v29 = vld [vmem:[%s2805_s18 + $0xe0] sm:$0xff]   ;;  %v2983_v35 = vld [vmem:[%s2805_s18 + $0x110] sm:$0xff]   ;;  %3550 = vst [vmem:[#allocation11_spill] sm:$0xff] %v3040_v4 }
  0x22   : > { %vm709_vm9 = vcmp.gt.f32.partialorder %v2855_v50, 0.0  ;;  %v448_v58 = vmul.f32 %v2072_v38, %v2810_v0  ;;  %v2874_v60 = vsel %vm706_vm6, %v578_v30, %v834_v54  ;;  %v836_v61 = vmul.f32 0.2, %v580_v44  ;;  %v2968_v30 = vld [vmem:[%s2805_s18 + $0xe8] sm:$0xff]   ;;  %v2995_v40 = vld [vmem:[%s2805_s18 + $0x130] sm:$0xff]   ;;  %v3001_v43 = vld [vmem:[%s2805_s18 + $0x140] sm:$0xff]  }
  0x23   : > { %v2877_v62 = vadd.f32 %v2819_v9, %v447_v55  ;;  %v2883_v1 = vsel %vm707_vm7, %v579_v31, %v835_v57  ;;  %v837_v2 = vmul.f32 0.2, %v2855_v50  ;;  %v2971_v31 = vld [vmem:[%s2805_s18 + $0xf0] sm:$0xff]   ;;  %v2992_v38 = vld [vmem:[%s2805_s18 + $0x128] sm:$0xff]   ;;  %v3010_v49 = vld [vmem:[%s2805_s18 + $0x158] sm:$0xff]   ;;  %v2076_v4 = vunpack.c.h.bf16 %v2858_v51 }
  0x24   : > { %v2887_v3 = vadd.f32 %v2819_v9, %v448_v58  ;;  %v2899_v8 = vsel %vm708_vm8, %v580_v44, %v836_v61  ;;  %v3004_v44 = vld [vmem:[%s2805_s18 + $0x148] sm:$0xff]   ;;  %v3007_v47 = vld [vmem:[%s2805_s18 + $0x150] sm:$0xff]   ;;  %v3013_v54 = vld [vmem:[%s2805_s18 + $0x160] sm:$0xff]   ;;  %v2079_v7 = vunpack.c.l.bf16 %v2880_v63 }
  0x25   : > { %vm710_vm10 = vcmp.gt.f32.partialorder %v2877_v62, 0.0  ;;  %v838_v10 = vmul.f32 0.2, %v2877_v62  ;;  %3541 = vst [vmem:[#allocation2_spill] sm:$0xff] %v3013_v54  ;;  %v3016_v55 = vld [vmem:[%s2805_s18 + $0x168] sm:$0xff]   ;;  %v3019_v57 = vld [vmem:[%s2805_s18 + $0x170] sm:$0xff]   ;;  %v965_v59 = vsel %vm709_vm9, %v2855_v50, %v837_v2  ;;  %v3558_v2 = vunpack.c.l.bf16 %v2858_v51 }
  0x26   : > { %3542 = vst [vmem:[#allocation3_spill] sm:$0xff] %v3016_v55  ;;  %3543 = vst [vmem:[#allocation4_spill] sm:$0xff] %v3019_v57  ;;  %v3022_v58 = vld [vmem:[%s2805_s18 + $0x178] sm:$0xff]   ;;  %v3025_v61 = vld [vmem:[%s2805_s18 + $0x180] sm:$0xff]   ;;  %vm711_vm11 = vcmp.gt.f32.partialorder %v2887_v3, 0.0  ;;  %v3559_v51 = vpack.c.bf16 %v2843_v42, %v2840_v39  ;;  %v2084_v39 = vunpack.c.h.bf16 %v2891_v5 }
  0x27   : > { %3544 = vst [vmem:[#allocation5_spill] sm:$0xff] %v3022_v58  ;;  %3545 = vst [vmem:[#allocation6_spill] sm:$0xff] %v3025_v61  ;;  %v3043_v55 = vld [vmem:[%s2805_s18 + $0x1b0] sm:$0xff]   ;;  %v3046_v57 = vld [vmem:[%s2805_s18 + $0x1b8] sm:$0xff]   ;;  %v839_v45 = vmul.f32 0.2, %v2887_v3  ;;  %v966_v50 = vsel %vm710_vm10, %v2877_v62, %v838_v10  ;;  %v449_v52 = vmul.f32 %v3558_v2, %v2810_v0  ;;  %v2083_v62 = vunpack.c.l.bf16 %v2891_v5 }
  0x28   : > { %3551 = vst [vmem:[#allocation12_spill] sm:$0xff] %v3043_v55  ;;  %3552 = vst [vmem:[#allocation13_spill] sm:$0xff] %v3046_v57  ;;  %v3049_v58 = vld [vmem:[%s2805_s18 + $0x1c0] sm:$0xff]   ;;  %v3052_v61 = vld [vmem:[%s2805_s18 + $0x1c8] sm:$0xff]   ;;  %v3560_v10 = vpack.c.bf16 %v2852_v48, %v2849_v46  ;;  %v3561_v2 = vpack.c.bf16 %v2867_v56, %v2863_v53  ;;  %v2087_v53 = vunpack.c.l.bf16 %v2894_v6 }
  0x29   : > { %3553 = vst [vmem:[#allocation14_spill] sm:$0xff] %v3049_v58  ;;  %3554 = vst [vmem:[#allocation15_spill] sm:$0xff] %v3052_v61  ;;  %v3061_v55 = vld [vmem:[%s2805_s18 + $0x1d0] sm:$0xff]   ;;  %v3064_v57 = vld [vmem:[%s2805_s18 + $0x1d8] sm:$0xff]   ;;  %v2328_v61 = vpack.c.bf16 %v965_v59, %v2899_v8  ;;  %v450_v59 = vmul.f32 %v2076_v4, %v2810_v0  ;;  %v2080_v8 = vunpack.c.h.bf16 %v2880_v63  ;;  %v451_v4 = vmul.f32 %v2079_v7, %v2810_v0 }
  0x2a   : > { %3555 = vst [vmem:[#allocation16_spill] sm:$0xff] %v3061_v55  ;;  %3556 = vst [vmem:[#allocation17_spill] sm:$0xff] %v3064_v57  ;;  %v3067_v58 = vld [vmem:[%s2805_s18 + $0x1e0] sm:$0xff]   ;;  %v3078_v55 = vld [vmem:[%s2805_s18 + $0x1e8] sm:$0xff]   ;;  %v453_v48 = vmul.f32 %v2083_v62, %v2810_v0 }
  0x2b   : > { %3557 = vst [vmem:[#allocation18_spill] sm:$0xff] %v3067_v58  ;;  %v3081_v54 = vld [vmem:[%s2805_s18 + $0x1f0] sm:$0xff]   ;;  %v3084_v57 = vld [vmem:[%s2805_s18 + $0x1f8] sm:$0xff]   ;;  %v967_v58 = vsel %vm711_vm11, %v2887_v3, %v839_v45  ;;  %v3562_v45 = vpack.c.bf16 %v2883_v1, %v2874_v60  ;;  %v584_v3 = vadd.f32 %v2819_v9, %v449_v52  ;;  %v585_v42 = vadd.f32 %v2819_v9, %v450_v59 }
  0x2c   : > { %2309 = vst [vmem:[%s2908_s25] sm:$0xff] %v3559_v51   ;;  %2688 = vst [vmem:[%s2908_s25 + $0x8] sm:$0xff] %v3560_v10   ;;  %v2333_v63 = vpack.c.bf16 %v967_v58, %v966_v50  ;;  %v452_v46 = vmul.f32 %v2080_v8, %v2810_v0  ;;  %v586_v60 = vadd.f32 %v2819_v9, %v451_v4 }
  0x2d   : > { %2689 = vst [vmem:[%s2908_s25 + $0x10] sm:$0xff] %v3561_v2   ;;  %2690 = vst [vmem:[%s2908_s25 + $0x18] sm:$0xff] %v3562_v45   ;;  %vm712_vm12 = vcmp.gt.f32.partialorder %v584_v3, 0.0  ;;  %v840_v56 = vmul.f32 0.2, %v584_v3  ;;  %v454_v1 = vmul.f32 %v2084_v39, %v2810_v0  ;;  %vm713_vm13 = vcmp.gt.f32.partialorder %v585_v42, 0.0 }
  0x2e   : > { %2691 = vst [vmem:[%s2908_s25 + $0x20] sm:$0xff] %v2328_v61   ;;  %2692 = vst [vmem:[%s2908_s25 + $0x28] sm:$0xff] %v2333_v63   ;;  %v841_v52 = vmul.f32 0.2, %v585_v42  ;;  %v587_v7 = vadd.f32 %v2819_v9, %v452_v46  ;;  %v588_v5 = vadd.f32 %v2819_v9, %v453_v48  ;;  %vm714_vm14 = vcmp.gt.f32.partialorder %v586_v60, 0.0 }
  0x2f   : > { %v968_v58 = vsel %vm712_vm12, %v584_v3, %v840_v56  ;;  %v842_v61 = vmul.f32 0.2, %v586_v60  ;;  %v589_v50 = vadd.f32 %v2819_v9, %v454_v1  ;;  %v2088_v63 = vunpack.c.h.bf16 %v2894_v6 }
  0x30   : > { %v969_v59 = vsel %vm713_vm13, %v585_v42, %v841_v52  ;;  %vm715_vm15 = vcmp.gt.f32.partialorder %v587_v7, 0.0  ;;  %v843_v8 = vmul.f32 0.2, %v587_v7  ;;  %vm716_vm0 = vcmp.gt.f32.partialorder %v588_v5, 0.0 }
  0x31   : > { %v2338_v62 = vpack.c.bf16 %v969_v59, %v968_v58  ;;  %v970_v51 = vsel %vm714_vm14, %v586_v60, %v842_v61  ;;  %vm717_vm1 = vcmp.gt.f32.partialorder %v589_v50, 0.0  ;;  %v844_v10 = vmul.f32 0.2, %v588_v5 }
  0x32   : > { %v971_v2 = vsel %vm715_vm15, %v587_v7, %v843_v8  ;;  %v845_v45 = vmul.f32 0.2, %v589_v50  ;;  %v455_v3 = vmul.f32 %v2087_v53, %v2810_v0  ;;  %v2091_v42 = vunpack.c.l.bf16 %v2911_v11 }
  0x33   : > { %2693 = vst [vmem:[%s2908_s25 + $0x30] sm:$0xff] %v2338_v62   ;;  %v2343_v4 = vpack.c.bf16 %v971_v2, %v970_v51  ;;  %v972_v39 = vsel %vm716_vm0, %v588_v5, %v844_v10  ;;  %v2092_v46 = vunpack.c.h.bf16 %v2911_v11  ;;  %v456_v56 = vmul.f32 %v2088_v63, %v2810_v0 }
  0x34   : > { %v973_v48 = vsel %vm717_vm1, %v589_v50, %v845_v45  ;;  %v590_v60 = vadd.f32 %v2819_v9, %v455_v3  ;;  %v2095_v1 = vunpack.c.l.bf16 %v2914_v12  ;;  %v457_v6 = vmul.f32 %v2091_v42, %v2810_v0 }
  0x35   : > { %2694 = vst [vmem:[%s2908_s25 + $0x38] sm:$0xff] %v2343_v4   ;;  %v2348_v52 = vpack.c.bf16 %v973_v48, %v972_v39  ;;  %v458_v53 = vmul.f32 %v2092_v46, %v2810_v0  ;;  %v2096_v7 = vunpack.c.h.bf16 %v2914_v12  ;;  %v591_v5 = vadd.f32 %v2819_v9, %v456_v56 }
  0x36   : > { %vm718_vm2 = vcmp.gt.f32.partialorder %v590_v60, 0.0  ;;  %v846_v58 = vmul.f32 0.2, %v590_v60  ;;  %v459_v11 = vmul.f32 %v2095_v1, %v2810_v0  ;;  %v592_v61 = vadd.f32 %v2819_v9, %v457_v6 }
  0x37   : > { %2695 = vst [vmem:[%s2908_s25 + $0x40] sm:$0xff] %v2348_v52   ;;  %v593_v50 = vadd.f32 %v2819_v9, %v458_v53  ;;  %v460_v59 = vmul.f32 %v2096_v7, %v2810_v0  ;;  %v2099_v8 = vunpack.c.l.bf16 %v2917_v13  ;;  %vm719_vm3 = vcmp.gt.f32.partialorder %v591_v5, 0.0 }
  0x38   : > { %v847_v62 = vmul.f32 0.2, %v591_v5  ;;  %v974_v51 = vsel %vm718_vm2, %v590_v60, %v846_v58  ;;  %v594_v12 = vadd.f32 %v2819_v9, %v459_v11  ;;  %vm720_vm4 = vcmp.gt.f32.partialorder %v592_v61, 0.0 }
  0x39   : > { %vm721_vm5 = vcmp.gt.f32.partialorder %v593_v50, 0.0  ;;  %v848_v10 = vmul.f32 0.2, %v592_v61  ;;  %v849_v2 = vmul.f32 0.2, %v593_v50  ;;  %v595_v63 = vadd.f32 %v2819_v9, %v460_v59 }
  0x3a   : > { %v975_v45 = vsel %vm719_vm3, %v591_v5, %v847_v62  ;;  %vm722_vm6 = vcmp.gt.f32.partialorder %v594_v12, 0.0  ;;  %v850_v3 = vmul.f32 0.2, %v594_v12  ;;  %v2100_v46 = vunpack.c.h.bf16 %v2917_v13 }
  0x3b   : > { %v2353_v4 = vpack.c.bf16 %v975_v45, %v974_v51  ;;  %v976_v39 = vsel %vm720_vm4, %v592_v61, %v848_v10  ;;  %v977_v42 = vsel %vm721_vm5, %v593_v50, %v849_v2  ;;  %vm723_vm7 = vcmp.gt.f32.partialorder %v595_v63, 0.0 }
  0x3c   : > { %v2358_v48 = vpack.c.bf16 %v977_v42, %v976_v39  ;;  %v851_v56 = vmul.f32 0.2, %v595_v63  ;;  %v978_v60 = vsel %vm722_vm6, %v594_v12, %v850_v3  ;;  %v461_v1 = vmul.f32 %v2099_v8, %v2810_v0 }
  0x3d   : > { %2696 = vst [vmem:[%s2908_s25 + $0x48] sm:$0xff] %v2353_v4   ;;  %v462_v52 = vmul.f32 %v2100_v46, %v2810_v0  ;;  %v2103_v6 = vunpack.c.l.bf16 %v2920_v14  ;;  %v2104_v53 = vunpack.c.h.bf16 %v2920_v14  ;;  %v2107_v5 = vunpack.c.l.bf16 %v2923_v15 }
  0x3e   : > { %2697 = vst [vmem:[%s2908_s25 + $0x50] sm:$0xff] %v2358_v48   ;;  %v979_v7 = vsel %vm723_vm7, %v595_v63, %v851_v56  ;;  %v2108_v13 = vunpack.c.h.bf16 %v2923_v15  ;;  %v2111_v58 = vunpack.c.l.bf16 %v2926_v16  ;;  %v596_v61 = vadd.f32 %v2819_v9, %v461_v1 }
  0x3f   : > { %v2363_v11 = vpack.c.bf16 %v979_v7, %v978_v60  ;;  %v597_v50 = vadd.f32 %v2819_v9, %v462_v52  ;;  %v463_v59 = vmul.f32 %v2103_v6, %v2810_v0  ;;  %v464_v8 = vmul.f32 %v2104_v53, %v2810_v0 }
  0x40   : > { %v465_v62 = vmul.f32 %v2107_v5, %v2810_v0  ;;  %v466_v14 = vmul.f32 %v2108_v13, %v2810_v0  ;;  %v2112_v51 = vunpack.c.h.bf16 %v2926_v16  ;;  %vm724_vm8 = vcmp.gt.f32.partialorder %v596_v61, 0.0 }
  0x41   : > { %2698 = vst [vmem:[%s2908_s25 + $0x58] sm:$0xff] %v2363_v11   ;;  %vm725_vm9 = vcmp.gt.f32.partialorder %v597_v50, 0.0  ;;  %v852_v15 = vmul.f32 0.2, %v596_v61  ;;  %v853_v12 = vmul.f32 0.2, %v597_v50  ;;  %v598_v10 = vadd.f32 %v2819_v9, %v463_v59 }
  0x42   : > { %v599_v2 = vadd.f32 %v2819_v9, %v464_v8  ;;  %v600_v45 = vadd.f32 %v2819_v9, %v465_v62  ;;  %v601_v63 = vadd.f32 %v2819_v9, %v466_v14  ;;  %v467_v39 = vmul.f32 %v2111_v58, %v2810_v0 }
  0x43   : > { %v980_v3 = vsel %vm724_vm8, %v596_v61, %v852_v15  ;;  %v981_v4 = vsel %vm725_vm9, %v597_v50, %v853_v12  ;;  %v468_v16 = vmul.f32 %v2112_v51, %v2810_v0  ;;  %vm726_vm10 = vcmp.gt.f32.partialorder %v598_v10, 0.0 }
  0x44   : > { %v2368_v42 = vpack.c.bf16 %v981_v4, %v980_v3  ;;  %vm727_vm11 = vcmp.gt.f32.partialorder %v599_v2, 0.0  ;;  %v854_v46 = vmul.f32 0.2, %v598_v10  ;;  %v855_v48 = vmul.f32 0.2, %v599_v2 }
  0x45   : > { %vm728_vm12 = vcmp.gt.f32.partialorder %v600_v45, 0.0  ;;  %vm729_vm13 = vcmp.gt.f32.partialorder %v601_v63, 0.0  ;;  %v856_v56 = vmul.f32 0.2, %v600_v45  ;;  %v857_v1 = vmul.f32 0.2, %v601_v63 }
  0x46   : > { %2699 = vst [vmem:[%s2908_s25 + $0x60] sm:$0xff] %v2368_v42   ;;  %v982_v60 = vsel %vm726_vm10, %v598_v10, %v854_v46  ;;  %v602_v52 = vadd.f32 %v2819_v9, %v467_v39  ;;  %v603_v6 = vadd.f32 %v2819_v9, %v468_v16  ;;  %v983_v53 = vsel %vm727_vm11, %v599_v2, %v855_v48 }
  0x47   : > { %v984_v7 = vsel %vm728_vm12, %v600_v45, %v856_v56  ;;  %v2115_v5 = vunpack.c.l.bf16 %v2929_v17  ;;  %v2116_v13 = vunpack.c.h.bf16 %v2929_v17  ;;  %v2373_v58 = vpack.c.bf16 %v983_v53, %v982_v60 }
  0x48   : > { %v985_v11 = vsel %vm729_vm13, %v601_v63, %v857_v1  ;;  %vm730_vm14 = vcmp.gt.f32.partialorder %v602_v52, 0.0  ;;  %vm731_vm15 = vcmp.gt.f32.partialorder %v603_v6, 0.0  ;;  %v858_v50 = vmul.f32 0.2, %v602_v52 }
  0x49   : > { %v2378_v61 = vpack.c.bf16 %v985_v11, %v984_v7  ;;  %v859_v59 = vmul.f32 0.2, %v603_v6  ;;  %v469_v8 = vmul.f32 %v2115_v5, %v2810_v0  ;;  %2700 = vst [vmem:[%s2908_s25 + $0x68] sm:$0xff] %v2373_v58   ;;  %v470_v62 = vmul.f32 %v2116_v13, %v2810_v0 }
  0x4a   : > { %v2119_v14 = vunpack.c.l.bf16 %v2932_v18  ;;  %v2120_v51 = vunpack.c.h.bf16 %v2932_v18  ;;  %v2123_v15 = vunpack.c.l.bf16 %v2935_v19  ;;  %v986_v17 = vsel %vm730_vm14, %v602_v52, %v858_v50 }
  0x4b   : > { %2701 = vst [vmem:[%s2908_s25 + $0x70] sm:$0xff] %v2378_v61   ;;  %v987_v12 = vsel %vm731_vm15, %v603_v6, %v859_v59  ;;  %v604_v10 = vadd.f32 %v2819_v9, %v469_v8  ;;  %v2124_v2 = vunpack.c.h.bf16 %v2935_v19  ;;  %v605_v63 = vadd.f32 %v2819_v9, %v470_v62 }
  0x4c   : > { %v2383_v45 = vpack.c.bf16 %v987_v12, %v986_v17  ;;  %v471_v3 = vmul.f32 %v2119_v14, %v2810_v0  ;;  %v472_v4 = vmul.f32 %v2120_v51, %v2810_v0  ;;  %v473_v18 = vmul.f32 %v2123_v15, %v2810_v0 }
  0x4d   : > { %vm732_vm0 = vcmp.gt.f32.partialorder %v604_v10, 0.0  ;;  %v860_v39 = vmul.f32 0.2, %v604_v10  ;;  %v474_v16 = vmul.f32 %v2124_v2, %v2810_v0  ;;  %vm733_vm1 = vcmp.gt.f32.partialorder %v605_v63, 0.0 }
  0x4e   : > { %2702 = vst [vmem:[%s2908_s25 + $0x78] sm:$0xff] %v2383_v45   ;;  %v861_v42 = vmul.f32 0.2, %v605_v63  ;;  %v606_v46 = vadd.f32 %v2819_v9, %v471_v3  ;;  %v607_v19 = vadd.f32 %v2819_v9, %v472_v4  ;;  %v608_v56 = vadd.f32 %v2819_v9, %v473_v18 }
  0x4f   : > { %v988_v48 = vsel %vm732_vm0, %v604_v10, %v860_v39  ;;  %v609_v60 = vadd.f32 %v2819_v9, %v474_v16  ;;  %v2127_v1 = vunpack.c.l.bf16 %v2938_v20  ;;  %v2128_v11 = vunpack.c.h.bf16 %v2938_v20 }
  0x50   : > { %v989_v52 = vsel %vm733_vm1, %v605_v63, %v861_v42  ;;  %vm734_vm2 = vcmp.gt.f32.partialorder %v606_v46, 0.0  ;;  %vm735_vm3 = vcmp.gt.f32.partialorder %v607_v19, 0.0  ;;  %v862_v6 = vmul.f32 0.2, %v606_v46 }
  0x51   : > { %v2388_v53 = vpack.c.bf16 %v989_v52, %v988_v48  ;;  %v863_v7 = vmul.f32 0.2, %v607_v19  ;;  %vm736_vm4 = vcmp.gt.f32.partialorder %v608_v56, 0.0  ;;  %vm737_vm5 = vcmp.gt.f32.partialorder %v609_v60, 0.0 }
  0x52   : > { %v990_v5 = vsel %vm734_vm2, %v606_v46, %v862_v6  ;;  %v864_v13 = vmul.f32 0.2, %v608_v56  ;;  %v865_v58 = vmul.f32 0.2, %v609_v60  ;;  %v475_v50 = vmul.f32 %v2127_v1, %v2810_v0 }
  0x53   : > { %2703 = vst [vmem:[%s2908_s25 + $0x80] sm:$0xff] %v2388_v53   ;;  %v991_v61 = vsel %vm735_vm3, %v607_v19, %v863_v7  ;;  %v2131_v59 = vunpack.c.l.bf16 %v2941_v21  ;;  %v2132_v8 = vunpack.c.h.bf16 %v2941_v21  ;;  %v476_v15 = vmul.f32 %v2128_v11, %v2810_v0 }
  0x54   : > { %v2393_v62 = vpack.c.bf16 %v991_v61, %v990_v5  ;;  %v992_v14 = vsel %vm736_vm4, %v608_v56, %v864_v13  ;;  %v993_v51 = vsel %vm737_vm5, %v609_v60, %v865_v58  ;;  %v610_v12 = vadd.f32 %v2819_v9, %v475_v50 }
  0x55   : > { %v2398_v17 = vpack.c.bf16 %v993_v51, %v992_v14  ;;  %v477_v10 = vmul.f32 %v2131_v59, %v2810_v0  ;;  %v478_v20 = vmul.f32 %v2132_v8, %v2810_v0  ;;  %v611_v2 = vadd.f32 %v2819_v9, %v476_v15 }
  0x56   : > { %2704 = vst [vmem:[%s2908_s25 + $0x88] sm:$0xff] %v2393_v62   ;;  %v2135_v45 = vunpack.c.l.bf16 %v2944_v22  ;;  %v2136_v63 = vunpack.c.h.bf16 %v2944_v22  ;;  %v2139_v21 = vunpack.c.l.bf16 %v2947_v23  ;;  %vm738_vm6 = vcmp.gt.f32.partialorder %v610_v12, 0.0 }
  0x57   : > { %2705 = vst [vmem:[%s2908_s25 + $0x90] sm:$0xff] %v2398_v17   ;;  %v866_v3 = vmul.f32 0.2, %v610_v12  ;;  %v612_v4 = vadd.f32 %v2819_v9, %v477_v10  ;;  %v613_v39 = vadd.f32 %v2819_v9, %v478_v20  ;;  %vm739_vm7 = vcmp.gt.f32.partialorder %v611_v2, 0.0 }
  0x58   : > { %v867_v18 = vmul.f32 0.2, %v611_v2  ;;  %v479_v16 = vmul.f32 %v2135_v45, %v2810_v0  ;;  %v480_v42 = vmul.f32 %v2136_v63, %v2810_v0  ;;  %v2140_v6 = vunpack.c.h.bf16 %v2947_v23 }
  0x59   : > { %v994_v46 = vsel %vm738_vm6, %v610_v12, %v866_v3  ;;  %vm740_vm8 = vcmp.gt.f32.partialorder %v612_v4, 0.0  ;;  %vm741_vm9 = vcmp.gt.f32.partialorder %v613_v39, 0.0  ;;  %v868_v22 = vmul.f32 0.2, %v612_v4 }
  0x5a   : > { %v995_v19 = vsel %vm739_vm7, %v611_v2, %v867_v18  ;;  %v869_v48 = vmul.f32 0.2, %v613_v39  ;;  %v614_v56 = vadd.f32 %v2819_v9, %v479_v16  ;;  %v615_v60 = vadd.f32 %v2819_v9, %v480_v42 }
  0x5b   : > { %v2403_v1 = vpack.c.bf16 %v995_v19, %v994_v46  ;;  %v996_v52 = vsel %vm740_vm8, %v612_v4, %v868_v22  ;;  %v481_v53 = vmul.f32 %v2139_v21, %v2810_v0  ;;  %v482_v11 = vmul.f32 %v2140_v6, %v2810_v0 }
  0x5c   : > { %v997_v7 = vsel %vm741_vm9, %v613_v39, %v869_v48  ;;  %vm742_vm10 = vcmp.gt.f32.partialorder %v614_v56, 0.0  ;;  %vm743_vm11 = vcmp.gt.f32.partialorder %v615_v60, 0.0  ;;  %v870_v5 = vmul.f32 0.2, %v614_v56 }
  0x5d   : > { %2706 = vst [vmem:[%s2908_s25 + $0x98] sm:$0xff] %v2403_v1   ;;  %v2408_v13 = vpack.c.bf16 %v997_v7, %v996_v52  ;;  %v871_v58 = vmul.f32 0.2, %v615_v60  ;;  %v616_v61 = vadd.f32 %v2819_v9, %v481_v53  ;;  %v2143_v59 = vunpack.c.l.bf16 %v2950_v24 }
  0x5e   : > { %v998_v50 = vsel %vm742_vm10, %v614_v56, %v870_v5  ;;  %v2144_v8 = vunpack.c.h.bf16 %v2950_v24  ;;  %v2147_v23 = vunpack.c.l.bf16 %v2953_v25  ;;  %v617_v14 = vadd.f32 %v2819_v9, %v482_v11 }
  0x5f   : > { %2707 = vst [vmem:[%s2908_s25 + $0xa0] sm:$0xff] %v2408_v13   ;;  %v999_v62 = vsel %vm743_vm11, %v615_v60, %v871_v58  ;;  %vm744_vm12 = vcmp.gt.f32.partialorder %v616_v61, 0.0  ;;  %v872_v51 = vmul.f32 0.2, %v616_v61  ;;  %v483_v17 = vmul.f32 %v2143_v59, %v2810_v0 }
  0x60   : > { %v2413_v15 = vpack.c.bf16 %v999_v62, %v998_v50  ;;  %v484_v12 = vmul.f32 %v2144_v8, %v2810_v0  ;;  %v2148_v10 = vunpack.c.h.bf16 %v2953_v25  ;;  %vm745_vm13 = vcmp.gt.f32.partialorder %v617_v14, 0.0 }
  0x61   : > { %v873_v20 = vmul.f32 0.2, %v617_v14  ;;  %v1000_v2 = vsel %vm744_vm12, %v616_v61, %v872_v51  ;;  %v485_v24 = vmul.f32 %v2147_v23, %v2810_v0  ;;  %v618_v45 = vadd.f32 %v2819_v9, %v483_v17 }
  0x62   : > { %2708 = vst [vmem:[%s2908_s25 + $0xa8] sm:$0xff] %v2413_v15   ;;  %v619_v63 = vadd.f32 %v2819_v9, %v484_v12  ;;  %v486_v21 = vmul.f32 %v2148_v10, %v2810_v0  ;;  %v2151_v3 = vunpack.c.l.bf16 %v2956_v26  ;;  %v2152_v25 = vunpack.c.h.bf16 %v2956_v26 }
  0x63   : > { %v1001_v4 = vsel %vm745_vm13, %v617_v14, %v873_v20  ;;  %v620_v39 = vadd.f32 %v2819_v9, %v485_v24  ;;  %v2155_v18 = vunpack.c.l.bf16 %v2959_v27  ;;  %vm746_vm14 = vcmp.gt.f32.partialorder %v618_v45, 0.0 }
  0x64   : > { %v2418_v16 = vpack.c.bf16 %v1001_v4, %v1000_v2  ;;  %vm747_vm15 = vcmp.gt.f32.partialorder %v619_v63, 0.0  ;;  %v874_v42 = vmul.f32 0.2, %v618_v45  ;;  %v875_v46 = vmul.f32 0.2, %v619_v63 }
  0x65   : > { %v621_v22 = vadd.f32 %v2819_v9, %v486_v21  ;;  %vm748_vm0 = vcmp.gt.f32.partialorder %v620_v39, 0.0  ;;  %v876_v19 = vmul.f32 0.2, %v620_v39  ;;  %v487_v56 = vmul.f32 %v2151_v3, %v2810_v0 }
  0x66   : > { %2709 = vst [vmem:[%s2908_s25 + $0xb0] sm:$0xff] %v2418_v16   ;;  %v1002_v48 = vsel %vm746_vm14, %v618_v45, %v874_v42  ;;  %v488_v60 = vmul.f32 %v2152_v25, %v2810_v0  ;;  %v2156_v26 = vunpack.c.h.bf16 %v2959_v27  ;;  %v1003_v1 = vsel %vm747_vm15, %v619_v63, %v875_v46 }
  0x67   : > { %vm749_vm1 = vcmp.gt.f32.partialorder %v621_v22, 0.0  ;;  %v877_v52 = vmul.f32 0.2, %v621_v22  ;;  %v1004_v6 = vsel %vm748_vm0, %v620_v39, %v876_v19  ;;  %v2423_v53 = vpack.c.bf16 %v1003_v1, %v1002_v48 }
  0x68   : > { %v622_v7 = vadd.f32 %v2819_v9, %v487_v56  ;;  %v623_v5 = vadd.f32 %v2819_v9, %v488_v60  ;;  %v489_v13 = vmul.f32 %v2155_v18, %v2810_v0  ;;  %v490_v11 = vmul.f32 %v2156_v26, %v2810_v0 }
  0x69   : > { %v1005_v58 = vsel %vm749_vm1, %v621_v22, %v877_v52  ;;  %v2159_v61 = vunpack.c.l.bf16 %v2962_v28  ;;  %v2160_v50 = vunpack.c.h.bf16 %v2962_v28  ;;  %2710 = vst [vmem:[%s2908_s25 + $0xb8] sm:$0xff] %v2423_v53   ;;  %v2163_v17 = vunpack.c.l.bf16 %v2965_v29 }
  0x6a   : > { %v2428_v27 = vpack.c.bf16 %v1005_v58, %v1004_v6  ;;  %vm750_vm2 = vcmp.gt.f32.partialorder %v622_v7, 0.0  ;;  %vm751_vm3 = vcmp.gt.f32.partialorder %v623_v5, 0.0  ;;  %v878_v59 = vmul.f32 0.2, %v622_v7 }
  0x6b   : > { %v879_v8 = vmul.f32 0.2, %v623_v5  ;;  %v624_v23 = vadd.f32 %v2819_v9, %v489_v13  ;;  %v625_v62 = vadd.f32 %v2819_v9, %v490_v11  ;;  %v491_v14 = vmul.f32 %v2159_v61, %v2810_v0 }
  0x6c   : > { %2711 = vst [vmem:[%s2908_s25 + $0xc0] sm:$0xff] %v2428_v27   ;;  %v1006_v51 = vsel %vm750_vm2, %v622_v7, %v878_v59  ;;  %v492_v15 = vmul.f32 %v2160_v50, %v2810_v0  ;;  %v2164_v28 = vunpack.c.h.bf16 %v2965_v29  ;;  %v493_v21 = vmul.f32 %v2163_v17, %v2810_v0 }
  0x6d   : > { %v1007_v12 = vsel %vm751_vm3, %v623_v5, %v879_v8  ;;  %vm752_vm4 = vcmp.gt.f32.partialorder %v624_v23, 0.0  ;;  %vm753_vm5 = vcmp.gt.f32.partialorder %v625_v62, 0.0  ;;  %v880_v10 = vmul.f32 0.2, %v624_v23 }
  0x6e   : > { %v2433_v20 = vpack.c.bf16 %v1007_v12, %v1006_v51  ;;  %v881_v2 = vmul.f32 0.2, %v625_v62  ;;  %v626_v24 = vadd.f32 %v2819_v9, %v491_v14  ;;  %v627_v45 = vadd.f32 %v2819_v9, %v492_v15 }
  0x6f   : > { %v1008_v63 = vsel %vm752_vm4, %v624_v23, %v880_v10  ;;  %v494_v3 = vmul.f32 %v2164_v28, %v2810_v0  ;;  %v2167_v4 = vunpack.c.l.bf16 %v2968_v30  ;;  %v628_v16 = vadd.f32 %v2819_v9, %v493_v21 }
  0x70   : > { %2712 = vst [vmem:[%s2908_s25 + $0xc8] sm:$0xff] %v2433_v20   ;;  %v1009_v29 = vsel %vm753_vm5, %v625_v62, %v881_v2  ;;  %vm754_vm6 = vcmp.gt.f32.partialorder %v626_v24, 0.0  ;;  %vm755_vm7 = vcmp.gt.f32.partialorder %v627_v45, 0.0  ;;  %v882_v39 = vmul.f32 0.2, %v626_v24 }
  0x71   : > { %v2438_v25 = vpack.c.bf16 %v1009_v29, %v1008_v63  ;;  %v883_v18 = vmul.f32 0.2, %v627_v45  ;;  %v629_v42 = vadd.f32 %v2819_v9, %v494_v3  ;;  %v2168_v22 = vunpack.c.h.bf16 %v2968_v30 }
  0x72   : > { %v1010_v46 = vsel %vm754_vm6, %v626_v24, %v882_v39  ;;  %v495_v19 = vmul.f32 %v2167_v4, %v2810_v0  ;;  %v2171_v48 = vunpack.c.l.bf16 %v2971_v31  ;;  %vm756_vm8 = vcmp.gt.f32.partialorder %v628_v16, 0.0 }
  0x73   : > { %2713 = vst [vmem:[%s2908_s25 + $0xd0] sm:$0xff] %v2438_v25   ;;  %v1011_v56 = vsel %vm755_vm7, %v627_v45, %v883_v18  ;;  %vm757_vm9 = vcmp.gt.f32.partialorder %v629_v42, 0.0  ;;  %v884_v60 = vmul.f32 0.2, %v628_v16  ;;  %v885_v1 = vmul.f32 0.2, %v629_v42 }
  0x74   : > { %v2443_v26 = vpack.c.bf16 %v1011_v56, %v1010_v46  ;;  %v496_v52 = vmul.f32 %v2168_v22, %v2810_v0  ;;  %v630_v6 = vadd.f32 %v2819_v9, %v495_v19  ;;  %v2172_v7 = vunpack.c.h.bf16 %v2971_v31 }
  0x75   : > { %v1012_v53 = vsel %vm756_vm8, %v628_v16, %v884_v60  ;;  %v497_v30 = vmul.f32 %v2171_v48, %v2810_v0  ;;  %v2175_v5 = vunpack.c.l.bf16 %v2974_v32  ;;  %v1013_v13 = vsel %vm757_vm9, %v629_v42, %v885_v1  ;;  %v3292_v16 = vld [vmem:[%s3521_s1] ss:$0 sm:$0xff] }
  0x76   : > { %2714 = vst [vmem:[%s2908_s25 + $0xd8] sm:$0xff] %v2443_v26   ;;  %v631_v58 = vadd.f32 %v2819_v9, %v496_v52  ;;  %vm758_vm10 = vcmp.gt.f32.partialorder %v630_v6, 0.0  ;;  %v886_v11 = vmul.f32 0.2, %v630_v6  ;;  %v2448_v61 = vpack.c.bf16 %v1013_v13, %v1012_v53  ;;  %v3303_v60 = vld [vmem:[%s3522_s2] ss:$0 sm:$0xff] }
  0x77   : > { %v498_v50 = vmul.f32 %v2172_v7, %v2810_v0  ;;  %v632_v27 = vadd.f32 %v2819_v9, %v497_v30  ;;  %v2176_v59 = vunpack.c.h.bf16 %v2974_v32  ;;  %v499_v23 = vmul.f32 %v2175_v5, %v2810_v0 }
  0x78   : > { %vm759_vm11 = vcmp.gt.f32.partialorder %v631_v58, 0.0  ;;  %v887_v31 = vmul.f32 0.2, %v631_v58  ;;  %v1014_v8 = vsel %vm758_vm10, %v630_v6, %v886_v11  ;;  %2715 = vst [vmem:[%s2908_s25 + $0xe0] sm:$0xff] %v2448_v61   ;;  %v2179_v28 = vunpack.c.l.bf16 %v2977_v33 }
  0x79   : > { %v633_v62 = vadd.f32 %v2819_v9, %v498_v50  ;;  %vm760_vm12 = vcmp.gt.f32.partialorder %v632_v27, 0.0  ;;  %v888_v14 = vmul.f32 0.2, %v632_v27  ;;  %v500_v51 = vmul.f32 %v2176_v59, %v2810_v0 }
  0x7a   : > { %v1015_v15 = vsel %vm759_vm11, %v631_v58, %v887_v31  ;;  %v634_v17 = vadd.f32 %v2819_v9, %v499_v23  ;;  %v2180_v32 = vunpack.c.h.bf16 %v2977_v33  ;;  %v501_v45 = vmul.f32 %v2179_v28, %v2810_v0 }
  0x7b   : > { %v2453_v12 = vpack.c.bf16 %v1015_v15, %v1014_v8  ;;  %vm761_vm13 = vcmp.gt.f32.partialorder %v633_v62, 0.0  ;;  %v889_v10 = vmul.f32 0.2, %v633_v62  ;;  %v1016_v20 = vsel %vm760_vm12, %v632_v27, %v888_v14 }
  0x7c   : > { %v635_v2 = vadd.f32 %v2819_v9, %v500_v51  ;;  %vm762_vm14 = vcmp.gt.f32.partialorder %v634_v17, 0.0  ;;  %v890_v24 = vmul.f32 0.2, %v634_v17  ;;  %v502_v21 = vmul.f32 %v2180_v32, %v2810_v0 }
  0x7d   : > { %2716 = vst [vmem:[%s2908_s25 + $0xe8] sm:$0xff] %v2453_v12   ;;  %v1017_v63 = vsel %vm761_vm13, %v633_v62, %v889_v10  ;;  %v2183_v3 = vunpack.c.l.bf16 %v2980_v34  ;;  %v2184_v4 = vunpack.c.h.bf16 %v2980_v34  ;;  %v636_v25 = vadd.f32 %v2819_v9, %v501_v45 }
  0x7e   : > { %v2458_v33 = vpack.c.bf16 %v1017_v63, %v1016_v20  ;;  %vm763_vm15 = vcmp.gt.f32.partialorder %v635_v2, 0.0  ;;  %v891_v29 = vmul.f32 0.2, %v635_v2  ;;  %v1018_v39 = vsel %vm762_vm14, %v634_v17, %v890_v24 }
  0x7f   : > { %v637_v18 = vadd.f32 %v2819_v9, %v502_v21  ;;  %v503_v42 = vmul.f32 %v3292_v16, %v2183_v3  ;;  %v504_v0 = vmul.f32 %v3292_v16, %v2184_v4  ;;  %v2187_v46 = vunpack.c.l.bf16 %v2983_v35 }
  0x80   : > { %2717 = vst [vmem:[%s2908_s25 + $0xf0] sm:$0xff] %v2458_v33   ;;  %v1019_v34 = vsel %vm763_vm15, %v635_v2, %v891_v29  ;;  %v2188_v22 = vunpack.c.h.bf16 %v2983_v35  ;;  %v2191_v19 = vunpack.c.l.bf16 %v2986_v36  ;;  %vm764_vm0 = vcmp.gt.f32.partialorder %v636_v25, 0.0 }
  0x81   : > { %v2463_v48 = vpack.c.bf16 %v1019_v34, %v1018_v39  ;;  %vm765_vm1 = vcmp.gt.f32.partialorder %v637_v18, 0.0  ;;  %v892_v9 = vmul.f32 0.2, %v636_v25  ;;  %v893_v56 = vmul.f32 0.2, %v637_v18 }
  0x82   : > { %v638_v26 = vadd.f32 %v3303_v60, %v503_v42  ;;  %v639_v1 = vadd.f32 %v3303_v60, %v504_v0  ;;  %v505_v52 = vmul.f32 %v3292_v16, %v2187_v46  ;;  %v506_v6 = vmul.f32 %v3292_v16, %v2188_v22 }
  0x83   : > { %2718 = vst [vmem:[%s2908_s25 + $0xf8] sm:$0xff] %v2463_v48   ;;  %v1020_v35 = vsel %vm764_vm0, %v636_v25, %v892_v9  ;;  %v2192_v53 = vunpack.c.h.bf16 %v2986_v36  ;;  %v507_v7 = vmul.f32 %v3292_v16, %v2191_v19  ;;  %v1021_v30 = vsel %vm765_vm1, %v637_v18, %v893_v56 }
  0x84   : > { %vm766_vm2 = vcmp.gt.f32.partialorder %v638_v26, 0.0  ;;  %vm767_vm3 = vcmp.gt.f32.partialorder %v639_v1, 0.0  ;;  %v894_v5 = vmul.f32 0.2, %v638_v26  ;;  %v2468_v13 = vpack.c.bf16 %v1021_v30, %v1020_v35 }
  0x85   : > { %v895_v58 = vmul.f32 0.2, %v639_v1  ;;  %v640_v11 = vadd.f32 %v3303_v60, %v505_v52  ;;  %v641_v61 = vadd.f32 %v3303_v60, %v506_v6  ;;  %v508_v27 = vmul.f32 %v3292_v16, %v2192_v53 }
  0x86   : > { %v1022_v50 = vsel %vm766_vm2, %v638_v26, %v894_v5  ;;  %v642_v59 = vadd.f32 %v3303_v60, %v507_v7  ;;  %v2195_v36 = vunpack.c.l.bf16 %v2989_v37  ;;  %2719 = vst [vmem:[%s2908_s25 + $0x100] sm:$0xff] %v2468_v13   ;;  %v2196_v17 = vunpack.c.h.bf16 %v2989_v37 }
  0x87   : > { %v1023_v31 = vsel %vm767_vm3, %v639_v1, %v895_v58  ;;  %vm768_vm4 = vcmp.gt.f32.partialorder %v640_v11, 0.0  ;;  %vm769_vm5 = vcmp.gt.f32.partialorder %v641_v61, 0.0  ;;  %v896_v8 = vmul.f32 0.2, %v640_v11 }
  0x88   : > { %v2473_v23 = vpack.c.bf16 %v1023_v31, %v1022_v50  ;;  %v897_v62 = vmul.f32 0.2, %v641_v61  ;;  %v643_v14 = vadd.f32 %v3303_v60, %v508_v27  ;;  %vm770_vm6 = vcmp.gt.f32.partialorder %v642_v59, 0.0 }
  0x89   : > { %v1024_v51 = vsel %vm768_vm4, %v640_v11, %v896_v8  ;;  %v898_v15 = vmul.f32 0.2, %v642_v59  ;;  %v509_v28 = vmul.f32 %v3292_v16, %v2195_v36  ;;  %v2199_v10 = vunpack.c.l.bf16 %v2992_v38 }
  0x8a   : > { %2720 = vst [vmem:[%s2908_s25 + $0x108] sm:$0xff] %v2473_v23   ;;  %v1025_v32 = vsel %vm769_vm5, %v641_v61, %v897_v62  ;;  %vm771_vm7 = vcmp.gt.f32.partialorder %v643_v14, 0.0  ;;  %v899_v12 = vmul.f32 0.2, %v643_v14  ;;  %v510_v24 = vmul.f32 %v3292_v16, %v2196_v17 }
  0x8b   : > { %v2478_v20 = vpack.c.bf16 %v1025_v32, %v1024_v51  ;;  %v1026_v2 = vsel %vm770_vm6, %v642_v59, %v898_v15  ;;  %v644_v45 = vadd.f32 %v3303_v60, %v509_v28  ;;  %v2200_v21 = vunpack.c.h.bf16 %v2992_v38 }
  0x8c   : > { %v1027_v63 = vsel %vm771_vm7, %v643_v14, %v899_v12  ;;  %v511_v37 = vmul.f32 %v3292_v16, %v2199_v10  ;;  %v2203_v3 = vunpack.c.l.bf16 %v2995_v40  ;;  %v645_v33 = vadd.f32 %v3303_v60, %v510_v24 }
  0x8d   : > { %2721 = vst [vmem:[%s2908_s25 + $0x110] sm:$0xff] %v2478_v20   ;;  %v2483_v4 = vpack.c.bf16 %v1027_v63, %v1026_v2  ;;  %vm772_vm8 = vcmp.gt.f32.partialorder %v644_v45, 0.0  ;;  %v900_v29 = vmul.f32 0.2, %v644_v45  ;;  %v512_v39 = vmul.f32 %v3292_v16, %v2200_v21 }
  0x8e   : > { %v646_v25 = vadd.f32 %v3303_v60, %v511_v37  ;;  %v2204_v18 = vunpack.c.h.bf16 %v2995_v40  ;;  %v513_v42 = vmul.f32 %v3292_v16, %v2203_v3  ;;  %vm773_vm9 = vcmp.gt.f32.partialorder %v645_v33, 0.0 }
  0x8f   : > { %2722 = vst [vmem:[%s2908_s25 + $0x118] sm:$0xff] %v2483_v4   ;;  %v901_v38 = vmul.f32 0.2, %v645_v33  ;;  %v1028_v0 = vsel %vm772_vm8, %v644_v45, %v900_v29  ;;  %v2207_v34 = vunpack.c.l.bf16 %v2998_v41  ;;  %v647_v46 = vadd.f32 %v3303_v60, %v512_v39 }
  0x90   : > { %vm774_vm10 = vcmp.gt.f32.partialorder %v646_v25, 0.0  ;;  %v902_v22 = vmul.f32 0.2, %v646_v25  ;;  %v514_v19 = vmul.f32 %v3292_v16, %v2204_v18  ;;  %v648_v9 = vadd.f32 %v3303_v60, %v513_v42 }
  0x91   : > { %v1029_v48 = vsel %vm773_vm9, %v645_v33, %v901_v38  ;;  %v2208_v40 = vunpack.c.h.bf16 %v2998_v41  ;;  %v515_v56 = vmul.f32 %v3292_v16, %v2207_v34  ;;  %vm775_vm11 = vcmp.gt.f32.partialorder %v647_v46, 0.0  ;;  %v3563_v34 = vld [vmem:[#allocation2_spill] sm:$0xff] }
  0x92   : > { %v2488_v26 = vpack.c.bf16 %v1029_v48, %v1028_v0  ;;  %v903_v1 = vmul.f32 0.2, %v647_v46  ;;  %v1030_v52 = vsel %vm774_vm10, %v646_v25, %v902_v22  ;;  %v649_v35 = vadd.f32 %v3303_v60, %v514_v19 }
  0x93   : > { %vm776_vm12 = vcmp.gt.f32.partialorder %v648_v9, 0.0  ;;  %v904_v6 = vmul.f32 0.2, %v648_v9  ;;  %v516_v53 = vmul.f32 %v3292_v16, %v2208_v40  ;;  %v650_v30 = vadd.f32 %v3303_v60, %v515_v56 }
  0x94   : > { %2723 = vst [vmem:[%s2908_s25 + $0x120] sm:$0xff] %v2488_v26   ;;  %v1031_v7 = vsel %vm775_vm11, %v647_v46, %v903_v1  ;;  %v2211_v5 = vunpack.c.l.bf16 %v3001_v43  ;;  %v2212_v41 = vunpack.c.h.bf16 %v3001_v43  ;;  %vm777_vm13 = vcmp.gt.f32.partialorder %v649_v35, 0.0 }
  0x95   : > { %v2493_v13 = vpack.c.bf16 %v1031_v7, %v1030_v52  ;;  %v905_v58 = vmul.f32 0.2, %v649_v35  ;;  %v1032_v11 = vsel %vm776_vm12, %v648_v9, %v904_v6  ;;  %v651_v61 = vadd.f32 %v3303_v60, %v516_v53  ;;  %v3564_v6 = vld [vmem:[#allocation3_spill] sm:$0xff] }
  0x96   : > { %vm778_vm14 = vcmp.gt.f32.partialorder %v650_v30, 0.0  ;;  %v906_v50 = vmul.f32 0.2, %v650_v30  ;;  %v517_v27 = vmul.f32 %v3292_v16, %v2211_v5  ;;  %v518_v36 = vmul.f32 %v3292_v16, %v2212_v41 }
  0x97   : > { %2724 = vst [vmem:[%s2908_s25 + $0x128] sm:$0xff] %v2493_v13   ;;  %v1033_v59 = vsel %vm777_vm13, %v649_v35, %v905_v58  ;;  %v2215_v31 = vunpack.c.l.bf16 %v3004_v44  ;;  %v2216_v8 = vunpack.c.h.bf16 %v3004_v44  ;;  %vm779_vm15 = vcmp.gt.f32.partialorder %v651_v61, 0.0 }
  0x98   : > { %v2498_v43 = vpack.c.bf16 %v1033_v59, %v1032_v11  ;;  %v907_v23 = vmul.f32 0.2, %v651_v61  ;;  %v1034_v62 = vsel %vm778_vm14, %v650_v30, %v906_v50  ;;  %v652_v14 = vadd.f32 %v3303_v60, %v517_v27 }
  0x99   : > { %v653_v51 = vadd.f32 %v3303_v60, %v518_v36  ;;  %v519_v15 = vmul.f32 %v3292_v16, %v2215_v31  ;;  %v520_v17 = vmul.f32 %v3292_v16, %v2216_v8  ;;  %v2219_v32 = vunpack.c.l.bf16 %v3007_v47 }
  0x9a   : > { %2725 = vst [vmem:[%s2908_s25 + $0x130] sm:$0xff] %v2498_v43   ;;  %v1035_v28 = vsel %vm779_vm15, %v651_v61, %v907_v23  ;;  %v2220_v12 = vunpack.c.h.bf16 %v3007_v47  ;;  %v2223_v44 = vunpack.c.l.bf16 %v3010_v49  ;;  %vm780_vm0 = vcmp.gt.f32.partialorder %v652_v14, 0.0  ;;  %v3565_v61 = vld [vmem:[#allocation4_spill] sm:$0xff] }
  0x9b   : > { %v2503_v10 = vpack.c.bf16 %v1035_v28, %v1034_v62  ;;  %vm781_vm1 = vcmp.gt.f32.partialorder %v653_v51, 0.0  ;;  %v908_v20 = vmul.f32 0.2, %v652_v14  ;;  %v909_v2 = vmul.f32 0.2, %v653_v51 }
  0x9c   : > { %v654_v24 = vadd.f32 %v3303_v60, %v519_v15  ;;  %v655_v45 = vadd.f32 %v3303_v60, %v520_v17  ;;  %v521_v63 = vmul.f32 %v3292_v16, %v2219_v32  ;;  %v522_v37 = vmul.f32 %v3292_v16, %v2220_v12 }
  0x9d   : > { %2726 = vst [vmem:[%s2908_s25 + $0x138] sm:$0xff] %v2503_v10   ;;  %v1036_v21 = vsel %vm780_vm0, %v652_v14, %v908_v20  ;;  %v2224_v47 = vunpack.c.h.bf16 %v3010_v49  ;;  %v523_v3 = vmul.f32 %v3292_v16, %v2223_v44  ;;  %v1037_v4 = vsel %vm781_vm1, %v653_v51, %v909_v2  ;;  %v3566_v51 = vld [vmem:[#allocation5_spill] sm:$0xff] }
  0x9e   : > { %vm782_vm2 = vcmp.gt.f32.partialorder %v654_v24, 0.0  ;;  %vm783_vm3 = vcmp.gt.f32.partialorder %v655_v45, 0.0  ;;  %v910_v33 = vmul.f32 0.2, %v654_v24  ;;  %v2508_v29 = vpack.c.bf16 %v1037_v4, %v1036_v21  ;;  %v3567_v4 = vld [vmem:[#allocation6_spill] sm:$0xff] }
  0x9f   : > { %v911_v39 = vmul.f32 0.2, %v655_v45  ;;  %v656_v25 = vadd.f32 %v3303_v60, %v521_v63  ;;  %v657_v18 = vadd.f32 %v3303_v60, %v522_v37  ;;  %v524_v38 = vmul.f32 %v3292_v16, %v2224_v47 }
  0xa0   : > { %v1038_v42 = vsel %vm782_vm2, %v654_v24, %v910_v33  ;;  %v658_v0 = vadd.f32 %v3303_v60, %v523_v3  ;;  %v2227_v49 = vunpack.c.l.bf16 %v3563_v34  ;;  %2727 = vst [vmem:[%s2908_s25 + $0x140] sm:$0xff] %v2508_v29   ;;  %v2228_v26 = vunpack.c.h.bf16 %v3563_v34 }
  0xa1   : > { %v1039_v46 = vsel %vm783_vm3, %v655_v45, %v911_v39  ;;  %vm784_vm4 = vcmp.gt.f32.partialorder %v656_v25, 0.0  ;;  %vm785_vm5 = vcmp.gt.f32.partialorder %v657_v18, 0.0  ;;  %v912_v22 = vmul.f32 0.2, %v656_v25 }
  0xa2   : > { %v2513_v19 = vpack.c.bf16 %v1039_v46, %v1038_v42  ;;  %v913_v48 = vmul.f32 0.2, %v657_v18  ;;  %v659_v9 = vadd.f32 %v3303_v60, %v524_v38  ;;  %vm786_vm6 = vcmp.gt.f32.partialorder %v658_v0, 0.0  ;;  %v3568_v46 = vld [vmem:[#allocation7_spill] sm:$0xff] }
  0xa3   : > { %v1040_v40 = vsel %vm784_vm4, %v656_v25, %v912_v22  ;;  %v914_v56 = vmul.f32 0.2, %v658_v0  ;;  %v525_v1 = vmul.f32 %v3292_v16, %v2227_v49  ;;  %v2231_v53 = vunpack.c.l.bf16 %v3564_v6 }
  0xa4   : > { %2728 = vst [vmem:[%s2908_s25 + $0x148] sm:$0xff] %v2513_v19   ;;  %v1041_v52 = vsel %vm785_vm5, %v657_v18, %v913_v48  ;;  %vm787_vm7 = vcmp.gt.f32.partialorder %v659_v9, 0.0  ;;  %v915_v35 = vmul.f32 0.2, %v659_v9  ;;  %v526_v5 = vmul.f32 %v3292_v16, %v2228_v26 }
  0xa5   : > { %v2518_v7 = vpack.c.bf16 %v1041_v52, %v1040_v40  ;;  %v1042_v30 = vsel %vm786_vm6, %v658_v0, %v914_v56  ;;  %v660_v41 = vadd.f32 %v3303_v60, %v525_v1  ;;  %v2232_v58 = vunpack.c.h.bf16 %v3564_v6  ;;  %v3569_v6 = vld [vmem:[#allocation8_spill] sm:$0xff] }
  0xa6   : > { %v1043_v13 = vsel %vm787_vm7, %v659_v9, %v915_v35  ;;  %v527_v11 = vmul.f32 %v3292_v16, %v2231_v53  ;;  %v2235_v50 = vunpack.c.l.bf16 %v3565_v61  ;;  %v661_v59 = vadd.f32 %v3303_v60, %v526_v5 }
  0xa7   : > { %2729 = vst [vmem:[%s2908_s25 + $0x150] sm:$0xff] %v2518_v7   ;;  %v2523_v27 = vpack.c.bf16 %v1043_v13, %v1042_v30  ;;  %vm788_vm8 = vcmp.gt.f32.partialorder %v660_v41, 0.0  ;;  %v916_v36 = vmul.f32 0.2, %v660_v41  ;;  %v528_v31 = vmul.f32 %v3292_v16, %v2232_v58  ;;  %v3570_v30 = vld [vmem:[#allocation9_spill] sm:$0xff] }
  0xa8   : > { %v662_v8 = vadd.f32 %v3303_v60, %v527_v11  ;;  %v2236_v43 = vunpack.c.h.bf16 %v3565_v61  ;;  %v529_v23 = vmul.f32 %v3292_v16, %v2235_v50  ;;  %vm789_vm9 = vcmp.gt.f32.partialorder %v661_v59, 0.0 }
  0xa9   : > { %2730 = vst [vmem:[%s2908_s25 + $0x158] sm:$0xff] %v2523_v27   ;;  %v917_v62 = vmul.f32 0.2, %v661_v59  ;;  %v1044_v14 = vsel %vm788_vm8, %v660_v41, %v916_v36  ;;  %v2239_v15 = vunpack.c.l.bf16 %v3566_v51  ;;  %v663_v17 = vadd.f32 %v3303_v60, %v528_v31 }
  0xaa   : > { %vm790_vm10 = vcmp.gt.f32.partialorder %v662_v8, 0.0  ;;  %v918_v28 = vmul.f32 0.2, %v662_v8  ;;  %v530_v32 = vmul.f32 %v3292_v16, %v2236_v43  ;;  %v664_v44 = vadd.f32 %v3303_v60, %v529_v23 }
  0xab   : > { %v1045_v12 = vsel %vm789_vm9, %v661_v59, %v917_v62  ;;  %v2240_v10 = vunpack.c.h.bf16 %v3566_v51  ;;  %v531_v20 = vmul.f32 %v3292_v16, %v2239_v15  ;;  %vm791_vm11 = vcmp.gt.f32.partialorder %v663_v17, 0.0 }
  0xac   : > { %v2528_v2 = vpack.c.bf16 %v1045_v12, %v1044_v14  ;;  %v919_v24 = vmul.f32 0.2, %v663_v17  ;;  %v1046_v45 = vsel %vm790_vm10, %v662_v8, %v918_v28  ;;  %v665_v63 = vadd.f32 %v3303_v60, %v530_v32  ;;  %v3571_v32 = vld [vmem:[#allocation10_spill] sm:$0xff] }
  0xad   : > { %vm792_vm12 = vcmp.gt.f32.partialorder %v664_v44, 0.0  ;;  %v920_v21 = vmul.f32 0.2, %v664_v44  ;;  %v532_v37 = vmul.f32 %v3292_v16, %v2240_v10  ;;  %v666_v3 = vadd.f32 %v3303_v60, %v531_v20 }
  0xae   : > { %2731 = vst [vmem:[%s2908_s25 + $0x160] sm:$0xff] %v2528_v2   ;;  %v1047_v47 = vsel %vm791_vm11, %v663_v17, %v919_v24  ;;  %v2243_v33 = vunpack.c.l.bf16 %v3567_v4  ;;  %v2244_v29 = vunpack.c.h.bf16 %v3567_v4  ;;  %vm793_vm13 = vcmp.gt.f32.partialorder %v665_v63, 0.0  ;;  %v3572_v4 = vld [vmem:[#allocation11_spill] sm:$0xff] }
  0xaf   : > { %v2533_v39 = vpack.c.bf16 %v1047_v47, %v1046_v45  ;;  %v921_v25 = vmul.f32 0.2, %v665_v63  ;;  %v1048_v18 = vsel %vm792_vm12, %v664_v44, %v920_v21  ;;  %v667_v42 = vadd.f32 %v3303_v60, %v532_v37 }
  0xb0   : > { %vm794_vm14 = vcmp.gt.f32.partialorder %v666_v3, 0.0  ;;  %v922_v38 = vmul.f32 0.2, %v666_v3  ;;  %v533_v0 = vmul.f32 %v3292_v16, %v2243_v33  ;;  %v534_v49 = vmul.f32 %v3292_v16, %v2244_v29 }
  0xb1   : > { %2732 = vst [vmem:[%s2908_s25 + $0x168] sm:$0xff] %v2533_v39   ;;  %v1049_v34 = vsel %vm793_vm13, %v665_v63, %v921_v25  ;;  %v2247_v22 = vunpack.c.l.bf16 %v3568_v46  ;;  %v2248_v19 = vunpack.c.h.bf16 %v3568_v46  ;;  %vm795_vm15 = vcmp.gt.f32.partialorder %v667_v42, 0.0 }
  0xb2   : > { %v2538_v48 = vpack.c.bf16 %v1049_v34, %v1048_v18  ;;  %v923_v9 = vmul.f32 0.2, %v667_v42  ;;  %v1050_v40 = vsel %vm794_vm14, %v666_v3, %v922_v38  ;;  %v668_v56 = vadd.f32 %v3303_v60, %v533_v0  ;;  %v3573_v34 = vld [vmem:[#allocation12_spill] sm:$0xff] }
  0xb3   : > { %v669_v26 = vadd.f32 %v3303_v60, %v534_v49  ;;  %v535_v1 = vmul.f32 %v3292_v16, %v2247_v22  ;;  %v536_v52 = vmul.f32 %v3292_v16, %v2248_v19  ;;  %v2251_v53 = vunpack.c.l.bf16 %v3569_v6 }
  0xb4   : > { %2733 = vst [vmem:[%s2908_s25 + $0x170] sm:$0xff] %v2538_v48   ;;  %v1051_v35 = vsel %vm795_vm15, %v667_v42, %v923_v9  ;;  %v2252_v7 = vunpack.c.h.bf16 %v3569_v6  ;;  %v2255_v5 = vunpack.c.l.bf16 %v3570_v30  ;;  %vm796_vm0 = vcmp.gt.f32.partialorder %v668_v56, 0.0 }
  0xb5   : > { %v2543_v41 = vpack.c.bf16 %v1051_v35, %v1050_v40  ;;  %vm797_vm1 = vcmp.gt.f32.partialorder %v669_v26, 0.0  ;;  %v924_v13 = vmul.f32 0.2, %v668_v56  ;;  %v925_v58 = vmul.f32 0.2, %v669_v26 }
  0xb6   : > { %v670_v11 = vadd.f32 %v3303_v60, %v535_v1  ;;  %v671_v61 = vadd.f32 %v3303_v60, %v536_v52  ;;  %v537_v50 = vmul.f32 %v3292_v16, %v2251_v53  ;;  %v538_v59 = vmul.f32 %v3292_v16, %v2252_v7  ;;  %v3574_v52 = vld [vmem:[#allocation13_spill] sm:$0xff] }
  0xb7   : > { %2734 = vst [vmem:[%s2908_s25 + $0x178] sm:$0xff] %v2543_v41   ;;  %v1052_v27 = vsel %vm796_vm0, %v668_v56, %v924_v13  ;;  %v2256_v36 = vunpack.c.h.bf16 %v3570_v30  ;;  %v539_v31 = vmul.f32 %v3292_v16, %v2255_v5  ;;  %v1053_v8 = vsel %vm797_vm1, %v669_v26, %v925_v58 }
  0xb8   : > { %vm798_vm2 = vcmp.gt.f32.partialorder %v670_v11, 0.0  ;;  %vm799_vm3 = vcmp.gt.f32.partialorder %v671_v61, 0.0  ;;  %v926_v43 = vmul.f32 0.2, %v670_v11  ;;  %v2548_v23 = vpack.c.bf16 %v1053_v8, %v1052_v27  ;;  %v3575_v8 = vld [vmem:[#allocation14_spill] sm:$0xff] }
  0xb9   : > { %v927_v62 = vmul.f32 0.2, %v671_v61  ;;  %v672_v14 = vadd.f32 %v3303_v60, %v537_v50  ;;  %v673_v51 = vadd.f32 %v3303_v60, %v538_v59  ;;  %v540_v17 = vmul.f32 %v3292_v16, %v2256_v36 }
  0xba   : > { %v1054_v15 = vsel %vm798_vm2, %v670_v11, %v926_v43  ;;  %v674_v28 = vadd.f32 %v3303_v60, %v539_v31  ;;  %v2259_v12 = vunpack.c.l.bf16 %v3571_v32  ;;  %2735 = vst [vmem:[%s2908_s25 + $0x180] sm:$0xff] %v2548_v23   ;;  %v2260_v21 = vunpack.c.h.bf16 %v3571_v32 }
  0xbb   : > { %v1055_v44 = vsel %vm799_vm3, %v671_v61, %v927_v62  ;;  %vm800_vm4 = vcmp.gt.f32.partialorder %v672_v14, 0.0  ;;  %vm801_vm5 = vcmp.gt.f32.partialorder %v673_v51, 0.0  ;;  %v928_v10 = vmul.f32 0.2, %v672_v14 }
  0xbc   : > { %v2553_v20 = vpack.c.bf16 %v1055_v44, %v1054_v15  ;;  %v929_v2 = vmul.f32 0.2, %v673_v51  ;;  %v675_v24 = vadd.f32 %v3303_v60, %v540_v17  ;;  %vm802_vm6 = vcmp.gt.f32.partialorder %v674_v28, 0.0  ;;  %v3576_v44 = vld [vmem:[#allocation15_spill] sm:$0xff] }
  0xbd   : > { %v1056_v45 = vsel %vm800_vm4, %v672_v14, %v928_v10  ;;  %v930_v63 = vmul.f32 0.2, %v674_v28  ;;  %v541_v37 = vmul.f32 %v3292_v16, %v2259_v12  ;;  %v2263_v33 = vunpack.c.l.bf16 %v3572_v4 }
  0xbe   : > { %2736 = vst [vmem:[%s2908_s25 + $0x188] sm:$0xff] %v2553_v20   ;;  %v1057_v47 = vsel %vm801_vm5, %v673_v51, %v929_v2  ;;  %vm803_vm7 = vcmp.gt.f32.partialorder %v675_v24, 0.0  ;;  %v931_v3 = vmul.f32 0.2, %v675_v24  ;;  %v542_v25 = vmul.f32 %v3292_v16, %v2260_v21 }
  0xbf   : > { %v2558_v29 = vpack.c.bf16 %v1057_v47, %v1056_v45  ;;  %v1058_v39 = vsel %vm802_vm6, %v674_v28, %v930_v63  ;;  %v676_v18 = vadd.f32 %v3303_v60, %v541_v37  ;;  %v2264_v38 = vunpack.c.h.bf16 %v3572_v4  ;;  %v3577_v4 = vld [vmem:[#allocation16_spill] sm:$0xff] }
  0xc0   : > { %v1059_v42 = vsel %vm803_vm7, %v675_v24, %v931_v3  ;;  %v543_v0 = vmul.f32 %v3292_v16, %v2263_v33  ;;  %v2267_v49 = vunpack.c.l.bf16 %v3573_v34  ;;  %v677_v22 = vadd.f32 %v3303_v60, %v542_v25 }
  0xc1   : > { %2737 = vst [vmem:[%s2908_s25 + $0x190] sm:$0xff] %v2558_v29   ;;  %v2563_v46 = vpack.c.bf16 %v1059_v42, %v1058_v39  ;;  %vm804_vm8 = vcmp.gt.f32.partialorder %v676_v18, 0.0  ;;  %v932_v19 = vmul.f32 0.2, %v676_v18  ;;  %v544_v48 = vmul.f32 %v3292_v16, %v2264_v38  ;;  %v3578_v39 = vld [vmem:[#allocation17_spill] sm:$0xff] }
  0xc2   : > { %v678_v9 = vadd.f32 %v3303_v60, %v543_v0  ;;  %v2268_v40 = vunpack.c.h.bf16 %v3573_v34  ;;  %v545_v56 = vmul.f32 %v3292_v16, %v2267_v49  ;;  %vm805_vm9 = vcmp.gt.f32.partialorder %v677_v22, 0.0 }
  0xc3   : > { %2738 = vst [vmem:[%s2908_s25 + $0x198] sm:$0xff] %v2563_v46   ;;  %v933_v26 = vmul.f32 0.2, %v677_v22  ;;  %v1060_v1 = vsel %vm804_vm8, %v676_v18, %v932_v19  ;;  %v2271_v35 = vunpack.c.l.bf16 %v3574_v52  ;;  %v679_v6 = vadd.f32 %v3303_v60, %v544_v48 }
  0xc4   : > { %vm806_vm10 = vcmp.gt.f32.partialorder %v678_v9, 0.0  ;;  %v934_v53 = vmul.f32 0.2, %v678_v9  ;;  %v546_v7 = vmul.f32 %v3292_v16, %v2268_v40  ;;  %v680_v5 = vadd.f32 %v3303_v60, %v545_v56 }
  0xc5   : > { %v1061_v30 = vsel %vm805_vm9, %v677_v22, %v933_v26  ;;  %v2272_v41 = vunpack.c.h.bf16 %v3574_v52  ;;  %v547_v13 = vmul.f32 %v3292_v16, %v2271_v35  ;;  %vm807_vm11 = vcmp.gt.f32.partialorder %v679_v6, 0.0 }
  0xc6   : > { %v2568_v58 = vpack.c.bf16 %v1061_v30, %v1060_v1  ;;  %v935_v11 = vmul.f32 0.2, %v679_v6  ;;  %v1062_v61 = vsel %vm806_vm10, %v678_v9, %v934_v53  ;;  %v681_v50 = vadd.f32 %v3303_v60, %v546_v7  ;;  %v3579_v7 = vld [vmem:[#allocation18_spill] sm:$0xff] }
  0xc7   : > { %vm808_vm12 = vcmp.gt.f32.partialorder %v680_v5, 0.0  ;;  %v936_v27 = vmul.f32 0.2, %v680_v5  ;;  %v548_v59 = vmul.f32 %v3292_v16, %v2272_v41  ;;  %v682_v31 = vadd.f32 %v3303_v60, %v547_v13 }
  0xc8   : > { %2739 = vst [vmem:[%s2908_s25 + $0x1a0] sm:$0xff] %v2568_v58   ;;  %v1063_v36 = vsel %vm807_vm11, %v679_v6, %v935_v11  ;;  %v2275_v43 = vunpack.c.l.bf16 %v3575_v8  ;;  %v2276_v23 = vunpack.c.h.bf16 %v3575_v8  ;;  %vm809_vm13 = vcmp.gt.f32.partialorder %v681_v50, 0.0 }
  0xc9   : > { %v2573_v62 = vpack.c.bf16 %v1063_v36, %v1062_v61  ;;  %v937_v14 = vmul.f32 0.2, %v681_v50  ;;  %v1064_v51 = vsel %vm808_vm12, %v680_v5, %v936_v27  ;;  %v683_v15 = vadd.f32 %v3303_v60, %v548_v59 }
  0xca   : > { %vm810_vm14 = vcmp.gt.f32.partialorder %v682_v31, 0.0  ;;  %v938_v17 = vmul.f32 0.2, %v682_v31  ;;  %v549_v28 = vmul.f32 %v3292_v16, %v2275_v43  ;;  %v550_v12 = vmul.f32 %v3292_v16, %v2276_v23 }
  0xcb   : > { %2740 = vst [vmem:[%s2908_s25 + $0x1a8] sm:$0xff] %v2573_v62   ;;  %v1065_v32 = vsel %vm809_vm13, %v681_v50, %v937_v14  ;;  %v2279_v10 = vunpack.c.l.bf16 %v3576_v44  ;;  %v2280_v20 = vunpack.c.h.bf16 %v3576_v44  ;;  %vm811_vm15 = vcmp.gt.f32.partialorder %v683_v15, 0.0 }
  0xcc   : > { %v2578_v2 = vpack.c.bf16 %v1065_v32, %v1064_v51  ;;  %v939_v24 = vmul.f32 0.2, %v683_v15  ;;  %v1066_v45 = vsel %vm810_vm14, %v682_v31, %v938_v17  ;;  %v684_v63 = vadd.f32 %v3303_v60, %v549_v28 }
  0xcd   : > { %v685_v21 = vadd.f32 %v3303_v60, %v550_v12  ;;  %v551_v37 = vmul.f32 %v3292_v16, %v2279_v10  ;;  %v552_v47 = vmul.f32 %v3292_v16, %v2280_v20  ;;  %v2283_v33 = vunpack.c.l.bf16 %v3577_v4 }
  0xce   : > { %2741 = vst [vmem:[%s2908_s25 + $0x1b0] sm:$0xff] %v2578_v2   ;;  %v1067_v3 = vsel %vm811_vm15, %v683_v15, %v939_v24  ;;  %v2284_v29 = vunpack.c.h.bf16 %v3577_v4  ;;  %v2287_v25 = vunpack.c.l.bf16 %v3578_v39  ;;  %vm812_vm0 = vcmp.gt.f32.partialorder %v684_v63, 0.0 }
  0xcf   : > { %v2583_v18 = vpack.c.bf16 %v1067_v3, %v1066_v45  ;;  %vm813_vm1 = vcmp.gt.f32.partialorder %v685_v21, 0.0  ;;  %v940_v42 = vmul.f32 0.2, %v684_v63  ;;  %v941_v38 = vmul.f32 0.2, %v685_v21 }
  0xd0   : > { %v686_v0 = vadd.f32 %v3303_v60, %v551_v37  ;;  %v687_v34 = vadd.f32 %v3303_v60, %v552_v47  ;;  %v553_v49 = vmul.f32 %v3292_v16, %v2283_v33  ;;  %v554_v22 = vmul.f32 %v3292_v16, %v2284_v29 }
  0xd1   : > { %2742 = vst [vmem:[%s2908_s25 + $0x1b8] sm:$0xff] %v2583_v18   ;;  %v1068_v46 = vsel %vm812_vm0, %v684_v63, %v940_v42  ;;  %v2288_v19 = vunpack.c.h.bf16 %v3578_v39  ;;  %v555_v48 = vmul.f32 %v3292_v16, %v2287_v25  ;;  %v1069_v9 = vsel %vm813_vm1, %v685_v21, %v941_v38 }
  0xd2   : > { %vm814_vm2 = vcmp.gt.f32.partialorder %v686_v0, 0.0  ;;  %vm815_vm3 = vcmp.gt.f32.partialorder %v687_v34, 0.0  ;;  %v942_v40 = vmul.f32 0.2, %v686_v0  ;;  %v2588_v56 = vpack.c.bf16 %v1069_v9, %v1068_v46 }
  0xd3   : > { %v943_v26 = vmul.f32 0.2, %v687_v34  ;;  %v688_v1 = vadd.f32 %v3303_v60, %v553_v49  ;;  %v689_v52 = vadd.f32 %v3303_v60, %v554_v22  ;;  %v556_v6 = vmul.f32 %v3292_v16, %v2288_v19 }
  0xd4   : > { %v1070_v35 = vsel %vm814_vm2, %v686_v0, %v942_v40  ;;  %v690_v53 = vadd.f32 %v3303_v60, %v555_v48  ;;  %v2291_v30 = vunpack.c.l.bf16 %v3579_v7  ;;  %2743 = vst [vmem:[%s2908_s25 + $0x1c0] sm:$0xff] %v2588_v56   ;;  %v2292_v27 = vunpack.c.h.bf16 %v3579_v7 }
  0xd5   : > { %v1071_v5 = vsel %vm815_vm3, %v687_v34, %v943_v26  ;;  %vm816_vm4 = vcmp.gt.f32.partialorder %v688_v1, 0.0  ;;  %vm817_vm5 = vcmp.gt.f32.partialorder %v689_v52, 0.0  ;;  %v944_v41 = vmul.f32 0.2, %v688_v1 }
  0xd6   : > { %v2593_v13 = vpack.c.bf16 %v1071_v5, %v1070_v35  ;;  %v945_v58 = vmul.f32 0.2, %v689_v52  ;;  %v691_v11 = vadd.f32 %v3303_v60, %v556_v6  ;;  %vm818_vm6 = vcmp.gt.f32.partialorder %v690_v53, 0.0 }
  0xd7   : > { %v1072_v61 = vsel %vm816_vm4, %v688_v1, %v944_v41  ;;  %v946_v50 = vmul.f32 0.2, %v690_v53  ;;  %v557_v59 = vmul.f32 %v3292_v16, %v2291_v30  ;;  %v2295_v8 = vunpack.c.l.bf16 %v3078_v55 }
  0xd8   : > { %2744 = vst [vmem:[%s2908_s25 + $0x1c8] sm:$0xff] %v2593_v13   ;;  %v1073_v36 = vsel %vm817_vm5, %v689_v52, %v945_v58  ;;  %vm819_vm7 = vcmp.gt.f32.partialorder %v691_v11, 0.0  ;;  %v947_v31 = vmul.f32 0.2, %v691_v11  ;;  %v558_v62 = vmul.f32 %v3292_v16, %v2292_v27 }
  0xd9   : > { %v2598_v43 = vpack.c.bf16 %v1073_v36, %v1072_v61  ;;  %v1074_v23 = vsel %vm818_vm6, %v690_v53, %v946_v50  ;;  %v692_v14 = vadd.f32 %v3303_v60, %v557_v59  ;;  %v2296_v15 = vunpack.c.h.bf16 %v3078_v55 }
  0xda   : > { %v1075_v51 = vsel %vm819_vm7, %v691_v11, %v947_v31  ;;  %v559_v17 = vmul.f32 %v3292_v16, %v2295_v8  ;;  %v2299_v28 = vunpack.c.l.bf16 %v3081_v54  ;;  %v693_v12 = vadd.f32 %v3303_v60, %v558_v62 }
  0xdb   : > { %2745 = vst [vmem:[%s2908_s25 + $0x1d0] sm:$0xff] %v2598_v43   ;;  %v2603_v32 = vpack.c.bf16 %v1075_v51, %v1074_v23  ;;  %vm820_vm8 = vcmp.gt.f32.partialorder %v692_v14, 0.0  ;;  %v948_v44 = vmul.f32 0.2, %v692_v14  ;;  %v560_v10 = vmul.f32 %v3292_v16, %v2296_v15 }
  0xdc   : > { %v694_v20 = vadd.f32 %v3303_v60, %v559_v17  ;;  %v2300_v2 = vunpack.c.h.bf16 %v3081_v54  ;;  %v561_v24 = vmul.f32 %v3292_v16, %v2299_v28  ;;  %vm821_vm9 = vcmp.gt.f32.partialorder %v693_v12, 0.0 }
  0xdd   : > { %2746 = vst [vmem:[%s2908_s25 + $0x1d8] sm:$0xff] %v2603_v32   ;;  %v949_v55 = vmul.f32 0.2, %v693_v12  ;;  %v1076_v45 = vsel %vm820_vm8, %v692_v14, %v948_v44  ;;  %v2303_v63 = vunpack.c.l.bf16 %v3084_v57  ;;  %v695_v21 = vadd.f32 %v3303_v60, %v560_v10 }
  0xde   : > { %vm822_vm10 = vcmp.gt.f32.partialorder %v694_v20, 0.0  ;;  %v950_v37 = vmul.f32 0.2, %v694_v20  ;;  %v562_v47 = vmul.f32 %v3292_v16, %v2300_v2  ;;  %v696_v4 = vadd.f32 %v3303_v60, %v561_v24 }
  0xdf   : > { %v1077_v3 = vsel %vm821_vm9, %v693_v12, %v949_v55  ;;  %v2304_v54 = vunpack.c.h.bf16 %v3084_v57  ;;  %v563_v33 = vmul.f32 %v3292_v16, %v2303_v63  ;;  %vm823_vm11 = vcmp.gt.f32.partialorder %v695_v21, 0.0 }
  0xe0   : > { %v2608_v29 = vpack.c.bf16 %v1077_v3, %v1076_v45  ;;  %v951_v39 = vmul.f32 0.2, %v695_v21  ;;  %v1078_v25 = vsel %vm822_vm10, %v694_v20, %v950_v37  ;;  %v697_v18 = vadd.f32 %v3303_v60, %v562_v47 }
  0xe1   : > { %vm824_vm12 = vcmp.gt.f32.partialorder %v696_v4, 0.0  ;;  %v952_v42 = vmul.f32 0.2, %v696_v4  ;;  %v564_v38 = vmul.f32 %v3292_v16, %v2304_v54  ;;  %v698_v34 = vadd.f32 %v3303_v60, %v563_v33 }
  0xe2   : > { %2747 = vst [vmem:[%s2908_s25 + $0x1e0] sm:$0xff] %v2608_v29   ;;  %v1079_v0 = vsel %vm823_vm11, %v695_v21, %v951_v39  ;;  %vm825_vm13 = vcmp.gt.f32.partialorder %v697_v18, 0.0  ;;  %v953_v57 = vmul.f32 0.2, %v697_v18 }
  0xe3   : > { %v2613_v49 = vpack.c.bf16 %v1079_v0, %v1078_v25  ;;  %v1080_v46 = vsel %vm824_vm12, %v696_v4, %v952_v42  ;;  %v699_v22 = vadd.f32 %v3303_v60, %v564_v38  ;;  %vm826_vm14 = vcmp.gt.f32.partialorder %v698_v34, 0.0 }
  0xe4   : > { %v954_v19 = vmul.f32 0.2, %v698_v34  ;;  %v1081_v48 = vsel %vm825_vm13, %v697_v18, %v953_v57 }
  0xe5   : > { %2748 = vst [vmem:[%s2908_s25 + $0x1e8] sm:$0xff] %v2613_v49   ;;  %v2618_v9 = vpack.c.bf16 %v1081_v48, %v1080_v46  ;;  %vm827_vm15 = vcmp.gt.f32.partialorder %v699_v22, 0.0  ;;  %v955_v40 = vmul.f32 0.2, %v699_v22 }
  0xe6   : > { %v1082_v16 = vsel %vm826_vm14, %v698_v34, %v954_v19 }
  0xe7   : > { %2749 = vst [vmem:[%s2908_s25 + $0x1f0] sm:$0xff] %v2618_v9   ;;  %v1083_v56 = vsel %vm827_vm15, %v699_v22, %v955_v40 }
  0xe8   : > { %v2623_v26 = vpack.c.bf16 %v1083_v56, %v1082_v16 }
  0xea   : > { %2750 = vst [vmem:[%s2908_s25 + $0x1f8] sm:$0xff] %v2623_v26  }
  0xeb PF: > { %s13_s12 = sadd.s32 1, %s2767_s12  }
  0xec   : > { %p10_p4 = scmp.ge.s32.totalorder %s13_s12, 4  }
  0xee   :  { %12 = sbr.rel (!%p10_p4) target bundleno = 1 (0x1), region = 62 }

// kernel: discriminator_forward.10
= control target key start
LH: loop header
LB: loop body
LE: loop exit
PB: predicated region body
PF: predicated region fallthrough
CT: control target
= control target key end

     0   :  { %s4434_s15 = smov 0   ;;  %s4436_s16 = smov 0   ;;  %s5077_s0 = inlined_call_operand.vmem [shape: bf16[2048,64], index: 0, kind: input, shape index: {}]   ;;  %s5078_s1 = inlined_call_operand.vmem [shape: bf16[64,128], index: 1, kind: input, shape index: {}]   ;;  %s5079_s2 = inlined_call_operand.vmem [shape: bf16[2048,128], index: 2, kind: output, shape index: {0}]   ;;  %s5080_s3 = inlined_call_operand.vmem [shape: f32[2,1,128], index: 3, kind: output, shape index: {1}]   ;;  %s5081_s4 = inlined_call_operand.vmem [shape: f32[2,1,128], index: 4, kind: output, shape index: {2}]  }
   0x1   :  { %s4438_s17 = smov 0  }
   0x2 LB: > { %s27_s18 = sadd.s32 1, %s4403_s16  ;;  %p3303_p0 = scmp.ge.s32.totalorder %s4407_s17, 1  ;;  %s4407_s17 = sphi %s4438_s17, %s15_s17   ;;  %s4403_s16 = sphi %s4436_s16, %s5115_s16   ;;  %s4399_s15 = sphi %s4434_s15, %s5114_s15  }
   0x3   : > { %p29_p1 = scmp.ge.s32.totalorder %s27_s18, 2  ;;  %p196_p2 = scmp.lt.s32.totalorder %s4407_s17, 3 }
   0x5   : > { %s5117_s18 = smov (%p29_p1, %s27_s18), 0  ;;  %p197_p3 = pnand %p3303_p0, %p196_p2 }
   0x7   : > { %200 = sbr.rel (%p197_p3) target bundleno = 515 (0x203), region = 28 }
   0xe   : > { %v4317_v0 = vld [vmem:[%s5078_s1] sm:$0xff]   ;;  %s3304_s21 = sshll.u32 %s4399_s15, 7  ;;  %v4318_v1 = vld [vmem:[%s5078_s1 + $0x8] sm:$0xff]   ;;  %v4319_v2 = vld [vmem:[%s5078_s1 + $0x10] sm:$0xff]   ;;  %vm1004_vm0 = vcmask 523264   ;;  %p257_p5 = scmp.lt.s32.totalorder %s4399_s15, 1 }
   0xf   : > { %p237_p4 = scmp.lt.s32.totalorder %s3304_s21, 255  ;;  %4149 = vmatprep.subr.bf16.mxu0 %v4317_v0  ;;  %4285 = vmatprep.subr.bf16.mxu1 %v4317_v0  ;;  %v4320_v4 = vld [vmem:[%s5078_s1 + $0x18] sm:$0xff]  }
  0x10   : > { %4150 = vmatpush3.bf16.msra.mxu0 %v4317_v0  ;;  %4289 = vmatpush3.bf16.msra.mxu1 %v4317_v0  ;;  %s5121_s15 = smov (!%p257_p5, %s4399_s15), 1 }
  0x11   : > { %s5119_s21 = smov (!%p237_p4, %s3304_s21), 255  ;;  %4151 = vmatprep.subr.bf16.mxu0 %v4318_v1  ;;  %4286 = vmatprep.subr.bf16.mxu1 %v4318_v1  ;;  %s259_s11 = scalar_lea.vmem %s5080_s3, %s5121_s15 }
  0x12   : > { %s3305_s26 = sshll.u32 %s5119_s21, 2  ;;  %s262_s14 = scalar_lea.vmem %s5081_s4, %s5121_s15 }
  0x13   : > { %s4472_s29 = scalar_lea.vmem %s5077_s0, %s3305_s26  ;;  %s4610_s8 = scalar_lea.vmem %s5079_s2, %s3305_s26 }
  0x14   : > { %4152 = vmatpush3.bf16.msra.mxu0 %v4318_v1  ;;  %v4321_v3 = vld [vmem:[%s4472_s29] sm:$0xff]   ;;  %4290 = vmatpush3.bf16.msra.mxu1 %v4318_v1  ;;  %v4322_v5 = vld [vmem:[%s4472_s29 + $0x8] sm:$0xff]   ;;  %v4323_v6 = vld [vmem:[%s4472_s29 + $0x10] sm:$0xff]  }
  0x15   : > { %4153 = vmatprep.subr.bf16.mxu0 %v4319_v2  ;;  %4287 = vmatprep.subr.bf16.mxu1 %v4319_v2  ;;  %v4324_v7 = vld [vmem:[%s4472_s29 + $0x18] sm:$0xff]   ;;  %v4325_v8 = vld [vmem:[%s4472_s29 + $0x20] sm:$0xff]   ;;  %v4326_v9 = vld [vmem:[%s4472_s29 + $0x28] sm:$0xff]  }
  0x16   : > { %4157 = vmatprep.mubr.msk.bf16.mxu0 %vm1004_vm0, %v4321_v3  ;;  %v4327_v10 = vld [vmem:[%s4472_s29 + $0x30] sm:$0xff]   ;;  %v4328_v11 = vld [vmem:[%s4472_s29 + $0x38] sm:$0xff]   ;;  %v4329_v12 = vld [vmem:[%s4472_s29 + $0x40] sm:$0xff]  }
  0x17   : > { %v4353_v13 = vld [vmem:[%s4472_s29 + $0x100] sm:$0xff]   ;;  %v4354_v14 = vld [vmem:[%s4472_s29 + $0x108] sm:$0xff]   ;;  %v4355_v15 = vld [vmem:[%s4472_s29 + $0x110] sm:$0xff]  }
  0x18   : > { %4154 = vmatpush3.bf16.msra.mxu0 %v4319_v2  ;;  %4291 = vmatpush3.bf16.msra.mxu1 %v4319_v2  ;;  %v4330_v16 = vld [vmem:[%s4472_s29 + $0x48] sm:$0xff]   ;;  %v4331_v17 = vld [vmem:[%s4472_s29 + $0x50] sm:$0xff]   ;;  %v4356_v18 = vld [vmem:[%s4472_s29 + $0x118] sm:$0xff]  }
  0x19   : > { %4155 = vmatprep.subr.bf16.mxu0 %v4320_v4  ;;  %4288 = vmatprep.subr.bf16.mxu1 %v4320_v4  ;;  %v4357_v19 = vld [vmem:[%s4472_s29 + $0x120] sm:$0xff]   ;;  %v4332_v20 = vld [vmem:[%s4472_s29 + $0x58] sm:$0xff]   ;;  %v4358_v22 = vld [vmem:[%s4472_s29 + $0x128] sm:$0xff]  }
  0x1a   : > { %4221 = vmatprep.mubr.msk.bf16.mxu1 %vm1004_vm0, %v4353_v13  ;;  %v4333_v21 = vld [vmem:[%s4472_s29 + $0x60] sm:$0xff]   ;;  %v4359_v23 = vld [vmem:[%s4472_s29 + $0x130] sm:$0xff]   ;;  %v4334_v24 = vld [vmem:[%s4472_s29 + $0x68] sm:$0xff]  }
  0x1b   : > { %v4360_v25 = vld [vmem:[%s4472_s29 + $0x138] sm:$0xff]   ;;  %v4335_v26 = vld [vmem:[%s4472_s29 + $0x70] sm:$0xff]   ;;  %v4361_v27 = vld [vmem:[%s4472_s29 + $0x140] sm:$0xff]  }
  0x1c   : > { %4156 = vmatpush3.bf16.msra.mxu0 %v4320_v4  ;;  %4292 = vmatpush3.bf16.msra.mxu1 %v4320_v4  ;;  %v4336_v28 = vld [vmem:[%s4472_s29 + $0x78] sm:$0xff]   ;;  %v4362_v29 = vld [vmem:[%s4472_s29 + $0x148] sm:$0xff]   ;;  %v4337_v30 = vld [vmem:[%s4472_s29 + $0x80] sm:$0xff]  }
  0x1d   : > { %v4363_v31 = vld [vmem:[%s4472_s29 + $0x150] sm:$0xff]   ;;  %v4338_v32 = vld [vmem:[%s4472_s29 + $0x88] sm:$0xff]   ;;  %v4364_v33 = vld [vmem:[%s4472_s29 + $0x158] sm:$0xff]  }
  0x1e   : > { %v4339_v34 = vld [vmem:[%s4472_s29 + $0x90] sm:$0xff]   ;;  %v4365_v35 = vld [vmem:[%s4472_s29 + $0x160] sm:$0xff]   ;;  %v4340_v36 = vld [vmem:[%s4472_s29 + $0x98] sm:$0xff]  }
  0x1f   : > { %4158 = vmatmul.mubr.msk.bf16.vlgmr.msra.gmra.mrb[0].mxu0 %vm1004_vm0, %v4322_v5  ;;  %4222 = vmatmul.mubr.msk.bf16.vlgmr.msra.gmra.mrb[0].mxu1 %vm1004_vm0, %v4354_v14  ;;  %v4366_v37 = vld [vmem:[%s4472_s29 + $0x168] sm:$0xff]   ;;  %v4341_v38 = vld [vmem:[%s4472_s29 + $0xa0] sm:$0xff]   ;;  %v4367_v39 = vld [vmem:[%s4472_s29 + $0x170] sm:$0xff]  }
  0x20   : > { %4161 = vmatprep.mubr.msk.bf16.mxu0 %vm1004_vm0, %v4323_v6  ;;  %4225 = vmatprep.mubr.msk.bf16.mxu1 %vm1004_vm0, %v4355_v15  ;;  %v4342_v40 = vld [vmem:[%s4472_s29 + $0xa8] sm:$0xff]   ;;  %v4368_v41 = vld [vmem:[%s4472_s29 + $0x178] sm:$0xff]   ;;  %v4343_v42 = vld [vmem:[%s4472_s29 + $0xb0] sm:$0xff]  }
  0x21   : > { %v4369_v43 = vld [vmem:[%s4472_s29 + $0x180] sm:$0xff]   ;;  %v4344_v44 = vld [vmem:[%s4472_s29 + $0xb8] sm:$0xff]   ;;  %v4370_v45 = vld [vmem:[%s4472_s29 + $0x188] sm:$0xff]  }
  0x22   : > { %v4345_v46 = vld [vmem:[%s4472_s29 + $0xc0] sm:$0xff]   ;;  %v4371_v47 = vld [vmem:[%s4472_s29 + $0x190] sm:$0xff]   ;;  %v4346_v48 = vld [vmem:[%s4472_s29 + $0xc8] sm:$0xff]  }
  0x23   : > { %v4372_v49 = vld [vmem:[%s4472_s29 + $0x198] sm:$0xff]   ;;  %v4347_v50 = vld [vmem:[%s4472_s29 + $0xd0] sm:$0xff]   ;;  %v4373_v51 = vld [vmem:[%s4472_s29 + $0x1a0] sm:$0xff]  }
  0x24   : > { %v4348_v52 = vld [vmem:[%s4472_s29 + $0xd8] sm:$0xff]   ;;  %v4374_v53 = vld [vmem:[%s4472_s29 + $0x1a8] sm:$0xff]   ;;  %v4349_v54 = vld [vmem:[%s4472_s29 + $0xe0] sm:$0xff]  }
  0x25   : > { %v4375_v55 = vld [vmem:[%s4472_s29 + $0x1b0] sm:$0xff]   ;;  %v4350_v56 = vld [vmem:[%s4472_s29 + $0xe8] sm:$0xff]   ;;  %v4376_v57 = vld [vmem:[%s4472_s29 + $0x1b8] sm:$0xff]  }
  0x26   : > { %v4351_v58 = vld [vmem:[%s4472_s29 + $0xf0] sm:$0xff]   ;;  %v4377_v59 = vld [vmem:[%s4472_s29 + $0x1c0] sm:$0xff]   ;;  %v4352_v60 = vld [vmem:[%s4472_s29 + $0xf8] sm:$0xff]  }
  0x27   : > { %4162 = vmatmul.mubr.msk.bf16.gmra.mrb[4].mxu0 %vm1004_vm0, %v4324_v7  ;;  %4226 = vmatmul.mubr.msk.bf16.gmra.mrb[4].mxu1 %vm1004_vm0, %v4356_v18  ;;  %v4378_v61 = vld [vmem:[%s4472_s29 + $0x1c8] sm:$0xff]   ;;  %v4379_v62 = vld [vmem:[%s4472_s29 + $0x1d0] sm:$0xff]   ;;  %v4380_v63 = vld [vmem:[%s4472_s29 + $0x1d8] sm:$0xff]  }
  0x28   : > { %4165 = vmatprep.mubr.msk.bf16.mxu0 %vm1004_vm0, %v4325_v8  ;;  %4229 = vmatprep.mubr.msk.bf16.mxu1 %vm1004_vm0, %v4357_v19  ;;  %v4381_v0 = vld [vmem:[%s4472_s29 + $0x1e0] sm:$0xff]   ;;  %v4382_v1 = vld [vmem:[%s4472_s29 + $0x1e8] sm:$0xff]   ;;  %v4383_v2 = vld [vmem:[%s4472_s29 + $0x1f0] sm:$0xff]  }
  0x29   : > { %v4384_v3 = vld [vmem:[%s4472_s29 + $0x1f8] sm:$0xff]  }
  0x2f   : > { %4166 = vmatmul.mubr.msk.bf16.gmra.mrb[8].mxu0 %vm1004_vm0, %v4326_v9  ;;  %4230 = vmatmul.mubr.msk.bf16.gmra.mrb[8].mxu1 %vm1004_vm0, %v4358_v22 }
  0x30   : > { %4169 = vmatprep.mubr.msk.bf16.mxu0 %vm1004_vm0, %v4327_v10  ;;  %4233 = vmatprep.mubr.msk.bf16.mxu1 %vm1004_vm0, %v4359_v23 }
  0x37   : > { %4170 = vmatmul.mubr.msk.bf16.gmra.mrb[12].mxu0 %vm1004_vm0, %v4328_v11  ;;  %4234 = vmatmul.mubr.msk.bf16.gmra.mrb[12].mxu1 %vm1004_vm0, %v4360_v25 }
  0x38   : > { %4173 = vmatprep.mubr.msk.bf16.mxu0 %vm1004_vm0, %v4329_v12  ;;  %4237 = vmatprep.mubr.msk.bf16.mxu1 %vm1004_vm0, %v4361_v27 }
  0x3f   : > { %4174 = vmatmul.mubr.msk.bf16.gmra.mrb[16].mxu0 %vm1004_vm0, %v4330_v16  ;;  %4238 = vmatmul.mubr.msk.bf16.gmra.mrb[16].mxu1 %vm1004_vm0, %v4362_v29 }
  0x40   : > { %4177 = vmatprep.mubr.msk.bf16.mxu0 %vm1004_vm0, %v4331_v17  ;;  %4241 = vmatprep.mubr.msk.bf16.mxu1 %vm1004_vm0, %v4363_v31 }
  0x47   : > { %4178 = vmatmul.mubr.msk.bf16.gmra.mrb[20].mxu0 %vm1004_vm0, %v4332_v20  ;;  %4242 = vmatmul.mubr.msk.bf16.gmra.mrb[20].mxu1 %vm1004_vm0, %v4364_v33 }
  0x48   : > { %4181 = vmatprep.mubr.msk.bf16.mxu0 %vm1004_vm0, %v4333_v21  ;;  %4245 = vmatprep.mubr.msk.bf16.mxu1 %vm1004_vm0, %v4365_v35 }
  0x4f   : > { %4182 = vmatmul.mubr.msk.bf16.gmra.mrb[24].mxu0 %vm1004_vm0, %v4334_v24  ;;  %4246 = vmatmul.mubr.msk.bf16.gmra.mrb[24].mxu1 %vm1004_vm0, %v4366_v37 }
  0x50   : > { %4185 = vmatprep.mubr.msk.bf16.mxu0 %vm1004_vm0, %v4335_v26  ;;  %4249 = vmatprep.mubr.msk.bf16.mxu1 %vm1004_vm0, %v4367_v39 }
  0x57   : > { %4186 = vmatmul.mubr.msk.bf16.gmra.mrb[28].mxu0 %vm1004_vm0, %v4336_v28  ;;  %4250 = vmatmul.mubr.msk.bf16.gmra.mrb[28].mxu1 %vm1004_vm0, %v4368_v41 }
  0x58   : > { %4189 = vmatprep.mubr.msk.bf16.mxu0 %vm1004_vm0, %v4337_v30  ;;  %4253 = vmatprep.mubr.msk.bf16.mxu1 %vm1004_vm0, %v4369_v43 }
  0x5f   : > { %4190 = vmatmul.mubr.msk.bf16.gmra.mrb[32].mxu0 %vm1004_vm0, %v4338_v32  ;;  %4254 = vmatmul.mubr.msk.bf16.gmra.mrb[32].mxu1 %vm1004_vm0, %v4370_v45 }
  0x60   : > { %4193 = vmatprep.mubr.msk.bf16.mxu0 %vm1004_vm0, %v4339_v34  ;;  %4257 = vmatprep.mubr.msk.bf16.mxu1 %vm1004_vm0, %v4371_v47 }
  0x67   : > { %4194 = vmatmul.mubr.msk.bf16.gmra.mrb[36].mxu0 %vm1004_vm0, %v4340_v36  ;;  %4258 = vmatmul.mubr.msk.bf16.gmra.mrb[36].mxu1 %vm1004_vm0, %v4372_v49 }
  0x68   : > { %4197 = vmatprep.mubr.msk.bf16.mxu0 %vm1004_vm0, %v4341_v38  ;;  %4261 = vmatprep.mubr.msk.bf16.mxu1 %vm1004_vm0, %v4373_v51 }
  0x6f   : > { %4198 = vmatmul.mubr.msk.bf16.gmra.mrb[40].mxu0 %vm1004_vm0, %v4342_v40  ;;  %4262 = vmatmul.mubr.msk.bf16.gmra.mrb[40].mxu1 %vm1004_vm0, %v4374_v53 }
  0x70   : > { %4201 = vmatprep.mubr.msk.bf16.mxu0 %vm1004_vm0, %v4343_v42  ;;  %4265 = vmatprep.mubr.msk.bf16.mxu1 %vm1004_vm0, %v4375_v55 }
  0x77   : > { %4202 = vmatmul.mubr.msk.bf16.gmra.mrb[44].mxu0 %vm1004_vm0, %v4344_v44  ;;  %4266 = vmatmul.mubr.msk.bf16.gmra.mrb[44].mxu1 %vm1004_vm0, %v4376_v57 }
  0x78   : > { %4205 = vmatprep.mubr.msk.bf16.mxu0 %vm1004_vm0, %v4345_v46  ;;  %4269 = vmatprep.mubr.msk.bf16.mxu1 %vm1004_vm0, %v4377_v59 }
  0x7f   : > { %4206 = vmatmul.mubr.msk.bf16.gmra.mrb[48].mxu0 %vm1004_vm0, %v4346_v48  ;;  %4270 = vmatmul.mubr.msk.bf16.gmra.mrb[48].mxu1 %vm1004_vm0, %v4378_v61 }
  0x80   : > { %4209 = vmatprep.mubr.msk.bf16.mxu0 %vm1004_vm0, %v4347_v50  ;;  %4273 = vmatprep.mubr.msk.bf16.mxu1 %vm1004_vm0, %v4379_v62 }
  0x87   : > { %4210 = vmatmul.mubr.msk.bf16.gmra.mrb[52].mxu0 %vm1004_vm0, %v4348_v52  ;;  %4274 = vmatmul.mubr.msk.bf16.gmra.mrb[52].mxu1 %vm1004_vm0, %v4380_v63 }
  0x88   : > { %4213 = vmatprep.mubr.msk.bf16.mxu0 %vm1004_vm0, %v4349_v54  ;;  %4277 = vmatprep.mubr.msk.bf16.mxu1 %vm1004_vm0, %v4381_v0 }
  0x8f   : > { %4214 = vmatmul.mubr.msk.bf16.gmra.mrb[56].mxu0 %vm1004_vm0, %v4350_v56  ;;  %4278 = vmatmul.mubr.msk.bf16.gmra.mrb[56].mxu1 %vm1004_vm0, %v4382_v1 }
  0x90   : > { %4217 = vmatprep.mubr.msk.bf16.mxu0 %vm1004_vm0, %v4351_v58  ;;  %4281 = vmatprep.mubr.msk.bf16.mxu1 %vm1004_vm0, %v4383_v2 }
  0x97   : > { %4218 = vmatmul.mubr.msk.bf16.gmra.mrb[60].mxu0 %vm1004_vm0, %v4352_v60  ;;  %4282 = vmatmul.mubr.msk.bf16.gmra.mrb[60].mxu1 %vm1004_vm0, %v4384_v3 }
  0xf2   : > { %v4159_v4 = vpop.f32.mrb[0].mxu0  ;;  %v4618_v56 = vpop.f32.mrb[0].mxu1 }
  0xf3   : > { %v1231_v5 = vpop.f32.mrb[1].mxu0  ;;  %v2905_v13 = vmul.f32 %v4159_v4, %v4159_v4  ;;  %v4620_v58 = vpop.f32.mrb[1].mxu1 }
  0xf4   : > { %v4160_v6 = vpop.f32.mrb[2].mxu0  ;;  %v2903_v9 = vmul.f32 %v1231_v5, %v1231_v5  ;;  %v4622_v63 = vpop.f32.mrb[2].mxu1 }
  0xf5   : > { %v3706_v7 = vpack.c.bf16 %v4160_v6, %v4159_v4  ;;  %v1234_v8 = vpop.f32.mrb[3].mxu0  ;;  %v2906_v16 = vmul.f32 %v4160_v6, %v4160_v6  ;;  %v3866_v2 = vpack.c.bf16 %v4622_v63, %v4618_v56  ;;  %v4626_v3 = vpop.f32.mrb[3].mxu1 }
  0xf6   : > { %v3701_v10 = vpack.c.bf16 %v1234_v8, %v1231_v5  ;;  %v2769_v11 = vadd.f32 %v1234_v8, %v1231_v5  ;;  %v2904_v12 = vmul.f32 %v1234_v8, %v1234_v8  ;;  %v3861_v8 = vpack.c.bf16 %v4626_v3, %v4620_v58 }
  0xf7   : > { %4018 = vst [vmem:[%s4610_s8 + $0x8] sm:$0xff] %v3706_v7   ;;  %4050 = vst [vmem:[%s4610_s8 + $0x108] sm:$0xff] %v3866_v2  }
  0xf8   : > { %3702 = vst [vmem:[%s4610_s8] sm:$0xff] %v3701_v10   ;;  %v2770_v14 = vadd.f32 %v4159_v4, %v2769_v11  ;;  %v3031_v15 = vadd.f32 %v2904_v12, %v2903_v9  ;;  %4049 = vst [vmem:[%s4610_s8 + $0x100] sm:$0xff] %v3861_v8  }
  0xfa   : > { %v3032_v17 = vadd.f32 %v3031_v15, %v2905_v13  ;;  %v4163_v18 = vpop.f32.mrb[4].mxu0  ;;  %v2771_v19 = vadd.f32 %v4160_v6, %v2770_v14 }
  0xfb   : > { %v1247_v20 = vpop.f32.mrb[5].mxu0  ;;  %v2909_v31 = vmul.f32 %v4163_v18, %v4163_v18 }
  0xfc   : > { %v2772_v21 = vadd.f32 %v2771_v19, %v1247_v20  ;;  %v2907_v22 = vmul.f32 %v1247_v20, %v1247_v20  ;;  %v3033_v23 = vadd.f32 %v3032_v17, %v2906_v16  ;;  %v4164_v24 = vpop.f32.mrb[6].mxu0  ;;  %v4634_v16 = vpop.f32.mrb[4].mxu1 }
  0xfd   : > { %v3716_v25 = vpack.c.bf16 %v4164_v24, %v4163_v18  ;;  %v1250_v26 = vpop.f32.mrb[7].mxu0  ;;  %v2910_v34 = vmul.f32 %v4164_v24, %v4164_v24 }
  0xfe   : > { %v3034_v27 = vadd.f32 %v3033_v23, %v2907_v22  ;;  %v3711_v28 = vpack.c.bf16 %v1250_v26, %v1247_v20  ;;  %v2773_v29 = vadd.f32 %v2772_v21, %v1250_v26  ;;  %v2908_v30 = vmul.f32 %v1250_v26, %v1250_v26 }
  0xff   : > { %4020 = vst [vmem:[%s4610_s8 + $0x18] sm:$0xff] %v3716_v25  }
 0x100   : > { %4019 = vst [vmem:[%s4610_s8 + $0x10] sm:$0xff] %v3711_v28   ;;  %v2774_v32 = vadd.f32 %v4163_v18, %v2773_v29  ;;  %v3035_v33 = vadd.f32 %v3034_v27, %v2908_v30  ;;  %v4636_v18 = vpop.f32.mrb[5].mxu1 }
 0x101   : > { %v4638_v23 = vpop.f32.mrb[6].mxu1 }
 0x102   : > { %v3036_v35 = vadd.f32 %v3035_v33, %v2909_v31  ;;  %v4167_v36 = vpop.f32.mrb[8].mxu0  ;;  %v2775_v37 = vadd.f32 %v4164_v24, %v2774_v32  ;;  %v3876_v26 = vpack.c.bf16 %v4638_v23, %v4634_v16  ;;  %v4642_v27 = vpop.f32.mrb[7].mxu1 }
 0x103   : > { %v1263_v38 = vpop.f32.mrb[9].mxu0  ;;  %v2913_v49 = vmul.f32 %v4167_v36, %v4167_v36  ;;  %v3871_v32 = vpack.c.bf16 %v4642_v27, %v4636_v18 }
 0x104   : > { %v2776_v39 = vadd.f32 %v2775_v37, %v1263_v38  ;;  %v2911_v40 = vmul.f32 %v1263_v38, %v1263_v38  ;;  %v3037_v41 = vadd.f32 %v3036_v35, %v2910_v34  ;;  %v4168_v42 = vpop.f32.mrb[10].mxu0  ;;  %4052 = vst [vmem:[%s4610_s8 + $0x118] sm:$0xff] %v3876_v26  }
 0x105   : > { %v3726_v43 = vpack.c.bf16 %v4168_v42, %v4167_v36  ;;  %v1266_v44 = vpop.f32.mrb[11].mxu0  ;;  %v2914_v52 = vmul.f32 %v4168_v42, %v4168_v42  ;;  %4051 = vst [vmem:[%s4610_s8 + $0x110] sm:$0xff] %v3871_v32  }
 0x106   : > { %v3038_v45 = vadd.f32 %v3037_v41, %v2911_v40  ;;  %v3721_v46 = vpack.c.bf16 %v1266_v44, %v1263_v38  ;;  %v2777_v47 = vadd.f32 %v2776_v39, %v1266_v44  ;;  %v2912_v48 = vmul.f32 %v1266_v44, %v1266_v44  ;;  %v4650_v40 = vpop.f32.mrb[8].mxu1 }
 0x107   : > { %4022 = vst [vmem:[%s4610_s8 + $0x28] sm:$0xff] %v3726_v43  }
 0x108   : > { %4021 = vst [vmem:[%s4610_s8 + $0x20] sm:$0xff] %v3721_v46   ;;  %v2778_v50 = vadd.f32 %v4167_v36, %v2777_v47  ;;  %v3039_v51 = vadd.f32 %v3038_v45, %v2912_v48 }
 0x10a   : > { %v3040_v53 = vadd.f32 %v3039_v51, %v2913_v49  ;;  %v4171_v54 = vpop.f32.mrb[12].mxu0  ;;  %v2779_v55 = vadd.f32 %v4168_v42, %v2778_v50  ;;  %v4652_v42 = vpop.f32.mrb[9].mxu1 }
 0x10b   : > { %v1279_v57 = vpop.f32.mrb[13].mxu0  ;;  %v2917_v9 = vmul.f32 %v4171_v54, %v4171_v54  ;;  %v4654_v47 = vpop.f32.mrb[10].mxu1 }
 0x10c   : > { %v2780_v59 = vadd.f32 %v2779_v55, %v1279_v57  ;;  %v2915_v60 = vmul.f32 %v1279_v57, %v1279_v57  ;;  %v3041_v61 = vadd.f32 %v3040_v53, %v2914_v52  ;;  %v4172_v62 = vpop.f32.mrb[14].mxu0  ;;  %v3886_v50 = vpack.c.bf16 %v4654_v47, %v4650_v40  ;;  %v4658_v51 = vpop.f32.mrb[11].mxu1 }
 0x10d   : > { %v3736_v0 = vpack.c.bf16 %v4172_v62, %v4171_v54  ;;  %v1282_v1 = vpop.f32.mrb[15].mxu0  ;;  %v2918_v12 = vmul.f32 %v4172_v62, %v4172_v62 }
 0x10e   : > { %v3042_v4 = vadd.f32 %v3041_v61, %v2915_v60  ;;  %v3731_v5 = vpack.c.bf16 %v1282_v1, %v1279_v57  ;;  %v2781_v6 = vadd.f32 %v2780_v59, %v1282_v1  ;;  %v2916_v7 = vmul.f32 %v1282_v1, %v1282_v1  ;;  %4054 = vst [vmem:[%s4610_s8 + $0x128] sm:$0xff] %v3886_v50  }
 0x10f   : > { %4024 = vst [vmem:[%s4610_s8 + $0x38] sm:$0xff] %v3736_v0   ;;  %v3881_v57 = vpack.c.bf16 %v4658_v51, %v4652_v42 }
 0x110   : > { %4023 = vst [vmem:[%s4610_s8 + $0x30] sm:$0xff] %v3731_v5   ;;  %v2782_v10 = vadd.f32 %v4171_v54, %v2781_v6  ;;  %v3043_v11 = vadd.f32 %v3042_v4, %v2916_v7  ;;  %v4666_v4 = vpop.f32.mrb[12].mxu1 }
 0x111   : > { %4053 = vst [vmem:[%s4610_s8 + $0x120] sm:$0xff] %v3881_v57   ;;  %v4668_v6 = vpop.f32.mrb[13].mxu1 }
 0x112   : > { %v3044_v13 = vadd.f32 %v3043_v11, %v2917_v9  ;;  %v4175_v14 = vpop.f32.mrb[16].mxu0  ;;  %v2783_v15 = vadd.f32 %v4172_v62, %v2782_v10  ;;  %v4670_v11 = vpop.f32.mrb[14].mxu1 }
 0x113   : > { %v1295_v17 = vpop.f32.mrb[17].mxu0  ;;  %v2921_v33 = vmul.f32 %v4175_v14, %v4175_v14 }
 0x114   : > { %v2784_v19 = vadd.f32 %v2783_v15, %v1295_v17  ;;  %v2919_v20 = vmul.f32 %v1295_v17, %v1295_v17  ;;  %v3045_v21 = vadd.f32 %v3044_v13, %v2918_v12  ;;  %v4176_v22 = vpop.f32.mrb[18].mxu0  ;;  %v4674_v15 = vpop.f32.mrb[15].mxu1 }
 0x115   : > { %v3746_v24 = vpack.c.bf16 %v4176_v22, %v4175_v14  ;;  %v1298_v25 = vpop.f32.mrb[19].mxu0  ;;  %v2922_v36 = vmul.f32 %v4176_v22, %v4176_v22  ;;  %v4682_v32 = vpop.f32.mrb[16].mxu1 }
 0x116   : > { %v3046_v28 = vadd.f32 %v3045_v21, %v2919_v20  ;;  %v3741_v29 = vpack.c.bf16 %v1298_v25, %v1295_v17  ;;  %v2785_v30 = vadd.f32 %v2784_v19, %v1298_v25  ;;  %v2920_v31 = vmul.f32 %v1298_v25, %v1298_v25 }
 0x117   : > { %4026 = vst [vmem:[%s4610_s8 + $0x48] sm:$0xff] %v3746_v24  }
 0x118   : > { %4025 = vst [vmem:[%s4610_s8 + $0x40] sm:$0xff] %v3741_v29   ;;  %v2786_v34 = vadd.f32 %v4175_v14, %v2785_v30  ;;  %v3047_v35 = vadd.f32 %v3046_v28, %v2920_v31  ;;  %v3896_v14 = vpack.c.bf16 %v4670_v11, %v4666_v4 }
 0x11a   : > { %v3048_v37 = vadd.f32 %v3047_v35, %v2921_v33  ;;  %v4179_v38 = vpop.f32.mrb[20].mxu0  ;;  %v2787_v39 = vadd.f32 %v4176_v22, %v2786_v34  ;;  %4056 = vst [vmem:[%s4610_s8 + $0x138] sm:$0xff] %v3896_v14   ;;  %v3891_v22 = vpack.c.bf16 %v4674_v15, %v4668_v6  ;;  %v4684_v34 = vpop.f32.mrb[17].mxu1 }
 0x11b   : > { %v1311_v41 = vpop.f32.mrb[21].mxu0  ;;  %v2925_v59 = vmul.f32 %v4179_v38, %v4179_v38 }
 0x11c   : > { %v2788_v43 = vadd.f32 %v2787_v39, %v1311_v41  ;;  %v2923_v44 = vmul.f32 %v1311_v41, %v1311_v41  ;;  %v3049_v45 = vadd.f32 %v3048_v37, %v2922_v36  ;;  %v4180_v46 = vpop.f32.mrb[22].mxu0  ;;  %4055 = vst [vmem:[%s4610_s8 + $0x130] sm:$0xff] %v3891_v22   ;;  %v4686_v39 = vpop.f32.mrb[18].mxu1 }
 0x11d   : > { %v3756_v48 = vpack.c.bf16 %v4180_v46, %v4179_v38  ;;  %v1314_v49 = vpop.f32.mrb[23].mxu0  ;;  %v2926_v62 = vmul.f32 %v4180_v46, %v4180_v46 }
 0x11e   : > { %v3050_v52 = vadd.f32 %v3049_v45, %v2923_v44  ;;  %v3751_v53 = vpack.c.bf16 %v1314_v49, %v1311_v41  ;;  %v2789_v54 = vadd.f32 %v2788_v43, %v1314_v49  ;;  %v2924_v55 = vmul.f32 %v1314_v49, %v1314_v49  ;;  %v4690_v45 = vpop.f32.mrb[19].mxu1 }
 0x11f   : > { %4028 = vst [vmem:[%s4610_s8 + $0x58] sm:$0xff] %v3756_v48   ;;  %v3906_v44 = vpack.c.bf16 %v4686_v39, %v4682_v32 }
 0x120   : > { %4027 = vst [vmem:[%s4610_s8 + $0x50] sm:$0xff] %v3751_v53   ;;  %v2790_v60 = vadd.f32 %v4179_v38, %v2789_v54  ;;  %v3051_v61 = vadd.f32 %v3050_v52, %v2924_v55  ;;  %v3901_v52 = vpack.c.bf16 %v4690_v45, %v4684_v34 }
 0x121   : > { %4058 = vst [vmem:[%s4610_s8 + $0x148] sm:$0xff] %v3906_v44  }
 0x122   : > { %v3052_v0 = vadd.f32 %v3051_v61, %v2925_v59  ;;  %v4183_v1 = vpop.f32.mrb[24].mxu0  ;;  %v2791_v2 = vadd.f32 %v4180_v46, %v2790_v60  ;;  %4057 = vst [vmem:[%s4610_s8 + $0x140] sm:$0xff] %v3901_v52  }
 0x123   : > { %v1327_v5 = vpop.f32.mrb[25].mxu0  ;;  %v2929_v24 = vmul.f32 %v4183_v1, %v4183_v1 }
 0x124   : > { %v2792_v7 = vadd.f32 %v2791_v2, %v1327_v5  ;;  %v2927_v8 = vmul.f32 %v1327_v5, %v1327_v5  ;;  %v3053_v9 = vadd.f32 %v3052_v0, %v2926_v62  ;;  %v4184_v10 = vpop.f32.mrb[26].mxu0  ;;  %v4698_v62 = vpop.f32.mrb[20].mxu1 }
 0x125   : > { %v3766_v12 = vpack.c.bf16 %v4184_v10, %v4183_v1  ;;  %v1330_v13 = vpop.f32.mrb[27].mxu0  ;;  %v2930_v28 = vmul.f32 %v4184_v10, %v4184_v10 }
 0x126   : > { %v3054_v17 = vadd.f32 %v3053_v9, %v2927_v8  ;;  %v3761_v19 = vpack.c.bf16 %v1330_v13, %v1327_v5  ;;  %v2793_v20 = vadd.f32 %v2792_v7, %v1330_v13  ;;  %v2928_v21 = vmul.f32 %v1330_v13, %v1330_v13 }
 0x127   : > { %4030 = vst [vmem:[%s4610_s8 + $0x68] sm:$0xff] %v3766_v12  }
 0x128   : > { %4029 = vst [vmem:[%s4610_s8 + $0x60] sm:$0xff] %v3761_v19   ;;  %v2794_v25 = vadd.f32 %v4183_v1, %v2793_v20  ;;  %v3055_v26 = vadd.f32 %v3054_v17, %v2928_v21  ;;  %v4700_v1 = vpop.f32.mrb[21].mxu1 }
 0x129   : > { %v4702_v9 = vpop.f32.mrb[22].mxu1 }
 0x12a   : > { %v3056_v29 = vadd.f32 %v3055_v26, %v2929_v24  ;;  %v4187_v30 = vpop.f32.mrb[28].mxu0  ;;  %v2795_v31 = vadd.f32 %v4184_v10, %v2794_v25  ;;  %v3916_v13 = vpack.c.bf16 %v4702_v9, %v4698_v62  ;;  %v4706_v14 = vpop.f32.mrb[23].mxu1 }
 0x12b   : > { %v1343_v33 = vpop.f32.mrb[29].mxu0  ;;  %v2933_v53 = vmul.f32 %v4187_v30, %v4187_v30  ;;  %v3911_v22 = vpack.c.bf16 %v4706_v14, %v4700_v1 }
 0x12c   : > { %v2796_v35 = vadd.f32 %v2795_v31, %v1343_v33  ;;  %v2931_v36 = vmul.f32 %v1343_v33, %v1343_v33  ;;  %v3057_v37 = vadd.f32 %v3056_v29, %v2930_v28  ;;  %v4188_v38 = vpop.f32.mrb[30].mxu0  ;;  %4060 = vst [vmem:[%s4610_s8 + $0x158] sm:$0xff] %v3916_v13  }
 0x12d   : > { %v3776_v41 = vpack.c.bf16 %v4188_v38, %v4187_v30  ;;  %v1346_v43 = vpop.f32.mrb[31].mxu0  ;;  %v2934_v57 = vmul.f32 %v4188_v38, %v4188_v38  ;;  %4059 = vst [vmem:[%s4610_s8 + $0x150] sm:$0xff] %v3911_v22  }
 0x12e   : > { %v3058_v46 = vadd.f32 %v3057_v37, %v2931_v36  ;;  %v3771_v48 = vpack.c.bf16 %v1346_v43, %v1343_v33  ;;  %v2797_v49 = vadd.f32 %v2796_v35, %v1346_v43  ;;  %v2932_v50 = vmul.f32 %v1346_v43, %v1346_v43  ;;  %v4714_v33 = vpop.f32.mrb[24].mxu1 }
 0x12f   : > { %4032 = vst [vmem:[%s4610_s8 + $0x78] sm:$0xff] %v3776_v41   ;;  %v4716_v36 = vpop.f32.mrb[25].mxu1 }
 0x130   : > { %4031 = vst [vmem:[%s4610_s8 + $0x70] sm:$0xff] %v3771_v48   ;;  %v2798_v54 = vadd.f32 %v4187_v30, %v2797_v49  ;;  %v3059_v55 = vadd.f32 %v3058_v46, %v2932_v50  ;;  %v4718_v44 = vpop.f32.mrb[26].mxu1 }
 0x131   : > { %v3926_v49 = vpack.c.bf16 %v4718_v44, %v4714_v33  ;;  %v4722_v50 = vpop.f32.mrb[27].mxu1 }
 0x132   : > { %v3060_v59 = vadd.f32 %v3059_v55, %v2933_v53  ;;  %v4191_v60 = vpop.f32.mrb[32].mxu0  ;;  %v2799_v61 = vadd.f32 %v4188_v38, %v2798_v54 }
 0x133   : > { %v1359_v0 = vpop.f32.mrb[33].mxu0  ;;  %v2937_v24 = vmul.f32 %v4191_v60, %v4191_v60  ;;  %4062 = vst [vmem:[%s4610_s8 + $0x168] sm:$0xff] %v3926_v49  }
 0x134   : > { %v2800_v2 = vadd.f32 %v2799_v61, %v1359_v0  ;;  %v2935_v5 = vmul.f32 %v1359_v0, %v1359_v0  ;;  %v3061_v7 = vadd.f32 %v3060_v59, %v2934_v57  ;;  %v4192_v8 = vpop.f32.mrb[34].mxu0  ;;  %v3921_v57 = vpack.c.bf16 %v4722_v50, %v4716_v36 }
 0x135   : > { %v3786_v10 = vpack.c.bf16 %v4192_v8, %v4191_v60  ;;  %v1362_v12 = vpop.f32.mrb[35].mxu0  ;;  %v2938_v28 = vmul.f32 %v4192_v8, %v4192_v8 }
 0x136   : > { %v3062_v17 = vadd.f32 %v3061_v7, %v2935_v5  ;;  %v3781_v19 = vpack.c.bf16 %v1362_v12, %v1359_v0  ;;  %v2801_v20 = vadd.f32 %v2800_v2, %v1362_v12  ;;  %v2936_v21 = vmul.f32 %v1362_v12, %v1362_v12  ;;  %4061 = vst [vmem:[%s4610_s8 + $0x160] sm:$0xff] %v3921_v57  }
 0x137   : > { %4034 = vst [vmem:[%s4610_s8 + $0x88] sm:$0xff] %v3786_v10  }
 0x138   : > { %4033 = vst [vmem:[%s4610_s8 + $0x80] sm:$0xff] %v3781_v19   ;;  %v2802_v25 = vadd.f32 %v4191_v60, %v2801_v20  ;;  %v3063_v26 = vadd.f32 %v3062_v17, %v2936_v21 }
 0x13a   : > { %v3064_v29 = vadd.f32 %v3063_v26, %v2937_v24  ;;  %v4195_v30 = vpop.f32.mrb[36].mxu0  ;;  %v2803_v31 = vadd.f32 %v4192_v8, %v2802_v25  ;;  %v4730_v8 = vpop.f32.mrb[28].mxu1 }
 0x13b   : > { %v1375_v35 = vpop.f32.mrb[37].mxu0  ;;  %v2941_v59 = vmul.f32 %v4195_v30, %v4195_v30  ;;  %v4732_v12 = vpop.f32.mrb[29].mxu1 }
 0x13c   : > { %v2804_v37 = vadd.f32 %v2803_v31, %v1375_v35  ;;  %v2939_v38 = vmul.f32 %v1375_v35, %v1375_v35  ;;  %v3065_v41 = vadd.f32 %v3064_v29, %v2938_v28  ;;  %v4196_v43 = vpop.f32.mrb[38].mxu0  ;;  %v4734_v21 = vpop.f32.mrb[30].mxu1 }
 0x13d   : > { %v3796_v46 = vpack.c.bf16 %v4196_v43, %v4195_v30  ;;  %v1378_v48 = vpop.f32.mrb[39].mxu0  ;;  %v2942_v0 = vmul.f32 %v4196_v43, %v4196_v43  ;;  %v3936_v25 = vpack.c.bf16 %v4734_v21, %v4730_v8  ;;  %v4738_v26 = vpop.f32.mrb[31].mxu1 }
 0x13e   : > { %v3066_v52 = vadd.f32 %v3065_v41, %v2939_v38  ;;  %v3791_v53 = vpack.c.bf16 %v1378_v48, %v1375_v35  ;;  %v2805_v54 = vadd.f32 %v2804_v37, %v1378_v48  ;;  %v2940_v55 = vmul.f32 %v1378_v48, %v1378_v48 }
 0x13f   : > { %4036 = vst [vmem:[%s4610_s8 + $0x98] sm:$0xff] %v3796_v46   ;;  %4064 = vst [vmem:[%s4610_s8 + $0x178] sm:$0xff] %v3936_v25   ;;  %v3931_v35 = vpack.c.bf16 %v4738_v26, %v4732_v12 }
 0x140   : > { %4035 = vst [vmem:[%s4610_s8 + $0x90] sm:$0xff] %v3791_v53   ;;  %v2806_v60 = vadd.f32 %v4195_v30, %v2805_v54  ;;  %v3067_v61 = vadd.f32 %v3066_v52, %v2940_v55  ;;  %v4746_v52 = vpop.f32.mrb[32].mxu1 }
 0x141   : > { %4063 = vst [vmem:[%s4610_s8 + $0x170] sm:$0xff] %v3931_v35   ;;  %v4748_v54 = vpop.f32.mrb[33].mxu1 }
 0x142   : > { %v3068_v2 = vadd.f32 %v3067_v61, %v2941_v59  ;;  %v4199_v5 = vpop.f32.mrb[40].mxu0  ;;  %v2807_v7 = vadd.f32 %v4196_v43, %v2806_v60  ;;  %v4750_v61 = vpop.f32.mrb[34].mxu1 }
 0x143   : > { %v1391_v10 = vpop.f32.mrb[41].mxu0  ;;  %v2945_v37 = vmul.f32 %v4199_v5, %v4199_v5 }
 0x144   : > { %v2808_v13 = vadd.f32 %v2807_v7, %v1391_v10  ;;  %v2943_v17 = vmul.f32 %v1391_v10, %v1391_v10  ;;  %v3069_v19 = vadd.f32 %v3068_v2, %v2942_v0  ;;  %v4200_v20 = vpop.f32.mrb[42].mxu0  ;;  %v4754_v7 = vpop.f32.mrb[35].mxu1 }
 0x145   : > { %v3806_v22 = vpack.c.bf16 %v4200_v20, %v4199_v5  ;;  %v1394_v24 = vpop.f32.mrb[43].mxu0  ;;  %v2946_v43 = vmul.f32 %v4200_v20, %v4200_v20  ;;  %v4762_v35 = vpop.f32.mrb[36].mxu1 }
 0x146   : > { %v3070_v28 = vadd.f32 %v3069_v19, %v2943_v17  ;;  %v3801_v29 = vpack.c.bf16 %v1394_v24, %v1391_v10  ;;  %v2809_v30 = vadd.f32 %v2808_v13, %v1394_v24  ;;  %v2944_v31 = vmul.f32 %v1394_v24, %v1394_v24 }
 0x147   : > { %4038 = vst [vmem:[%s4610_s8 + $0xa8] sm:$0xff] %v3806_v22  }
 0x148   : > { %4037 = vst [vmem:[%s4610_s8 + $0xa0] sm:$0xff] %v3801_v29   ;;  %v2810_v38 = vadd.f32 %v4199_v5, %v2809_v30  ;;  %v3071_v41 = vadd.f32 %v3070_v28, %v2944_v31  ;;  %v3946_v5 = vpack.c.bf16 %v4750_v61, %v4746_v52 }
 0x14a   : > { %v3072_v46 = vadd.f32 %v3071_v41, %v2945_v37  ;;  %v4203_v48 = vpop.f32.mrb[44].mxu0  ;;  %v2811_v49 = vadd.f32 %v4200_v20, %v2810_v38  ;;  %4066 = vst [vmem:[%s4610_s8 + $0x188] sm:$0xff] %v3946_v5   ;;  %v3941_v20 = vpack.c.bf16 %v4754_v7, %v4748_v54  ;;  %v4764_v38 = vpop.f32.mrb[37].mxu1 }
 0x14b   : > { %v1407_v53 = vpop.f32.mrb[45].mxu0  ;;  %v2949_v22 = vmul.f32 %v4203_v48, %v4203_v48 }
 0x14c   : > { %v2812_v55 = vadd.f32 %v2811_v49, %v1407_v53  ;;  %v2947_v57 = vmul.f32 %v1407_v53, %v1407_v53  ;;  %v3073_v59 = vadd.f32 %v3072_v46, %v2946_v43  ;;  %v4204_v60 = vpop.f32.mrb[46].mxu0  ;;  %4065 = vst [vmem:[%s4610_s8 + $0x180] sm:$0xff] %v3941_v20  }
 0x14d   : > { %v3816_v0 = vpack.c.bf16 %v4204_v60, %v4203_v48  ;;  %v1410_v2 = vpop.f32.mrb[47].mxu0  ;;  %v2950_v28 = vmul.f32 %v4204_v60, %v4204_v60 }
 0x14e   : > { %v3074_v10 = vadd.f32 %v3073_v59, %v2947_v57  ;;  %v3811_v13 = vpack.c.bf16 %v1410_v2, %v1407_v53  ;;  %v2813_v17 = vadd.f32 %v2812_v55, %v1410_v2  ;;  %v2948_v19 = vmul.f32 %v1410_v2, %v1410_v2  ;;  %v4766_v53 = vpop.f32.mrb[38].mxu1 }
 0x14f   : > { %4040 = vst [vmem:[%s4610_s8 + $0xb8] sm:$0xff] %v3816_v0   ;;  %v3956_v57 = vpack.c.bf16 %v4766_v53, %v4762_v35  ;;  %v4770_v59 = vpop.f32.mrb[39].mxu1 }
 0x150   : > { %4039 = vst [vmem:[%s4610_s8 + $0xb0] sm:$0xff] %v3811_v13   ;;  %v2814_v24 = vadd.f32 %v4203_v48, %v2813_v17  ;;  %v3075_v25 = vadd.f32 %v3074_v10, %v2948_v19  ;;  %v3951_v10 = vpack.c.bf16 %v4770_v59, %v4764_v38 }
 0x151   : > { %4068 = vst [vmem:[%s4610_s8 + $0x198] sm:$0xff] %v3956_v57  }
 0x152   : > { %v3076_v29 = vadd.f32 %v3075_v25, %v2949_v22  ;;  %v4207_v30 = vpop.f32.mrb[48].mxu0  ;;  %v2815_v31 = vadd.f32 %v4204_v60, %v2814_v24  ;;  %4067 = vst [vmem:[%s4610_s8 + $0x190] sm:$0xff] %v3951_v10  }
 0x153   : > { %v1423_v37 = vpop.f32.mrb[49].mxu0  ;;  %v2953_v13 = vmul.f32 %v4207_v30, %v4207_v30 }
 0x154   : > { %v2816_v41 = vadd.f32 %v2815_v31, %v1423_v37  ;;  %v2951_v43 = vmul.f32 %v1423_v37, %v1423_v37  ;;  %v3077_v46 = vadd.f32 %v3076_v29, %v2950_v28  ;;  %v4208_v49 = vpop.f32.mrb[50].mxu0  ;;  %v4778_v28 = vpop.f32.mrb[40].mxu1 }
 0x155   : > { %v3826_v48 = vpack.c.bf16 %v4208_v49, %v4207_v30  ;;  %v1426_v55 = vpop.f32.mrb[51].mxu0  ;;  %v2954_v20 = vmul.f32 %v4208_v49, %v4208_v49  ;;  %5098 = vst [vmem:[#allocation3_spill] sm:$0xff] %v4778_v28  ;;  %v4780_v31 = vpop.f32.mrb[41].mxu1 }
 0x156   : > { %v3078_v60 = vadd.f32 %v3077_v46, %v2951_v43  ;;  %v3821_v0 = vpack.c.bf16 %v1426_v55, %v1423_v37  ;;  %v2817_v2 = vadd.f32 %v2816_v41, %v1426_v55  ;;  %v2952_v5 = vmul.f32 %v1426_v55, %v1426_v55  ;;  %5099 = vst [vmem:[#allocation4_spill] sm:$0xff] %v4780_v31 }
 0x157   : > { %4042 = vst [vmem:[%s4610_s8 + $0xc8] sm:$0xff] %v3826_v48   ;;  %v4782_v48 = vpop.f32.mrb[42].mxu1 }
 0x158   : > { %4041 = vst [vmem:[%s4610_s8 + $0xc0] sm:$0xff] %v3821_v0   ;;  %v2818_v17 = vadd.f32 %v4207_v30, %v2817_v2  ;;  %v3079_v19 = vadd.f32 %v3078_v60, %v2952_v5  ;;  %5100 = vst [vmem:[#allocation5_spill] sm:$0xff] %v4782_v48  ;;  %v4786_v57 = vpop.f32.mrb[43].mxu1 }
 0x159   : > { %5101 = vst [vmem:[#allocation6_spill] sm:$0xff] %v4786_v57  ;;  %v3961_v10 = vpack.c.bf16 %v4786_v57, %v4780_v31 }
 0x15a   : > { %v3080_v22 = vadd.f32 %v3079_v19, %v2953_v13  ;;  %v4211_v24 = vpop.f32.mrb[52].mxu0  ;;  %v2819_v25 = vadd.f32 %v4208_v49, %v2818_v17  ;;  %v3966_v49 = vpack.c.bf16 %v4782_v48, %v4778_v28  ;;  %v4794_v28 = vpop.f32.mrb[44].mxu1 }
 0x15b   : > { %v1439_v29 = vpop.f32.mrb[53].mxu0  ;;  %v2957_v13 = vmul.f32 %v4211_v24, %v4211_v24  ;;  %4069 = vst [vmem:[%s4610_s8 + $0x1a0] sm:$0xff] %v3961_v10   ;;  %5102 = vst [vmem:[#allocation7_spill] sm:$0xff] %v4794_v28 }
 0x15c   : > { %v2820_v37 = vadd.f32 %v2819_v25, %v1439_v29  ;;  %v2955_v41 = vmul.f32 %v1439_v29, %v1439_v29  ;;  %v3081_v43 = vadd.f32 %v3080_v22, %v2954_v20  ;;  %v4212_v46 = vpop.f32.mrb[54].mxu0  ;;  %4070 = vst [vmem:[%s4610_s8 + $0x1a8] sm:$0xff] %v3966_v49  }
 0x15d   : > { %v3836_v30 = vpack.c.bf16 %v4212_v46, %v4211_v24  ;;  %v1442_v55 = vpop.f32.mrb[55].mxu0  ;;  %v2958_v20 = vmul.f32 %v4212_v46, %v4212_v46 }
 0x15e   : > { %v3082_v60 = vadd.f32 %v3081_v43, %v2955_v41  ;;  %v3831_v0 = vpack.c.bf16 %v1442_v55, %v1439_v29  ;;  %v2821_v2 = vadd.f32 %v2820_v37, %v1442_v55  ;;  %v2956_v5 = vmul.f32 %v1442_v55, %v1442_v55  ;;  %v4796_v37 = vpop.f32.mrb[45].mxu1 }
 0x15f   : > { %4044 = vst [vmem:[%s4610_s8 + $0xd8] sm:$0xff] %v3836_v30   ;;  %v4798_v49 = vpop.f32.mrb[46].mxu1 }
 0x160   : > { %4043 = vst [vmem:[%s4610_s8 + $0xd0] sm:$0xff] %v3831_v0   ;;  %v2822_v17 = vadd.f32 %v4211_v24, %v2821_v2  ;;  %v3083_v19 = vadd.f32 %v3082_v60, %v2956_v5  ;;  %5103 = vst [vmem:[#allocation8_spill] sm:$0xff] %v4798_v49  ;;  %v4802_v0 = vpop.f32.mrb[47].mxu1 }
 0x161   : > { %5104 = vst [vmem:[#allocation9_spill] sm:$0xff] %v4802_v0 }
 0x162   : > { %v3084_v22 = vadd.f32 %v3083_v19, %v2957_v13  ;;  %v4215_v25 = vpop.f32.mrb[56].mxu0  ;;  %v2823_v48 = vadd.f32 %v4212_v46, %v2822_v17  ;;  %v3976_v46 = vpack.c.bf16 %v4798_v49, %v4794_v28  ;;  %v4810_v28 = vpop.f32.mrb[48].mxu1 }
 0x163   : > { %v1455_v29 = vpop.f32.mrb[57].mxu0  ;;  %v2961_v17 = vmul.f32 %v4215_v25, %v4215_v25 }
 0x164   : > { %v2824_v41 = vadd.f32 %v2823_v48, %v1455_v29  ;;  %v2959_v43 = vmul.f32 %v1455_v29, %v1455_v29  ;;  %v3085_v30 = vadd.f32 %v3084_v22, %v2958_v20  ;;  %v4216_v55 = vpop.f32.mrb[58].mxu0  ;;  %4072 = vst [vmem:[%s4610_s8 + $0x1b8] sm:$0xff] %v3976_v46   ;;  %v3971_v48 = vpack.c.bf16 %v4802_v0, %v4796_v37 }
 0x165   : > { %v3846_v24 = vpack.c.bf16 %v4216_v55, %v4215_v25  ;;  %v1458_v60 = vpop.f32.mrb[59].mxu0  ;;  %v2962_v22 = vmul.f32 %v4216_v55, %v4216_v55 }
 0x166   : > { %v3086_v2 = vadd.f32 %v3085_v30, %v2959_v43  ;;  %v3841_v5 = vpack.c.bf16 %v1458_v60, %v1455_v29  ;;  %v2825_v10 = vadd.f32 %v2824_v41, %v1458_v60  ;;  %v2960_v13 = vmul.f32 %v1458_v60, %v1458_v60  ;;  %4071 = vst [vmem:[%s4610_s8 + $0x1b0] sm:$0xff] %v3971_v48   ;;  %v4812_v41 = vpop.f32.mrb[49].mxu1 }
 0x167   : > { %4046 = vst [vmem:[%s4610_s8 + $0xe8] sm:$0xff] %v3846_v24   ;;  %v4814_v46 = vpop.f32.mrb[50].mxu1 }
 0x168   : > { %4045 = vst [vmem:[%s4610_s8 + $0xe0] sm:$0xff] %v3841_v5   ;;  %v2826_v19 = vadd.f32 %v4215_v25, %v2825_v10  ;;  %v3087_v20 = vadd.f32 %v3086_v2, %v2960_v13  ;;  %5105 = vst [vmem:[#allocation10_spill] sm:$0xff] %v4814_v46  ;;  %v4818_v5 = vpop.f32.mrb[51].mxu1 }
 0x16a   : > { %v3088_v57 = vadd.f32 %v3087_v20, %v2961_v17  ;;  %v4219_v31 = vpop.f32.mrb[60].mxu0  ;;  %v2827_v49 = vadd.f32 %v4216_v55, %v2826_v19  ;;  %v3986_v55 = vpack.c.bf16 %v4814_v46, %v4810_v28 }
 0x16b   : > { %v1471_v29 = vpop.f32.mrb[61].mxu0 }
 0x16c   : > { %v2828_v43 = vadd.f32 %v2827_v49, %v1471_v29  ;;  %v2963_v30 = vmul.f32 %v1471_v29, %v1471_v29  ;;  %v3089_v24 = vadd.f32 %v3088_v57, %v2962_v22  ;;  %v4220_v60 = vpop.f32.mrb[62].mxu0  ;;  %4074 = vst [vmem:[%s4610_s8 + $0x1c8] sm:$0xff] %v3986_v55   ;;  %v3981_v57 = vpack.c.bf16 %v4818_v5, %v4812_v41 }
 0x16d   : > { %v3856_v25 = vpack.c.bf16 %v4220_v60, %v4219_v31  ;;  %v1474_v2 = vpop.f32.mrb[63].mxu0  ;;  %v2965_v49 = vmul.f32 %v4219_v31, %v4219_v31  ;;  %v2966_v22 = vmul.f32 %v4220_v60, %v4220_v60 }
 0x16e   : > { %v3090_v10 = vadd.f32 %v3089_v24, %v2963_v30  ;;  %v3851_v13 = vpack.c.bf16 %v1474_v2, %v1471_v29  ;;  %v2829_v48 = vadd.f32 %v2828_v43, %v1474_v2  ;;  %v2964_v17 = vmul.f32 %v1474_v2, %v1474_v2  ;;  %4073 = vst [vmem:[%s4610_s8 + $0x1c0] sm:$0xff] %v3981_v57   ;;  %v4828_v29 = vpop.f32.mrb[52].mxu1 }
 0x16f   : > { %4048 = vst [vmem:[%s4610_s8 + $0xf8] sm:$0xff] %v3856_v25   ;;  %v2967_v30 = vmul.f32 %v4620_v58, %v4620_v58  ;;  %v4830_v43 = vpop.f32.mrb[53].mxu1 }
 0x170   : > { %4047 = vst [vmem:[%s4610_s8 + $0xf0] sm:$0xff] %v3851_v13   ;;  %v2830_v19 = vadd.f32 %v4219_v31, %v2829_v48  ;;  %v3091_v20 = vadd.f32 %v3090_v10, %v2964_v17  ;;  %v4833_v2 = vpop.f32.mrb[54].mxu1  ;;  %v2968_v13 = vmul.f32 %v4626_v3, %v4626_v3  ;;  %v2970_v17 = vmul.f32 %v4622_v63, %v4622_v63 }
 0x171   : > { %v3996_v31 = vpack.c.bf16 %v4833_v2, %v4828_v29  ;;  %v4837_v55 = vpop.f32.mrb[55].mxu1 }
 0x172   : > { %v2831_v0 = vadd.f32 %v4220_v60, %v2830_v19  ;;  %v3092_v46 = vadd.f32 %v3091_v20, %v2965_v49  ;;  %v3991_v48 = vpack.c.bf16 %v4837_v55, %v4830_v43  ;;  %v4854_v19 = vpop.f32.mrb[56].mxu1 }
 0x173   : > { %4076 = vst [vmem:[%s4610_s8 + $0x1d8] sm:$0xff] %v3996_v31   ;;  %v4856_v20 = vpop.f32.mrb[57].mxu1 }
 0x174   : > { %v3093_v24 = vadd.f32 %v3092_v46, %v2966_v22  ;;  %v2832_v25 = vadd.f32 %v2831_v0, %v4620_v58  ;;  %v2969_v58 = vmul.f32 %v4618_v56, %v4618_v56  ;;  %4075 = vst [vmem:[%s4610_s8 + $0x1d0] sm:$0xff] %v3991_v48  }
 0x176   : > { %v3094_v60 = vadd.f32 %v3093_v24, %v2967_v30  ;;  %v2833_v10 = vadd.f32 %v2832_v25, %v4626_v3  ;;  %v2971_v3 = vmul.f32 %v4636_v18, %v4636_v18  ;;  %v4859_v30 = vpop.f32.mrb[58].mxu1 }
 0x177   : > { %v4006_v24 = vpack.c.bf16 %v4859_v30, %v4854_v19  ;;  %v4863_v25 = vpop.f32.mrb[59].mxu1 }
 0x178   : > { %v2834_v0 = vadd.f32 %v4618_v56, %v2833_v10  ;;  %v3095_v46 = vadd.f32 %v3094_v60, %v2968_v13  ;;  %v2972_v60 = vmul.f32 %v4642_v27, %v4642_v27  ;;  %v4001_v10 = vpack.c.bf16 %v4863_v25, %v4856_v20 }
 0x179   : > { %4078 = vst [vmem:[%s4610_s8 + $0x1e8] sm:$0xff] %v4006_v24  }
 0x17a   : > { %v3096_v57 = vadd.f32 %v3095_v46, %v2969_v58  ;;  %v2835_v49 = vadd.f32 %v4622_v63, %v2834_v0  ;;  %4077 = vst [vmem:[%s4610_s8 + $0x1e0] sm:$0xff] %v4001_v10   ;;  %v2974_v58 = vmul.f32 %v4638_v23, %v4638_v23 }
 0x17c   : > { %v2836_v22 = vadd.f32 %v2835_v49, %v4636_v18  ;;  %v3097_v56 = vadd.f32 %v3096_v57, %v2970_v17  ;;  %v2973_v18 = vmul.f32 %v4634_v16, %v4634_v16  ;;  %v4880_v17 = vpop.f32.mrb[60].mxu1 }
 0x17d   : > { %v4882_v57 = vpop.f32.mrb[61].mxu1 }
 0x17e   : > { %v3098_v31 = vadd.f32 %v3097_v56, %v2971_v3  ;;  %v2837_v63 = vadd.f32 %v2836_v22, %v4642_v27  ;;  %v2975_v27 = vmul.f32 %v4652_v42, %v4652_v42  ;;  %v4885_v3 = vpop.f32.mrb[62].mxu1 }
 0x17f   : > { %v4016_v22 = vpack.c.bf16 %v4885_v3, %v4880_v17  ;;  %v4889_v56 = vpop.f32.mrb[63].mxu1 }
 0x180   : > { %v2838_v13 = vadd.f32 %v4634_v16, %v2837_v63  ;;  %v3099_v48 = vadd.f32 %v3098_v31, %v2972_v60  ;;  %v2976_v31 = vmul.f32 %v4658_v51, %v4658_v51  ;;  %v4011_v63 = vpack.c.bf16 %v4889_v56, %v4882_v57 }
 0x181   : > { %4080 = vst [vmem:[%s4610_s8 + $0x1f8] sm:$0xff] %v4016_v22  }
 0x182   : > { %v3100_v0 = vadd.f32 %v3099_v48, %v2973_v18  ;;  %v2839_v46 = vadd.f32 %v4638_v23, %v2838_v13  ;;  %4079 = vst [vmem:[%s4610_s8 + $0x1f0] sm:$0xff] %v4011_v63   ;;  %v2978_v18 = vmul.f32 %v4654_v47, %v4654_v47 }
 0x184   : > { %v2840_v49 = vadd.f32 %v2839_v46, %v4652_v42  ;;  %v3101_v16 = vadd.f32 %v3100_v0, %v2974_v58  ;;  %v2977_v42 = vmul.f32 %v4650_v40, %v4650_v40 }
 0x186   : > { %v3102_v24 = vadd.f32 %v3101_v16, %v2975_v27  ;;  %v2841_v23 = vadd.f32 %v2840_v49, %v4658_v51  ;;  %v2979_v51 = vmul.f32 %v4668_v6, %v4668_v6  ;;  %v2981_v49 = vmul.f32 %v4666_v4, %v4666_v4 }
 0x188   : > { %v2842_v60 = vadd.f32 %v4650_v40, %v2841_v23  ;;  %v3103_v10 = vadd.f32 %v3102_v24, %v2976_v31  ;;  %v2980_v40 = vmul.f32 %v4674_v15, %v4674_v15 }
 0x18a   : > { %v3104_v13 = vadd.f32 %v3103_v10, %v2977_v42  ;;  %v2843_v48 = vadd.f32 %v4654_v47, %v2842_v60  ;;  %v2982_v47 = vmul.f32 %v4670_v11, %v4670_v11  ;;  %v2984_v60 = vmul.f32 %v4690_v45, %v4690_v45 }
 0x18c   : > { %v2844_v58 = vadd.f32 %v2843_v48, %v4668_v6  ;;  %v3105_v0 = vadd.f32 %v3104_v13, %v2978_v18  ;;  %v2983_v6 = vmul.f32 %v4684_v34, %v4684_v34 }
 0x18e   : > { %v3106_v46 = vadd.f32 %v3105_v0, %v2979_v51  ;;  %v2845_v27 = vadd.f32 %v2844_v58, %v4674_v15 }
 0x190   : > { %v2846_v16 = vadd.f32 %v4666_v4, %v2845_v27  ;;  %v3107_v22 = vadd.f32 %v3106_v46, %v2980_v40  ;;  %v2985_v4 = vmul.f32 %v4682_v32, %v4682_v32  ;;  %v2988_v46 = vmul.f32 %v4706_v14, %v4706_v14 }
 0x192   : > { %v3108_v24 = vadd.f32 %v3107_v22, %v2981_v49  ;;  %v2847_v23 = vadd.f32 %v4670_v11, %v2846_v16  ;;  %v2986_v11 = vmul.f32 %v4686_v39, %v4686_v39 }
 0x194   : > { %v2848_v31 = vadd.f32 %v2847_v23, %v4684_v34  ;;  %v3109_v63 = vadd.f32 %v3108_v24, %v2982_v47  ;;  %v2987_v34 = vmul.f32 %v4700_v1, %v4700_v1  ;;  %v2992_v23 = vmul.f32 %v4722_v50, %v4722_v50 }
 0x196   : > { %v3110_v42 = vadd.f32 %v3109_v63, %v2983_v6  ;;  %v2849_v15 = vadd.f32 %v2848_v31, %v4690_v45 }
 0x198   : > { %v2850_v10 = vadd.f32 %v4682_v32, %v2849_v15  ;;  %v3111_v18 = vadd.f32 %v3110_v42, %v2984_v60  ;;  %v2989_v32 = vmul.f32 %v4698_v62, %v4698_v62 }
 0x19a   : > { %v3112_v13 = vadd.f32 %v3111_v18, %v2985_v4  ;;  %v2851_v48 = vadd.f32 %v4686_v39, %v2850_v10  ;;  %v2990_v39 = vmul.f32 %v4702_v9, %v4702_v9  ;;  %v2996_v10 = vmul.f32 %v4738_v26, %v4738_v26 }
 0x19c   : > { %v2852_v51 = vadd.f32 %v2851_v48, %v4700_v1  ;;  %v3113_v58 = vadd.f32 %v3112_v13, %v2986_v11  ;;  %v2991_v1 = vmul.f32 %v4716_v36, %v4716_v36 }
 0x19e   : > { %v3114_v0 = vadd.f32 %v3113_v58, %v2987_v34  ;;  %v2853_v45 = vadd.f32 %v2852_v51, %v4706_v14 }
 0x1a0   : > { %v2854_v27 = vadd.f32 %v4698_v62, %v2853_v45  ;;  %v3115_v40 = vadd.f32 %v3114_v0, %v2988_v46  ;;  %v2993_v62 = vmul.f32 %v4714_v33, %v4714_v33  ;;  %v3000_v0 = vmul.f32 %v4754_v7, %v4754_v7 }
 0x1a2   : > { %v3116_v49 = vadd.f32 %v3115_v40, %v2989_v32  ;;  %v2855_v16 = vadd.f32 %v4702_v9, %v2854_v27  ;;  %v2994_v9 = vmul.f32 %v4718_v44, %v4718_v44 }
 0x1a4   : > { %v2856_v22 = vadd.f32 %v2855_v16, %v4716_v36  ;;  %v3117_v47 = vadd.f32 %v3116_v49, %v2990_v39  ;;  %v2995_v36 = vmul.f32 %v4732_v12, %v4732_v12  ;;  %v3004_v16 = vmul.f32 %v4770_v59, %v4770_v59 }
 0x1a6   : > { %v3118_v24 = vadd.f32 %v3117_v47, %v2991_v1  ;;  %v2857_v14 = vadd.f32 %v2856_v22, %v4722_v50 }
 0x1a8   : > { %v2858_v6 = vadd.f32 %v4714_v33, %v2857_v14  ;;  %v3119_v31 = vadd.f32 %v3118_v24, %v2992_v23  ;;  %v2997_v33 = vmul.f32 %v4730_v8, %v4730_v8 }
 0x1aa   : > { %v3120_v63 = vadd.f32 %v3119_v31, %v2993_v62  ;;  %v2859_v42 = vadd.f32 %v4718_v44, %v2858_v6  ;;  %v2998_v44 = vmul.f32 %v4734_v21, %v4734_v21 }
 0x1ac   : > { %v2860_v15 = vadd.f32 %v2859_v42, %v4732_v12  ;;  %v3121_v60 = vadd.f32 %v3120_v63, %v2994_v9  ;;  %v2999_v12 = vmul.f32 %v4748_v54, %v4748_v54 }
 0x1ae   : > { %v3122_v4 = vadd.f32 %v3121_v60, %v2995_v36  ;;  %v2861_v50 = vadd.f32 %v2860_v15, %v4738_v26  ;;  %v5109_v15 = vld [vmem:[#allocation5_spill] sm:$0xff] }
 0x1b0   : > { %v2862_v18 = vadd.f32 %v4730_v8, %v2861_v50  ;;  %v3123_v11 = vadd.f32 %v3122_v4, %v2996_v10  ;;  %v3001_v8 = vmul.f32 %v4746_v52, %v4746_v52  ;;  %v3011_v50 = vmul.f32 %v4796_v37, %v4796_v37 }
 0x1b2   : > { %v3124_v13 = vadd.f32 %v3123_v11, %v2997_v33  ;;  %v2863_v48 = vadd.f32 %v4734_v21, %v2862_v18  ;;  %v3002_v21 = vmul.f32 %v4750_v61, %v4750_v61  ;;  %v5110_v11 = vld [vmem:[#allocation9_spill] sm:$0xff] }
 0x1b4   : > { %v2864_v34 = vadd.f32 %v2863_v48, %v4748_v54  ;;  %v3125_v51 = vadd.f32 %v3124_v13, %v2998_v44  ;;  %v3003_v54 = vmul.f32 %v4764_v38, %v4764_v38  ;;  %v3012_v13 = vmul.f32 %v5110_v11, %v5110_v11  ;;  %v5111_v48 = vld [vmem:[#allocation7_spill] sm:$0xff] }
 0x1b6   : > { %v3126_v58 = vadd.f32 %v3125_v51, %v2999_v12  ;;  %v2865_v26 = vadd.f32 %v2864_v34, %v4754_v7  ;;  %v3013_v12 = vmul.f32 %v5111_v48, %v5111_v48 }
 0x1b8   : > { %v2866_v45 = vadd.f32 %v4746_v52, %v2865_v26  ;;  %v3127_v46 = vadd.f32 %v3126_v58, %v3000_v0  ;;  %v3005_v52 = vmul.f32 %v4762_v35, %v4762_v35  ;;  %v5112_v58 = vld [vmem:[#allocation8_spill] sm:$0xff] }
 0x1b9   : > { %v3014_v26 = vmul.f32 %v5112_v58, %v5112_v58 }
 0x1ba   : > { %v3128_v32 = vadd.f32 %v3127_v46, %v3001_v8  ;;  %v2867_v27 = vadd.f32 %v4750_v61, %v2866_v45  ;;  %v3006_v61 = vmul.f32 %v4766_v53, %v4766_v53 }
 0x1bc   : > { %v2868_v40 = vadd.f32 %v2867_v27, %v4764_v38  ;;  %v3129_v39 = vadd.f32 %v3128_v32, %v3002_v21  ;;  %v5106_v38 = vld [vmem:[#allocation4_spill] sm:$0xff]  ;;  %v3016_v27 = vmul.f32 %v4818_v5, %v4818_v5 }
 0x1bd   : > { %v3007_v14 = vmul.f32 %v5106_v38, %v5106_v38 }
 0x1be   : > { %v3130_v49 = vadd.f32 %v3129_v39, %v3003_v54  ;;  %v2869_v7 = vadd.f32 %v2868_v40, %v4770_v59  ;;  %v5107_v59 = vld [vmem:[#allocation6_spill] sm:$0xff]  ;;  %v3017_v54 = vmul.f32 %v4810_v28, %v4810_v28 }
 0x1bf   : > { %v3008_v9 = vmul.f32 %v5107_v59, %v5107_v59 }
 0x1c0   : > { %v2870_v1 = vadd.f32 %v4762_v35, %v2869_v7  ;;  %v3131_v22 = vadd.f32 %v3130_v49, %v3004_v16  ;;  %v5108_v35 = vld [vmem:[#allocation3_spill] sm:$0xff]  ;;  %v5113_v49 = vld [vmem:[#allocation10_spill] sm:$0xff] }
 0x1c1   : > { %v3009_v63 = vmul.f32 %v5108_v35, %v5108_v35  ;;  %v3018_v7 = vmul.f32 %v5113_v49, %v5113_v49 }
 0x1c2   : > { %v3132_v47 = vadd.f32 %v3131_v22, %v3005_v52  ;;  %v2871_v24 = vadd.f32 %v4766_v53, %v2870_v1  ;;  %v3010_v53 = vmul.f32 %v5109_v15, %v5109_v15 }
 0x1c4   : > { %v2872_v23 = vadd.f32 %v2871_v24, %v5106_v38  ;;  %v3133_v62 = vadd.f32 %v3132_v47, %v3006_v61  ;;  %v3020_v47 = vmul.f32 %v4837_v55, %v4837_v55 }
 0x1c6   : > { %v3134_v6 = vadd.f32 %v3133_v62, %v3007_v14  ;;  %v2873_v31 = vadd.f32 %v2872_v23, %v5107_v59  ;;  %v3022_v14 = vmul.f32 %v4833_v2, %v4833_v2 }
 0x1c8   : > { %v2874_v42 = vadd.f32 %v5108_v35, %v2873_v31  ;;  %v3135_v36 = vadd.f32 %v3134_v6, %v3008_v9  ;;  %v3024_v9 = vmul.f32 %v4863_v25, %v4863_v25 }
 0x1ca   : > { %v3136_v60 = vadd.f32 %v3135_v36, %v3009_v63  ;;  %v2875_v4 = vadd.f32 %v5109_v15, %v2874_v42  ;;  %v3027_v36 = vmul.f32 %v4882_v57, %v4882_v57 }
 0x1cc   : > { %v2876_v10 = vadd.f32 %v2875_v4, %v4796_v37  ;;  %v3137_v33 = vadd.f32 %v3136_v60, %v3010_v53  ;;  %v3015_v37 = vmul.f32 %v4812_v41, %v4812_v41  ;;  %v3029_v4 = vmul.f32 %v4880_v17, %v4880_v17 }
 0x1ce   : > { %v3138_v18 = vadd.f32 %v3137_v33, %v3011_v50  ;;  %v2877_v44 = vadd.f32 %v2876_v10, %v5110_v11 }
 0x1d0   : > { %v2878_v34 = vadd.f32 %v5111_v48, %v2877_v44  ;;  %v3139_v51 = vadd.f32 %v3138_v18, %v3012_v13 }
 0x1d2   : > { %v3140_v0 = vadd.f32 %v3139_v51, %v3013_v12  ;;  %v2879_v8 = vadd.f32 %v5112_v58, %v2878_v34 }
 0x1d4   : > { %v2880_v45 = vadd.f32 %v2879_v8, %v4812_v41  ;;  %v3141_v46 = vadd.f32 %v3140_v0, %v3014_v26  ;;  %v3019_v41 = vmul.f32 %v4830_v43, %v4830_v43 }
 0x1d6   : > { %v3142_v21 = vadd.f32 %v3141_v46, %v3015_v37  ;;  %v2881_v32 = vadd.f32 %v2880_v45, %v4818_v5 }
 0x1d8   : > { %v2882_v40 = vadd.f32 %v4810_v28, %v2881_v32  ;;  %v3143_v39 = vadd.f32 %v3142_v21, %v3016_v27  ;;  %v3021_v28 = vmul.f32 %v4828_v29, %v4828_v29 }
 0x1da   : > { %v3144_v16 = vadd.f32 %v3143_v39, %v3017_v54  ;;  %v2883_v52 = vadd.f32 %v5113_v49, %v2882_v40 }
 0x1dc   : > { %v2884_v1 = vadd.f32 %v2883_v52, %v4830_v43  ;;  %v3145_v22 = vadd.f32 %v3144_v16, %v3018_v7  ;;  %v3023_v43 = vmul.f32 %v4856_v20, %v4856_v20 }
 0x1de   : > { %v3146_v61 = vadd.f32 %v3145_v22, %v3019_v41  ;;  %v2885_v5 = vadd.f32 %v2884_v1, %v4837_v55 }
 0x1e0   : > { %v2886_v24 = vadd.f32 %v4828_v29, %v2885_v5  ;;  %v3147_v38 = vadd.f32 %v3146_v61, %v3020_v47  ;;  %v3025_v29 = vmul.f32 %v4854_v19, %v4854_v19 }
 0x1e2   : > { %v3148_v23 = vadd.f32 %v3147_v38, %v3021_v28  ;;  %v2887_v62 = vadd.f32 %v4833_v2, %v2886_v24  ;;  %v3026_v2 = vmul.f32 %v4859_v30, %v4859_v30 }
 0x1e4   : > { %v2888_v6 = vadd.f32 %v2887_v62, %v4856_v20  ;;  %v3149_v59 = vadd.f32 %v3148_v23, %v3022_v14 }
 0x1e6   : > { %v3150_v31 = vadd.f32 %v3149_v59, %v3023_v43  ;;  %v2889_v55 = vadd.f32 %v2888_v6, %v4863_v25 }
 0x1e8   : > { %v2890_v35 = vadd.f32 %v4854_v19, %v2889_v55  ;;  %v3151_v63 = vadd.f32 %v3150_v31, %v3024_v9  ;;  %v3028_v19 = vmul.f32 %v4889_v56, %v4889_v56 }
 0x1ea   : > { %v3152_v42 = vadd.f32 %v3151_v63, %v3025_v29  ;;  %v2891_v20 = vadd.f32 %v4859_v30, %v2890_v35  ;;  %v3030_v30 = vmul.f32 %v4885_v3, %v4885_v3 }
 0x1ec   : > { %v2892_v15 = vadd.f32 %v2891_v20, %v4882_v57  ;;  %v3153_v53 = vadd.f32 %v3152_v42, %v3026_v2 }
 0x1ee   : > { %v3154_v25 = vadd.f32 %v3153_v53, %v3027_v36  ;;  %v2893_v60 = vadd.f32 %v2892_v15, %v4889_v56 }
 0x1f0   : > { %v2894_v50 = vadd.f32 %v4880_v17, %v2893_v60  ;;  %v3155_v10 = vadd.f32 %v3154_v25, %v3028_v19 }
 0x1f2   : > { %v2895_v33 = vadd.f32 %v4885_v3, %v2894_v50  ;;  %v3156_v57 = vadd.f32 %v3155_v10, %v3029_v4 }
 0x1f4   : > { %v2896_v18 = vrot.slane %v2895_v33, 4  ;;  %v3157_v11 = vadd.f32 %v3156_v57, %v3030_v30 }
 0x1f6   : > { %v2897_v44 = vadd.f32 %v2896_v18, %v2895_v33  ;;  %v3158_v13 = vrot.slane %v3157_v11, 4 }
 0x1f8   : > { %v2898_v48 = vrot.slane %v2897_v44, 2  ;;  %v3159_v12 = vadd.f32 %v3158_v13, %v3157_v11 }
 0x1fa   : > { %v2899_v56 = vadd.f32 %v2898_v48, %v2897_v44  ;;  %v3160_v34 = vrot.slane %v3159_v12, 2 }
 0x1fc   : > { %v2900_v51 = vrot.slane %v2899_v56, 1  ;;  %v3161_v58 = vadd.f32 %v3160_v34, %v3159_v12 }
 0x1fe   : > { %v2901_v17 = vadd.f32 %v2900_v51, %v2899_v56  ;;  %v3162_v26 = vrot.slane %v3161_v58, 1 }
 0x200   : > { %2902 = vst [vmem:[%s259_s11] sm:$0x1] %v2901_v17  ;;  %v3163_v3 = vadd.f32 %v3162_v26, %v3161_v58 }
 0x202   : > { %3164 = vst [vmem:[%s262_s14] sm:$0x1] %v3163_v3 }
 0x203 PF: > { %s15_s17 = sadd.s32 1, %s4407_s17   ;;  %s5114_s15 = smov %s4403_s16 }
 0x204   : > { %p12_p6 = scmp.ge.s32.totalorder %s15_s17, 4   ;;  %s5115_s16 = smov %s5117_s18 }
 0x206   :  { %14 = sbr.rel (!%p12_p6) target bundleno = 2 (0x2), region = 93 }

// kernel: discriminator_forward.12
= control target key start
LH: loop header
LB: loop body
LE: loop exit
PB: predicated region body
PF: predicated region fallthrough
CT: control target
= control target key end

     0   :  { %s2461_s1 = inlined_call_operand.vmem [shape: bf16[128,128], index: 1, kind: input, shape index: {}]   ;;  %s2462_s0 = inlined_call_operand.vmem [shape: bf16[512,128], index: 0, kind: input, shape index: {}]   ;;  %s2463_s2 = inlined_call_operand.vmem [shape: bf16[512,128], index: 2, kind: output, shape index: {0}]   ;;  %s2464_s3 = inlined_call_operand.vmem [shape: f32[1,1,128], index: 3, kind: output, shape index: {1}]   ;;  %s2465_s4 = inlined_call_operand.vmem [shape: f32[1,1,128], index: 4, kind: output, shape index: {2}]  }
   0x1   :  { %v1982_v0 = vld [vmem:[%s2461_s1] sm:$0xff]   ;;  %v1983_v1 = vld [vmem:[%s2461_s1 + $0x8] sm:$0xff]   ;;  %v1984_v2 = vld [vmem:[%s2461_s1 + $0x10] sm:$0xff]  }
   0x2   :  { %1886 = vmatprep.subr.bf16.mxu0 %v1982_v0  ;;  %1966 = vmatprep.subr.bf16.mxu1 %v1982_v0  ;;  %v1985_v3 = vld [vmem:[%s2461_s1 + $0x18] sm:$0xff]   ;;  %v1990_v4 = vld [vmem:[%s2462_s0] sm:$0xff]   ;;  %v1987_v6 = vld [vmem:[%s2461_s1 + $0x28] sm:$0xff]  }
   0x3   :  { %1887 = vmatpush3.bf16.msra.mxu0 %v1982_v0  ;;  %1974 = vmatpush3.bf16.msra.mxu1 %v1982_v0  ;;  %v1986_v5 = vld [vmem:[%s2461_s1 + $0x20] sm:$0xff]   ;;  %v1988_v7 = vld [vmem:[%s2461_s1 + $0x30] sm:$0xff]   ;;  %v1989_v8 = vld [vmem:[%s2461_s1 + $0x38] sm:$0xff]  }
   0x4   :  { %1888 = vmatprep.subr.bf16.mxu0 %v1983_v1  ;;  %1967 = vmatprep.subr.bf16.mxu1 %v1983_v1  ;;  %v2006_v9 = vld [vmem:[%s2462_s0 + $0x80] sm:$0xff]   ;;  %v1991_v10 = vld [vmem:[%s2462_s0 + $0x8] sm:$0xff]   ;;  %v1992_v11 = vld [vmem:[%s2462_s0 + $0x10] sm:$0xff]  }
   0x5   :  { %1902 = vmatprep.mubr.bf16.mxu0 %v1990_v4  ;;  %1934 = vmatprep.mubr.bf16.mxu1 %v2006_v9  ;;  %v2007_v12 = vld [vmem:[%s2462_s0 + $0x88] sm:$0xff]   ;;  %v2008_v13 = vld [vmem:[%s2462_s0 + $0x90] sm:$0xff]   ;;  %v1993_v14 = vld [vmem:[%s2462_s0 + $0x18] sm:$0xff]  }
   0x6   :  { %v1994_v15 = vld [vmem:[%s2462_s0 + $0x20] sm:$0xff]   ;;  %v2009_v16 = vld [vmem:[%s2462_s0 + $0x98] sm:$0xff]   ;;  %v1995_v18 = vld [vmem:[%s2462_s0 + $0x28] sm:$0xff]  }
   0x7   :  { %1889 = vmatpush3.bf16.msra.mxu0 %v1983_v1  ;;  %1975 = vmatpush3.bf16.msra.mxu1 %v1983_v1  ;;  %v2010_v17 = vld [vmem:[%s2462_s0 + $0xa0] sm:$0xff]   ;;  %v2011_v19 = vld [vmem:[%s2462_s0 + $0xa8] sm:$0xff]   ;;  %v1996_v20 = vld [vmem:[%s2462_s0 + $0x30] sm:$0xff]  }
   0x8   :  { %1890 = vmatprep.subr.bf16.mxu0 %v1984_v2  ;;  %1968 = vmatprep.subr.bf16.mxu1 %v1984_v2  ;;  %v2012_v21 = vld [vmem:[%s2462_s0 + $0xb0] sm:$0xff]   ;;  %v1997_v22 = vld [vmem:[%s2462_s0 + $0x38] sm:$0xff]   ;;  %v1998_v24 = vld [vmem:[%s2462_s0 + $0x40] sm:$0xff]  }
   0x9   :  { %v2013_v23 = vld [vmem:[%s2462_s0 + $0xb8] sm:$0xff]   ;;  %v2014_v25 = vld [vmem:[%s2462_s0 + $0xc0] sm:$0xff]   ;;  %v1999_v26 = vld [vmem:[%s2462_s0 + $0x48] sm:$0xff]  }
   0xa   :  { %v2015_v27 = vld [vmem:[%s2462_s0 + $0xc8] sm:$0xff]   ;;  %v2000_v28 = vld [vmem:[%s2462_s0 + $0x50] sm:$0xff]   ;;  %v2001_v30 = vld [vmem:[%s2462_s0 + $0x58] sm:$0xff]  }
   0xb   :  { %1891 = vmatpush3.bf16.msra.mxu0 %v1984_v2  ;;  %1976 = vmatpush3.bf16.msra.mxu1 %v1984_v2  ;;  %v2016_v29 = vld [vmem:[%s2462_s0 + $0xd0] sm:$0xff]   ;;  %v2017_v31 = vld [vmem:[%s2462_s0 + $0xd8] sm:$0xff]   ;;  %v2002_v32 = vld [vmem:[%s2462_s0 + $0x60] sm:$0xff]  }
   0xc   :  { %1892 = vmatprep.subr.bf16.mxu0 %v1985_v3  ;;  %1969 = vmatprep.subr.bf16.mxu1 %v1985_v3  ;;  %v2018_v33 = vld [vmem:[%s2462_s0 + $0xe0] sm:$0xff]   ;;  %v2003_v34 = vld [vmem:[%s2462_s0 + $0x68] sm:$0xff]   ;;  %v2004_v36 = vld [vmem:[%s2462_s0 + $0x70] sm:$0xff]  }
   0xd   :  { %v2019_v35 = vld [vmem:[%s2462_s0 + $0xe8] sm:$0xff]   ;;  %v2020_v37 = vld [vmem:[%s2462_s0 + $0xf0] sm:$0xff]   ;;  %v2005_v38 = vld [vmem:[%s2462_s0 + $0x78] sm:$0xff]  }
   0xe   :  { %v2021_v39 = vld [vmem:[%s2462_s0 + $0xf8] sm:$0xff]  }
   0xf   :  { %1893 = vmatpush3.bf16.msra.mxu0 %v1985_v3  ;;  %1977 = vmatpush3.bf16.msra.mxu1 %v1985_v3 }
  0x10   :  { %1894 = vmatprep.subr.bf16.mxu0 %v1986_v5  ;;  %1970 = vmatprep.subr.bf16.mxu1 %v1986_v5 }
  0x13   :  { %1895 = vmatpush3.bf16.msra.mxu0 %v1986_v5  ;;  %1978 = vmatpush3.bf16.msra.mxu1 %v1986_v5 }
  0x14   :  { %1896 = vmatprep.subr.bf16.mxu0 %v1987_v6  ;;  %1971 = vmatprep.subr.bf16.mxu1 %v1987_v6 }
  0x17   :  { %1897 = vmatpush3.bf16.msra.mxu0 %v1987_v6  ;;  %1979 = vmatpush3.bf16.msra.mxu1 %v1987_v6 }
  0x18   :  { %1898 = vmatprep.subr.bf16.mxu0 %v1988_v7  ;;  %1972 = vmatprep.subr.bf16.mxu1 %v1988_v7 }
  0x1b   :  { %1899 = vmatpush3.bf16.msra.mxu0 %v1988_v7  ;;  %1980 = vmatpush3.bf16.msra.mxu1 %v1988_v7 }
  0x1c   :  { %1900 = vmatprep.subr.bf16.mxu0 %v1989_v8  ;;  %1973 = vmatprep.subr.bf16.mxu1 %v1989_v8 }
  0x1f   :  { %1901 = vmatpush3.bf16.msra.mxu0 %v1989_v8  ;;  %1981 = vmatpush3.bf16.msra.mxu1 %v1989_v8 }
  0x22   :  { %1903 = vmatmul.mubr.bf16.vlgmr.msra.gmra.mrb[0].mxu0 %v1991_v10  ;;  %1935 = vmatmul.mubr.bf16.vlgmr.msra.gmra.mrb[0].mxu1 %v2007_v12 }
  0x23   :  { %1906 = vmatprep.mubr.bf16.mxu0 %v1992_v11  ;;  %1938 = vmatprep.mubr.bf16.mxu1 %v2008_v13 }
  0x2a   :  { %1907 = vmatmul.mubr.bf16.gmra.mrb[4].mxu0 %v1993_v14  ;;  %1939 = vmatmul.mubr.bf16.gmra.mrb[4].mxu1 %v2009_v16 }
  0x2b   :  { %1910 = vmatprep.mubr.bf16.mxu0 %v1994_v15  ;;  %1942 = vmatprep.mubr.bf16.mxu1 %v2010_v17 }
  0x32   :  { %1911 = vmatmul.mubr.bf16.gmra.mrb[8].mxu0 %v1995_v18  ;;  %1943 = vmatmul.mubr.bf16.gmra.mrb[8].mxu1 %v2011_v19 }
  0x33   :  { %1914 = vmatprep.mubr.bf16.mxu0 %v1996_v20  ;;  %1946 = vmatprep.mubr.bf16.mxu1 %v2012_v21 }
  0x3a   :  { %1915 = vmatmul.mubr.bf16.gmra.mrb[12].mxu0 %v1997_v22  ;;  %1947 = vmatmul.mubr.bf16.gmra.mrb[12].mxu1 %v2013_v23 }
  0x3b   :  { %1918 = vmatprep.mubr.bf16.mxu0 %v1998_v24  ;;  %1950 = vmatprep.mubr.bf16.mxu1 %v2014_v25 }
  0x42   :  { %1919 = vmatmul.mubr.bf16.gmra.mrb[16].mxu0 %v1999_v26  ;;  %1951 = vmatmul.mubr.bf16.gmra.mrb[16].mxu1 %v2015_v27 }
  0x43   :  { %1922 = vmatprep.mubr.bf16.mxu0 %v2000_v28  ;;  %1954 = vmatprep.mubr.bf16.mxu1 %v2016_v29 }
  0x4a   :  { %1923 = vmatmul.mubr.bf16.gmra.mrb[20].mxu0 %v2001_v30  ;;  %1955 = vmatmul.mubr.bf16.gmra.mrb[20].mxu1 %v2017_v31 }
  0x4b   :  { %1926 = vmatprep.mubr.bf16.mxu0 %v2002_v32  ;;  %1958 = vmatprep.mubr.bf16.mxu1 %v2018_v33 }
  0x52   :  { %1927 = vmatmul.mubr.bf16.gmra.mrb[24].mxu0 %v2003_v34  ;;  %1959 = vmatmul.mubr.bf16.gmra.mrb[24].mxu1 %v2019_v35 }
  0x53   :  { %1930 = vmatprep.mubr.bf16.mxu0 %v2004_v36  ;;  %1962 = vmatprep.mubr.bf16.mxu1 %v2020_v37 }
  0x5a   :  { %1931 = vmatmul.mubr.bf16.gmra.mrb[28].mxu0 %v2005_v38  ;;  %1963 = vmatmul.mubr.bf16.gmra.mrb[28].mxu1 %v2021_v39 }
  0xf5   :  { %v1904_v40 = vpop.f32.mrb[0].mxu0  ;;  %v2167_v41 = vpop.f32.mrb[0].mxu1 }
  0xf6   :  { %v501_v42 = vpop.f32.mrb[1].mxu0  ;;  %v2169_v43 = vpop.f32.mrb[1].mxu1  ;;  %v1343_v55 = vmul.f32 %v1904_v40, %v1904_v40 }
  0xf7   :  { %v1905_v44 = vpop.f32.mrb[2].mxu0  ;;  %v2171_v45 = vpop.f32.mrb[2].mxu1  ;;  %v1341_v46 = vmul.f32 %v501_v42, %v501_v42 }
  0xf8   :  { %v1663_v47 = vpack.c.bf16 %v1905_v44, %v1904_v40  ;;  %v504_v48 = vpop.f32.mrb[3].mxu0  ;;  %v1743_v49 = vpack.c.bf16 %v2171_v45, %v2167_v41  ;;  %v2175_v50 = vpop.f32.mrb[3].mxu1  ;;  %v1344_v58 = vmul.f32 %v1905_v44, %v1905_v44 }
  0xf9   :  { %v1658_v51 = vpack.c.bf16 %v504_v48, %v501_v42  ;;  %v1271_v52 = vadd.f32 %v504_v48, %v501_v42  ;;  %v1342_v53 = vmul.f32 %v504_v48, %v504_v48  ;;  %v1738_v54 = vpack.c.bf16 %v2175_v50, %v2169_v43 }
  0xfa   :  { %1815 = vst [vmem:[%s2463_s2 + $0x8] sm:$0xff] %v1663_v47   ;;  %1831 = vst [vmem:[%s2463_s2 + $0x88] sm:$0xff] %v1743_v49  }
  0xfb   :  { %1659 = vst [vmem:[%s2463_s2] sm:$0xff] %v1658_v51   ;;  %v1272_v56 = vadd.f32 %v1904_v40, %v1271_v52  ;;  %v1405_v57 = vadd.f32 %v1342_v53, %v1341_v46  ;;  %1830 = vst [vmem:[%s2463_s2 + $0x80] sm:$0xff] %v1738_v54  }
  0xfd   :  { %v1406_v59 = vadd.f32 %v1405_v57, %v1343_v55  ;;  %v1908_v60 = vpop.f32.mrb[4].mxu0  ;;  %v1273_v61 = vadd.f32 %v1905_v44, %v1272_v56  ;;  %v2191_v62 = vpop.f32.mrb[4].mxu1 }
  0xfe   :  { %v517_v63 = vpop.f32.mrb[5].mxu0  ;;  %v2193_v0 = vpop.f32.mrb[5].mxu1  ;;  %v1347_v15 = vmul.f32 %v1908_v60, %v1908_v60 }
  0xff   :  { %v1274_v1 = vadd.f32 %v1273_v61, %v517_v63  ;;  %v1345_v2 = vmul.f32 %v517_v63, %v517_v63  ;;  %v1407_v3 = vadd.f32 %v1406_v59, %v1344_v58  ;;  %v1909_v4 = vpop.f32.mrb[6].mxu0  ;;  %v2195_v5 = vpop.f32.mrb[6].mxu1 }
 0x100   :  { %v1673_v6 = vpack.c.bf16 %v1909_v4, %v1908_v60  ;;  %v520_v7 = vpop.f32.mrb[7].mxu0  ;;  %v1753_v8 = vpack.c.bf16 %v2195_v5, %v2191_v62  ;;  %v2199_v9 = vpop.f32.mrb[7].mxu1  ;;  %v1348_v18 = vmul.f32 %v1909_v4, %v1909_v4 }
 0x101   :  { %v1408_v10 = vadd.f32 %v1407_v3, %v1345_v2  ;;  %v1668_v11 = vpack.c.bf16 %v520_v7, %v517_v63  ;;  %v1275_v12 = vadd.f32 %v1274_v1, %v520_v7  ;;  %v1346_v13 = vmul.f32 %v520_v7, %v520_v7 }
 0x102   :  { %1817 = vst [vmem:[%s2463_s2 + $0x18] sm:$0xff] %v1673_v6   ;;  %1833 = vst [vmem:[%s2463_s2 + $0x98] sm:$0xff] %v1753_v8   ;;  %v1748_v14 = vpack.c.bf16 %v2199_v9, %v2193_v0 }
 0x103   :  { %1816 = vst [vmem:[%s2463_s2 + $0x10] sm:$0xff] %v1668_v11   ;;  %v1276_v16 = vadd.f32 %v1908_v60, %v1275_v12  ;;  %v1409_v17 = vadd.f32 %v1408_v10, %v1346_v13 }
 0x104   :  { %1832 = vst [vmem:[%s2463_s2 + $0x90] sm:$0xff] %v1748_v14  }
 0x105   :  { %v1410_v19 = vadd.f32 %v1409_v17, %v1347_v15  ;;  %v1912_v20 = vpop.f32.mrb[8].mxu0  ;;  %v1277_v21 = vadd.f32 %v1909_v4, %v1276_v16  ;;  %v2215_v22 = vpop.f32.mrb[8].mxu1 }
 0x106   :  { %v533_v23 = vpop.f32.mrb[9].mxu0  ;;  %v2217_v24 = vpop.f32.mrb[9].mxu1  ;;  %v1351_v39 = vmul.f32 %v1912_v20, %v1912_v20 }
 0x107   :  { %v1278_v25 = vadd.f32 %v1277_v21, %v533_v23  ;;  %v1349_v26 = vmul.f32 %v533_v23, %v533_v23  ;;  %v1411_v27 = vadd.f32 %v1410_v19, %v1348_v18  ;;  %v1913_v28 = vpop.f32.mrb[10].mxu0  ;;  %v2219_v29 = vpop.f32.mrb[10].mxu1 }
 0x108   :  { %v1683_v30 = vpack.c.bf16 %v1913_v28, %v1912_v20  ;;  %v536_v31 = vpop.f32.mrb[11].mxu0  ;;  %v1763_v32 = vpack.c.bf16 %v2219_v29, %v2215_v22  ;;  %v2223_v33 = vpop.f32.mrb[11].mxu1  ;;  %v1352_v44 = vmul.f32 %v1913_v28, %v1913_v28 }
 0x109   :  { %v1412_v34 = vadd.f32 %v1411_v27, %v1349_v26  ;;  %v1678_v35 = vpack.c.bf16 %v536_v31, %v533_v23  ;;  %v1279_v36 = vadd.f32 %v1278_v25, %v536_v31  ;;  %v1350_v37 = vmul.f32 %v536_v31, %v536_v31 }
 0x10a   :  { %1819 = vst [vmem:[%s2463_s2 + $0x28] sm:$0xff] %v1683_v30   ;;  %1835 = vst [vmem:[%s2463_s2 + $0xa8] sm:$0xff] %v1763_v32   ;;  %v1758_v38 = vpack.c.bf16 %v2223_v33, %v2217_v24 }
 0x10b   :  { %1818 = vst [vmem:[%s2463_s2 + $0x20] sm:$0xff] %v1678_v35   ;;  %v1280_v40 = vadd.f32 %v1912_v20, %v1279_v36  ;;  %v1413_v42 = vadd.f32 %v1412_v34, %v1350_v37 }
 0x10c   :  { %1834 = vst [vmem:[%s2463_s2 + $0xa0] sm:$0xff] %v1758_v38  }
 0x10d   :  { %v1414_v46 = vadd.f32 %v1413_v42, %v1351_v39  ;;  %v1916_v47 = vpop.f32.mrb[12].mxu0  ;;  %v1281_v48 = vadd.f32 %v1913_v28, %v1280_v40  ;;  %v2239_v49 = vpop.f32.mrb[12].mxu1 }
 0x10e   :  { %v549_v51 = vpop.f32.mrb[13].mxu0  ;;  %v2241_v52 = vpop.f32.mrb[13].mxu1  ;;  %v1355_v6 = vmul.f32 %v1916_v47, %v1916_v47 }
 0x10f   :  { %v1282_v53 = vadd.f32 %v1281_v48, %v549_v51  ;;  %v1353_v54 = vmul.f32 %v549_v51, %v549_v51  ;;  %v1415_v55 = vadd.f32 %v1414_v46, %v1352_v44  ;;  %v1917_v56 = vpop.f32.mrb[14].mxu0  ;;  %v2243_v57 = vpop.f32.mrb[14].mxu1 }
 0x110   :  { %v1693_v58 = vpack.c.bf16 %v1917_v56, %v1916_v47  ;;  %v552_v59 = vpop.f32.mrb[15].mxu0  ;;  %v1773_v60 = vpack.c.bf16 %v2243_v57, %v2239_v49  ;;  %v2247_v61 = vpop.f32.mrb[15].mxu1  ;;  %v1356_v10 = vmul.f32 %v1917_v56, %v1917_v56 }
 0x111   :  { %v1416_v63 = vadd.f32 %v1415_v55, %v1353_v54  ;;  %v1688_v1 = vpack.c.bf16 %v552_v59, %v549_v51  ;;  %v1283_v2 = vadd.f32 %v1282_v53, %v552_v59  ;;  %v1354_v3 = vmul.f32 %v552_v59, %v552_v59 }
 0x112   :  { %1821 = vst [vmem:[%s2463_s2 + $0x38] sm:$0xff] %v1693_v58   ;;  %1837 = vst [vmem:[%s2463_s2 + $0xb8] sm:$0xff] %v1773_v60   ;;  %v1768_v4 = vpack.c.bf16 %v2247_v61, %v2241_v52 }
 0x113   :  { %1820 = vst [vmem:[%s2463_s2 + $0x30] sm:$0xff] %v1688_v1   ;;  %v1284_v7 = vadd.f32 %v1916_v47, %v1283_v2  ;;  %v1417_v8 = vadd.f32 %v1416_v63, %v1354_v3 }
 0x114   :  { %1836 = vst [vmem:[%s2463_s2 + $0xb0] sm:$0xff] %v1768_v4  }
 0x115   :  { %v1418_v11 = vadd.f32 %v1417_v8, %v1355_v6  ;;  %v1920_v12 = vpop.f32.mrb[16].mxu0  ;;  %v1285_v13 = vadd.f32 %v1917_v56, %v1284_v7  ;;  %v2263_v14 = vpop.f32.mrb[16].mxu1 }
 0x116   :  { %v565_v15 = vpop.f32.mrb[17].mxu0  ;;  %v2265_v16 = vpop.f32.mrb[17].mxu1  ;;  %v1359_v35 = vmul.f32 %v1920_v12, %v1920_v12 }
 0x117   :  { %v1286_v17 = vadd.f32 %v1285_v13, %v565_v15  ;;  %v1357_v18 = vmul.f32 %v565_v15, %v565_v15  ;;  %v1419_v19 = vadd.f32 %v1418_v11, %v1356_v10  ;;  %v1921_v20 = vpop.f32.mrb[18].mxu0  ;;  %v2267_v21 = vpop.f32.mrb[18].mxu1 }
 0x118   :  { %v1703_v23 = vpack.c.bf16 %v1921_v20, %v1920_v12  ;;  %v568_v25 = vpop.f32.mrb[19].mxu0  ;;  %v1783_v26 = vpack.c.bf16 %v2267_v21, %v2263_v14  ;;  %v2271_v27 = vpop.f32.mrb[19].mxu1  ;;  %v1360_v38 = vmul.f32 %v1921_v20, %v1921_v20 }
 0x119   :  { %v1420_v28 = vadd.f32 %v1419_v19, %v1357_v18  ;;  %v1698_v30 = vpack.c.bf16 %v568_v25, %v565_v15  ;;  %v1287_v31 = vadd.f32 %v1286_v17, %v568_v25  ;;  %v1358_v32 = vmul.f32 %v568_v25, %v568_v25 }
 0x11a   :  { %1823 = vst [vmem:[%s2463_s2 + $0x48] sm:$0xff] %v1703_v23   ;;  %1839 = vst [vmem:[%s2463_s2 + $0xc8] sm:$0xff] %v1783_v26   ;;  %v1778_v34 = vpack.c.bf16 %v2271_v27, %v2265_v16 }
 0x11b   :  { %1822 = vst [vmem:[%s2463_s2 + $0x40] sm:$0xff] %v1698_v30   ;;  %v1288_v36 = vadd.f32 %v1920_v12, %v1287_v31  ;;  %v1421_v37 = vadd.f32 %v1420_v28, %v1358_v32 }
 0x11c   :  { %1838 = vst [vmem:[%s2463_s2 + $0xc0] sm:$0xff] %v1778_v34  }
 0x11d   :  { %v1422_v39 = vadd.f32 %v1421_v37, %v1359_v35  ;;  %v1924_v40 = vpop.f32.mrb[20].mxu0  ;;  %v1289_v42 = vadd.f32 %v1921_v20, %v1288_v36  ;;  %v2287_v44 = vpop.f32.mrb[20].mxu1 }
 0x11e   :  { %v581_v46 = vpop.f32.mrb[21].mxu0  ;;  %v2289_v47 = vpop.f32.mrb[21].mxu1  ;;  %v1363_v6 = vmul.f32 %v1924_v40, %v1924_v40 }
 0x11f   :  { %v1290_v48 = vadd.f32 %v1289_v42, %v581_v46  ;;  %v1361_v51 = vmul.f32 %v581_v46, %v581_v46  ;;  %v1423_v53 = vadd.f32 %v1422_v39, %v1360_v38  ;;  %v1925_v54 = vpop.f32.mrb[22].mxu0  ;;  %v2291_v55 = vpop.f32.mrb[22].mxu1 }
 0x120   :  { %v1713_v56 = vpack.c.bf16 %v1925_v54, %v1924_v40  ;;  %v584_v58 = vpop.f32.mrb[23].mxu0  ;;  %v1793_v59 = vpack.c.bf16 %v2291_v55, %v2287_v44  ;;  %v2295_v60 = vpop.f32.mrb[23].mxu1  ;;  %v1364_v10 = vmul.f32 %v1925_v54, %v1925_v54 }
 0x121   :  { %v1424_v63 = vadd.f32 %v1423_v53, %v1361_v51  ;;  %v1708_v1 = vpack.c.bf16 %v584_v58, %v581_v46  ;;  %v1291_v2 = vadd.f32 %v1290_v48, %v584_v58  ;;  %v1362_v3 = vmul.f32 %v584_v58, %v584_v58 }
 0x122   :  { %1825 = vst [vmem:[%s2463_s2 + $0x58] sm:$0xff] %v1713_v56   ;;  %1841 = vst [vmem:[%s2463_s2 + $0xd8] sm:$0xff] %v1793_v59   ;;  %v1788_v4 = vpack.c.bf16 %v2295_v60, %v2289_v47 }
 0x123   :  { %1824 = vst [vmem:[%s2463_s2 + $0x50] sm:$0xff] %v1708_v1   ;;  %v1292_v7 = vadd.f32 %v1924_v40, %v1291_v2  ;;  %v1425_v8 = vadd.f32 %v1424_v63, %v1362_v3 }
 0x124   :  { %1840 = vst [vmem:[%s2463_s2 + $0xd0] sm:$0xff] %v1788_v4  }
 0x125   :  { %v1426_v11 = vadd.f32 %v1425_v8, %v1363_v6  ;;  %v1928_v12 = vpop.f32.mrb[24].mxu0  ;;  %v1293_v13 = vadd.f32 %v1925_v54, %v1292_v7  ;;  %v2311_v15 = vpop.f32.mrb[24].mxu1 }
 0x126   :  { %v597_v17 = vpop.f32.mrb[25].mxu0  ;;  %v2313_v18 = vpop.f32.mrb[25].mxu1  ;;  %v1367_v39 = vmul.f32 %v1928_v12, %v1928_v12 }
 0x127   :  { %v1294_v19 = vadd.f32 %v1293_v13, %v597_v17  ;;  %v1365_v20 = vmul.f32 %v597_v17, %v597_v17  ;;  %v1427_v23 = vadd.f32 %v1426_v11, %v1364_v10  ;;  %v1929_v25 = vpop.f32.mrb[26].mxu0  ;;  %v2315_v26 = vpop.f32.mrb[26].mxu1 }
 0x128   :  { %v1723_v28 = vpack.c.bf16 %v1929_v25, %v1928_v12  ;;  %v600_v30 = vpop.f32.mrb[27].mxu0  ;;  %v1803_v31 = vpack.c.bf16 %v2315_v26, %v2311_v15  ;;  %v2319_v32 = vpop.f32.mrb[27].mxu1  ;;  %v1368_v46 = vmul.f32 %v1929_v25, %v1929_v25 }
 0x129   :  { %v1428_v34 = vadd.f32 %v1427_v23, %v1365_v20  ;;  %v1718_v35 = vpack.c.bf16 %v600_v30, %v597_v17  ;;  %v1295_v36 = vadd.f32 %v1294_v19, %v600_v30  ;;  %v1366_v37 = vmul.f32 %v600_v30, %v600_v30 }
 0x12a   :  { %1827 = vst [vmem:[%s2463_s2 + $0x68] sm:$0xff] %v1723_v28   ;;  %1843 = vst [vmem:[%s2463_s2 + $0xe8] sm:$0xff] %v1803_v31   ;;  %v1798_v38 = vpack.c.bf16 %v2319_v32, %v2313_v18  ;;  %v1373_v31 = vmul.f32 %v2169_v43, %v2169_v43 }
 0x12b   :  { %1826 = vst [vmem:[%s2463_s2 + $0x60] sm:$0xff] %v1718_v35   ;;  %v1296_v40 = vadd.f32 %v1928_v12, %v1295_v36  ;;  %v1429_v42 = vadd.f32 %v1428_v34, %v1366_v37 }
 0x12c   :  { %1842 = vst [vmem:[%s2463_s2 + $0xe0] sm:$0xff] %v1798_v38   ;;  %v1374_v38 = vmul.f32 %v2175_v50, %v2175_v50 }
 0x12d   :  { %v1430_v48 = vadd.f32 %v1429_v42, %v1367_v39  ;;  %v1932_v51 = vpop.f32.mrb[28].mxu0  ;;  %v1297_v53 = vadd.f32 %v1929_v25, %v1296_v40  ;;  %v2335_v54 = vpop.f32.mrb[28].mxu1  ;;  %v1375_v39 = vmul.f32 %v2167_v41, %v2167_v41 }
 0x12e   :  { %v613_v56 = vpop.f32.mrb[29].mxu0  ;;  %v2337_v58 = vpop.f32.mrb[29].mxu1  ;;  %v1371_v19 = vmul.f32 %v1932_v51, %v1932_v51 }
 0x12f   :  { %v1298_v59 = vadd.f32 %v1297_v53, %v613_v56  ;;  %v1369_v63 = vmul.f32 %v613_v56, %v613_v56  ;;  %v1431_v1 = vadd.f32 %v1430_v48, %v1368_v46  ;;  %v1933_v2 = vpop.f32.mrb[30].mxu0  ;;  %v2339_v3 = vpop.f32.mrb[30].mxu1  ;;  %v1376_v46 = vmul.f32 %v2171_v45, %v2171_v45 }
 0x130   :  { %v1733_v4 = vpack.c.bf16 %v1933_v2, %v1932_v51  ;;  %v616_v6 = vpop.f32.mrb[31].mxu0  ;;  %v1813_v7 = vpack.c.bf16 %v2339_v3, %v2335_v54  ;;  %v2343_v8 = vpop.f32.mrb[31].mxu1  ;;  %v1372_v25 = vmul.f32 %v1933_v2, %v1933_v2 }
 0x131   :  { %v1432_v10 = vadd.f32 %v1431_v1, %v1369_v63  ;;  %v1728_v11 = vpack.c.bf16 %v616_v6, %v613_v56  ;;  %v1299_v12 = vadd.f32 %v1298_v59, %v616_v6  ;;  %v1370_v13 = vmul.f32 %v616_v6, %v616_v6 }
 0x132   :  { %1829 = vst [vmem:[%s2463_s2 + $0x78] sm:$0xff] %v1733_v4   ;;  %1845 = vst [vmem:[%s2463_s2 + $0xf8] sm:$0xff] %v1813_v7   ;;  %v1808_v17 = vpack.c.bf16 %v2343_v8, %v2337_v58  ;;  %v1378_v63 = vmul.f32 %v2199_v9, %v2199_v9 }
 0x133   :  { %1828 = vst [vmem:[%s2463_s2 + $0x70] sm:$0xff] %v1728_v11   ;;  %v1300_v20 = vadd.f32 %v1932_v51, %v1299_v12  ;;  %v1433_v23 = vadd.f32 %v1432_v10, %v1370_v13  ;;  %v1382_v12 = vmul.f32 %v2223_v33, %v2223_v33 }
 0x134   :  { %1844 = vst [vmem:[%s2463_s2 + $0xf0] sm:$0xff] %v1808_v17  }
 0x135   :  { %v1434_v28 = vadd.f32 %v1433_v23, %v1371_v19  ;;  %v1301_v30 = vadd.f32 %v1933_v2, %v1300_v20 }
 0x137   :  { %v1302_v34 = vadd.f32 %v1301_v30, %v2169_v43  ;;  %v1435_v35 = vadd.f32 %v1434_v28, %v1372_v25  ;;  %v1377_v43 = vmul.f32 %v2193_v0, %v2193_v0  ;;  %v1386_v30 = vmul.f32 %v2247_v61, %v2247_v61 }
 0x139   :  { %v1436_v36 = vadd.f32 %v1435_v35, %v1373_v31  ;;  %v1303_v37 = vadd.f32 %v1302_v34, %v2175_v50 }
 0x13b   :  { %v1304_v40 = vadd.f32 %v2167_v41, %v1303_v37  ;;  %v1437_v42 = vadd.f32 %v1436_v36, %v1374_v38  ;;  %v1379_v41 = vmul.f32 %v2191_v62, %v2191_v62 }
 0x13d   :  { %v1438_v48 = vadd.f32 %v1437_v42, %v1375_v39  ;;  %v1305_v51 = vadd.f32 %v2171_v45, %v1304_v40  ;;  %v1380_v45 = vmul.f32 %v2195_v5, %v2195_v5  ;;  %v1390_v40 = vmul.f32 %v2271_v27, %v2271_v27 }
 0x13f   :  { %v1306_v53 = vadd.f32 %v1305_v51, %v2193_v0  ;;  %v1439_v56 = vadd.f32 %v1438_v48, %v1376_v46  ;;  %v1381_v0 = vmul.f32 %v2217_v24, %v2217_v24 }
 0x141   :  { %v1440_v59 = vadd.f32 %v1439_v56, %v1377_v43  ;;  %v1307_v50 = vadd.f32 %v1306_v53, %v2199_v9 }
 0x143   :  { %v1308_v1 = vadd.f32 %v2191_v62, %v1307_v50  ;;  %v1441_v2 = vadd.f32 %v1440_v59, %v1378_v63  ;;  %v1383_v62 = vmul.f32 %v2215_v22, %v2215_v22  ;;  %v1394_v59 = vmul.f32 %v2295_v60, %v2295_v60 }
 0x145   :  { %v1442_v4 = vadd.f32 %v1441_v2, %v1379_v41  ;;  %v1309_v6 = vadd.f32 %v2195_v5, %v1308_v1  ;;  %v1384_v5 = vmul.f32 %v2219_v29, %v2219_v29 }
 0x147   :  { %v1310_v7 = vadd.f32 %v1309_v6, %v2217_v24  ;;  %v1443_v10 = vadd.f32 %v1442_v4, %v1380_v45  ;;  %v1385_v24 = vmul.f32 %v2241_v52, %v2241_v52  ;;  %v1398_v6 = vmul.f32 %v2319_v32, %v2319_v32 }
 0x149   :  { %v1444_v11 = vadd.f32 %v1443_v10, %v1381_v0  ;;  %v1311_v9 = vadd.f32 %v1310_v7, %v2223_v33 }
 0x14b   :  { %v1312_v13 = vadd.f32 %v2215_v22, %v1311_v9  ;;  %v1445_v17 = vadd.f32 %v1444_v11, %v1382_v12  ;;  %v1387_v22 = vmul.f32 %v2239_v49, %v2239_v49 }
 0x14d   :  { %v1446_v19 = vadd.f32 %v1445_v17, %v1383_v62  ;;  %v1313_v20 = vadd.f32 %v2219_v29, %v1312_v13  ;;  %v1388_v29 = vmul.f32 %v2243_v57, %v2243_v57  ;;  %v1402_v13 = vmul.f32 %v2343_v8, %v2343_v8 }
 0x14f   :  { %v1314_v23 = vadd.f32 %v1313_v20, %v2241_v52  ;;  %v1447_v25 = vadd.f32 %v1446_v19, %v1384_v5  ;;  %v1389_v52 = vmul.f32 %v2265_v16, %v2265_v16 }
 0x151   :  { %v1448_v28 = vadd.f32 %v1447_v25, %v1385_v24  ;;  %v1315_v33 = vadd.f32 %v1314_v23, %v2247_v61 }
 0x153   :  { %v1316_v31 = vadd.f32 %v2239_v49, %v1315_v33  ;;  %v1449_v34 = vadd.f32 %v1448_v28, %v1386_v30  ;;  %v1391_v49 = vmul.f32 %v2263_v14, %v2263_v14 }
 0x155   :  { %v1450_v35 = vadd.f32 %v1449_v34, %v1387_v22  ;;  %v1317_v36 = vadd.f32 %v2243_v57, %v1316_v31  ;;  %v1392_v57 = vmul.f32 %v2267_v21, %v2267_v21 }
 0x157   :  { %v1318_v37 = vadd.f32 %v1317_v36, %v2265_v16  ;;  %v1451_v38 = vadd.f32 %v1450_v35, %v1388_v29  ;;  %v1393_v16 = vmul.f32 %v2289_v47, %v2289_v47 }
 0x159   :  { %v1452_v39 = vadd.f32 %v1451_v38, %v1389_v52  ;;  %v1319_v61 = vadd.f32 %v1318_v37, %v2271_v27 }
 0x15b   :  { %v1320_v42 = vadd.f32 %v2263_v14, %v1319_v61  ;;  %v1453_v46 = vadd.f32 %v1452_v39, %v1390_v40  ;;  %v1395_v14 = vmul.f32 %v2287_v44, %v2287_v44 }
 0x15d   :  { %v1454_v48 = vadd.f32 %v1453_v46, %v1391_v49  ;;  %v1321_v51 = vadd.f32 %v2267_v21, %v1320_v42  ;;  %v1396_v21 = vmul.f32 %v2291_v55, %v2291_v55 }
 0x15f   :  { %v1322_v43 = vadd.f32 %v1321_v51, %v2289_v47  ;;  %v1455_v53 = vadd.f32 %v1454_v48, %v1392_v57  ;;  %v1397_v47 = vmul.f32 %v2313_v18, %v2313_v18 }
 0x161   :  { %v1456_v56 = vadd.f32 %v1455_v53, %v1393_v16  ;;  %v1323_v27 = vadd.f32 %v1322_v43, %v2295_v60 }
 0x163   :  { %v1324_v50 = vadd.f32 %v2287_v44, %v1323_v27  ;;  %v1457_v63 = vadd.f32 %v1456_v56, %v1394_v59  ;;  %v1399_v44 = vmul.f32 %v2311_v15, %v2311_v15 }
 0x165   :  { %v1458_v41 = vadd.f32 %v1457_v63, %v1395_v14  ;;  %v1325_v1 = vadd.f32 %v2291_v55, %v1324_v50  ;;  %v1400_v55 = vmul.f32 %v2315_v26, %v2315_v26 }
 0x167   :  { %v1326_v2 = vadd.f32 %v1325_v1, %v2313_v18  ;;  %v1459_v45 = vadd.f32 %v1458_v41, %v1396_v21  ;;  %v1401_v18 = vmul.f32 %v2337_v58, %v2337_v58 }
 0x169   :  { %v1460_v4 = vadd.f32 %v1459_v45, %v1397_v47  ;;  %v1327_v60 = vadd.f32 %v1326_v2, %v2319_v32 }
 0x16b   :  { %v1328_v0 = vadd.f32 %v2311_v15, %v1327_v60  ;;  %v1461_v7 = vadd.f32 %v1460_v4, %v1398_v6  ;;  %v1403_v15 = vmul.f32 %v2335_v54, %v2335_v54 }
 0x16d   :  { %v1462_v10 = vadd.f32 %v1461_v7, %v1399_v44  ;;  %v1329_v11 = vadd.f32 %v2315_v26, %v1328_v0  ;;  %v1404_v26 = vmul.f32 %v2339_v3, %v2339_v3 }
 0x16f   :  { %v1330_v9 = vadd.f32 %v1329_v11, %v2337_v58  ;;  %v1463_v12 = vadd.f32 %v1462_v10, %v1400_v55 }
 0x171   :  { %v1464_v62 = vadd.f32 %v1463_v12, %v1401_v18  ;;  %v1331_v32 = vadd.f32 %v1330_v9, %v2343_v8 }
 0x173   :  { %v1332_v17 = vadd.f32 %v2335_v54, %v1331_v32  ;;  %v1465_v5 = vadd.f32 %v1464_v62, %v1402_v13 }
 0x175   :  { %v1333_v19 = vadd.f32 %v2339_v3, %v1332_v17  ;;  %v1466_v20 = vadd.f32 %v1465_v5, %v1403_v15 }
 0x177   :  { %v1334_v58 = vrot.slane %v1333_v19, 4  ;;  %v1467_v24 = vadd.f32 %v1466_v20, %v1404_v26 }
 0x179   :  { %v1335_v23 = vadd.f32 %v1334_v58, %v1333_v19  ;;  %v1468_v25 = vrot.slane %v1467_v24, 4 }
 0x17b   :  { %v1336_v28 = vrot.slane %v1335_v23, 2  ;;  %v1469_v33 = vadd.f32 %v1468_v25, %v1467_v24 }
 0x17d   :  { %v1337_v30 = vadd.f32 %v1336_v28, %v1335_v23  ;;  %v1470_v8 = vrot.slane %v1469_v33, 2 }
 0x17f   :  { %v1338_v22 = vrot.slane %v1337_v30, 1  ;;  %v1471_v31 = vadd.f32 %v1470_v8, %v1469_v33 }
 0x181   :  { %v1339_v34 = vadd.f32 %v1338_v22, %v1337_v30  ;;  %v1472_v29 = vrot.slane %v1471_v31, 1 }
 0x183   :  { %1340 = vst [vmem:[%s2464_s3] sm:$0x1] %v1339_v34  ;;  %v1473_v54 = vadd.f32 %v1472_v29, %v1471_v31 }
 0x185   :  { %1474 = vst [vmem:[%s2465_s4] sm:$0x1] %v1473_v54 }

// kernel: discriminator_forward.13
= control target key start
LH: loop header
LB: loop body
LE: loop exit
PB: predicated region body
PF: predicated region fallthrough
CT: control target
= control target key end

     0   :  { %s1631_s0 = inlined_call_operand.vmem [shape: bf16[512,128], index: 0, kind: input, shape index: {}, may-alias: {0,3}]   ;;  %s1632_s1 = inlined_call_operand.vmem [shape: f32[1,128], index: 1, kind: input, shape index: {}]   ;;  %s1633_s2 = inlined_call_operand.vmem [shape: f32[1,128], index: 2, kind: input, shape index: {}]   ;;  %s1634_s3 = inlined_call_operand.vmem [shape: bf16[512,128], index: 3, kind: output, shape index: {}, may-alias: {0,3}]  }
   0x1   :  { %v931_v0 = vld [vmem:[%s1631_s0] sm:$0xff]   ;;  %v1218_v4 = vld [vmem:[%s1631_s0 + $0x8] sm:$0xff]   ;;  %v1219_v5 = vld [vmem:[%s1631_s0 + $0x10] sm:$0xff]  }
   0x2   :  { %v1306_v1 = vld [vmem:[%s1632_s1] ss:$0 sm:$0xff]  ;;  %v932_v2 = vunpack.c.l.bf16 %v931_v0  ;;  %v933_v3 = vunpack.c.h.bf16 %v931_v0  ;;  %v1220_v6 = vld [vmem:[%s1631_s0 + $0x18] sm:$0xff]   ;;  %v936_v8 = vunpack.c.l.bf16 %v1218_v4  ;;  %v937_v9 = vunpack.c.h.bf16 %v1218_v4  ;;  %v1222_v35 = vld [vmem:[%s1631_s0 + $0x28] sm:$0xff]  }
   0x3   :  { %v1320_v7 = vld [vmem:[%s1633_s2] ss:$0 sm:$0xff]  ;;  %v940_v10 = vunpack.c.l.bf16 %v1219_v5  ;;  %v941_v11 = vunpack.c.h.bf16 %v1219_v5  ;;  %v944_v14 = vunpack.c.l.bf16 %v1220_v6  ;;  %v945_v15 = vunpack.c.h.bf16 %v1220_v6 }
   0x4   :  { %v149_v12 = vmul.f32 %v932_v2, %v1306_v1  ;;  %v150_v13 = vmul.f32 %v933_v3, %v1306_v1  ;;  %v151_v16 = vmul.f32 %v936_v8, %v1306_v1  ;;  %v152_v17 = vmul.f32 %v937_v9, %v1306_v1  ;;  %v1221_v34 = vld [vmem:[%s1631_s0 + $0x20] sm:$0xff]  }
   0x5   :  { %v153_v18 = vmul.f32 %v940_v10, %v1306_v1  ;;  %v154_v19 = vmul.f32 %v941_v11, %v1306_v1  ;;  %v155_v22 = vmul.f32 %v944_v14, %v1306_v1  ;;  %v156_v23 = vmul.f32 %v945_v15, %v1306_v1 }
   0x6   :  { %v220_v20 = vadd.f32 %v1320_v7, %v149_v12  ;;  %v221_v21 = vadd.f32 %v1320_v7, %v150_v13  ;;  %v222_v24 = vadd.f32 %v1320_v7, %v151_v16  ;;  %v223_v25 = vadd.f32 %v1320_v7, %v152_v17 }
   0x7   :  { %v224_v26 = vadd.f32 %v1320_v7, %v153_v18  ;;  %v225_v27 = vadd.f32 %v1320_v7, %v154_v19  ;;  %v226_v42 = vadd.f32 %v1320_v7, %v155_v22  ;;  %v227_v43 = vadd.f32 %v1320_v7, %v156_v23 }
   0x8   :  { %vm284_vm0 = vcmp.gt.f32.partialorder %v220_v20, 0.0  ;;  %vm285_vm1 = vcmp.gt.f32.partialorder %v221_v21, 0.0  ;;  %v348_v28 = vmul.f32 0.2, %v220_v20  ;;  %v349_v29 = vmul.f32 0.2, %v221_v21 }
   0x9   :  { %vm286_vm2 = vcmp.gt.f32.partialorder %v222_v24, 0.0  ;;  %vm287_vm3 = vcmp.gt.f32.partialorder %v223_v25, 0.0  ;;  %v350_v30 = vmul.f32 0.2, %v222_v24  ;;  %v351_v31 = vmul.f32 0.2, %v223_v25 }
   0xa   :  { %v412_v32 = vsel %vm284_vm0, %v220_v20, %v348_v28  ;;  %v413_v33 = vsel %vm285_vm1, %v221_v21, %v349_v29  ;;  %vm288_vm4 = vcmp.gt.f32.partialorder %v224_v26, 0.0  ;;  %vm289_vm5 = vcmp.gt.f32.partialorder %v225_v27, 0.0 }
   0xb   :  { %v1061_v36 = vpack.c.bf16 %v413_v33, %v412_v32  ;;  %v414_v37 = vsel %vm286_vm2, %v222_v24, %v350_v30  ;;  %v415_v38 = vsel %vm287_vm3, %v223_v25, %v351_v31  ;;  %v352_v39 = vmul.f32 0.2, %v224_v26 }
   0xc   :  { %v1066_v40 = vpack.c.bf16 %v415_v38, %v414_v37  ;;  %v353_v41 = vmul.f32 0.2, %v225_v27  ;;  %v948_v45 = vunpack.c.l.bf16 %v1221_v34  ;;  %v949_v46 = vunpack.c.h.bf16 %v1221_v34 }
   0xd   :  { %1062 = vst [vmem:[%s1634_s3] sm:$0xff] %v1061_v36   ;;  %v416_v44 = vsel %vm288_vm4, %v224_v26, %v352_v39  ;;  %v952_v47 = vunpack.c.l.bf16 %v1222_v35  ;;  %vm290_vm6 = vcmp.gt.f32.partialorder %v226_v42, 0.0  ;;  %vm291_vm7 = vcmp.gt.f32.partialorder %v227_v43, 0.0 }
   0xe   :  { %v417_v49 = vsel %vm289_vm5, %v225_v27, %v353_v41  ;;  %v354_v50 = vmul.f32 0.2, %v226_v42  ;;  %v355_v52 = vmul.f32 0.2, %v227_v43  ;;  %v157_v53 = vmul.f32 %v948_v45, %v1306_v1 }
   0xf   :  { %v1071_v51 = vpack.c.bf16 %v417_v49, %v416_v44  ;;  %v158_v54 = vmul.f32 %v949_v46, %v1306_v1  ;;  %v953_v56 = vunpack.c.h.bf16 %v1222_v35  ;;  %v159_v57 = vmul.f32 %v952_v47, %v1306_v1 }
  0x10   :  { %v418_v55 = vsel %vm290_vm6, %v226_v42, %v354_v50  ;;  %v419_v59 = vsel %vm291_vm7, %v227_v43, %v355_v52  ;;  %v228_v60 = vadd.f32 %v1320_v7, %v157_v53 }
  0x11   :  { %v229_v61 = vadd.f32 %v1320_v7, %v158_v54  ;;  %v1076_v63 = vpack.c.bf16 %v419_v59, %v418_v55  ;;  %v160_v0 = vmul.f32 %v953_v56, %v1306_v1  ;;  %v230_v2 = vadd.f32 %v1320_v7, %v159_v57 }
  0x12   :  { %vm292_vm8 = vcmp.gt.f32.partialorder %v228_v60, 0.0  ;;  %v356_v5 = vmul.f32 0.2, %v228_v60 }
  0x13   :  { %vm293_vm9 = vcmp.gt.f32.partialorder %v229_v61, 0.0  ;;  %v357_v6 = vmul.f32 0.2, %v229_v61  ;;  %v231_v8 = vadd.f32 %v1320_v7, %v160_v0  ;;  %vm294_vm10 = vcmp.gt.f32.partialorder %v230_v2, 0.0 }
  0x14   :  { %v1223_v48 = vld [vmem:[%s1631_s0 + $0x30] sm:$0xff]   ;;  %v358_v9 = vmul.f32 0.2, %v230_v2  ;;  %v420_v11 = vsel %vm292_vm8, %v228_v60, %v356_v5 }
  0x15   :  { %1249 = vst [vmem:[%s1634_s3 + $0x8] sm:$0xff] %v1066_v40   ;;  %v956_v58 = vunpack.c.l.bf16 %v1223_v48  ;;  %1250 = vst [vmem:[%s1634_s3 + $0x10] sm:$0xff] %v1071_v51   ;;  %v957_v62 = vunpack.c.h.bf16 %v1223_v48  ;;  %v421_v12 = vsel %vm293_vm9, %v229_v61, %v357_v6  ;;  %vm295_vm11 = vcmp.gt.f32.partialorder %v231_v8, 0.0 }
  0x16   :  { %v1081_v16 = vpack.c.bf16 %v421_v12, %v420_v11  ;;  %v359_v17 = vmul.f32 0.2, %v231_v8  ;;  %v422_v18 = vsel %vm294_vm10, %v230_v2, %v358_v9 }
  0x17   :  { %v161_v3 = vmul.f32 %v956_v58, %v1306_v1  ;;  %v162_v10 = vmul.f32 %v957_v62, %v1306_v1 }
  0x18   :  { %v423_v22 = vsel %vm295_vm11, %v231_v8, %v359_v17 }
  0x19   :  { %v232_v13 = vadd.f32 %v1320_v7, %v161_v3  ;;  %v233_v19 = vadd.f32 %v1320_v7, %v162_v10  ;;  %v1086_v28 = vpack.c.bf16 %v423_v22, %v422_v18 }
  0x1b   :  { %vm296_vm12 = vcmp.gt.f32.partialorder %v232_v13, 0.0  ;;  %v360_v20 = vmul.f32 0.2, %v232_v13  ;;  %vm297_vm13 = vcmp.gt.f32.partialorder %v233_v19, 0.0  ;;  %v361_v29 = vmul.f32 0.2, %v233_v19 }
  0x1c   :  { %v1224_v4 = vld [vmem:[%s1631_s0 + $0x38] sm:$0xff]  }
  0x1d   :  { %1251 = vst [vmem:[%s1634_s3 + $0x18] sm:$0xff] %v1076_v63   ;;  %v960_v14 = vunpack.c.l.bf16 %v1224_v4  ;;  %v961_v21 = vunpack.c.h.bf16 %v1224_v4  ;;  %v424_v30 = vsel %vm296_vm12, %v232_v13, %v360_v20  ;;  %v425_v35 = vsel %vm297_vm13, %v233_v19, %v361_v29 }
  0x1e   :  { %v1091_v39 = vpack.c.bf16 %v425_v35, %v424_v30 }
  0x1f   :  { %v163_v23 = vmul.f32 %v960_v14, %v1306_v1  ;;  %v164_v31 = vmul.f32 %v961_v21, %v1306_v1 }
  0x21   :  { %v234_v32 = vadd.f32 %v1320_v7, %v163_v23  ;;  %v235_v40 = vadd.f32 %v1320_v7, %v164_v31 }
  0x23   :  { %vm298_vm14 = vcmp.gt.f32.partialorder %v234_v32, 0.0  ;;  %v362_v41 = vmul.f32 0.2, %v234_v32  ;;  %vm299_vm15 = vcmp.gt.f32.partialorder %v235_v40, 0.0  ;;  %v363_v46 = vmul.f32 0.2, %v235_v40 }
  0x24   :  { %v1225_v15 = vld [vmem:[%s1631_s0 + $0x40] sm:$0xff]  }
  0x25   :  { %1252 = vst [vmem:[%s1634_s3 + $0x20] sm:$0xff] %v1081_v16   ;;  %v964_v24 = vunpack.c.l.bf16 %v1225_v15  ;;  %v965_v25 = vunpack.c.h.bf16 %v1225_v15  ;;  %v426_v47 = vsel %vm298_vm14, %v234_v32, %v362_v41  ;;  %v427_v51 = vsel %vm299_vm15, %v235_v40, %v363_v46 }
  0x26   :  { %v1096_v56 = vpack.c.bf16 %v427_v51, %v426_v47 }
  0x27   :  { %v165_v33 = vmul.f32 %v964_v24, %v1306_v1  ;;  %v166_v34 = vmul.f32 %v965_v25, %v1306_v1 }
  0x29   :  { %v236_v42 = vadd.f32 %v1320_v7, %v165_v33  ;;  %v237_v43 = vadd.f32 %v1320_v7, %v166_v34 }
  0x2b   :  { %vm300_vm0 = vcmp.gt.f32.partialorder %v236_v42, 0.0  ;;  %vm301_vm1 = vcmp.gt.f32.partialorder %v237_v43, 0.0  ;;  %v364_v49 = vmul.f32 0.2, %v236_v42  ;;  %v365_v50 = vmul.f32 0.2, %v237_v43 }
  0x2c   :  { %v1226_v26 = vld [vmem:[%s1631_s0 + $0x48] sm:$0xff]   ;;  %v1227_v27 = vld [vmem:[%s1631_s0 + $0x50] sm:$0xff]  }
  0x2d   :  { %1253 = vst [vmem:[%s1634_s3 + $0x28] sm:$0xff] %v1086_v28   ;;  %v968_v36 = vunpack.c.l.bf16 %v1226_v26  ;;  %v969_v37 = vunpack.c.h.bf16 %v1226_v26  ;;  %v972_v38 = vunpack.c.l.bf16 %v1227_v27  ;;  %1254 = vst [vmem:[%s1634_s3 + $0x30] sm:$0xff] %v1091_v39   ;;  %v973_v48 = vunpack.c.h.bf16 %v1227_v27 }
  0x2e   :  { %v428_v57 = vsel %vm300_vm0, %v236_v42, %v364_v49  ;;  %v429_v58 = vsel %vm301_vm1, %v237_v43, %v365_v50 }
  0x2f   :  { %v167_v44 = vmul.f32 %v968_v36, %v1306_v1  ;;  %v168_v45 = vmul.f32 %v969_v37, %v1306_v1  ;;  %v169_v54 = vmul.f32 %v972_v38, %v1306_v1  ;;  %v170_v59 = vmul.f32 %v973_v48, %v1306_v1 }
  0x30   :  { %v1101_v61 = vpack.c.bf16 %v429_v58, %v428_v57 }
  0x31   :  { %v238_v52 = vadd.f32 %v1320_v7, %v167_v44  ;;  %v239_v53 = vadd.f32 %v1320_v7, %v168_v45  ;;  %v240_v0 = vadd.f32 %v1320_v7, %v169_v54  ;;  %v241_v2 = vadd.f32 %v1320_v7, %v170_v59 }
  0x33   :  { %vm302_vm2 = vcmp.gt.f32.partialorder %v238_v52, 0.0  ;;  %vm303_vm3 = vcmp.gt.f32.partialorder %v239_v53, 0.0  ;;  %v366_v62 = vmul.f32 0.2, %v238_v52  ;;  %v367_v63 = vmul.f32 0.2, %v239_v53 }
  0x34   :  { %v1228_v55 = vld [vmem:[%s1631_s0 + $0x58] sm:$0xff]   ;;  %v1229_v60 = vld [vmem:[%s1631_s0 + $0x60] sm:$0xff]   ;;  %vm304_vm4 = vcmp.gt.f32.partialorder %v240_v0, 0.0  ;;  %vm305_vm5 = vcmp.gt.f32.partialorder %v241_v2, 0.0  ;;  %v368_v11 = vmul.f32 0.2, %v240_v0 }
  0x35   :  { %1255 = vst [vmem:[%s1634_s3 + $0x38] sm:$0xff] %v1096_v56   ;;  %v976_v3 = vunpack.c.l.bf16 %v1228_v55  ;;  %1256 = vst [vmem:[%s1634_s3 + $0x40] sm:$0xff] %v1101_v61   ;;  %v430_v4 = vsel %vm302_vm2, %v238_v52, %v366_v62  ;;  %v977_v5 = vunpack.c.h.bf16 %v1228_v55  ;;  %v980_v6 = vunpack.c.l.bf16 %v1229_v60 }
  0x36   :  { %v981_v8 = vunpack.c.h.bf16 %v1229_v60  ;;  %v431_v10 = vsel %vm303_vm3, %v239_v53, %v367_v63  ;;  %v369_v13 = vmul.f32 0.2, %v241_v2  ;;  %v432_v16 = vsel %vm304_vm4, %v240_v0, %v368_v11 }
  0x37   :  { %v1106_v12 = vpack.c.bf16 %v431_v10, %v430_v4  ;;  %v171_v14 = vmul.f32 %v976_v3, %v1306_v1  ;;  %v172_v15 = vmul.f32 %v977_v5, %v1306_v1  ;;  %v173_v17 = vmul.f32 %v980_v6, %v1306_v1 }
  0x38   :  { %v174_v18 = vmul.f32 %v981_v8, %v1306_v1  ;;  %v433_v20 = vsel %vm305_vm5, %v241_v2, %v369_v13 }
  0x39   :  { %v242_v21 = vadd.f32 %v1320_v7, %v171_v14  ;;  %v243_v22 = vadd.f32 %v1320_v7, %v172_v15  ;;  %v1111_v24 = vpack.c.bf16 %v433_v20, %v432_v16  ;;  %v244_v25 = vadd.f32 %v1320_v7, %v173_v17 }
  0x3a   :  { %v245_v26 = vadd.f32 %v1320_v7, %v174_v18 }
  0x3b   :  { %vm306_vm6 = vcmp.gt.f32.partialorder %v242_v21, 0.0  ;;  %vm307_vm7 = vcmp.gt.f32.partialorder %v243_v22, 0.0  ;;  %v370_v29 = vmul.f32 0.2, %v242_v21  ;;  %v371_v30 = vmul.f32 0.2, %v243_v22 }
  0x3c   :  { %v1230_v9 = vld [vmem:[%s1631_s0 + $0x68] sm:$0xff]   ;;  %vm308_vm8 = vcmp.gt.f32.partialorder %v244_v25, 0.0  ;;  %vm309_vm9 = vcmp.gt.f32.partialorder %v245_v26, 0.0  ;;  %v372_v31 = vmul.f32 0.2, %v244_v25 }
  0x3d   :  { %v984_v19 = vunpack.c.l.bf16 %v1230_v9  ;;  %1257 = vst [vmem:[%s1634_s3 + $0x48] sm:$0xff] %v1106_v12   ;;  %v985_v23 = vunpack.c.h.bf16 %v1230_v9  ;;  %v373_v32 = vmul.f32 0.2, %v245_v26  ;;  %v434_v33 = vsel %vm306_vm6, %v242_v21, %v370_v29 }
  0x3e   :  { %v435_v34 = vsel %vm307_vm7, %v243_v22, %v371_v30  ;;  %v436_v39 = vsel %vm308_vm8, %v244_v25, %v372_v31 }
  0x3f   :  { %v175_v27 = vmul.f32 %v984_v19, %v1306_v1  ;;  %v176_v35 = vmul.f32 %v985_v23, %v1306_v1  ;;  %v1116_v38 = vpack.c.bf16 %v435_v34, %v434_v33  ;;  %v437_v40 = vsel %vm309_vm9, %v245_v26, %v373_v32 }
  0x40   :  { %v1121_v43 = vpack.c.bf16 %v437_v40, %v436_v39 }
  0x41   :  { %v246_v36 = vadd.f32 %v1320_v7, %v175_v27  ;;  %v247_v44 = vadd.f32 %v1320_v7, %v176_v35 }
  0x43   :  { %vm310_vm10 = vcmp.gt.f32.partialorder %v246_v36, 0.0  ;;  %v374_v45 = vmul.f32 0.2, %v246_v36  ;;  %vm311_vm11 = vcmp.gt.f32.partialorder %v247_v44, 0.0  ;;  %v375_v51 = vmul.f32 0.2, %v247_v44 }
  0x44   :  { %v1231_v28 = vld [vmem:[%s1631_s0 + $0x70] sm:$0xff]  }
  0x45   :  { %1258 = vst [vmem:[%s1634_s3 + $0x50] sm:$0xff] %v1111_v24   ;;  %v988_v41 = vunpack.c.l.bf16 %v1231_v28  ;;  %v989_v46 = vunpack.c.h.bf16 %v1231_v28  ;;  %v438_v52 = vsel %vm310_vm10, %v246_v36, %v374_v45  ;;  %v439_v58 = vsel %vm311_vm11, %v247_v44, %v375_v51 }
  0x46   :  { %v1126_v62 = vpack.c.bf16 %v439_v58, %v438_v52 }
  0x47   :  { %v177_v47 = vmul.f32 %v988_v41, %v1306_v1  ;;  %v178_v54 = vmul.f32 %v989_v46, %v1306_v1 }
  0x49   :  { %v248_v55 = vadd.f32 %v1320_v7, %v177_v47  ;;  %v249_v63 = vadd.f32 %v1320_v7, %v178_v54 }
  0x4b   :  { %vm312_vm12 = vcmp.gt.f32.partialorder %v248_v55, 0.0  ;;  %v376_v0 = vmul.f32 0.2, %v248_v55  ;;  %vm313_vm13 = vcmp.gt.f32.partialorder %v249_v63, 0.0  ;;  %v377_v6 = vmul.f32 0.2, %v249_v63 }
  0x4c   :  { %v1232_v37 = vld [vmem:[%s1631_s0 + $0x78] sm:$0xff]   ;;  %v1233_v42 = vld [vmem:[%s1631_s0 + $0x80] sm:$0xff]  }
  0x4d   :  { %1259 = vst [vmem:[%s1634_s3 + $0x58] sm:$0xff] %v1116_v38   ;;  %v992_v48 = vunpack.c.l.bf16 %v1232_v37  ;;  %v993_v49 = vunpack.c.h.bf16 %v1232_v37  ;;  %v996_v53 = vunpack.c.l.bf16 %v1233_v42  ;;  %v997_v59 = vunpack.c.h.bf16 %v1233_v42 }
  0x4e   :  { %v440_v8 = vsel %vm312_vm12, %v248_v55, %v376_v0  ;;  %v441_v12 = vsel %vm313_vm13, %v249_v63, %v377_v6 }
  0x4f   :  { %v179_v56 = vmul.f32 %v992_v48, %v1306_v1  ;;  %v180_v57 = vmul.f32 %v993_v49, %v1306_v1  ;;  %v181_v60 = vmul.f32 %v996_v53, %v1306_v1  ;;  %v182_v4 = vmul.f32 %v997_v59, %v1306_v1 }
  0x50   :  { %v1131_v16 = vpack.c.bf16 %v441_v12, %v440_v8 }
  0x51   :  { %v250_v2 = vadd.f32 %v1320_v7, %v179_v56  ;;  %v251_v3 = vadd.f32 %v1320_v7, %v180_v57  ;;  %v252_v5 = vadd.f32 %v1320_v7, %v181_v60  ;;  %v253_v13 = vadd.f32 %v1320_v7, %v182_v4 }
  0x53   :  { %vm314_vm14 = vcmp.gt.f32.partialorder %v250_v2, 0.0  ;;  %vm315_vm15 = vcmp.gt.f32.partialorder %v251_v3, 0.0  ;;  %v378_v10 = vmul.f32 0.2, %v250_v2  ;;  %v379_v11 = vmul.f32 0.2, %v251_v3 }
  0x54   :  { %v1234_v50 = vld [vmem:[%s1631_s0 + $0x88] sm:$0xff]   ;;  %vm316_vm0 = vcmp.gt.f32.partialorder %v252_v5, 0.0  ;;  %v380_v14 = vmul.f32 0.2, %v252_v5  ;;  %vm317_vm1 = vcmp.gt.f32.partialorder %v253_v13, 0.0 }
  0x55   :  { %1260 = vst [vmem:[%s1634_s3 + $0x60] sm:$0xff] %v1121_v43   ;;  %v1000_v61 = vunpack.c.l.bf16 %v1234_v50  ;;  %1261 = vst [vmem:[%s1634_s3 + $0x68] sm:$0xff] %v1126_v62   ;;  %v1001_v9 = vunpack.c.h.bf16 %v1234_v50  ;;  %v442_v17 = vsel %vm314_vm14, %v250_v2, %v378_v10  ;;  %v443_v18 = vsel %vm315_vm15, %v251_v3, %v379_v11 }
  0x56   :  { %v1136_v22 = vpack.c.bf16 %v443_v18, %v442_v17  ;;  %v381_v23 = vmul.f32 0.2, %v253_v13  ;;  %v444_v24 = vsel %vm316_vm0, %v252_v5, %v380_v14 }
  0x57   :  { %v183_v19 = vmul.f32 %v1000_v61, %v1306_v1  ;;  %v184_v25 = vmul.f32 %v1001_v9, %v1306_v1 }
  0x58   :  { %v445_v29 = vsel %vm317_vm1, %v253_v13, %v381_v23 }
  0x59   :  { %v254_v26 = vadd.f32 %v1320_v7, %v183_v19  ;;  %v1141_v33 = vpack.c.bf16 %v445_v29, %v444_v24  ;;  %v255_v34 = vadd.f32 %v1320_v7, %v184_v25 }
  0x5b   :  { %vm318_vm2 = vcmp.gt.f32.partialorder %v254_v26, 0.0  ;;  %v382_v35 = vmul.f32 0.2, %v254_v26  ;;  %vm319_vm3 = vcmp.gt.f32.partialorder %v255_v34, 0.0  ;;  %v383_v41 = vmul.f32 0.2, %v255_v34 }
  0x5c   :  { %v1235_v15 = vld [vmem:[%s1631_s0 + $0x90] sm:$0xff]   ;;  %v1236_v20 = vld [vmem:[%s1631_s0 + $0x98] sm:$0xff]   ;;  %v1237_v21 = vld [vmem:[%s1631_s0 + $0xa0] sm:$0xff]  }
  0x5d   :  { %1262 = vst [vmem:[%s1634_s3 + $0x70] sm:$0xff] %v1131_v16   ;;  %v1004_v27 = vunpack.c.l.bf16 %v1235_v15  ;;  %v1005_v28 = vunpack.c.h.bf16 %v1235_v15  ;;  %1263 = vst [vmem:[%s1634_s3 + $0x78] sm:$0xff] %v1136_v22   ;;  %v1008_v30 = vunpack.c.l.bf16 %v1236_v20  ;;  %v1009_v31 = vunpack.c.h.bf16 %v1236_v20 }
  0x5e   :  { %v1012_v32 = vunpack.c.l.bf16 %v1237_v21  ;;  %v446_v42 = vsel %vm318_vm2, %v254_v26, %v382_v35  ;;  %v1013_v43 = vunpack.c.h.bf16 %v1237_v21  ;;  %v447_v48 = vsel %vm319_vm3, %v255_v34, %v383_v41 }
  0x5f   :  { %v185_v36 = vmul.f32 %v1004_v27, %v1306_v1  ;;  %v186_v37 = vmul.f32 %v1005_v28, %v1306_v1  ;;  %v187_v38 = vmul.f32 %v1008_v30, %v1306_v1  ;;  %v188_v39 = vmul.f32 %v1009_v31, %v1306_v1 }
  0x60   :  { %v189_v49 = vmul.f32 %v1012_v32, %v1306_v1  ;;  %v190_v50 = vmul.f32 %v1013_v43, %v1306_v1  ;;  %v1146_v52 = vpack.c.bf16 %v447_v48, %v446_v42 }
  0x61   :  { %v256_v44 = vadd.f32 %v1320_v7, %v185_v36  ;;  %v257_v45 = vadd.f32 %v1320_v7, %v186_v37  ;;  %v258_v46 = vadd.f32 %v1320_v7, %v187_v38  ;;  %v259_v47 = vadd.f32 %v1320_v7, %v188_v39 }
  0x62   :  { %v260_v58 = vadd.f32 %v1320_v7, %v189_v49  ;;  %v261_v59 = vadd.f32 %v1320_v7, %v190_v50 }
  0x63   :  { %vm320_vm4 = vcmp.gt.f32.partialorder %v256_v44, 0.0  ;;  %vm321_vm5 = vcmp.gt.f32.partialorder %v257_v45, 0.0  ;;  %v384_v53 = vmul.f32 0.2, %v256_v44  ;;  %v385_v54 = vmul.f32 0.2, %v257_v45 }
  0x64   :  { %v1238_v40 = vld [vmem:[%s1631_s0 + $0xa8] sm:$0xff]   ;;  %vm322_vm6 = vcmp.gt.f32.partialorder %v258_v46, 0.0  ;;  %vm323_vm7 = vcmp.gt.f32.partialorder %v259_v47, 0.0  ;;  %v386_v55 = vmul.f32 0.2, %v258_v46  ;;  %vm324_vm8 = vcmp.gt.f32.partialorder %v260_v58, 0.0 }
  0x65   :  { %1264 = vst [vmem:[%s1634_s3 + $0x80] sm:$0xff] %v1141_v33   ;;  %v1016_v51 = vunpack.c.l.bf16 %v1238_v40  ;;  %1265 = vst [vmem:[%s1634_s3 + $0x88] sm:$0xff] %v1146_v52   ;;  %v448_v56 = vsel %vm320_vm4, %v256_v44, %v384_v53  ;;  %v387_v57 = vmul.f32 0.2, %v259_v47  ;;  %v449_v60 = vsel %vm321_vm5, %v257_v45, %v385_v54 }
  0x66   :  { %v450_v61 = vsel %vm322_vm6, %v258_v46, %v386_v55  ;;  %v1017_v62 = vunpack.c.h.bf16 %v1238_v40  ;;  %v1151_v3 = vpack.c.bf16 %v449_v60, %v448_v56  ;;  %vm325_vm9 = vcmp.gt.f32.partialorder %v261_v59, 0.0 }
  0x67   :  { %v191_v63 = vmul.f32 %v1016_v51, %v1306_v1  ;;  %v451_v4 = vsel %vm323_vm7, %v259_v47, %v387_v57  ;;  %v388_v6 = vmul.f32 0.2, %v260_v58  ;;  %v389_v8 = vmul.f32 0.2, %v261_v59 }
  0x68   :  { %v1156_v5 = vpack.c.bf16 %v451_v4, %v450_v61  ;;  %v192_v9 = vmul.f32 %v1017_v62, %v1306_v1 }
  0x69   :  { %v262_v10 = vadd.f32 %v1320_v7, %v191_v63  ;;  %v452_v14 = vsel %vm324_vm8, %v260_v58, %v388_v6  ;;  %v453_v15 = vsel %vm325_vm9, %v261_v59, %v389_v8 }
  0x6a   :  { %v263_v16 = vadd.f32 %v1320_v7, %v192_v9  ;;  %v1161_v19 = vpack.c.bf16 %v453_v15, %v452_v14 }
  0x6b   :  { %vm326_vm10 = vcmp.gt.f32.partialorder %v262_v10, 0.0  ;;  %v390_v20 = vmul.f32 0.2, %v262_v10 }
  0x6c   :  { %v1239_v0 = vld [vmem:[%s1631_s0 + $0xb0] sm:$0xff]   ;;  %v1240_v2 = vld [vmem:[%s1631_s0 + $0xb8] sm:$0xff]   ;;  %vm327_vm11 = vcmp.gt.f32.partialorder %v263_v16, 0.0  ;;  %v391_v22 = vmul.f32 0.2, %v263_v16 }
  0x6d   :  { %1266 = vst [vmem:[%s1634_s3 + $0x90] sm:$0xff] %v1151_v3   ;;  %v1020_v11 = vunpack.c.l.bf16 %v1239_v0  ;;  %v1021_v12 = vunpack.c.h.bf16 %v1239_v0  ;;  %v1024_v13 = vunpack.c.l.bf16 %v1240_v2  ;;  %1267 = vst [vmem:[%s1634_s3 + $0x98] sm:$0xff] %v1156_v5   ;;  %v1025_v17 = vunpack.c.h.bf16 %v1240_v2 }
  0x6e   :  { %v454_v25 = vsel %vm326_vm10, %v262_v10, %v390_v20  ;;  %v455_v29 = vsel %vm327_vm11, %v263_v16, %v391_v22 }
  0x6f   :  { %v193_v21 = vmul.f32 %v1020_v11, %v1306_v1  ;;  %v194_v23 = vmul.f32 %v1021_v12, %v1306_v1  ;;  %v195_v24 = vmul.f32 %v1024_v13, %v1306_v1  ;;  %v196_v27 = vmul.f32 %v1025_v17, %v1306_v1 }
  0x70   :  { %v1166_v33 = vpack.c.bf16 %v455_v29, %v454_v25 }
  0x71   :  { %v264_v26 = vadd.f32 %v1320_v7, %v193_v21  ;;  %v265_v30 = vadd.f32 %v1320_v7, %v194_v23  ;;  %v266_v31 = vadd.f32 %v1320_v7, %v195_v24  ;;  %v267_v35 = vadd.f32 %v1320_v7, %v196_v27 }
  0x73   :  { %vm328_vm12 = vcmp.gt.f32.partialorder %v264_v26, 0.0  ;;  %v392_v34 = vmul.f32 0.2, %v264_v26  ;;  %vm329_vm13 = vcmp.gt.f32.partialorder %v265_v30, 0.0  ;;  %v393_v37 = vmul.f32 0.2, %v265_v30 }
  0x74   :  { %v1241_v18 = vld [vmem:[%s1631_s0 + $0xc0] sm:$0xff]   ;;  %vm330_vm14 = vcmp.gt.f32.partialorder %v266_v31, 0.0  ;;  %v394_v38 = vmul.f32 0.2, %v266_v31  ;;  %vm331_vm15 = vcmp.gt.f32.partialorder %v267_v35, 0.0 }
  0x75   :  { %1268 = vst [vmem:[%s1634_s3 + $0xa0] sm:$0xff] %v1161_v19   ;;  %v1028_v28 = vunpack.c.l.bf16 %v1241_v18  ;;  %v1029_v32 = vunpack.c.h.bf16 %v1241_v18  ;;  %v456_v39 = vsel %vm328_vm12, %v264_v26, %v392_v34  ;;  %v395_v40 = vmul.f32 0.2, %v267_v35 }
  0x76   :  { %v457_v43 = vsel %vm329_vm13, %v265_v30, %v393_v37  ;;  %v458_v44 = vsel %vm330_vm14, %v266_v31, %v394_v38 }
  0x77   :  { %v197_v41 = vmul.f32 %v1028_v28, %v1306_v1  ;;  %v198_v45 = vmul.f32 %v1029_v32, %v1306_v1  ;;  %v1171_v47 = vpack.c.bf16 %v457_v43, %v456_v39  ;;  %v459_v48 = vsel %vm331_vm15, %v267_v35, %v395_v40 }
  0x78   :  { %v1176_v51 = vpack.c.bf16 %v459_v48, %v458_v44 }
  0x79   :  { %v268_v49 = vadd.f32 %v1320_v7, %v197_v41  ;;  %v269_v52 = vadd.f32 %v1320_v7, %v198_v45 }
  0x7b   :  { %vm332_vm0 = vcmp.gt.f32.partialorder %v268_v49, 0.0  ;;  %v396_v56 = vmul.f32 0.2, %v268_v49  ;;  %vm333_vm1 = vcmp.gt.f32.partialorder %v269_v52, 0.0  ;;  %v397_v59 = vmul.f32 0.2, %v269_v52 }
  0x7c   :  { %v1242_v36 = vld [vmem:[%s1631_s0 + $0xc8] sm:$0xff]  }
  0x7d   :  { %1269 = vst [vmem:[%s1634_s3 + $0xa8] sm:$0xff] %v1166_v33   ;;  %v1032_v46 = vunpack.c.l.bf16 %v1242_v36  ;;  %v1033_v50 = vunpack.c.h.bf16 %v1242_v36  ;;  %v460_v62 = vsel %vm332_vm0, %v268_v49, %v396_v56  ;;  %v461_v3 = vsel %vm333_vm1, %v269_v52, %v397_v59 }
  0x7e   :  { %v1181_v6 = vpack.c.bf16 %v461_v3, %v460_v62 }
  0x7f   :  { %v199_v53 = vmul.f32 %v1032_v46, %v1306_v1  ;;  %v200_v57 = vmul.f32 %v1033_v50, %v1306_v1 }
  0x81   :  { %v270_v60 = vadd.f32 %v1320_v7, %v199_v53  ;;  %v271_v63 = vadd.f32 %v1320_v7, %v200_v57 }
  0x83   :  { %vm334_vm2 = vcmp.gt.f32.partialorder %v270_v60, 0.0  ;;  %v398_v4 = vmul.f32 0.2, %v270_v60  ;;  %vm335_vm3 = vcmp.gt.f32.partialorder %v271_v63, 0.0  ;;  %v399_v8 = vmul.f32 0.2, %v271_v63 }
  0x84   :  { %v1243_v42 = vld [vmem:[%s1631_s0 + $0xd0] sm:$0xff]   ;;  %v1244_v55 = vld [vmem:[%s1631_s0 + $0xd8] sm:$0xff]  }
  0x85   :  { %v1036_v54 = vunpack.c.l.bf16 %v1243_v42  ;;  %1270 = vst [vmem:[%s1634_s3 + $0xb0] sm:$0xff] %v1171_v47   ;;  %v1037_v58 = vunpack.c.h.bf16 %v1243_v42  ;;  %1271 = vst [vmem:[%s1634_s3 + $0xb8] sm:$0xff] %v1176_v51   ;;  %v1040_v2 = vunpack.c.l.bf16 %v1244_v55  ;;  %v462_v11 = vsel %vm334_vm2, %v270_v60, %v398_v4 }
  0x86   :  { %v1041_v13 = vunpack.c.h.bf16 %v1244_v55  ;;  %v463_v15 = vsel %vm335_vm3, %v271_v63, %v399_v8 }
  0x87   :  { %v201_v61 = vmul.f32 %v1036_v54, %v1306_v1  ;;  %v202_v0 = vmul.f32 %v1037_v58, %v1306_v1  ;;  %v203_v17 = vmul.f32 %v1040_v2, %v1306_v1  ;;  %v1186_v18 = vpack.c.bf16 %v463_v15, %v462_v11 }
  0x88   :  { %v204_v20 = vmul.f32 %v1041_v13, %v1306_v1 }
  0x89   :  { %v272_v5 = vadd.f32 %v1320_v7, %v201_v61  ;;  %v273_v9 = vadd.f32 %v1320_v7, %v202_v0  ;;  %v274_v23 = vadd.f32 %v1320_v7, %v203_v17 }
  0x8a   :  { %v275_v27 = vadd.f32 %v1320_v7, %v204_v20 }
  0x8b   :  { %vm336_vm4 = vcmp.gt.f32.partialorder %v272_v5, 0.0  ;;  %v400_v12 = vmul.f32 0.2, %v272_v5  ;;  %vm337_vm5 = vcmp.gt.f32.partialorder %v273_v9, 0.0  ;;  %v401_v16 = vmul.f32 0.2, %v273_v9 }
  0x8c   :  { %v1245_v10 = vld [vmem:[%s1631_s0 + $0xe0] sm:$0xff]   ;;  %v1246_v14 = vld [vmem:[%s1631_s0 + $0xe8] sm:$0xff]   ;;  %vm338_vm6 = vcmp.gt.f32.partialorder %v274_v23, 0.0  ;;  %v402_v31 = vmul.f32 0.2, %v274_v23  ;;  %vm339_vm7 = vcmp.gt.f32.partialorder %v275_v27, 0.0 }
  0x8d   :  { %1272 = vst [vmem:[%s1634_s3 + $0xc0] sm:$0xff] %v1181_v6   ;;  %v464_v19 = vsel %vm336_vm4, %v272_v5, %v400_v12  ;;  %v1044_v21 = vunpack.c.l.bf16 %v1245_v10  ;;  %v465_v22 = vsel %vm337_vm5, %v273_v9, %v401_v16  ;;  %v1045_v24 = vunpack.c.h.bf16 %v1245_v10  ;;  %1273 = vst [vmem:[%s1634_s3 + $0xc8] sm:$0xff] %v1186_v18  }
  0x8e   :  { %v1048_v25 = vunpack.c.l.bf16 %v1246_v14  ;;  %v1191_v26 = vpack.c.bf16 %v465_v22, %v464_v19  ;;  %v1049_v29 = vunpack.c.h.bf16 %v1246_v14  ;;  %v403_v34 = vmul.f32 0.2, %v275_v27 }
  0x8f   :  { %v205_v28 = vmul.f32 %v1044_v21, %v1306_v1  ;;  %v206_v32 = vmul.f32 %v1045_v24, %v1306_v1  ;;  %v466_v37 = vsel %vm338_vm6, %v274_v23, %v402_v31 }
  0x90   :  { %v207_v33 = vmul.f32 %v1048_v25, %v1306_v1  ;;  %v208_v36 = vmul.f32 %v1049_v29, %v1306_v1  ;;  %v467_v41 = vsel %vm339_vm7, %v275_v27, %v403_v34 }
  0x91   :  { %v276_v35 = vadd.f32 %v1320_v7, %v205_v28  ;;  %v277_v38 = vadd.f32 %v1320_v7, %v206_v32  ;;  %v1196_v45 = vpack.c.bf16 %v467_v41, %v466_v37 }
  0x92   :  { %v278_v39 = vadd.f32 %v1320_v7, %v207_v33  ;;  %v279_v43 = vadd.f32 %v1320_v7, %v208_v36 }
  0x93   :  { %vm340_vm8 = vcmp.gt.f32.partialorder %v276_v35, 0.0  ;;  %v404_v42 = vmul.f32 0.2, %v276_v35  ;;  %vm341_vm9 = vcmp.gt.f32.partialorder %v277_v38, 0.0  ;;  %v405_v46 = vmul.f32 0.2, %v277_v38 }
  0x94   :  { %v1247_v30 = vld [vmem:[%s1631_s0 + $0xf0] sm:$0xff]   ;;  %vm342_vm10 = vcmp.gt.f32.partialorder %v278_v39, 0.0  ;;  %vm343_vm11 = vcmp.gt.f32.partialorder %v279_v43, 0.0  ;;  %v406_v48 = vmul.f32 0.2, %v278_v39 }
  0x95   :  { %1274 = vst [vmem:[%s1634_s3 + $0xd0] sm:$0xff] %v1191_v26   ;;  %v1052_v40 = vunpack.c.l.bf16 %v1247_v30  ;;  %v468_v47 = vsel %vm340_vm8, %v276_v35, %v404_v42  ;;  %v407_v49 = vmul.f32 0.2, %v279_v43  ;;  %v469_v50 = vsel %vm341_vm9, %v277_v38, %v405_v46 }
  0x96   :  { %v1053_v51 = vunpack.c.h.bf16 %v1247_v30  ;;  %v1201_v54 = vpack.c.bf16 %v469_v50, %v468_v47  ;;  %v470_v55 = vsel %vm342_vm10, %v278_v39, %v406_v48 }
  0x97   :  { %v209_v52 = vmul.f32 %v1052_v40, %v1306_v1  ;;  %v471_v56 = vsel %vm343_vm11, %v279_v43, %v407_v49 }
  0x98   :  { %v1206_v58 = vpack.c.bf16 %v471_v56, %v470_v55  ;;  %v210_v59 = vmul.f32 %v1053_v51, %v1306_v1 }
  0x99   :  { %v280_v60 = vadd.f32 %v1320_v7, %v209_v52 }
  0x9a   :  { %v281_v63 = vadd.f32 %v1320_v7, %v210_v59 }
  0x9b   :  { %vm344_vm12 = vcmp.gt.f32.partialorder %v280_v60, 0.0  ;;  %v408_v0 = vmul.f32 0.2, %v280_v60 }
  0x9c   :  { %v1248_v44 = vld [vmem:[%s1631_s0 + $0xf8] sm:$0xff]   ;;  %vm345_vm13 = vcmp.gt.f32.partialorder %v281_v63, 0.0  ;;  %v409_v4 = vmul.f32 0.2, %v281_v63 }
  0x9d   :  { %1275 = vst [vmem:[%s1634_s3 + $0xd8] sm:$0xff] %v1196_v45   ;;  %v1056_v53 = vunpack.c.l.bf16 %v1248_v44  ;;  %v1057_v57 = vunpack.c.h.bf16 %v1248_v44  ;;  %1276 = vst [vmem:[%s1634_s3 + $0xe0] sm:$0xff] %v1201_v54   ;;  %v472_v5 = vsel %vm344_vm12, %v280_v60, %v408_v0 }
  0x9e   :  { %1277 = vst [vmem:[%s1634_s3 + $0xe8] sm:$0xff] %v1206_v58  }
  0x9f   :  { %v211_v61 = vmul.f32 %v1056_v53, %v1306_v1  ;;  %v212_v62 = vmul.f32 %v1057_v57, %v1306_v1  ;;  %v473_v1 = vsel %vm345_vm13, %v281_v63, %v409_v4 }
  0xa0   :  { %v1211_v9 = vpack.c.bf16 %v473_v1, %v472_v5 }
  0xa1   :  { %v282_v2 = vadd.f32 %v1320_v7, %v211_v61  ;;  %v283_v3 = vadd.f32 %v1320_v7, %v212_v62 }
  0xa2   :  { %1278 = vst [vmem:[%s1634_s3 + $0xf0] sm:$0xff] %v1211_v9  }
  0xa3   :  { %vm346_vm14 = vcmp.gt.f32.partialorder %v282_v2, 0.0  ;;  %vm347_vm15 = vcmp.gt.f32.partialorder %v283_v3, 0.0  ;;  %v410_v6 = vmul.f32 0.2, %v282_v2  ;;  %v411_v8 = vmul.f32 0.2, %v283_v3 }
  0xa5   :  { %v474_v10 = vsel %vm346_vm14, %v282_v2, %v410_v6  ;;  %v475_v11 = vsel %vm347_vm15, %v283_v3, %v411_v8 }
  0xa6   :  { %v1216_v12 = vpack.c.bf16 %v475_v11, %v474_v10 }
  0xa8   :  { %1279 = vst [vmem:[%s1634_s3 + $0xf8] sm:$0xff] %v1216_v12  }

// kernel: discriminator_forward.14
= control target key start
LH: loop header
LB: loop body
LE: loop exit
PB: predicated region body
PF: predicated region fallthrough
CT: control target
= control target key end

     0   :  { %s975_s1 = inlined_call_operand.vmem [shape: bf16[256,128], index: 1, kind: input, shape index: {}]   ;;  %s976_s0 = inlined_call_operand.vmem [shape: bf16[128,256], index: 0, kind: input, shape index: {}]   ;;  %s977_s2 = inlined_call_operand.vmem [shape: bf16[128,128], index: 2, kind: output, shape index: {0}]   ;;  %s978_s3 = inlined_call_operand.vmem [shape: f32[1,1,128], index: 3, kind: output, shape index: {1}]   ;;  %s979_s4 = inlined_call_operand.vmem [shape: f32[1,1,128], index: 4, kind: output, shape index: {2}]  }
   0x1   :  { %v766_v0 = vld [vmem:[%s975_s1 + $0x40] sm:$0xff]   ;;  %v768_v2 = vld [vmem:[%s975_s1 + $0x48] sm:$0xff]   ;;  %v770_v4 = vld [vmem:[%s975_s1 + $0x50] sm:$0xff]  }
   0x2   :  { %v767_v1 = vld [vmem:[%s975_s1] sm:$0xff]   ;;  %686 = vmatprep.subr.bf16.mxu0 %v766_v0  ;;  %750 = vmatprep.subr.bf16.mxu1 %v766_v0  ;;  %v769_v3 = vld [vmem:[%s975_s1 + $0x8] sm:$0xff]   ;;  %v771_v5 = vld [vmem:[%s975_s1 + $0x10] sm:$0xff]  }
   0x3   :  { %687 = vmatpush3.bf16.msra.mxu0 %v767_v1  ;;  %758 = vmatpush3.bf16.msra.mxu1 %v767_v1  ;;  %v772_v6 = vld [vmem:[%s975_s1 + $0x58] sm:$0xff]   ;;  %v774_v8 = vld [vmem:[%s975_s1 + $0x60] sm:$0xff]   ;;  %v776_v10 = vld [vmem:[%s975_s1 + $0x68] sm:$0xff]  }
   0x4   :  { %688 = vmatprep.subr.bf16.mxu0 %v768_v2  ;;  %751 = vmatprep.subr.bf16.mxu1 %v768_v2  ;;  %v773_v7 = vld [vmem:[%s975_s1 + $0x18] sm:$0xff]   ;;  %v775_v9 = vld [vmem:[%s975_s1 + $0x20] sm:$0xff]   ;;  %v777_v12 = vld [vmem:[%s975_s1 + $0x28] sm:$0xff]  }
   0x5   :  { %v784_v11 = vld [vmem:[%s976_s0 + $0x4] ss:$8 sps:$4 sm:$0xff]   ;;  %v778_v14 = vld [vmem:[%s975_s1 + $0x70] sm:$0xff]   ;;  %v780_v16 = vld [vmem:[%s975_s1 + $0x78] sm:$0xff]  }
   0x6   :  { %v790_v13 = vld [vmem:[%s976_s0 + $0x44] ss:$8 sps:$4 sm:$0xff]   ;;  %307 = vmatprep.mubr.bf16.mxu0 %v784_v11  ;;  %v779_v15 = vld [vmem:[%s975_s1 + $0x30] sm:$0xff]   ;;  %v781_v17 = vld [vmem:[%s975_s1 + $0x38] sm:$0xff]  }
   0x7   :  { %689 = vmatpush3.bf16.msra.mxu0 %v769_v3  ;;  %759 = vmatpush3.bf16.msra.mxu1 %v769_v3  ;;  %v782_v18 = vld [vmem:[%s976_s0] ss:$8 sps:$4 sm:$0xff]   ;;  %v785_v20 = vld [vmem:[%s976_s0 + $0x14] ss:$8 sps:$4 sm:$0xff]   ;;  %v787_v22 = vld [vmem:[%s976_s0 + $0x10] ss:$8 sps:$4 sm:$0xff]  }
   0x8   :  { %690 = vmatprep.subr.bf16.mxu0 %v770_v4  ;;  %752 = vmatprep.subr.bf16.mxu1 %v770_v4  ;;  %v788_v19 = vld [vmem:[%s976_s0 + $0x40] ss:$8 sps:$4 sm:$0xff]   ;;  %v794_v21 = vld [vmem:[%s976_s0 + $0x54] ss:$8 sps:$4 sm:$0xff]   ;;  %v796_v23 = vld [vmem:[%s976_s0 + $0x50] ss:$8 sps:$4 sm:$0xff]  }
   0x9   :  { %339 = vmatprep.mubr.bf16.mxu1 %v790_v13  ;;  %v791_v24 = vld [vmem:[%s976_s0 + $0x24] ss:$8 sps:$4 sm:$0xff]   ;;  %v793_v26 = vld [vmem:[%s976_s0 + $0x20] ss:$8 sps:$4 sm:$0xff]   ;;  %v797_v28 = vld [vmem:[%s976_s0 + $0x34] ss:$8 sps:$4 sm:$0xff]  }
   0xa   :  { %v800_v25 = vld [vmem:[%s976_s0 + $0x64] ss:$8 sps:$4 sm:$0xff]   ;;  %v802_v27 = vld [vmem:[%s976_s0 + $0x60] ss:$8 sps:$4 sm:$0xff]   ;;  %v803_v29 = vld [vmem:[%s976_s0 + $0x74] ss:$8 sps:$4 sm:$0xff]  }
   0xb   :  { %691 = vmatpush3.bf16.msra.mxu0 %v771_v5  ;;  %760 = vmatpush3.bf16.msra.mxu1 %v771_v5  ;;  %v799_v30 = vld [vmem:[%s976_s0 + $0x30] ss:$8 sps:$4 sm:$0xff]  }
   0xc   :  { %692 = vmatprep.subr.bf16.mxu0 %v772_v6  ;;  %753 = vmatprep.subr.bf16.mxu1 %v772_v6  ;;  %v805_v31 = vld [vmem:[%s976_s0 + $0x70] ss:$8 sps:$4 sm:$0xff]  }
   0xf   :  { %693 = vmatpush3.bf16.msra.mxu0 %v773_v7  ;;  %761 = vmatpush3.bf16.msra.mxu1 %v773_v7 }
  0x10   :  { %694 = vmatprep.subr.bf16.mxu0 %v774_v8  ;;  %754 = vmatprep.subr.bf16.mxu1 %v774_v8 }
  0x13   :  { %695 = vmatpush3.bf16.msra.mxu0 %v775_v9  ;;  %762 = vmatpush3.bf16.msra.mxu1 %v775_v9 }
  0x14   :  { %696 = vmatprep.subr.bf16.mxu0 %v776_v10  ;;  %755 = vmatprep.subr.bf16.mxu1 %v776_v10 }
  0x17   :  { %697 = vmatpush3.bf16.msra.mxu0 %v777_v12  ;;  %763 = vmatpush3.bf16.msra.mxu1 %v777_v12 }
  0x18   :  { %698 = vmatprep.subr.bf16.mxu0 %v778_v14  ;;  %756 = vmatprep.subr.bf16.mxu1 %v778_v14 }
  0x1b   :  { %699 = vmatpush3.bf16.msra.mxu0 %v779_v15  ;;  %764 = vmatpush3.bf16.msra.mxu1 %v779_v15 }
  0x1c   :  { %700 = vmatprep.subr.bf16.mxu0 %v780_v16  ;;  %757 = vmatprep.subr.bf16.mxu1 %v780_v16 }
  0x1f   :  { %701 = vmatpush3.bf16.msra.mxu0 %v781_v17  ;;  %765 = vmatpush3.bf16.msra.mxu1 %v781_v17 }
  0x22   :  { %308 = vmatmul.mubr.bf16.vlgmr.msra.gmra.mrb[0].mxu0 %v782_v18  ;;  %340 = vmatmul.mubr.bf16.vlgmr.msra.gmra.mrb[0].mxu1 %v788_v19 }
  0x23   :  { %315 = vmatprep.mubr.bf16.mxu0 %v785_v20  ;;  %347 = vmatprep.mubr.bf16.mxu1 %v794_v21 }
  0x2a   :  { %316 = vmatmul.mubr.bf16.gmra.mrb[4].mxu0 %v787_v22  ;;  %348 = vmatmul.mubr.bf16.gmra.mrb[4].mxu1 %v796_v23 }
  0x2b   :  { %323 = vmatprep.mubr.bf16.mxu0 %v791_v24  ;;  %355 = vmatprep.mubr.bf16.mxu1 %v800_v25 }
  0x32   :  { %324 = vmatmul.mubr.bf16.gmra.mrb[8].mxu0 %v793_v26  ;;  %356 = vmatmul.mubr.bf16.gmra.mrb[8].mxu1 %v802_v27 }
  0x33   :  { %331 = vmatprep.mubr.bf16.mxu0 %v797_v28  ;;  %363 = vmatprep.mubr.bf16.mxu1 %v803_v29 }
  0x3a   :  { %332 = vmatmul.mubr.bf16.gmra.mrb[12].mxu0 %v799_v30  ;;  %364 = vmatmul.mubr.bf16.gmra.mrb[12].mxu1 %v805_v31 }
  0xf5   :  { %v702_v32 = vpop.f32.mrb[0].mxu0  ;;  %v726_v33 = vpop.f32.mrb[0].mxu1 }
  0xf6   :  { %v703_v34 = vpop.f32.mrb[1].mxu0  ;;  %v727_v35 = vpop.f32.mrb[1].mxu1 }
  0xf7   :  { %v704_v36 = vadd.f32 %v703_v34, %v702_v32  ;;  %v705_v37 = vpop.f32.mrb[2].mxu0  ;;  %v927_v38 = vadd.f32 %v727_v35, %v726_v33  ;;  %v729_v39 = vpop.f32.mrb[2].mxu1 }
  0xf8   :  { %v706_v40 = vpop.f32.mrb[3].mxu0  ;;  %v730_v41 = vpop.f32.mrb[3].mxu1 }
  0xf9   :  { %v707_v42 = vadd.f32 %v706_v40, %v705_v37  ;;  %v929_v43 = vadd.f32 %v730_v41, %v729_v39  ;;  %v525_v44 = vmul.f32 %v704_v36, %v704_v36 }
  0xfb   :  { %v642_v45 = vpack.c.bf16 %v707_v42, %v704_v36  ;;  %v503_v46 = vadd.f32 %v707_v42, %v704_v36  ;;  %v526_v47 = vmul.f32 %v707_v42, %v707_v42  ;;  %v662_v48 = vpack.c.bf16 %v929_v43, %v927_v38 }
  0xfd   :  { %643 = vst [vmem:[%s977_s2] sm:$0xff] %v642_v45   ;;  %v541_v49 = vadd.f32 %v526_v47, %v525_v44  ;;  %v708_v50 = vpop.f32.mrb[4].mxu0  ;;  %682 = vst [vmem:[%s977_s2 + $0x20] sm:$0xff] %v662_v48   ;;  %v732_v51 = vpop.f32.mrb[4].mxu1  ;;  %v533_v47 = vmul.f32 %v927_v38, %v927_v38 }
  0xfe   :  { %v709_v52 = vpop.f32.mrb[5].mxu0  ;;  %v733_v53 = vpop.f32.mrb[5].mxu1 }
  0xff   :  { %v710_v54 = vadd.f32 %v709_v52, %v708_v50  ;;  %v711_v55 = vpop.f32.mrb[6].mxu0  ;;  %v939_v56 = vadd.f32 %v733_v53, %v732_v51  ;;  %v735_v57 = vpop.f32.mrb[6].mxu1  ;;  %v534_v50 = vmul.f32 %v929_v43, %v929_v43 }
 0x100   :  { %v712_v58 = vpop.f32.mrb[7].mxu0  ;;  %v736_v59 = vpop.f32.mrb[7].mxu1 }
 0x101   :  { %v504_v60 = vadd.f32 %v710_v54, %v503_v46  ;;  %v527_v61 = vmul.f32 %v710_v54, %v710_v54  ;;  %v713_v62 = vadd.f32 %v712_v58, %v711_v55  ;;  %v737_v63 = vadd.f32 %v736_v59, %v735_v57 }
 0x102   :  { %v535_v53 = vmul.f32 %v939_v56, %v939_v56 }
 0x103   :  { %v542_v0 = vadd.f32 %v541_v49, %v527_v61  ;;  %v647_v1 = vpack.c.bf16 %v713_v62, %v710_v54  ;;  %v505_v2 = vadd.f32 %v713_v62, %v504_v60  ;;  %v528_v3 = vmul.f32 %v713_v62, %v713_v62 }
 0x104   :  { %v667_v4 = vpack.c.bf16 %v737_v63, %v939_v56  ;;  %v536_v57 = vmul.f32 %v737_v63, %v737_v63 }
 0x105   :  { %679 = vst [vmem:[%s977_s2 + $0x8] sm:$0xff] %v647_v1   ;;  %v543_v5 = vadd.f32 %v542_v0, %v528_v3  ;;  %v714_v6 = vpop.f32.mrb[8].mxu0  ;;  %v738_v7 = vpop.f32.mrb[8].mxu1 }
 0x106   :  { %v715_v8 = vpop.f32.mrb[9].mxu0  ;;  %683 = vst [vmem:[%s977_s2 + $0x28] sm:$0xff] %v667_v4   ;;  %v739_v9 = vpop.f32.mrb[9].mxu1 }
 0x107   :  { %v716_v10 = vadd.f32 %v715_v8, %v714_v6  ;;  %v717_v11 = vpop.f32.mrb[10].mxu0  ;;  %v740_v12 = vadd.f32 %v739_v9, %v738_v7  ;;  %v741_v13 = vpop.f32.mrb[10].mxu1 }
 0x108   :  { %v718_v14 = vpop.f32.mrb[11].mxu0  ;;  %v742_v15 = vpop.f32.mrb[11].mxu1 }
 0x109   :  { %v506_v16 = vadd.f32 %v716_v10, %v505_v2  ;;  %v529_v17 = vmul.f32 %v716_v10, %v716_v10  ;;  %v719_v18 = vadd.f32 %v718_v14, %v717_v11  ;;  %v743_v19 = vadd.f32 %v742_v15, %v741_v13 }
 0x10a   :  { %v537_v60 = vmul.f32 %v740_v12, %v740_v12 }
 0x10b   :  { %v544_v20 = vadd.f32 %v543_v5, %v529_v17  ;;  %v652_v21 = vpack.c.bf16 %v719_v18, %v716_v10  ;;  %v507_v22 = vadd.f32 %v719_v18, %v506_v16  ;;  %v530_v23 = vmul.f32 %v719_v18, %v719_v18 }
 0x10c   :  { %v672_v24 = vpack.c.bf16 %v743_v19, %v740_v12  ;;  %v538_v1 = vmul.f32 %v743_v19, %v743_v19 }
 0x10d   :  { %680 = vst [vmem:[%s977_s2 + $0x10] sm:$0xff] %v652_v21   ;;  %v545_v25 = vadd.f32 %v544_v20, %v530_v23  ;;  %v720_v26 = vpop.f32.mrb[12].mxu0  ;;  %v744_v27 = vpop.f32.mrb[12].mxu1 }
 0x10e   :  { %v721_v28 = vpop.f32.mrb[13].mxu0  ;;  %684 = vst [vmem:[%s977_s2 + $0x30] sm:$0xff] %v672_v24   ;;  %v745_v29 = vpop.f32.mrb[13].mxu1 }
 0x10f   :  { %v722_v30 = vadd.f32 %v721_v28, %v720_v26  ;;  %v723_v31 = vpop.f32.mrb[14].mxu0  ;;  %v746_v32 = vadd.f32 %v745_v29, %v744_v27  ;;  %v747_v33 = vpop.f32.mrb[14].mxu1 }
 0x110   :  { %v724_v34 = vpop.f32.mrb[15].mxu0  ;;  %v748_v35 = vpop.f32.mrb[15].mxu1 }
 0x111   :  { %v508_v36 = vadd.f32 %v722_v30, %v507_v22  ;;  %v531_v37 = vmul.f32 %v722_v30, %v722_v30  ;;  %v725_v39 = vadd.f32 %v724_v34, %v723_v31  ;;  %v749_v40 = vadd.f32 %v748_v35, %v747_v33 }
 0x112   :  { %v539_v2 = vmul.f32 %v746_v32, %v746_v32 }
 0x113   :  { %v546_v41 = vadd.f32 %v545_v25, %v531_v37  ;;  %v657_v42 = vpack.c.bf16 %v725_v39, %v722_v30  ;;  %v509_v44 = vadd.f32 %v725_v39, %v508_v36  ;;  %v532_v45 = vmul.f32 %v725_v39, %v725_v39 }
 0x114   :  { %v677_v46 = vpack.c.bf16 %v749_v40, %v746_v32  ;;  %v540_v6 = vmul.f32 %v749_v40, %v749_v40 }
 0x115   :  { %681 = vst [vmem:[%s977_s2 + $0x18] sm:$0xff] %v657_v42   ;;  %v510_v48 = vadd.f32 %v927_v38, %v509_v44  ;;  %v547_v49 = vadd.f32 %v546_v41, %v532_v45 }
 0x116   :  { %685 = vst [vmem:[%s977_s2 + $0x38] sm:$0xff] %v677_v46  }
 0x117   :  { %v511_v51 = vadd.f32 %v929_v43, %v510_v48  ;;  %v548_v52 = vadd.f32 %v547_v49, %v533_v47 }
 0x119   :  { %v549_v54 = vadd.f32 %v548_v52, %v534_v50  ;;  %v512_v55 = vadd.f32 %v939_v56, %v511_v51 }
 0x11b   :  { %v513_v58 = vadd.f32 %v737_v63, %v512_v55  ;;  %v550_v38 = vadd.f32 %v549_v54, %v535_v53 }
 0x11d   :  { %v514_v59 = vadd.f32 %v740_v12, %v513_v58  ;;  %v551_v61 = vadd.f32 %v550_v38, %v536_v57 }
 0x11f   :  { %v552_v62 = vadd.f32 %v551_v61, %v537_v60  ;;  %v515_v0 = vadd.f32 %v743_v19, %v514_v59 }
 0x121   :  { %v553_v3 = vadd.f32 %v552_v62, %v538_v1  ;;  %v516_v4 = vadd.f32 %v746_v32, %v515_v0 }
 0x123   :  { %v554_v43 = vadd.f32 %v553_v3, %v539_v2  ;;  %v517_v5 = vadd.f32 %v749_v40, %v516_v4 }
 0x125   :  { %v518_v7 = vrot.slane %v517_v5, 4  ;;  %v555_v8 = vadd.f32 %v554_v43, %v540_v6 }
 0x127   :  { %v519_v9 = vadd.f32 %v518_v7, %v517_v5  ;;  %v556_v10 = vrot.slane %v555_v8, 4 }
 0x129   :  { %v520_v56 = vrot.slane %v519_v9, 2  ;;  %v557_v11 = vadd.f32 %v556_v10, %v555_v8 }
 0x12b   :  { %v521_v63 = vadd.f32 %v520_v56, %v519_v9  ;;  %v558_v13 = vrot.slane %v557_v11, 2 }
 0x12d   :  { %v522_v14 = vrot.slane %v521_v63, 1  ;;  %v559_v12 = vadd.f32 %v558_v13, %v557_v11 }
 0x12f   :  { %v523_v15 = vadd.f32 %v522_v14, %v521_v63  ;;  %v560_v16 = vrot.slane %v559_v12, 1 }
 0x131   :  { %524 = vst [vmem:[%s978_s3] sm:$0x1] %v523_v15  ;;  %v561_v17 = vadd.f32 %v560_v16, %v559_v12 }
 0x133   :  { %562 = vst [vmem:[%s979_s4] sm:$0x1] %v561_v17 }

// kernel: discriminator_forward.15
= control target key start
LH: loop header
LB: loop body
LE: loop exit
PB: predicated region body
PF: predicated region fallthrough
CT: control target
= control target key end

     0   :  { %s455_s0 = inlined_call_operand.vmem [shape: bf16[128,128], index: 0, kind: input, shape index: {}, may-alias: {0,3}]   ;;  %s456_s1 = inlined_call_operand.vmem [shape: f32[1,128], index: 1, kind: input, shape index: {}]   ;;  %s457_s2 = inlined_call_operand.vmem [shape: f32[1,128], index: 2, kind: input, shape index: {}]   ;;  %s458_s3 = inlined_call_operand.vmem [shape: bf16[128,128], index: 3, kind: output, shape index: {}, may-alias: {0,3}]  }
   0x1   :  { %v259_v0 = vld [vmem:[%s455_s0] sm:$0xff]   ;;  %v330_v4 = vld [vmem:[%s455_s0 + $0x8] sm:$0xff]   ;;  %v331_v5 = vld [vmem:[%s455_s0 + $0x10] sm:$0xff]  }
   0x2   :  { %v370_v1 = vld [vmem:[%s456_s1] ss:$0 sm:$0xff]  ;;  %v260_v2 = vunpack.c.l.bf16 %v259_v0  ;;  %v261_v3 = vunpack.c.h.bf16 %v259_v0  ;;  %v332_v6 = vld [vmem:[%s455_s0 + $0x18] sm:$0xff]   ;;  %v264_v8 = vunpack.c.l.bf16 %v330_v4  ;;  %v265_v9 = vunpack.c.h.bf16 %v330_v4  ;;  %v334_v35 = vld [vmem:[%s455_s0 + $0x28] sm:$0xff]  }
   0x3   :  { %v384_v7 = vld [vmem:[%s457_s2] ss:$0 sm:$0xff]  ;;  %v268_v10 = vunpack.c.l.bf16 %v331_v5  ;;  %v269_v11 = vunpack.c.h.bf16 %v331_v5  ;;  %v272_v14 = vunpack.c.l.bf16 %v332_v6  ;;  %v273_v15 = vunpack.c.h.bf16 %v332_v6 }
   0x4   :  { %v53_v12 = vmul.f32 %v260_v2, %v370_v1  ;;  %v54_v13 = vmul.f32 %v261_v3, %v370_v1  ;;  %v55_v16 = vmul.f32 %v264_v8, %v370_v1  ;;  %v56_v17 = vmul.f32 %v265_v9, %v370_v1  ;;  %v333_v34 = vld [vmem:[%s455_s0 + $0x20] sm:$0xff]  }
   0x5   :  { %v57_v18 = vmul.f32 %v268_v10, %v370_v1  ;;  %v58_v19 = vmul.f32 %v269_v11, %v370_v1  ;;  %v59_v22 = vmul.f32 %v272_v14, %v370_v1  ;;  %v60_v23 = vmul.f32 %v273_v15, %v370_v1 }
   0x6   :  { %v76_v20 = vadd.f32 %v384_v7, %v53_v12  ;;  %v77_v21 = vadd.f32 %v384_v7, %v54_v13  ;;  %v78_v24 = vadd.f32 %v384_v7, %v55_v16  ;;  %v79_v25 = vadd.f32 %v384_v7, %v56_v17 }
   0x7   :  { %v80_v26 = vadd.f32 %v384_v7, %v57_v18  ;;  %v81_v27 = vadd.f32 %v384_v7, %v58_v19  ;;  %v82_v42 = vadd.f32 %v384_v7, %v59_v22  ;;  %v83_v43 = vadd.f32 %v384_v7, %v60_v23 }
   0x8   :  { %vm92_vm0 = vcmp.gt.f32.partialorder %v76_v20, 0.0  ;;  %vm93_vm1 = vcmp.gt.f32.partialorder %v77_v21, 0.0  ;;  %v108_v28 = vmul.f32 0.2, %v76_v20  ;;  %v109_v29 = vmul.f32 0.2, %v77_v21 }
   0x9   :  { %vm94_vm2 = vcmp.gt.f32.partialorder %v78_v24, 0.0  ;;  %vm95_vm3 = vcmp.gt.f32.partialorder %v79_v25, 0.0  ;;  %v110_v30 = vmul.f32 0.2, %v78_v24  ;;  %v111_v31 = vmul.f32 0.2, %v79_v25 }
   0xa   :  { %v124_v32 = vsel %vm92_vm0, %v76_v20, %v108_v28  ;;  %v125_v33 = vsel %vm93_vm1, %v77_v21, %v109_v29  ;;  %vm96_vm4 = vcmp.gt.f32.partialorder %v80_v26, 0.0  ;;  %vm97_vm5 = vcmp.gt.f32.partialorder %v81_v27, 0.0 }
   0xb   :  { %v293_v36 = vpack.c.bf16 %v125_v33, %v124_v32  ;;  %v126_v37 = vsel %vm94_vm2, %v78_v24, %v110_v30  ;;  %v127_v38 = vsel %vm95_vm3, %v79_v25, %v111_v31  ;;  %v112_v39 = vmul.f32 0.2, %v80_v26 }
   0xc   :  { %v298_v40 = vpack.c.bf16 %v127_v38, %v126_v37  ;;  %v113_v41 = vmul.f32 0.2, %v81_v27  ;;  %v276_v45 = vunpack.c.l.bf16 %v333_v34  ;;  %v277_v46 = vunpack.c.h.bf16 %v333_v34 }
   0xd   :  { %294 = vst [vmem:[%s458_s3] sm:$0xff] %v293_v36   ;;  %v128_v44 = vsel %vm96_vm4, %v80_v26, %v112_v39  ;;  %v280_v47 = vunpack.c.l.bf16 %v334_v35  ;;  %vm98_vm6 = vcmp.gt.f32.partialorder %v82_v42, 0.0  ;;  %vm99_vm7 = vcmp.gt.f32.partialorder %v83_v43, 0.0 }
   0xe   :  { %v129_v49 = vsel %vm97_vm5, %v81_v27, %v113_v41  ;;  %v114_v50 = vmul.f32 0.2, %v82_v42  ;;  %v115_v52 = vmul.f32 0.2, %v83_v43  ;;  %v61_v53 = vmul.f32 %v276_v45, %v370_v1 }
   0xf   :  { %v303_v51 = vpack.c.bf16 %v129_v49, %v128_v44  ;;  %v62_v54 = vmul.f32 %v277_v46, %v370_v1  ;;  %v281_v56 = vunpack.c.h.bf16 %v334_v35  ;;  %v63_v57 = vmul.f32 %v280_v47, %v370_v1 }
  0x10   :  { %v130_v55 = vsel %vm98_vm6, %v82_v42, %v114_v50  ;;  %v131_v59 = vsel %vm99_vm7, %v83_v43, %v115_v52  ;;  %v84_v60 = vadd.f32 %v384_v7, %v61_v53 }
  0x11   :  { %v85_v61 = vadd.f32 %v384_v7, %v62_v54  ;;  %v308_v63 = vpack.c.bf16 %v131_v59, %v130_v55  ;;  %v64_v0 = vmul.f32 %v281_v56, %v370_v1  ;;  %v86_v2 = vadd.f32 %v384_v7, %v63_v57 }
  0x12   :  { %vm100_vm8 = vcmp.gt.f32.partialorder %v84_v60, 0.0  ;;  %v116_v5 = vmul.f32 0.2, %v84_v60 }
  0x13   :  { %vm101_vm9 = vcmp.gt.f32.partialorder %v85_v61, 0.0  ;;  %v117_v6 = vmul.f32 0.2, %v85_v61  ;;  %v87_v8 = vadd.f32 %v384_v7, %v64_v0  ;;  %vm102_vm10 = vcmp.gt.f32.partialorder %v86_v2, 0.0 }
  0x14   :  { %v335_v48 = vld [vmem:[%s455_s0 + $0x30] sm:$0xff]   ;;  %v118_v9 = vmul.f32 0.2, %v86_v2  ;;  %v132_v11 = vsel %vm100_vm8, %v84_v60, %v116_v5 }
  0x15   :  { %337 = vst [vmem:[%s458_s3 + $0x8] sm:$0xff] %v298_v40   ;;  %v284_v58 = vunpack.c.l.bf16 %v335_v48  ;;  %338 = vst [vmem:[%s458_s3 + $0x10] sm:$0xff] %v303_v51   ;;  %v285_v62 = vunpack.c.h.bf16 %v335_v48  ;;  %v133_v12 = vsel %vm101_vm9, %v85_v61, %v117_v6  ;;  %vm103_vm11 = vcmp.gt.f32.partialorder %v87_v8, 0.0 }
  0x16   :  { %v313_v15 = vpack.c.bf16 %v133_v12, %v132_v11  ;;  %v119_v16 = vmul.f32 0.2, %v87_v8  ;;  %v134_v17 = vsel %vm102_vm10, %v86_v2, %v118_v9 }
  0x17   :  { %v65_v3 = vmul.f32 %v284_v58, %v370_v1  ;;  %v66_v10 = vmul.f32 %v285_v62, %v370_v1 }
  0x18   :  { %v135_v21 = vsel %vm103_vm11, %v87_v8, %v119_v16 }
  0x19   :  { %v88_v13 = vadd.f32 %v384_v7, %v65_v3  ;;  %v89_v18 = vadd.f32 %v384_v7, %v66_v10  ;;  %v318_v23 = vpack.c.bf16 %v135_v21, %v134_v17 }
  0x1b   :  { %vm104_vm12 = vcmp.gt.f32.partialorder %v88_v13, 0.0  ;;  %v120_v19 = vmul.f32 0.2, %v88_v13  ;;  %vm105_vm13 = vcmp.gt.f32.partialorder %v89_v18, 0.0  ;;  %v121_v24 = vmul.f32 0.2, %v89_v18 }
  0x1c   :  { %v336_v4 = vld [vmem:[%s455_s0 + $0x38] sm:$0xff]  }
  0x1d   :  { %339 = vst [vmem:[%s458_s3 + $0x18] sm:$0xff] %v308_v63   ;;  %v288_v14 = vunpack.c.l.bf16 %v336_v4  ;;  %v289_v20 = vunpack.c.h.bf16 %v336_v4  ;;  %340 = vst [vmem:[%s458_s3 + $0x20] sm:$0xff] %v313_v15   ;;  %v136_v25 = vsel %vm104_vm12, %v88_v13, %v120_v19  ;;  %v137_v28 = vsel %vm105_vm13, %v89_v18, %v121_v24 }
  0x1e   :  { %341 = vst [vmem:[%s458_s3 + $0x28] sm:$0xff] %v318_v23   ;;  %v323_v29 = vpack.c.bf16 %v137_v28, %v136_v25 }
  0x1f   :  { %v67_v22 = vmul.f32 %v288_v14, %v370_v1  ;;  %v68_v26 = vmul.f32 %v289_v20, %v370_v1 }
  0x20   :  { %342 = vst [vmem:[%s458_s3 + $0x30] sm:$0xff] %v323_v29  }
  0x21   :  { %v90_v27 = vadd.f32 %v384_v7, %v67_v22  ;;  %v91_v30 = vadd.f32 %v384_v7, %v68_v26 }
  0x23   :  { %vm106_vm14 = vcmp.gt.f32.partialorder %v90_v27, 0.0  ;;  %v122_v31 = vmul.f32 0.2, %v90_v27  ;;  %vm107_vm15 = vcmp.gt.f32.partialorder %v91_v30, 0.0  ;;  %v123_v32 = vmul.f32 0.2, %v91_v30 }
  0x25   :  { %v138_v33 = vsel %vm106_vm14, %v90_v27, %v122_v31  ;;  %v139_v1 = vsel %vm107_vm15, %v91_v30, %v123_v32 }
  0x26   :  { %v328_v34 = vpack.c.bf16 %v139_v1, %v138_v33 }
  0x28   :  { %343 = vst [vmem:[%s458_s3 + $0x38] sm:$0xff] %v328_v34  }

// kernel: discriminator_forward.16
= control target key start
LH: loop header
LB: loop body
LE: loop exit
PB: predicated region body
PF: predicated region fallthrough
CT: control target
= control target key end

     0   :  { %s816_s1 = inlined_call_operand.vmem [shape: bf16[512,128], index: 1, kind: input, shape index: {}]   ;;  %s817_s0 = inlined_call_operand.vmem [shape: bf16[32,512], index: 0, kind: input, shape index: {}]   ;;  %s818_s2 = inlined_call_operand.vmem [shape: bf16[32,128], index: 2, kind: output, shape index: {0}]   ;;  %s819_s3 = inlined_call_operand.vmem [shape: f32[1,1,128], index: 3, kind: output, shape index: {1}]   ;;  %s820_s4 = inlined_call_operand.vmem [shape: f32[1,1,128], index: 4, kind: output, shape index: {2}]  }
   0x1   :  { %v615_v0 = vld [vmem:[%s816_s1 + $0x40] sm:$0xff]   ;;  %v619_v4 = vld [vmem:[%s816_s1 + $0x48] sm:$0xff]   ;;  %v623_v8 = vld [vmem:[%s816_s1 + $0x50] sm:$0xff]  }
   0x2   :  { %v616_v1 = vld [vmem:[%s816_s1 + $0xc0] sm:$0xff]   ;;  %559 = vmatprep.subr.bf16.mxu0 %v615_v0  ;;  %v620_v5 = vld [vmem:[%s816_s1 + $0xc8] sm:$0xff]   ;;  %v624_v9 = vld [vmem:[%s816_s1 + $0xd0] sm:$0xff]  }
   0x3   :  { %v617_v2 = vld [vmem:[%s816_s1] sm:$0xff]   ;;  %587 = vmatprep.subr.bf16.mxu1 %v616_v1  ;;  %v621_v6 = vld [vmem:[%s816_s1 + $0x8] sm:$0xff]   ;;  %v625_v10 = vld [vmem:[%s816_s1 + $0x10] sm:$0xff]  }
   0x4   :  { %v618_v3 = vld [vmem:[%s816_s1 + $0x80] sm:$0xff]   ;;  %560 = vmatpush3.bf16.msra.mxu0 %v617_v2  ;;  %v622_v7 = vld [vmem:[%s816_s1 + $0x88] sm:$0xff]   ;;  %v626_v11 = vld [vmem:[%s816_s1 + $0x90] sm:$0xff]  }
   0x5   :  { %588 = vmatpush3.bf16.msra.mxu1 %v618_v3  ;;  %561 = vmatprep.subr.bf16.mxu0 %v619_v4  ;;  %v627_v12 = vld [vmem:[%s816_s1 + $0x58] sm:$0xff]   ;;  %v631_v16 = vld [vmem:[%s816_s1 + $0x60] sm:$0xff]   ;;  %v635_v20 = vld [vmem:[%s816_s1 + $0x68] sm:$0xff]  }
   0x6   :  { %589 = vmatprep.subr.bf16.mxu1 %v620_v5  ;;  %v628_v13 = vld [vmem:[%s816_s1 + $0xd8] sm:$0xff]   ;;  %v632_v17 = vld [vmem:[%s816_s1 + $0xe0] sm:$0xff]   ;;  %v636_v21 = vld [vmem:[%s816_s1 + $0xe8] sm:$0xff]  }
   0x7   :  { %v629_v14 = vld [vmem:[%s816_s1 + $0x18] sm:$0xff]   ;;  %v633_v18 = vld [vmem:[%s816_s1 + $0x20] sm:$0xff]   ;;  %v637_v22 = vld [vmem:[%s816_s1 + $0x28] sm:$0xff]  }
   0x8   :  { %562 = vmatpush3.bf16.msra.mxu0 %v621_v6  ;;  %v630_v15 = vld [vmem:[%s816_s1 + $0x98] sm:$0xff]   ;;  %v634_v19 = vld [vmem:[%s816_s1 + $0xa0] sm:$0xff]   ;;  %v638_v23 = vld [vmem:[%s816_s1 + $0xa8] sm:$0xff]  }
   0x9   :  { %590 = vmatpush3.bf16.msra.mxu1 %v622_v7  ;;  %563 = vmatprep.subr.bf16.mxu0 %v623_v8  ;;  %v639_v24 = vld [vmem:[%s816_s1 + $0x70] sm:$0xff]   ;;  %v643_v28 = vld [vmem:[%s816_s1 + $0x78] sm:$0xff]  }
   0xa   :  { %591 = vmatprep.subr.bf16.mxu1 %v624_v9  ;;  %v640_v25 = vld [vmem:[%s816_s1 + $0xf0] sm:$0xff]   ;;  %v644_v29 = vld [vmem:[%s816_s1 + $0xf8] sm:$0xff]  }
   0xb   :  { %v641_v26 = vld [vmem:[%s816_s1 + $0x30] sm:$0xff]   ;;  %v645_v30 = vld [vmem:[%s816_s1 + $0x38] sm:$0xff]  }
   0xc   :  { %564 = vmatpush3.bf16.msra.mxu0 %v625_v10  ;;  %v642_v27 = vld [vmem:[%s816_s1 + $0xb0] sm:$0xff]   ;;  %v646_v31 = vld [vmem:[%s816_s1 + $0xb8] sm:$0xff]  }
   0xd   :  { %592 = vmatpush3.bf16.msra.mxu1 %v626_v11  ;;  %565 = vmatprep.subr.bf16.mxu0 %v627_v12  ;;  %v647_v32 = vld [vmem:[%s817_s0] ss:$16 sps:$4 sm:$0xff]   ;;  %v649_v33 = vld [vmem:[%s817_s0 + $0x4] ss:$16 sps:$4 sm:$0xff]   ;;  %v650_v34 = vld [vmem:[%s817_s0 + $0x8] ss:$16 sps:$4 sm:$0xff]  }
   0xe   :  { %593 = vmatprep.subr.bf16.mxu1 %v628_v13  ;;  %v652_v35 = vld [vmem:[%s817_s0 + $0xc] ss:$16 sps:$4 sm:$0xff]   ;;  %363 = vmatprep.mubr.bf16.mxu0 %v649_v33  ;;  %v653_v36 = vld [vmem:[%s817_s0 + $0x24] ss:$16 sps:$4 sm:$0xff]   ;;  %v657_v38 = vld [vmem:[%s817_s0 + $0x20] ss:$16 sps:$4 sm:$0xff]  }
   0xf   :  { %412 = vmatprep.mubr.bf16.mxu1 %v652_v35  ;;  %v655_v37 = vld [vmem:[%s817_s0 + $0x2c] ss:$16 sps:$4 sm:$0xff]   ;;  %v658_v39 = vld [vmem:[%s817_s0 + $0x28] ss:$16 sps:$4 sm:$0xff]  }
  0x10   :  { %566 = vmatpush3.bf16.msra.mxu0 %v629_v14 }
  0x11   :  { %594 = vmatpush3.bf16.msra.mxu1 %v630_v15  ;;  %567 = vmatprep.subr.bf16.mxu0 %v631_v16 }
  0x12   :  { %595 = vmatprep.subr.bf16.mxu1 %v632_v17 }
  0x14   :  { %568 = vmatpush3.bf16.msra.mxu0 %v633_v18 }
  0x15   :  { %596 = vmatpush3.bf16.msra.mxu1 %v634_v19  ;;  %569 = vmatprep.subr.bf16.mxu0 %v635_v20 }
  0x16   :  { %597 = vmatprep.subr.bf16.mxu1 %v636_v21 }
  0x18   :  { %570 = vmatpush3.bf16.msra.mxu0 %v637_v22 }
  0x19   :  { %598 = vmatpush3.bf16.msra.mxu1 %v638_v23  ;;  %571 = vmatprep.subr.bf16.mxu0 %v639_v24 }
  0x1a   :  { %599 = vmatprep.subr.bf16.mxu1 %v640_v25 }
  0x1c   :  { %572 = vmatpush3.bf16.msra.mxu0 %v641_v26 }
  0x1d   :  { %600 = vmatpush3.bf16.msra.mxu1 %v642_v27  ;;  %573 = vmatprep.subr.bf16.mxu0 %v643_v28 }
  0x1e   :  { %601 = vmatprep.subr.bf16.mxu1 %v644_v29 }
  0x20   :  { %574 = vmatpush3.bf16.msra.mxu0 %v645_v30 }
  0x21   :  { %602 = vmatpush3.bf16.msra.mxu1 %v646_v31 }
  0x23   :  { %364 = vmatmul.mubr.bf16.vlgmr.msra.gmra.mrb[0].mxu0 %v647_v32 }
  0x24   :  { %413 = vmatmul.mubr.bf16.vlgmr.msra.gmra.mrb[0].mxu1 %v650_v34  ;;  %371 = vmatprep.mubr.bf16.mxu0 %v653_v36 }
  0x25   :  { %420 = vmatprep.mubr.bf16.mxu1 %v655_v37 }
  0x2b   :  { %372 = vmatmul.mubr.bf16.gmra.mrb[4].mxu0 %v657_v38 }
  0x2c   :  { %421 = vmatmul.mubr.bf16.gmra.mrb[4].mxu1 %v658_v39 }
  0xf6   :  { %v575_v40 = vpop.f32.mrb[0].mxu0 }
  0xf7   :  { %v603_v41 = vpop.f32.mrb[0].mxu1  ;;  %v576_v42 = vpop.f32.mrb[1].mxu0 }
  0xf8   :  { %v577_v43 = vadd.f32 %v576_v42, %v575_v40  ;;  %v604_v44 = vpop.f32.mrb[1].mxu1  ;;  %v578_v45 = vpop.f32.mrb[2].mxu0 }
  0xf9   :  { %v605_v46 = vadd.f32 %v604_v44, %v603_v41  ;;  %v606_v47 = vpop.f32.mrb[2].mxu1  ;;  %v579_v48 = vpop.f32.mrb[3].mxu0 }
  0xfa   :  { %v580_v49 = vadd.f32 %v579_v48, %v578_v45  ;;  %v607_v50 = vpop.f32.mrb[3].mxu1 }
  0xfb   :  { %v415_v51 = vadd.f32 %v605_v46, %v577_v43  ;;  %v608_v52 = vadd.f32 %v607_v50, %v606_v47 }
  0xfd   :  { %v418_v53 = vadd.f32 %v608_v52, %v580_v49  ;;  %v474_v55 = vmul.f32 %v415_v51, %v415_v51 }
  0xfe   :  { %v581_v54 = vpop.f32.mrb[4].mxu0 }
  0xff   :  { %v551_v56 = vpack.c.bf16 %v418_v53, %v415_v51  ;;  %v464_v57 = vadd.f32 %v418_v53, %v415_v51  ;;  %v475_v58 = vmul.f32 %v418_v53, %v418_v53  ;;  %v609_v59 = vpop.f32.mrb[4].mxu1  ;;  %v582_v60 = vpop.f32.mrb[5].mxu0 }
 0x100   :  { %v583_v61 = vadd.f32 %v582_v60, %v581_v54  ;;  %v610_v62 = vpop.f32.mrb[5].mxu1  ;;  %v584_v63 = vpop.f32.mrb[6].mxu0 }
 0x101   :  { %552 = vst [vmem:[%s818_s2] sm:$0xff] %v551_v56   ;;  %v478_v0 = vadd.f32 %v475_v58, %v474_v55  ;;  %v611_v1 = vadd.f32 %v610_v62, %v609_v59  ;;  %v612_v2 = vpop.f32.mrb[6].mxu1  ;;  %v585_v3 = vpop.f32.mrb[7].mxu0 }
 0x102   :  { %v586_v4 = vadd.f32 %v585_v3, %v584_v63  ;;  %v613_v5 = vpop.f32.mrb[7].mxu1 }
 0x103   :  { %v423_v6 = vadd.f32 %v611_v1, %v583_v61  ;;  %v614_v7 = vadd.f32 %v613_v5, %v612_v2 }
 0x105   :  { %v465_v8 = vadd.f32 %v464_v57, %v423_v6  ;;  %v476_v9 = vmul.f32 %v423_v6, %v423_v6  ;;  %v426_v10 = vadd.f32 %v614_v7, %v586_v4 }
 0x107   :  { %v479_v11 = vadd.f32 %v478_v0, %v476_v9  ;;  %v556_v12 = vpack.c.bf16 %v426_v10, %v423_v6  ;;  %v466_v13 = vadd.f32 %v465_v8, %v426_v10  ;;  %v477_v14 = vmul.f32 %v426_v10, %v426_v10 }
 0x109   :  { %558 = vst [vmem:[%s818_s2 + $0x8] sm:$0xff] %v556_v12   ;;  %v467_v15 = vrot.slane %v466_v13, 4  ;;  %v480_v16 = vadd.f32 %v479_v11, %v477_v14 }
 0x10b   :  { %v468_v17 = vadd.f32 %v467_v15, %v466_v13  ;;  %v481_v18 = vrot.slane %v480_v16, 4 }
 0x10d   :  { %v469_v19 = vrot.slane %v468_v17, 2  ;;  %v482_v20 = vadd.f32 %v481_v18, %v480_v16 }
 0x10f   :  { %v470_v21 = vadd.f32 %v469_v19, %v468_v17  ;;  %v483_v22 = vrot.slane %v482_v20, 2 }
 0x111   :  { %v471_v23 = vrot.slane %v470_v21, 1  ;;  %v484_v24 = vadd.f32 %v483_v22, %v482_v20 }
 0x113   :  { %v472_v25 = vadd.f32 %v471_v23, %v470_v21  ;;  %v485_v26 = vrot.slane %v484_v24, 1 }
 0x115   :  { %473 = vst [vmem:[%s819_s3] sm:$0x1] %v472_v25  ;;  %v486_v27 = vadd.f32 %v485_v26, %v484_v24 }
 0x117   :  { %487 = vst [vmem:[%s820_s4] sm:$0x1] %v486_v27 }

// kernel: discriminator_forward.17
= control target key start
LH: loop header
LB: loop body
LE: loop exit
PB: predicated region body
PF: predicated region fallthrough
CT: control target
= control target key end

     0   :  { %s148_s0 = inlined_call_operand.vmem [shape: bf16[32,128], index: 0, kind: input, shape index: {}, may-alias: {0,3}]   ;;  %s149_s1 = inlined_call_operand.vmem [shape: f32[1,128], index: 1, kind: input, shape index: {}]   ;;  %s150_s2 = inlined_call_operand.vmem [shape: f32[1,128], index: 2, kind: input, shape index: {}]   ;;  %s151_s3 = inlined_call_operand.vmem [shape: bf16[32,128], index: 3, kind: output, shape index: {}, may-alias: {0,3}]  }
   0x1   :  { %v91_v0 = vld [vmem:[%s148_s0] sm:$0xff]   ;;  %v108_v4 = vld [vmem:[%s148_s0 + $0x8] sm:$0xff]  }
   0x2   :  { %v80_v1 = vld [vmem:[%s149_s1] ss:$0 sm:$0xff]  ;;  %v92_v2 = vunpack.c.l.bf16 %v91_v0  ;;  %v93_v3 = vunpack.c.h.bf16 %v91_v0  ;;  %v96_v6 = vunpack.c.l.bf16 %v108_v4  ;;  %v97_v7 = vunpack.c.h.bf16 %v108_v4 }
   0x3   :  { %v81_v5 = vld [vmem:[%s150_s2] ss:$0 sm:$0xff] }
   0x4   :  { %v29_v8 = vmul.f32 %v92_v2, %v80_v1  ;;  %v30_v9 = vmul.f32 %v93_v3, %v80_v1  ;;  %v31_v10 = vmul.f32 %v96_v6, %v80_v1  ;;  %v32_v11 = vmul.f32 %v97_v7, %v80_v1 }
   0x6   :  { %v40_v12 = vadd.f32 %v81_v5, %v29_v8  ;;  %v41_v13 = vadd.f32 %v81_v5, %v30_v9  ;;  %v42_v14 = vadd.f32 %v81_v5, %v31_v10  ;;  %v43_v15 = vadd.f32 %v81_v5, %v32_v11 }
   0x8   :  { %vm44_vm0 = vcmp.gt.f32.partialorder %v40_v12, 0.0  ;;  %vm45_vm1 = vcmp.gt.f32.partialorder %v41_v13, 0.0  ;;  %v48_v16 = vmul.f32 0.2, %v40_v12  ;;  %v49_v17 = vmul.f32 0.2, %v41_v13 }
   0x9   :  { %vm46_vm2 = vcmp.gt.f32.partialorder %v42_v14, 0.0  ;;  %vm47_vm3 = vcmp.gt.f32.partialorder %v43_v15, 0.0  ;;  %v50_v18 = vmul.f32 0.2, %v42_v14  ;;  %v51_v19 = vmul.f32 0.2, %v43_v15 }
   0xa   :  { %v52_v20 = vsel %vm44_vm0, %v40_v12, %v48_v16  ;;  %v53_v21 = vsel %vm45_vm1, %v41_v13, %v49_v17 }
   0xb   :  { %v101_v22 = vpack.c.bf16 %v53_v21, %v52_v20  ;;  %v54_v23 = vsel %vm46_vm2, %v42_v14, %v50_v18  ;;  %v55_v24 = vsel %vm47_vm3, %v43_v15, %v51_v19 }
   0xc   :  { %v106_v25 = vpack.c.bf16 %v55_v24, %v54_v23 }
   0xd   :  { %102 = vst [vmem:[%s151_s3] sm:$0xff] %v101_v22  }
   0xe   :  { %109 = vst [vmem:[%s151_s3 + $0x8] sm:$0xff] %v106_v25  }

</bundles_post_ra>
